<compile_context>
chip_gen: v6e
topology: v6e:2x2x1
jax: 0.10.0
libtpu: 0.0.40
codegen_flags: <defaults>
</compile_context>

<pallas_src>
import functools

import jax
import jax.numpy as jnp
from jax.experimental import pallas as pl
from jax.experimental.pallas import tpu as pltpu

DIL = 6        # dilation of the 3x3 conv
KS = 3         # 3x3 spatial kernel
ECA_K = 3      # conv1d kernel size (ECA attention)
BN_EPS = 1e-5


def _vmem_capacity_bytes():
    try:
        return int(getattr(pltpu.get_tpu_info(), "vmem_capacity_bytes", 128 << 20))
    except Exception:
        return 128 << 20


# ----------------------------------------------------------------------------
# Kernel 1: dilated 3x3 conv.  Per grid step: B padded samples, flattened to
# (Hp*Wp, C) rows each, live in VMEM.  For each of the 9 taps the valid rows
# are copied into a compact (B*H*W, C) scratch (strided VMEM copies, cheap vs
# the MXU work) and one accumulating bf16 MXU dot is run against that tap's
# (C, C) weight.  Also emits per-block channel sum / sum-of-squares so the
# training-mode BatchNorm statistics need no extra HBM pass.
# ----------------------------------------------------------------------------
def _dilated_conv_kernel(x_ref, w_ref, b_ref, z_ref, sum_ref, sq_ref,
                         col_ref, acc_ref, *, H, W, Wp, B):
    HW = H * W
    for t in range(KS * KS):
        kh, kw = divmod(t, KS)
        base = kh * DIL * Wp + kw * DIL
        # Gather this tap's rows into the compact scratch (static offsets ->
        # simple unrolled strided VMEM copies; the matmul dominates).
        for b in range(B):
            for h in range(H):
                col_ref[pl.ds(b * HW + h * W, W), :] = (
                    x_ref[b, pl.ds(base + h * Wp, W), :])
        d = jnp.dot(col_ref[...], w_ref[t],
                    preferred_element_type=jnp.float32)
        if t == 0:
            acc_ref[...] = d
        else:
            acc_ref[...] += d
    z = acc_ref[...] + b_ref[...]                        # (B*H*W, C) f32
    z_ref[...] = z.astype(z_ref.dtype)                   # bf16 writeback
    sum_ref[0] = jnp.sum(z, axis=0, keepdims=True)       # (1, C)
    sq_ref[0] = jnp.sum(z * z, axis=0, keepdims=True)    # (1, C)


# ----------------------------------------------------------------------------
# Kernel 2: folded BatchNorm + ReLU + per-sample GAP + ECA channel conv
# (banded-matrix matmul, one batched dot) + sigmoid + channel re-scaling.
# ----------------------------------------------------------------------------
def _bn_eca_kernel(z_ref, inv_ref, shift_ref, tmat_ref, b1d_ref, o_ref):
    # BN with pre-folded scale/shift, then ReLU.
    a = jnp.maximum(z_ref[...].astype(jnp.float32) * inv_ref[...]
                    + shift_ref[...], 0.0)               # (B, HW, C)
    gap = jnp.mean(a, axis=1)                            # (B, C)
    # ECA: zero-padded k=3 conv over channels == gap @ banded (C, C) matrix.
    y = jnp.dot(gap, tmat_ref[...],
                preferred_element_type=jnp.float32) + b1d_ref[...]
    s = 1.0 / (1.0 + jnp.exp(-y))                        # sigmoid, (B, C)
    o_ref[...] = (a * s[:, None, :]).astype(o_ref.dtype)


@jax.jit
def eca_attention_forward(x_nchw, params):
    N, C, H, W = x_nchw.shape
    HW = H * W
    pad = DIL * (KS - 1) // 2                                        # = 6
    Hp, Wp = H + 2 * pad, W + 2 * pad

    # ---- layout prep (fused by XLA): NHWC, bf16, halo pad, flatten rows ----
    # TODO(synk): if the surrounding model runs NHWC natively, the two
    # NCHW<->NHWC transposes (one full HBM pass each) can be dropped.
    x = jnp.transpose(x_nchw, (0, 2, 3, 1)).astype(jnp.bfloat16)
    x_pad = jnp.pad(x, ((0, 0), (pad, pad), (pad, pad), (0, 0)))
    x_flat = x_pad.reshape(N, Hp * Wp, C)

    w_taps = params["conv2d_w_taps"].astype(jnp.bfloat16)            # (9, C, C)
    b2d = params["conv2d_b"].reshape(1, C).astype(jnp.float32)

    # ---- generation-aware block sizing --------------------------------------
    vmem_cap = _vmem_capacity_bytes()          # 64 MiB on v7x, 128 MiB v5e/v6e
    vmem_budget = (vmem_cap * 3) // 4          # headroom for Mosaic scratch
    rows_target = 2048 if vmem_cap >= (96 << 20) else 1024

    def k1_bytes(blk):
        return (2 * blk * Hp * Wp * C * 2      # x blocks (bf16, double-buffered)
                + 2 * blk * HW * C * 2         # z blocks (bf16, double-buffered)
                + blk * HW * C * (2 + 4)       # col (bf16) + acc (f32) scratch
                + KS * KS * C * C * 2          # weight slab (single-buffered)
                + 16 * C * 4)                  # bias + stat blocks

    blk1 = 1
    for d in range(1, N + 1):
        if N % d:
            continue
        if N >= 2 and N // d < 2:      # keep >=2 grid steps (v7x has 2 TCs)
            continue
        if d > 1 and d * HW > rows_target:
            continue
        if k1_bytes(d) > vmem_budget:
            continue
        blk1 = d
    g1 = N // blk1
    rows = blk1 * HW
    # TODO(synk): for very large H*W a single padded sample no longer fits
    # VMEM; add halo blocking over H (manual DMA) for that regime.

    conv_fn = pl.pallas_call(
        functools.partial(_dilated_conv_kernel, H=H, W=W, Wp=Wp, B=blk1),
        out_shape=(jax.ShapeDtypeStruct((N * HW, C), jnp.bfloat16),
                   jax.ShapeDtypeStruct((g1, 1, C), jnp.float32),
                   jax.ShapeDtypeStruct((g1, 1, C), jnp.float32)),
        grid=(g1,),
        in_specs=[
            pl.BlockSpec((blk1, Hp * Wp, C), lambda n: (n, 0, 0)),
            pl.BlockSpec((KS * KS, C, C), lambda n: (0, 0, 0),
                         pipeline_mode=pl.Buffered(1)),
            pl.BlockSpec((1, C), lambda n: (0, 0),
                         pipeline_mode=pl.Buffered(1)),
        ],
        out_specs=(
            pl.BlockSpec((rows, C), lambda n: (n, 0)),
            pl.BlockSpec((1, 1, C), lambda n: (n, 0, 0)),
            pl.BlockSpec((1, 1, C), lambda n: (n, 0, 0)),
        ),
        scratch_shapes=[pltpu.VMEM((rows, C), jnp.bfloat16),
                        pltpu.VMEM((rows, C), jnp.float32)],
        compiler_params=pltpu.CompilerParams(
            dimension_semantics=("parallel",),
            vmem_limit_bytes=int(min(max(2 * k1_bytes(blk1), 16 << 20),
                                     vmem_budget))),
    )
    z_flat, zsum, zsq = conv_fn(x_flat, w_taps, b2d)

    # ---- training-mode BatchNorm stats, folded into per-channel inv/shift ---
    # NOTE: matches nn.BatchNorm2d in training mode (batch statistics, biased
    # variance).  Eval mode would use running_mean/running_var instead.
    cnt = jnp.float32(N * HW)
    mean_c = jnp.sum(zsum, axis=(0, 1)) / cnt
    var_c = jnp.maximum(jnp.sum(zsq, axis=(0, 1)) / cnt - mean_c * mean_c, 0.0)
    gamma = params["bn_gamma"].astype(jnp.float32)
    beta = params["bn_beta"].astype(jnp.float32)
    inv_c = gamma * jax.lax.rsqrt(var_c + BN_EPS)
    inv = inv_c.reshape(1, 1, C)
    shift = (beta - mean_c * inv_c).reshape(1, 1, C)

    # ---- ECA channel conv (k=3, zero padded) as a banded (C, C) matrix ------
    w1d = params["conv1d_w"].astype(jnp.float32)                     # (3,)
    rr = jnp.arange(C)[:, None]
    cc = jnp.arange(C)[None, :]
    t_mat = (jnp.where(rr == cc - 1, w1d[0], 0.0)
             + jnp.where(rr == cc, w1d[1], 0.0)
             + jnp.where(rr == cc + 1, w1d[2], 0.0)).astype(jnp.float32)
    b1d = jnp.broadcast_to(
        params["conv1d_b"].astype(jnp.float32).reshape(1, 1), (1, C))

    # ---- BN/ReLU/GAP/ECA/scale blocking -------------------------------------
    def k2_bytes(blk):
        return (2 * blk * HW * C * 2           # z in blocks (bf16)
                + 2 * blk * HW * C * 4         # out blocks (f32)
                + C * C * 4                    # banded ECA matrix (1 buffer)
                + 16 * C * 4)                  # inv/shift/bias vectors

    blk2 = 1
    for d in range(1, N + 1):
        if N % d:
            continue
        if N >= 2 and N // d < 2:
            continue
        if k2_bytes(d) > vmem_budget:
            continue
        blk2 = d
    g2 = N // blk2

    z3 = z_flat.reshape(N, HW, C)
    attn_fn = pl.pallas_call(
        _bn_eca_kernel,
        out_shape=jax.ShapeDtypeStruct((N, HW, C), jnp.float32),
        grid=(g2,),
        in_specs=[
            pl.BlockSpec((blk2, HW, C), lambda n: (n, 0, 0)),
            pl.BlockSpec((1, 1, C), lambda n: (0, 0, 0),
                         pipeline_mode=pl.Buffered(1)),
            pl.BlockSpec((1, 1, C), lambda n: (0, 0, 0),
                         pipeline_mode=pl.Buffered(1)),
            pl.BlockSpec((C, C), lambda n: (0, 0),
                         pipeline_mode=pl.Buffered(1)),
            pl.BlockSpec((1, C), lambda n: (0, 0),
                         pipeline_mode=pl.Buffered(1)),
        ],
        out_specs=pl.BlockSpec((blk2, HW, C), lambda n: (n, 0, 0)),
        compiler_params=pltpu.CompilerParams(
            dimension_semantics=("parallel",),
            vmem_limit_bytes=int(min(max(2 * k2_bytes(blk2), 16 << 20),
                                     vmem_budget))),
    )
    out = attn_fn(z3, inv, shift, t_mat, b1d)

    out = out.reshape(N, H, W, C)
    # TODO(synk): padding C 320->384 (3 lane tiles) would make every store
    # lane-dense; measure before committing (+20% bytes / FLOPs).
    return jnp.transpose(out, (0, 3, 1, 2))                          # NCHW


def make_params(key, C):
    k1, k2, k3, k4, k5, k6 = jax.random.split(key, 6)
    # Conv2d(320, 320, 3, 3) weight in PyTorch layout (Cout, Cin, kh, kw).
    fan_out = C * KS * KS
    w2d = jax.random.normal(k1, (C, C, KS, KS), jnp.float32) * (2.0 / fan_out) ** 0.5
    b2d = jax.random.normal(k2, (C,), jnp.float32) * 0.01
    # Reorganize to (9, Cin, Cout): tap index = kh*3 + kw, ready for x @ W.
    w_taps = jnp.transpose(w2d, (2, 3, 1, 0)).reshape(KS * KS, C, C)

    bn_gamma = 1.0 + 0.1 * jax.random.normal(k3, (C,), jnp.float32)
    bn_beta = 0.1 * jax.random.normal(k4, (C,), jnp.float32)

    # Conv1d(1, 1, 3, padding=1) -> weight (3,), bias (1,) (bias=True default).
    w1d = 0.5 * jax.random.normal(k5, (ECA_K,), jnp.float32)
    b1d = 0.1 * jax.random.normal(k6, (1,), jnp.float32)

    return {
        "conv2d_w_taps": w_taps,
        "conv2d_b": b2d,
        "bn_gamma": bn_gamma,
        "bn_beta": bn_beta,
        "conv1d_w": w1d,
        "conv1d_b": b1d,
    }


def _reference_forward(x_nchw, params):
    """Pure-JAX f32 reference of the PyTorch forward (training-mode BN)."""
    N, C, H, W = x_nchw.shape
    pad = DIL * (KS - 1) // 2
    x = jnp.transpose(x_nchw, (0, 2, 3, 1)).astype(jnp.float32)
    xp = jnp.pad(x, ((0, 0), (pad, pad), (pad, pad), (0, 0)))
    w_taps = params["conv2d_w_taps"].astype(jnp.float32)             # (9, C, C)
    acc = jnp.zeros((N, H, W, C), jnp.float32)
    for t in range(KS * KS):
        kh, kw = divmod(t, KS)
        acc = acc + jnp.einsum(
            "nhwc,cd->nhwd",
            xp[:, kh * DIL:kh * DIL + H, kw * DIL:kw * DIL + W, :],
            w_taps[t], precision=jax.lax.Precision.HIGHEST)
    z = acc + params["conv2d_b"].astype(jnp.float32)
    mean = jnp.mean(z, axis=(0, 1, 2))
    var = jnp.var(z, axis=(0, 1, 2))
    a = jnp.maximum((z - mean) * params["bn_gamma"] * jax.lax.rsqrt(var + BN_EPS)
                    + params["bn_beta"], 0.0)
    gap = jnp.mean(a, axis=(1, 2))                                   # (N, C)
    w1 = params["conv1d_w"].astype(jnp.float32)
    gpad = jnp.pad(gap, ((0, 0), (1, 1)))
    y = (w1[0] * gpad[:, :-2] + w1[1] * gpad[:, 1:-1] + w1[2] * gpad[:, 2:]
         + params["conv1d_b"][0])
    s = jax.nn.sigmoid(y)                                            # (N, C)
    out = a * s[:, None, None, :]
    return jnp.transpose(out, (0, 3, 1, 2))


if __name__ == "__main__":
    key = jax.random.PRNGKey(0)
    kx, kp = jax.random.split(key)

    # The module hard-codes 320 channels in the dilated conv; keep spatial small.
    N, C, H, W = 2, 320, 8, 8
    x = jax.random.normal(kx, (N, C, H, W), jnp.float32)
    params = make_params(kp, C)

    out = eca_attention_forward(x, params)
    jax.block_until_ready(out)
    assert out.shape == (N, C, H, W)

    # Loose check vs a pure-JAX f32 reference (bf16 MXU inputs => ~1e-2 dev).
    ref = _reference_forward(x, params)
    max_err = float(jnp.max(jnp.abs(out - ref)))
    assert max_err < 0.1, f"max abs error vs reference: {max_err}"
    print("KERNEL_OK")
</pallas_src>

<mosaic_0001>
module attributes {stable_mosaic.version = 11 : i64} {
  func.func @_dilated_conv_kernel(%arg0: i32, %arg1: memref<1x400x320xbf16, #tpu.memory_space<vmem>>, %arg2: memref<9x320x320xbf16, #tpu.memory_space<vmem>>, %arg3: memref<1x320xf32, #tpu.memory_space<vmem>>, %arg4: memref<64x320xbf16, #tpu.memory_space<vmem>>, %arg5: memref<1x1x320xf32, #tpu.memory_space<vmem>>, %arg6: memref<1x1x320xf32, #tpu.memory_space<vmem>>, %arg7: memref<64x320xbf16, #tpu.memory_space<vmem>>, %arg8: memref<64x320xf32, #tpu.memory_space<vmem>>) attributes {dimension_semantics = [#tpu.dimension_semantics<parallel>], iteration_bounds = array<i64: 2>, scalar_prefetch = 0 : i64, scratch_operands = 2 : i64, tpu.core_type = #tpu.core_type<tc>, window_params = [{transform_indices = @transform_0, window_bounds = array<i64: 1, 400, 320>}, {pipeline_mode = #tpu.pipeline_mode<synchronous>, transform_indices = @transform_1, window_bounds = array<i64: 9, 320, 320>}, {pipeline_mode = #tpu.pipeline_mode<synchronous>, transform_indices = @transform_2, window_bounds = array<i64: 1, 320>}, {transform_indices = @transform_3, window_bounds = array<i64: 64, 320>}, {transform_indices = @transform_4, window_bounds = array<i64: 1, 1, 320>}, {transform_indices = @transform_5, window_bounds = array<i64: 1, 1, 320>}]} {
    %c0 = arith.constant 0 : index
    %c0_0 = arith.constant 0 : index
    %c0_1 = arith.constant 0 : index
    %0 = vector.load %arg1[%c0, %c0_0, %c0_1] : memref<1x400x320xbf16, #tpu.memory_space<vmem>>, vector<1x8x320xbf16>
    %1 = vector.shape_cast %0 : vector<1x8x320xbf16> to vector<8x320xbf16>
    %c0_2 = arith.constant 0 : index
    %c0_3 = arith.constant 0 : index
    %2 = vector.load %arg7[%c0_2, %c0_3] : memref<64x320xbf16, #tpu.memory_space<vmem>>, vector<8x320xbf16>
    tpu.vector_store %arg7[%c0_2, %c0_3], %1 {strides = array<i32>} : memref<64x320xbf16, #tpu.memory_space<vmem>>, vector<8x320xbf16>,
    %c0_4 = arith.constant 0 : index
    %c20 = arith.constant 20 : index
    %c0_5 = arith.constant 0 : index
    %3 = vector.load %arg1[%c0_4, %c20, %c0_5] : memref<1x400x320xbf16, #tpu.memory_space<vmem>>, vector<1x8x320xbf16>
    %4 = vector.shape_cast %3 : vector<1x8x320xbf16> to vector<8x320xbf16>
    %c8 = arith.constant 8 : index
    %c0_6 = arith.constant 0 : index
    %5 = vector.load %arg7[%c8, %c0_6] : memref<64x320xbf16, #tpu.memory_space<vmem>>, vector<8x320xbf16>
    tpu.vector_store %arg7[%c8, %c0_6], %4 {strides = array<i32>} : memref<64x320xbf16, #tpu.memory_space<vmem>>, vector<8x320xbf16>,
    %c0_7 = arith.constant 0 : index
    %c40 = arith.constant 40 : index
    %c0_8 = arith.constant 0 : index
    %6 = vector.load %arg1[%c0_7, %c40, %c0_8] : memref<1x400x320xbf16, #tpu.memory_space<vmem>>, vector<1x8x320xbf16>
    %7 = vector.shape_cast %6 : vector<1x8x320xbf16> to vector<8x320xbf16>
    %c16 = arith.constant 16 : index
    %c0_9 = arith.constant 0 : index
    %8 = vector.load %arg7[%c16, %c0_9] : memref<64x320xbf16, #tpu.memory_space<vmem>>, vector<8x320xbf16>
    tpu.vector_store %arg7[%c16, %c0_9], %7 {strides = array<i32>} : memref<64x320xbf16, #tpu.memory_space<vmem>>, vector<8x320xbf16>,
    %c0_10 = arith.constant 0 : index
    %c60 = arith.constant 60 : index
    %c0_11 = arith.constant 0 : index
    %9 = vector.load %arg1[%c0_10, %c60, %c0_11] : memref<1x400x320xbf16, #tpu.memory_space<vmem>>, vector<1x8x320xbf16>
    %10 = vector.shape_cast %9 : vector<1x8x320xbf16> to vector<8x320xbf16>
    %c24 = arith.constant 24 : index
    %c0_12 = arith.constant 0 : index
    %11 = vector.load %arg7[%c24, %c0_12] : memref<64x320xbf16, #tpu.memory_space<vmem>>, vector<8x320xbf16>
    tpu.vector_store %arg7[%c24, %c0_12], %10 {strides = array<i32>} : memref<64x320xbf16, #tpu.memory_space<vmem>>, vector<8x320xbf16>,
    %c0_13 = arith.constant 0 : index
    %c80 = arith.constant 80 : index
    %c0_14 = arith.constant 0 : index
    %12 = vector.load %arg1[%c0_13, %c80, %c0_14] : memref<1x400x320xbf16, #tpu.memory_space<vmem>>, vector<1x8x320xbf16>
    %13 = vector.shape_cast %12 : vector<1x8x320xbf16> to vector<8x320xbf16>
    %c32 = arith.constant 32 : index
    %c0_15 = arith.constant 0 : index
    %14 = vector.load %arg7[%c32, %c0_15] : memref<64x320xbf16, #tpu.memory_space<vmem>>, vector<8x320xbf16>
    tpu.vector_store %arg7[%c32, %c0_15], %13 {strides = array<i32>} : memref<64x320xbf16, #tpu.memory_space<vmem>>, vector<8x320xbf16>,
    %c0_16 = arith.constant 0 : index
    %c100 = arith.constant 100 : index
    %c0_17 = arith.constant 0 : index
    %15 = vector.load %arg1[%c0_16, %c100, %c0_17] : memref<1x400x320xbf16, #tpu.memory_space<vmem>>, vector<1x8x320xbf16>
    %16 = vector.shape_cast %15 : vector<1x8x320xbf16> to vector<8x320xbf16>
    %c40_18 = arith.constant 40 : index
    %c0_19 = arith.constant 0 : index
    %17 = vector.load %arg7[%c40_18, %c0_19] : memref<64x320xbf16, #tpu.memory_space<vmem>>, vector<8x320xbf16>
    tpu.vector_store %arg7[%c40_18, %c0_19], %16 {strides = array<i32>} : memref<64x320xbf16, #tpu.memory_space<vmem>>, vector<8x320xbf16>,
    %c0_20 = arith.constant 0 : index
    %c120 = arith.constant 120 : index
    %c0_21 = arith.constant 0 : index
    %18 = vector.load %arg1[%c0_20, %c120, %c0_21] : memref<1x400x320xbf16, #tpu.memory_space<vmem>>, vector<1x8x320xbf16>
    %19 = vector.shape_cast %18 : vector<1x8x320xbf16> to vector<8x320xbf16>
    %c48 = arith.constant 48 : index
    %c0_22 = arith.constant 0 : index
    %20 = vector.load %arg7[%c48, %c0_22] : memref<64x320xbf16, #tpu.memory_space<vmem>>, vector<8x320xbf16>
    tpu.vector_store %arg7[%c48, %c0_22], %19 {strides = array<i32>} : memref<64x320xbf16, #tpu.memory_space<vmem>>, vector<8x320xbf16>,
    %c0_23 = arith.constant 0 : index
    %c140 = arith.constant 140 : index
    %c0_24 = arith.constant 0 : index
    %21 = vector.load %arg1[%c0_23, %c140, %c0_24] : memref<1x400x320xbf16, #tpu.memory_space<vmem>>, vector<1x8x320xbf16>
    %22 = vector.shape_cast %21 : vector<1x8x320xbf16> to vector<8x320xbf16>
    %c56 = arith.constant 56 : index
    %c0_25 = arith.constant 0 : index
    %23 = vector.load %arg7[%c56, %c0_25] : memref<64x320xbf16, #tpu.memory_space<vmem>>, vector<8x320xbf16>
    tpu.vector_store %arg7[%c56, %c0_25], %22 {strides = array<i32>} : memref<64x320xbf16, #tpu.memory_space<vmem>>, vector<8x320xbf16>,
    %c0_26 = arith.constant 0 : index
    %c0_27 = arith.constant 0 : index
    %24 = vector.load %arg7[%c0_26, %c0_27] : memref<64x320xbf16, #tpu.memory_space<vmem>>, vector<64x320xbf16>
    %c0_28 = arith.constant 0 : index
    %c0_29 = arith.constant 0 : index
    %c0_30 = arith.constant 0 : index
    %25 = vector.load %arg2[%c0_28, %c0_29, %c0_30] : memref<9x320x320xbf16, #tpu.memory_space<vmem>>, vector<1x320x320xbf16>
    %26 = vector.shape_cast %25 : vector<1x320x320xbf16> to vector<320x320xbf16>
    %cst = arith.constant dense<0.000000e+00> : vector<64x320xf32>
    %27 = tpu.matmul %24, %26, %cst {dimension_numbers = #tpu.dot_dimension_numbers<[1], [0], [0], [1], [0, 0, 1, 1], [], []>} : vector<64x320xbf16>, vector<320x320xbf16>, vector<64x320xf32> -> vector<64x320xf32>
    %c0_31 = arith.constant 0 : index
    %c0_32 = arith.constant 0 : index
    %28 = vector.load %arg8[%c0_31, %c0_32] : memref<64x320xf32, #tpu.memory_space<vmem>>, vector<64x320xf32>
    tpu.vector_store %arg8[%c0_31, %c0_32], %27 {strides = array<i32>} : memref<64x320xf32, #tpu.memory_space<vmem>>, vector<64x320xf32>,
    %c0_33 = arith.constant 0 : index
    %c6 = arith.constant 6 : index
    %c0_34 = arith.constant 0 : index
    %29 = vector.load %arg1[%c0_33, %c6, %c0_34] : memref<1x400x320xbf16, #tpu.memory_space<vmem>>, vector<1x8x320xbf16>
    %30 = vector.shape_cast %29 : vector<1x8x320xbf16> to vector<8x320xbf16>
    %c0_35 = arith.constant 0 : index
    %c0_36 = arith.constant 0 : index
    %31 = vector.load %arg7[%c0_35, %c0_36] : memref<64x320xbf16, #tpu.memory_space<vmem>>, vector<8x320xbf16>
    tpu.vector_store %arg7[%c0_35, %c0_36], %30 {strides = array<i32>} : memref<64x320xbf16, #tpu.memory_space<vmem>>, vector<8x320xbf16>,
    %c0_37 = arith.constant 0 : index
    %c26 = arith.constant 26 : index
    %c0_38 = arith.constant 0 : index
    %32 = vector.load %arg1[%c0_37, %c26, %c0_38] : memref<1x400x320xbf16, #tpu.memory_space<vmem>>, vector<1x8x320xbf16>
    %33 = vector.shape_cast %32 : vector<1x8x320xbf16> to vector<8x320xbf16>
    %c8_39 = arith.constant 8 : index
    %c0_40 = arith.constant 0 : index
    %34 = vector.load %arg7[%c8_39, %c0_40] : memref<64x320xbf16, #tpu.memory_space<vmem>>, vector<8x320xbf16>
    tpu.vector_store %arg7[%c8_39, %c0_40], %33 {strides = array<i32>} : memref<64x320xbf16, #tpu.memory_space<vmem>>, vector<8x320xbf16>,
    %c0_41 = arith.constant 0 : index
    %c46 = arith.constant 46 : index
    %c0_42 = arith.constant 0 : index
    %35 = vector.load %arg1[%c0_41, %c46, %c0_42] : memref<1x400x320xbf16, #tpu.memory_space<vmem>>, vector<1x8x320xbf16>
    %36 = vector.shape_cast %35 : vector<1x8x320xbf16> to vector<8x320xbf16>
    %c16_43 = arith.constant 16 : index
    %c0_44 = arith.constant 0 : index
    %37 = vector.load %arg7[%c16_43, %c0_44] : memref<64x320xbf16, #tpu.memory_space<vmem>>, vector<8x320xbf16>
    tpu.vector_store %arg7[%c16_43, %c0_44], %36 {strides = array<i32>} : memref<64x320xbf16, #tpu.memory_space<vmem>>, vector<8x320xbf16>,
    %c0_45 = arith.constant 0 : index
    %c66 = arith.constant 66 : index
    %c0_46 = arith.constant 0 : index
    %38 = vector.load %arg1[%c0_45, %c66, %c0_46] : memref<1x400x320xbf16, #tpu.memory_space<vmem>>, vector<1x8x320xbf16>
    %39 = vector.shape_cast %38 : vector<1x8x320xbf16> to vector<8x320xbf16>
    %c24_47 = arith.constant 24 : index
    %c0_48 = arith.constant 0 : index
    %40 = vector.load %arg7[%c24_47, %c0_48] : memref<64x320xbf16, #tpu.memory_space<vmem>>, vector<8x320xbf16>
    tpu.vector_store %arg7[%c24_47, %c0_48], %39 {strides = array<i32>} : memref<64x320xbf16, #tpu.memory_space<vmem>>, vector<8x320xbf16>,
    %c0_49 = arith.constant 0 : index
    %c86 = arith.constant 86 : index
    %c0_50 = arith.constant 0 : index
    %41 = vector.load %arg1[%c0_49, %c86, %c0_50] : memref<1x400x320xbf16, #tpu.memory_space<vmem>>, vector<1x8x320xbf16>
    %42 = vector.shape_cast %41 : vector<1x8x320xbf16> to vector<8x320xbf16>
    %c32_51 = arith.constant 32 : index
    %c0_52 = arith.constant 0 : index
    %43 = vector.load %arg7[%c32_51, %c0_52] : memref<64x320xbf16, #tpu.memory_space<vmem>>, vector<8x320xbf16>
    tpu.vector_store %arg7[%c32_51, %c0_52], %42 {strides = array<i32>} : memref<64x320xbf16, #tpu.memory_space<vmem>>, vector<8x320xbf16>,
    %c0_53 = arith.constant 0 : index
    %c106 = arith.constant 106 : index
    %c0_54 = arith.constant 0 : index
    %44 = vector.load %arg1[%c0_53, %c106, %c0_54] : memref<1x400x320xbf16, #tpu.memory_space<vmem>>, vector<1x8x320xbf16>
    %45 = vector.shape_cast %44 : vector<1x8x320xbf16> to vector<8x320xbf16>
    %c40_55 = arith.constant 40 : index
    %c0_56 = arith.constant 0 : index
    %46 = vector.load %arg7[%c40_55, %c0_56] : memref<64x320xbf16, #tpu.memory_space<vmem>>, vector<8x320xbf16>
    tpu.vector_store %arg7[%c40_55, %c0_56], %45 {strides = array<i32>} : memref<64x320xbf16, #tpu.memory_space<vmem>>, vector<8x320xbf16>,
    %c0_57 = arith.constant 0 : index
    %c126 = arith.constant 126 : index
    %c0_58 = arith.constant 0 : index
    %47 = vector.load %arg1[%c0_57, %c126, %c0_58] : memref<1x400x320xbf16, #tpu.memory_space<vmem>>, vector<1x8x320xbf16>
    %48 = vector.shape_cast %47 : vector<1x8x320xbf16> to vector<8x320xbf16>
    %c48_59 = arith.constant 48 : index
    %c0_60 = arith.constant 0 : index
    %49 = vector.load %arg7[%c48_59, %c0_60] : memref<64x320xbf16, #tpu.memory_space<vmem>>, vector<8x320xbf16>
    tpu.vector_store %arg7[%c48_59, %c0_60], %48 {strides = array<i32>} : memref<64x320xbf16, #tpu.memory_space<vmem>>, vector<8x320xbf16>,
    %c0_61 = arith.constant 0 : index
    %c146 = arith.constant 146 : index
    %c0_62 = arith.constant 0 : index
    %50 = vector.load %arg1[%c0_61, %c146, %c0_62] : memref<1x400x320xbf16, #tpu.memory_space<vmem>>, vector<1x8x320xbf16>
    %51 = vector.shape_cast %50 : vector<1x8x320xbf16> to vector<8x320xbf16>
    %c56_63 = arith.constant 56 : index
    %c0_64 = arith.constant 0 : index
    %52 = vector.load %arg7[%c56_63, %c0_64] : memref<64x320xbf16, #tpu.memory_space<vmem>>, vector<8x320xbf16>
    tpu.vector_store %arg7[%c56_63, %c0_64], %51 {strides = array<i32>} : memref<64x320xbf16, #tpu.memory_space<vmem>>, vector<8x320xbf16>,
    %c0_65 = arith.constant 0 : index
    %c0_66 = arith.constant 0 : index
    %53 = vector.load %arg7[%c0_65, %c0_66] : memref<64x320xbf16, #tpu.memory_space<vmem>>, vector<64x320xbf16>
    %c1 = arith.constant 1 : index
    %c0_67 = arith.constant 0 : index
    %c0_68 = arith.constant 0 : index
    %54 = vector.load %arg2[%c1, %c0_67, %c0_68] : memref<9x320x320xbf16, #tpu.memory_space<vmem>>, vector<1x320x320xbf16>
    %55 = vector.shape_cast %54 : vector<1x320x320xbf16> to vector<320x320xbf16>
    %cst_69 = arith.constant dense<0.000000e+00> : vector<64x320xf32>
    %56 = tpu.matmul %53, %55, %cst_69 {dimension_numbers = #tpu.dot_dimension_numbers<[1], [0], [0], [1], [0, 0, 1, 1], [], []>} : vector<64x320xbf16>, vector<320x320xbf16>, vector<64x320xf32> -> vector<64x320xf32>
    %c0_70 = arith.constant 0 : index
    %c0_71 = arith.constant 0 : index
    %57 = vector.load %arg8[%c0_70, %c0_71] : memref<64x320xf32, #tpu.memory_space<vmem>>, vector<64x320xf32>
    %58 = arith.addf %57, %56 : vector<64x320xf32>
    %c0_72 = arith.constant 0 : index
    %c0_73 = arith.constant 0 : index
    %59 = vector.load %arg8[%c0_72, %c0_73] : memref<64x320xf32, #tpu.memory_space<vmem>>, vector<64x320xf32>
    tpu.vector_store %arg8[%c0_72, %c0_73], %58 {strides = array<i32>} : memref<64x320xf32, #tpu.memory_space<vmem>>, vector<64x320xf32>,
    %c0_74 = arith.constant 0 : index
    %c12 = arith.constant 12 : index
    %c0_75 = arith.constant 0 : index
    %60 = vector.load %arg1[%c0_74, %c12, %c0_75] : memref<1x400x320xbf16, #tpu.memory_space<vmem>>, vector<1x8x320xbf16>
    %61 = vector.shape_cast %60 : vector<1x8x320xbf16> to vector<8x320xbf16>
    %c0_76 = arith.constant 0 : index
    %c0_77 = arith.constant 0 : index
    %62 = vector.load %arg7[%c0_76, %c0_77] : memref<64x320xbf16, #tpu.memory_space<vmem>>, vector<8x320xbf16>
    tpu.vector_store %arg7[%c0_76, %c0_77], %61 {strides = array<i32>} : memref<64x320xbf16, #tpu.memory_space<vmem>>, vector<8x320xbf16>,
    %c0_78 = arith.constant 0 : index
    %c32_79 = arith.constant 32 : index
    %c0_80 = arith.constant 0 : index
    %63 = vector.load %arg1[%c0_78, %c32_79, %c0_80] : memref<1x400x320xbf16, #tpu.memory_space<vmem>>, vector<1x8x320xbf16>
    %64 = vector.shape_cast %63 : vector<1x8x320xbf16> to vector<8x320xbf16>
    %c8_81 = arith.constant 8 : index
    %c0_82 = arith.constant 0 : index
    %65 = vector.load %arg7[%c8_81, %c0_82] : memref<64x320xbf16, #tpu.memory_space<vmem>>, vector<8x320xbf16>
    tpu.vector_store %arg7[%c8_81, %c0_82], %64 {strides = array<i32>} : memref<64x320xbf16, #tpu.memory_space<vmem>>, vector<8x320xbf16>,
    %c0_83 = arith.constant 0 : index
    %c52 = arith.constant 52 : index
    %c0_84 = arith.constant 0 : index
    %66 = vector.load %arg1[%c0_83, %c52, %c0_84] : memref<1x400x320xbf16, #tpu.memory_space<vmem>>, vector<1x8x320xbf16>
    %67 = vector.shape_cast %66 : vector<1x8x320xbf16> to vector<8x320xbf16>
    %c16_85 = arith.constant 16 : index
    %c0_86 = arith.constant 0 : index
    %68 = vector.load %arg7[%c16_85, %c0_86] : memref<64x320xbf16, #tpu.memory_space<vmem>>, vector<8x320xbf16>
    tpu.vector_store %arg7[%c16_85, %c0_86], %67 {strides = array<i32>} : memref<64x320xbf16, #tpu.memory_space<vmem>>, vector<8x320xbf16>,
    %c0_87 = arith.constant 0 : index
    %c72 = arith.constant 72 : index
    %c0_88 = arith.constant 0 : index
    %69 = vector.load %arg1[%c0_87, %c72, %c0_88] : memref<1x400x320xbf16, #tpu.memory_space<vmem>>, vector<1x8x320xbf16>
    %70 = vector.shape_cast %69 : vector<1x8x320xbf16> to vector<8x320xbf16>
    %c24_89 = arith.constant 24 : index
    %c0_90 = arith.constant 0 : index
    %71 = vector.load %arg7[%c24_89, %c0_90] : memref<64x320xbf16, #tpu.memory_space<vmem>>, vector<8x320xbf16>
    tpu.vector_store %arg7[%c24_89, %c0_90], %70 {strides = array<i32>} : memref<64x320xbf16, #tpu.memory_space<vmem>>, vector<8x320xbf16>,
    %c0_91 = arith.constant 0 : index
    %c92 = arith.constant 92 : index
    %c0_92 = arith.constant 0 : index
    %72 = vector.load %arg1[%c0_91, %c92, %c0_92] : memref<1x400x320xbf16, #tpu.memory_space<vmem>>, vector<1x8x320xbf16>
    %73 = vector.shape_cast %72 : vector<1x8x320xbf16> to vector<8x320xbf16>
    %c32_93 = arith.constant 32 : index
    %c0_94 = arith.constant 0 : index
    %74 = vector.load %arg7[%c32_93, %c0_94] : memref<64x320xbf16, #tpu.memory_space<vmem>>, vector<8x320xbf16>
    tpu.vector_store %arg7[%c32_93, %c0_94], %73 {strides = array<i32>} : memref<64x320xbf16, #tpu.memory_space<vmem>>, vector<8x320xbf16>,
    %c0_95 = arith.constant 0 : index
    %c112 = arith.constant 112 : index
    %c0_96 = arith.constant 0 : index
    %75 = vector.load %arg1[%c0_95, %c112, %c0_96] : memref<1x400x320xbf16, #tpu.memory_space<vmem>>, vector<1x8x320xbf16>
    %76 = vector.shape_cast %75 : vector<1x8x320xbf16> to vector<8x320xbf16>
    %c40_97 = arith.constant 40 : index
    %c0_98 = arith.constant 0 : index
    %77 = vector.load %arg7[%c40_97, %c0_98] : memref<64x320xbf16, #tpu.memory_space<vmem>>, vector<8x320xbf16>
    tpu.vector_store %arg7[%c40_97, %c0_98], %76 {strides = array<i32>} : memref<64x320xbf16, #tpu.memory_space<vmem>>, vector<8x320xbf16>,
    %c0_99 = arith.constant 0 : index
    %c132 = arith.constant 132 : index
    %c0_100 = arith.constant 0 : index
    %78 = vector.load %arg1[%c0_99, %c132, %c0_100] : memref<1x400x320xbf16, #tpu.memory_space<vmem>>, vector<1x8x320xbf16>
    %79 = vector.shape_cast %78 : vector<1x8x320xbf16> to vector<8x320xbf16>
    %c48_101 = arith.constant 48 : index
    %c0_102 = arith.constant 0 : index
    %80 = vector.load %arg7[%c48_101, %c0_102] : memref<64x320xbf16, #tpu.memory_space<vmem>>, vector<8x320xbf16>
    tpu.vector_store %arg7[%c48_101, %c0_102], %79 {strides = array<i32>} : memref<64x320xbf16, #tpu.memory_space<vmem>>, vector<8x320xbf16>,
    %c0_103 = arith.constant 0 : index
    %c152 = arith.constant 152 : index
    %c0_104 = arith.constant 0 : index
    %81 = vector.load %arg1[%c0_103, %c152, %c0_104] : memref<1x400x320xbf16, #tpu.memory_space<vmem>>, vector<1x8x320xbf16>
    %82 = vector.shape_cast %81 : vector<1x8x320xbf16> to vector<8x320xbf16>
    %c56_105 = arith.constant 56 : index
    %c0_106 = arith.constant 0 : index
    %83 = vector.load %arg7[%c56_105, %c0_106] : memref<64x320xbf16, #tpu.memory_space<vmem>>, vector<8x320xbf16>
    tpu.vector_store %arg7[%c56_105, %c0_106], %82 {strides = array<i32>} : memref<64x320xbf16, #tpu.memory_space<vmem>>, vector<8x320xbf16>,
    %c0_107 = arith.constant 0 : index
    %c0_108 = arith.constant 0 : index
    %84 = vector.load %arg7[%c0_107, %c0_108] : memref<64x320xbf16, #tpu.memory_space<vmem>>, vector<64x320xbf16>
    %c2 = arith.constant 2 : index
    %c0_109 = arith.constant 0 : index
    %c0_110 = arith.constant 0 : index
    %85 = vector.load %arg2[%c2, %c0_109, %c0_110] : memref<9x320x320xbf16, #tpu.memory_space<vmem>>, vector<1x320x320xbf16>
    %86 = vector.shape_cast %85 : vector<1x320x320xbf16> to vector<320x320xbf16>
    %cst_111 = arith.constant dense<0.000000e+00> : vector<64x320xf32>
    %87 = tpu.matmul %84, %86, %cst_111 {dimension_numbers = #tpu.dot_dimension_numbers<[1], [0], [0], [1], [0, 0, 1, 1], [], []>} : vector<64x320xbf16>, vector<320x320xbf16>, vector<64x320xf32> -> vector<64x320xf32>
    %c0_112 = arith.constant 0 : index
    %c0_113 = arith.constant 0 : index
    %88 = vector.load %arg8[%c0_112, %c0_113] : memref<64x320xf32, #tpu.memory_space<vmem>>, vector<64x320xf32>
    %89 = arith.addf %88, %87 : vector<64x320xf32>
    %c0_114 = arith.constant 0 : index
    %c0_115 = arith.constant 0 : index
    %90 = vector.load %arg8[%c0_114, %c0_115] : memref<64x320xf32, #tpu.memory_space<vmem>>, vector<64x320xf32>
    tpu.vector_store %arg8[%c0_114, %c0_115], %89 {strides = array<i32>} : memref<64x320xf32, #tpu.memory_space<vmem>>, vector<64x320xf32>,
    %c0_116 = arith.constant 0 : index
    %c120_117 = arith.constant 120 : index
    %c0_118 = arith.constant 0 : index
    %91 = vector.load %arg1[%c0_116, %c120_117, %c0_118] : memref<1x400x320xbf16, #tpu.memory_space<vmem>>, vector<1x8x320xbf16>
    %92 = vector.shape_cast %91 : vector<1x8x320xbf16> to vector<8x320xbf16>
    %c0_119 = arith.constant 0 : index
    %c0_120 = arith.constant 0 : index
    %93 = vector.load %arg7[%c0_119, %c0_120] : memref<64x320xbf16, #tpu.memory_space<vmem>>, vector<8x320xbf16>
    tpu.vector_store %arg7[%c0_119, %c0_120], %92 {strides = array<i32>} : memref<64x320xbf16, #tpu.memory_space<vmem>>, vector<8x320xbf16>,
    %c0_121 = arith.constant 0 : index
    %c140_122 = arith.constant 140 : index
    %c0_123 = arith.constant 0 : index
    %94 = vector.load %arg1[%c0_121, %c140_122, %c0_123] : memref<1x400x320xbf16, #tpu.memory_space<vmem>>, vector<1x8x320xbf16>
    %95 = vector.shape_cast %94 : vector<1x8x320xbf16> to vector<8x320xbf16>
    %c8_124 = arith.constant 8 : index
    %c0_125 = arith.constant 0 : index
    %96 = vector.load %arg7[%c8_124, %c0_125] : memref<64x320xbf16, #tpu.memory_space<vmem>>, vector<8x320xbf16>
    tpu.vector_store %arg7[%c8_124, %c0_125], %95 {strides = array<i32>} : memref<64x320xbf16, #tpu.memory_space<vmem>>, vector<8x320xbf16>,
    %c0_126 = arith.constant 0 : index
    %c160 = arith.constant 160 : index
    %c0_127 = arith.constant 0 : index
    %97 = vector.load %arg1[%c0_126, %c160, %c0_127] : memref<1x400x320xbf16, #tpu.memory_space<vmem>>, vector<1x8x320xbf16>
    %98 = vector.shape_cast %97 : vector<1x8x320xbf16> to vector<8x320xbf16>
    %c16_128 = arith.constant 16 : index
    %c0_129 = arith.constant 0 : index
    %99 = vector.load %arg7[%c16_128, %c0_129] : memref<64x320xbf16, #tpu.memory_space<vmem>>, vector<8x320xbf16>
    tpu.vector_store %arg7[%c16_128, %c0_129], %98 {strides = array<i32>} : memref<64x320xbf16, #tpu.memory_space<vmem>>, vector<8x320xbf16>,
    %c0_130 = arith.constant 0 : index
    %c180 = arith.constant 180 : index
    %c0_131 = arith.constant 0 : index
    %100 = vector.load %arg1[%c0_130, %c180, %c0_131] : memref<1x400x320xbf16, #tpu.memory_space<vmem>>, vector<1x8x320xbf16>
    %101 = vector.shape_cast %100 : vector<1x8x320xbf16> to vector<8x320xbf16>
    %c24_132 = arith.constant 24 : index
    %c0_133 = arith.constant 0 : index
    %102 = vector.load %arg7[%c24_132, %c0_133] : memref<64x320xbf16, #tpu.memory_space<vmem>>, vector<8x320xbf16>
    tpu.vector_store %arg7[%c24_132, %c0_133], %101 {strides = array<i32>} : memref<64x320xbf16, #tpu.memory_space<vmem>>, vector<8x320xbf16>,
    %c0_134 = arith.constant 0 : index
    %c200 = arith.constant 200 : index
    %c0_135 = arith.constant 0 : index
    %103 = vector.load %arg1[%c0_134, %c200, %c0_135] : memref<1x400x320xbf16, #tpu.memory_space<vmem>>, vector<1x8x320xbf16>
    %104 = vector.shape_cast %103 : vector<1x8x320xbf16> to vector<8x320xbf16>
    %c32_136 = arith.constant 32 : index
    %c0_137 = arith.constant 0 : index
    %105 = vector.load %arg7[%c32_136, %c0_137] : memref<64x320xbf16, #tpu.memory_space<vmem>>, vector<8x320xbf16>
    tpu.vector_store %arg7[%c32_136, %c0_137], %104 {strides = array<i32>} : memref<64x320xbf16, #tpu.memory_space<vmem>>, vector<8x320xbf16>,
    %c0_138 = arith.constant 0 : index
    %c220 = arith.constant 220 : index
    %c0_139 = arith.constant 0 : index
    %106 = vector.load %arg1[%c0_138, %c220, %c0_139] : memref<1x400x320xbf16, #tpu.memory_space<vmem>>, vector<1x8x320xbf16>
    %107 = vector.shape_cast %106 : vector<1x8x320xbf16> to vector<8x320xbf16>
    %c40_140 = arith.constant 40 : index
    %c0_141 = arith.constant 0 : index
    %108 = vector.load %arg7[%c40_140, %c0_141] : memref<64x320xbf16, #tpu.memory_space<vmem>>, vector<8x320xbf16>
    tpu.vector_store %arg7[%c40_140, %c0_141], %107 {strides = array<i32>} : memref<64x320xbf16, #tpu.memory_space<vmem>>, vector<8x320xbf16>,
    %c0_142 = arith.constant 0 : index
    %c240 = arith.constant 240 : index
    %c0_143 = arith.constant 0 : index
    %109 = vector.load %arg1[%c0_142, %c240, %c0_143] : memref<1x400x320xbf16, #tpu.memory_space<vmem>>, vector<1x8x320xbf16>
    %110 = vector.shape_cast %109 : vector<1x8x320xbf16> to vector<8x320xbf16>
    %c48_144 = arith.constant 48 : index
    %c0_145 = arith.constant 0 : index
    %111 = vector.load %arg7[%c48_144, %c0_145] : memref<64x320xbf16, #tpu.memory_space<vmem>>, vector<8x320xbf16>
    tpu.vector_store %arg7[%c48_144, %c0_145], %110 {strides = array<i32>} : memref<64x320xbf16, #tpu.memory_space<vmem>>, vector<8x320xbf16>,
    %c0_146 = arith.constant 0 : index
    %c260 = arith.constant 260 : index
    %c0_147 = arith.constant 0 : index
    %112 = vector.load %arg1[%c0_146, %c260, %c0_147] : memref<1x400x320xbf16, #tpu.memory_space<vmem>>, vector<1x8x320xbf16>
    %113 = vector.shape_cast %112 : vector<1x8x320xbf16> to vector<8x320xbf16>
    %c56_148 = arith.constant 56 : index
    %c0_149 = arith.constant 0 : index
    %114 = vector.load %arg7[%c56_148, %c0_149] : memref<64x320xbf16, #tpu.memory_space<vmem>>, vector<8x320xbf16>
    tpu.vector_store %arg7[%c56_148, %c0_149], %113 {strides = array<i32>} : memref<64x320xbf16, #tpu.memory_space<vmem>>, vector<8x320xbf16>,
    %c0_150 = arith.constant 0 : index
    %c0_151 = arith.constant 0 : index
    %115 = vector.load %arg7[%c0_150, %c0_151] : memref<64x320xbf16, #tpu.memory_space<vmem>>, vector<64x320xbf16>
    %c3 = arith.constant 3 : index
    %c0_152 = arith.constant 0 : index
    %c0_153 = arith.constant 0 : index
    %116 = vector.load %arg2[%c3, %c0_152, %c0_153] : memref<9x320x320xbf16, #tpu.memory_space<vmem>>, vector<1x320x320xbf16>
    %117 = vector.shape_cast %116 : vector<1x320x320xbf16> to vector<320x320xbf16>
    %cst_154 = arith.constant dense<0.000000e+00> : vector<64x320xf32>
    %118 = tpu.matmul %115, %117, %cst_154 {dimension_numbers = #tpu.dot_dimension_numbers<[1], [0], [0], [1], [0, 0, 1, 1], [], []>} : vector<64x320xbf16>, vector<320x320xbf16>, vector<64x320xf32> -> vector<64x320xf32>
    %c0_155 = arith.constant 0 : index
    %c0_156 = arith.constant 0 : index
    %119 = vector.load %arg8[%c0_155, %c0_156] : memref<64x320xf32, #tpu.memory_space<vmem>>, vector<64x320xf32>
    %120 = arith.addf %119, %118 : vector<64x320xf32>
    %c0_157 = arith.constant 0 : index
    %c0_158 = arith.constant 0 : index
    %121 = vector.load %arg8[%c0_157, %c0_158] : memref<64x320xf32, #tpu.memory_space<vmem>>, vector<64x320xf32>
    tpu.vector_store %arg8[%c0_157, %c0_158], %120 {strides = array<i32>} : memref<64x320xf32, #tpu.memory_space<vmem>>, vector<64x320xf32>,
    %c0_159 = arith.constant 0 : index
    %c126_160 = arith.constant 126 : index
    %c0_161 = arith.constant 0 : index
    %122 = vector.load %arg1[%c0_159, %c126_160, %c0_161] : memref<1x400x320xbf16, #tpu.memory_space<vmem>>, vector<1x8x320xbf16>
    %123 = vector.shape_cast %122 : vector<1x8x320xbf16> to vector<8x320xbf16>
    %c0_162 = arith.constant 0 : index
    %c0_163 = arith.constant 0 : index
    %124 = vector.load %arg7[%c0_162, %c0_163] : memref<64x320xbf16, #tpu.memory_space<vmem>>, vector<8x320xbf16>
    tpu.vector_store %arg7[%c0_162, %c0_163], %123 {strides = array<i32>} : memref<64x320xbf16, #tpu.memory_space<vmem>>, vector<8x320xbf16>,
    %c0_164 = arith.constant 0 : index
    %c146_165 = arith.constant 146 : index
    %c0_166 = arith.constant 0 : index
    %125 = vector.load %arg1[%c0_164, %c146_165, %c0_166] : memref<1x400x320xbf16, #tpu.memory_space<vmem>>, vector<1x8x320xbf16>
    %126 = vector.shape_cast %125 : vector<1x8x320xbf16> to vector<8x320xbf16>
    %c8_167 = arith.constant 8 : index
    %c0_168 = arith.constant 0 : index
    %127 = vector.load %arg7[%c8_167, %c0_168] : memref<64x320xbf16, #tpu.memory_space<vmem>>, vector<8x320xbf16>
    tpu.vector_store %arg7[%c8_167, %c0_168], %126 {strides = array<i32>} : memref<64x320xbf16, #tpu.memory_space<vmem>>, vector<8x320xbf16>,
    %c0_169 = arith.constant 0 : index
    %c166 = arith.constant 166 : index
    %c0_170 = arith.constant 0 : index
    %128 = vector.load %arg1[%c0_169, %c166, %c0_170] : memref<1x400x320xbf16, #tpu.memory_space<vmem>>, vector<1x8x320xbf16>
    %129 = vector.shape_cast %128 : vector<1x8x320xbf16> to vector<8x320xbf16>
    %c16_171 = arith.constant 16 : index
    %c0_172 = arith.constant 0 : index
    %130 = vector.load %arg7[%c16_171, %c0_172] : memref<64x320xbf16, #tpu.memory_space<vmem>>, vector<8x320xbf16>
    tpu.vector_store %arg7[%c16_171, %c0_172], %129 {strides = array<i32>} : memref<64x320xbf16, #tpu.memory_space<vmem>>, vector<8x320xbf16>,
    %c0_173 = arith.constant 0 : index
    %c186 = arith.constant 186 : index
    %c0_174 = arith.constant 0 : index
    %131 = vector.load %arg1[%c0_173, %c186, %c0_174] : memref<1x400x320xbf16, #tpu.memory_space<vmem>>, vector<1x8x320xbf16>
    %132 = vector.shape_cast %131 : vector<1x8x320xbf16> to vector<8x320xbf16>
    %c24_175 = arith.constant 24 : index
    %c0_176 = arith.constant 0 : index
    %133 = vector.load %arg7[%c24_175, %c0_176] : memref<64x320xbf16, #tpu.memory_space<vmem>>, vector<8x320xbf16>
    tpu.vector_store %arg7[%c24_175, %c0_176], %132 {strides = array<i32>} : memref<64x320xbf16, #tpu.memory_space<vmem>>, vector<8x320xbf16>,
    %c0_177 = arith.constant 0 : index
    %c206 = arith.constant 206 : index
    %c0_178 = arith.constant 0 : index
    %134 = vector.load %arg1[%c0_177, %c206, %c0_178] : memref<1x400x320xbf16, #tpu.memory_space<vmem>>, vector<1x8x320xbf16>
    %135 = vector.shape_cast %134 : vector<1x8x320xbf16> to vector<8x320xbf16>
    %c32_179 = arith.constant 32 : index
    %c0_180 = arith.constant 0 : index
    %136 = vector.load %arg7[%c32_179, %c0_180] : memref<64x320xbf16, #tpu.memory_space<vmem>>, vector<8x320xbf16>
    tpu.vector_store %arg7[%c32_179, %c0_180], %135 {strides = array<i32>} : memref<64x320xbf16, #tpu.memory_space<vmem>>, vector<8x320xbf16>,
    %c0_181 = arith.constant 0 : index
    %c226 = arith.constant 226 : index
    %c0_182 = arith.constant 0 : index
    %137 = vector.load %arg1[%c0_181, %c226, %c0_182] : memref<1x400x320xbf16, #tpu.memory_space<vmem>>, vector<1x8x320xbf16>
    %138 = vector.shape_cast %137 : vector<1x8x320xbf16> to vector<8x320xbf16>
    %c40_183 = arith.constant 40 : index
    %c0_184 = arith.constant 0 : index
    %139 = vector.load %arg7[%c40_183, %c0_184] : memref<64x320xbf16, #tpu.memory_space<vmem>>, vector<8x320xbf16>
    tpu.vector_store %arg7[%c40_183, %c0_184], %138 {strides = array<i32>} : memref<64x320xbf16, #tpu.memory_space<vmem>>, vector<8x320xbf16>,
    %c0_185 = arith.constant 0 : index
    %c246 = arith.constant 246 : index
    %c0_186 = arith.constant 0 : index
    %140 = vector.load %arg1[%c0_185, %c246, %c0_186] : memref<1x400x320xbf16, #tpu.memory_space<vmem>>, vector<1x8x320xbf16>
    %141 = vector.shape_cast %140 : vector<1x8x320xbf16> to vector<8x320xbf16>
    %c48_187 = arith.constant 48 : index
    %c0_188 = arith.constant 0 : index
    %142 = vector.load %arg7[%c48_187, %c0_188] : memref<64x320xbf16, #tpu.memory_space<vmem>>, vector<8x320xbf16>
    tpu.vector_store %arg7[%c48_187, %c0_188], %141 {strides = array<i32>} : memref<64x320xbf16, #tpu.memory_space<vmem>>, vector<8x320xbf16>,
    %c0_189 = arith.constant 0 : index
    %c266 = arith.constant 266 : index
    %c0_190 = arith.constant 0 : index
    %143 = vector.load %arg1[%c0_189, %c266, %c0_190] : memref<1x400x320xbf16, #tpu.memory_space<vmem>>, vector<1x8x320xbf16>
    %144 = vector.shape_cast %143 : vector<1x8x320xbf16> to vector<8x320xbf16>
    %c56_191 = arith.constant 56 : index
    %c0_192 = arith.constant 0 : index
    %145 = vector.load %arg7[%c56_191, %c0_192] : memref<64x320xbf16, #tpu.memory_space<vmem>>, vector<8x320xbf16>
    tpu.vector_store %arg7[%c56_191, %c0_192], %144 {strides = array<i32>} : memref<64x320xbf16, #tpu.memory_space<vmem>>, vector<8x320xbf16>,
    %c0_193 = arith.constant 0 : index
    %c0_194 = arith.constant 0 : index
    %146 = vector.load %arg7[%c0_193, %c0_194] : memref<64x320xbf16, #tpu.memory_space<vmem>>, vector<64x320xbf16>
    %c4 = arith.constant 4 : index
    %c0_195 = arith.constant 0 : index
    %c0_196 = arith.constant 0 : index
    %147 = vector.load %arg2[%c4, %c0_195, %c0_196] : memref<9x320x320xbf16, #tpu.memory_space<vmem>>, vector<1x320x320xbf16>
    %148 = vector.shape_cast %147 : vector<1x320x320xbf16> to vector<320x320xbf16>
    %cst_197 = arith.constant dense<0.000000e+00> : vector<64x320xf32>
    %149 = tpu.matmul %146, %148, %cst_197 {dimension_numbers = #tpu.dot_dimension_numbers<[1], [0], [0], [1], [0, 0, 1, 1], [], []>} : vector<64x320xbf16>, vector<320x320xbf16>, vector<64x320xf32> -> vector<64x320xf32>
    %c0_198 = arith.constant 0 : index
    %c0_199 = arith.constant 0 : index
    %150 = vector.load %arg8[%c0_198, %c0_199] : memref<64x320xf32, #tpu.memory_space<vmem>>, vector<64x320xf32>
    %151 = arith.addf %150, %149 : vector<64x320xf32>
    %c0_200 = arith.constant 0 : index
    %c0_201 = arith.constant 0 : index
    %152 = vector.load %arg8[%c0_200, %c0_201] : memref<64x320xf32, #tpu.memory_space<vmem>>, vector<64x320xf32>
    tpu.vector_store %arg8[%c0_200, %c0_201], %151 {strides = array<i32>} : memref<64x320xf32, #tpu.memory_space<vmem>>, vector<64x320xf32>,
    %c0_202 = arith.constant 0 : index
    %c132_203 = arith.constant 132 : index
    %c0_204 = arith.constant 0 : index
    %153 = vector.load %arg1[%c0_202, %c132_203, %c0_204] : memref<1x400x320xbf16, #tpu.memory_space<vmem>>, vector<1x8x320xbf16>
    %154 = vector.shape_cast %153 : vector<1x8x320xbf16> to vector<8x320xbf16>
    %c0_205 = arith.constant 0 : index
    %c0_206 = arith.constant 0 : index
    %155 = vector.load %arg7[%c0_205, %c0_206] : memref<64x320xbf16, #tpu.memory_space<vmem>>, vector<8x320xbf16>
    tpu.vector_store %arg7[%c0_205, %c0_206], %154 {strides = array<i32>} : memref<64x320xbf16, #tpu.memory_space<vmem>>, vector<8x320xbf16>,
    %c0_207 = arith.constant 0 : index
    %c152_208 = arith.constant 152 : index
    %c0_209 = arith.constant 0 : index
    %156 = vector.load %arg1[%c0_207, %c152_208, %c0_209] : memref<1x400x320xbf16, #tpu.memory_space<vmem>>, vector<1x8x320xbf16>
    %157 = vector.shape_cast %156 : vector<1x8x320xbf16> to vector<8x320xbf16>
    %c8_210 = arith.constant 8 : index
    %c0_211 = arith.constant 0 : index
    %158 = vector.load %arg7[%c8_210, %c0_211] : memref<64x320xbf16, #tpu.memory_space<vmem>>, vector<8x320xbf16>
    tpu.vector_store %arg7[%c8_210, %c0_211], %157 {strides = array<i32>} : memref<64x320xbf16, #tpu.memory_space<vmem>>, vector<8x320xbf16>,
    %c0_212 = arith.constant 0 : index
    %c172 = arith.constant 172 : index
    %c0_213 = arith.constant 0 : index
    %159 = vector.load %arg1[%c0_212, %c172, %c0_213] : memref<1x400x320xbf16, #tpu.memory_space<vmem>>, vector<1x8x320xbf16>
    %160 = vector.shape_cast %159 : vector<1x8x320xbf16> to vector<8x320xbf16>
    %c16_214 = arith.constant 16 : index
    %c0_215 = arith.constant 0 : index
    %161 = vector.load %arg7[%c16_214, %c0_215] : memref<64x320xbf16, #tpu.memory_space<vmem>>, vector<8x320xbf16>
    tpu.vector_store %arg7[%c16_214, %c0_215], %160 {strides = array<i32>} : memref<64x320xbf16, #tpu.memory_space<vmem>>, vector<8x320xbf16>,
    %c0_216 = arith.constant 0 : index
    %c192 = arith.constant 192 : index
    %c0_217 = arith.constant 0 : index
    %162 = vector.load %arg1[%c0_216, %c192, %c0_217] : memref<1x400x320xbf16, #tpu.memory_space<vmem>>, vector<1x8x320xbf16>
    %163 = vector.shape_cast %162 : vector<1x8x320xbf16> to vector<8x320xbf16>
    %c24_218 = arith.constant 24 : index
    %c0_219 = arith.constant 0 : index
    %164 = vector.load %arg7[%c24_218, %c0_219] : memref<64x320xbf16, #tpu.memory_space<vmem>>, vector<8x320xbf16>
    tpu.vector_store %arg7[%c24_218, %c0_219], %163 {strides = array<i32>} : memref<64x320xbf16, #tpu.memory_space<vmem>>, vector<8x320xbf16>,
    %c0_220 = arith.constant 0 : index
    %c212 = arith.constant 212 : index
    %c0_221 = arith.constant 0 : index
    %165 = vector.load %arg1[%c0_220, %c212, %c0_221] : memref<1x400x320xbf16, #tpu.memory_space<vmem>>, vector<1x8x320xbf16>
    %166 = vector.shape_cast %165 : vector<1x8x320xbf16> to vector<8x320xbf16>
    %c32_222 = arith.constant 32 : index
    %c0_223 = arith.constant 0 : index
    %167 = vector.load %arg7[%c32_222, %c0_223] : memref<64x320xbf16, #tpu.memory_space<vmem>>, vector<8x320xbf16>
    tpu.vector_store %arg7[%c32_222, %c0_223], %166 {strides = array<i32>} : memref<64x320xbf16, #tpu.memory_space<vmem>>, vector<8x320xbf16>,
    %c0_224 = arith.constant 0 : index
    %c232 = arith.constant 232 : index
    %c0_225 = arith.constant 0 : index
    %168 = vector.load %arg1[%c0_224, %c232, %c0_225] : memref<1x400x320xbf16, #tpu.memory_space<vmem>>, vector<1x8x320xbf16>
    %169 = vector.shape_cast %168 : vector<1x8x320xbf16> to vector<8x320xbf16>
    %c40_226 = arith.constant 40 : index
    %c0_227 = arith.constant 0 : index
    %170 = vector.load %arg7[%c40_226, %c0_227] : memref<64x320xbf16, #tpu.memory_space<vmem>>, vector<8x320xbf16>
    tpu.vector_store %arg7[%c40_226, %c0_227], %169 {strides = array<i32>} : memref<64x320xbf16, #tpu.memory_space<vmem>>, vector<8x320xbf16>,
    %c0_228 = arith.constant 0 : index
    %c252 = arith.constant 252 : index
    %c0_229 = arith.constant 0 : index
    %171 = vector.load %arg1[%c0_228, %c252, %c0_229] : memref<1x400x320xbf16, #tpu.memory_space<vmem>>, vector<1x8x320xbf16>
    %172 = vector.shape_cast %171 : vector<1x8x320xbf16> to vector<8x320xbf16>
    %c48_230 = arith.constant 48 : index
    %c0_231 = arith.constant 0 : index
    %173 = vector.load %arg7[%c48_230, %c0_231] : memref<64x320xbf16, #tpu.memory_space<vmem>>, vector<8x320xbf16>
    tpu.vector_store %arg7[%c48_230, %c0_231], %172 {strides = array<i32>} : memref<64x320xbf16, #tpu.memory_space<vmem>>, vector<8x320xbf16>,
    %c0_232 = arith.constant 0 : index
    %c272 = arith.constant 272 : index
    %c0_233 = arith.constant 0 : index
    %174 = vector.load %arg1[%c0_232, %c272, %c0_233] : memref<1x400x320xbf16, #tpu.memory_space<vmem>>, vector<1x8x320xbf16>
    %175 = vector.shape_cast %174 : vector<1x8x320xbf16> to vector<8x320xbf16>
    %c56_234 = arith.constant 56 : index
    %c0_235 = arith.constant 0 : index
    %176 = vector.load %arg7[%c56_234, %c0_235] : memref<64x320xbf16, #tpu.memory_space<vmem>>, vector<8x320xbf16>
    tpu.vector_store %arg7[%c56_234, %c0_235], %175 {strides = array<i32>} : memref<64x320xbf16, #tpu.memory_space<vmem>>, vector<8x320xbf16>,
    %c0_236 = arith.constant 0 : index
    %c0_237 = arith.constant 0 : index
    %177 = vector.load %arg7[%c0_236, %c0_237] : memref<64x320xbf16, #tpu.memory_space<vmem>>, vector<64x320xbf16>
    %c5 = arith.constant 5 : index
    %c0_238 = arith.constant 0 : index
    %c0_239 = arith.constant 0 : index
    %178 = vector.load %arg2[%c5, %c0_238, %c0_239] : memref<9x320x320xbf16, #tpu.memory_space<vmem>>, vector<1x320x320xbf16>
    %179 = vector.shape_cast %178 : vector<1x320x320xbf16> to vector<320x320xbf16>
    %cst_240 = arith.constant dense<0.000000e+00> : vector<64x320xf32>
    %180 = tpu.matmul %177, %179, %cst_240 {dimension_numbers = #tpu.dot_dimension_numbers<[1], [0], [0], [1], [0, 0, 1, 1], [], []>} : vector<64x320xbf16>, vector<320x320xbf16>, vector<64x320xf32> -> vector<64x320xf32>
    %c0_241 = arith.constant 0 : index
    %c0_242 = arith.constant 0 : index
    %181 = vector.load %arg8[%c0_241, %c0_242] : memref<64x320xf32, #tpu.memory_space<vmem>>, vector<64x320xf32>
    %182 = arith.addf %181, %180 : vector<64x320xf32>
    %c0_243 = arith.constant 0 : index
    %c0_244 = arith.constant 0 : index
    %183 = vector.load %arg8[%c0_243, %c0_244] : memref<64x320xf32, #tpu.memory_space<vmem>>, vector<64x320xf32>
    tpu.vector_store %arg8[%c0_243, %c0_244], %182 {strides = array<i32>} : memref<64x320xf32, #tpu.memory_space<vmem>>, vector<64x320xf32>,
    %c0_245 = arith.constant 0 : index
    %c240_246 = arith.constant 240 : index
    %c0_247 = arith.constant 0 : index
    %184 = vector.load %arg1[%c0_245, %c240_246, %c0_247] : memref<1x400x320xbf16, #tpu.memory_space<vmem>>, vector<1x8x320xbf16>
    %185 = vector.shape_cast %184 : vector<1x8x320xbf16> to vector<8x320xbf16>
    %c0_248 = arith.constant 0 : index
    %c0_249 = arith.constant 0 : index
    %186 = vector.load %arg7[%c0_248, %c0_249] : memref<64x320xbf16, #tpu.memory_space<vmem>>, vector<8x320xbf16>
    tpu.vector_store %arg7[%c0_248, %c0_249], %185 {strides = array<i32>} : memref<64x320xbf16, #tpu.memory_space<vmem>>, vector<8x320xbf16>,
    %c0_250 = arith.constant 0 : index
    %c260_251 = arith.constant 260 : index
    %c0_252 = arith.constant 0 : index
    %187 = vector.load %arg1[%c0_250, %c260_251, %c0_252] : memref<1x400x320xbf16, #tpu.memory_space<vmem>>, vector<1x8x320xbf16>
    %188 = vector.shape_cast %187 : vector<1x8x320xbf16> to vector<8x320xbf16>
    %c8_253 = arith.constant 8 : index
    %c0_254 = arith.constant 0 : index
    %189 = vector.load %arg7[%c8_253, %c0_254] : memref<64x320xbf16, #tpu.memory_space<vmem>>, vector<8x320xbf16>
    tpu.vector_store %arg7[%c8_253, %c0_254], %188 {strides = array<i32>} : memref<64x320xbf16, #tpu.memory_space<vmem>>, vector<8x320xbf16>,
    %c0_255 = arith.constant 0 : index
    %c280 = arith.constant 280 : index
    %c0_256 = arith.constant 0 : index
    %190 = vector.load %arg1[%c0_255, %c280, %c0_256] : memref<1x400x320xbf16, #tpu.memory_space<vmem>>, vector<1x8x320xbf16>
    %191 = vector.shape_cast %190 : vector<1x8x320xbf16> to vector<8x320xbf16>
    %c16_257 = arith.constant 16 : index
    %c0_258 = arith.constant 0 : index
    %192 = vector.load %arg7[%c16_257, %c0_258] : memref<64x320xbf16, #tpu.memory_space<vmem>>, vector<8x320xbf16>
    tpu.vector_store %arg7[%c16_257, %c0_258], %191 {strides = array<i32>} : memref<64x320xbf16, #tpu.memory_space<vmem>>, vector<8x320xbf16>,
    %c0_259 = arith.constant 0 : index
    %c300 = arith.constant 300 : index
    %c0_260 = arith.constant 0 : index
    %193 = vector.load %arg1[%c0_259, %c300, %c0_260] : memref<1x400x320xbf16, #tpu.memory_space<vmem>>, vector<1x8x320xbf16>
    %194 = vector.shape_cast %193 : vector<1x8x320xbf16> to vector<8x320xbf16>
    %c24_261 = arith.constant 24 : index
    %c0_262 = arith.constant 0 : index
    %195 = vector.load %arg7[%c24_261, %c0_262] : memref<64x320xbf16, #tpu.memory_space<vmem>>, vector<8x320xbf16>
    tpu.vector_store %arg7[%c24_261, %c0_262], %194 {strides = array<i32>} : memref<64x320xbf16, #tpu.memory_space<vmem>>, vector<8x320xbf16>,
    %c0_263 = arith.constant 0 : index
    %c320 = arith.constant 320 : index
    %c0_264 = arith.constant 0 : index
    %196 = vector.load %arg1[%c0_263, %c320, %c0_264] : memref<1x400x320xbf16, #tpu.memory_space<vmem>>, vector<1x8x320xbf16>
    %197 = vector.shape_cast %196 : vector<1x8x320xbf16> to vector<8x320xbf16>
    %c32_265 = arith.constant 32 : index
    %c0_266 = arith.constant 0 : index
    %198 = vector.load %arg7[%c32_265, %c0_266] : memref<64x320xbf16, #tpu.memory_space<vmem>>, vector<8x320xbf16>
    tpu.vector_store %arg7[%c32_265, %c0_266], %197 {strides = array<i32>} : memref<64x320xbf16, #tpu.memory_space<vmem>>, vector<8x320xbf16>,
    %c0_267 = arith.constant 0 : index
    %c340 = arith.constant 340 : index
    %c0_268 = arith.constant 0 : index
    %199 = vector.load %arg1[%c0_267, %c340, %c0_268] : memref<1x400x320xbf16, #tpu.memory_space<vmem>>, vector<1x8x320xbf16>
    %200 = vector.shape_cast %199 : vector<1x8x320xbf16> to vector<8x320xbf16>
    %c40_269 = arith.constant 40 : index
    %c0_270 = arith.constant 0 : index
    %201 = vector.load %arg7[%c40_269, %c0_270] : memref<64x320xbf16, #tpu.memory_space<vmem>>, vector<8x320xbf16>
    tpu.vector_store %arg7[%c40_269, %c0_270], %200 {strides = array<i32>} : memref<64x320xbf16, #tpu.memory_space<vmem>>, vector<8x320xbf16>,
    %c0_271 = arith.constant 0 : index
    %c360 = arith.constant 360 : index
    %c0_272 = arith.constant 0 : index
    %202 = vector.load %arg1[%c0_271, %c360, %c0_272] : memref<1x400x320xbf16, #tpu.memory_space<vmem>>, vector<1x8x320xbf16>
    %203 = vector.shape_cast %202 : vector<1x8x320xbf16> to vector<8x320xbf16>
    %c48_273 = arith.constant 48 : index
    %c0_274 = arith.constant 0 : index
    %204 = vector.load %arg7[%c48_273, %c0_274] : memref<64x320xbf16, #tpu.memory_space<vmem>>, vector<8x320xbf16>
    tpu.vector_store %arg7[%c48_273, %c0_274], %203 {strides = array<i32>} : memref<64x320xbf16, #tpu.memory_space<vmem>>, vector<8x320xbf16>,
    %c0_275 = arith.constant 0 : index
    %c380 = arith.constant 380 : index
    %c0_276 = arith.constant 0 : index
    %205 = vector.load %arg1[%c0_275, %c380, %c0_276] : memref<1x400x320xbf16, #tpu.memory_space<vmem>>, vector<1x8x320xbf16>
    %206 = vector.shape_cast %205 : vector<1x8x320xbf16> to vector<8x320xbf16>
    %c56_277 = arith.constant 56 : index
    %c0_278 = arith.constant 0 : index
    %207 = vector.load %arg7[%c56_277, %c0_278] : memref<64x320xbf16, #tpu.memory_space<vmem>>, vector<8x320xbf16>
    tpu.vector_store %arg7[%c56_277, %c0_278], %206 {strides = array<i32>} : memref<64x320xbf16, #tpu.memory_space<vmem>>, vector<8x320xbf16>,
    %c0_279 = arith.constant 0 : index
    %c0_280 = arith.constant 0 : index
    %208 = vector.load %arg7[%c0_279, %c0_280] : memref<64x320xbf16, #tpu.memory_space<vmem>>, vector<64x320xbf16>
    %c6_281 = arith.constant 6 : index
    %c0_282 = arith.constant 0 : index
    %c0_283 = arith.constant 0 : index
    %209 = vector.load %arg2[%c6_281, %c0_282, %c0_283] : memref<9x320x320xbf16, #tpu.memory_space<vmem>>, vector<1x320x320xbf16>
    %210 = vector.shape_cast %209 : vector<1x320x320xbf16> to vector<320x320xbf16>
    %cst_284 = arith.constant dense<0.000000e+00> : vector<64x320xf32>
    %211 = tpu.matmul %208, %210, %cst_284 {dimension_numbers = #tpu.dot_dimension_numbers<[1], [0], [0], [1], [0, 0, 1, 1], [], []>} : vector<64x320xbf16>, vector<320x320xbf16>, vector<64x320xf32> -> vector<64x320xf32>
    %c0_285 = arith.constant 0 : index
    %c0_286 = arith.constant 0 : index
    %212 = vector.load %arg8[%c0_285, %c0_286] : memref<64x320xf32, #tpu.memory_space<vmem>>, vector<64x320xf32>
    %213 = arith.addf %212, %211 : vector<64x320xf32>
    %c0_287 = arith.constant 0 : index
    %c0_288 = arith.constant 0 : index
    %214 = vector.load %arg8[%c0_287, %c0_288] : memref<64x320xf32, #tpu.memory_space<vmem>>, vector<64x320xf32>
    tpu.vector_store %arg8[%c0_287, %c0_288], %213 {strides = array<i32>} : memref<64x320xf32, #tpu.memory_space<vmem>>, vector<64x320xf32>,
    %c0_289 = arith.constant 0 : index
    %c246_290 = arith.constant 246 : index
    %c0_291 = arith.constant 0 : index
    %215 = vector.load %arg1[%c0_289, %c246_290, %c0_291] : memref<1x400x320xbf16, #tpu.memory_space<vmem>>, vector<1x8x320xbf16>
    %216 = vector.shape_cast %215 : vector<1x8x320xbf16> to vector<8x320xbf16>
    %c0_292 = arith.constant 0 : index
    %c0_293 = arith.constant 0 : index
    %217 = vector.load %arg7[%c0_292, %c0_293] : memref<64x320xbf16, #tpu.memory_space<vmem>>, vector<8x320xbf16>
    tpu.vector_store %arg7[%c0_292, %c0_293], %216 {strides = array<i32>} : memref<64x320xbf16, #tpu.memory_space<vmem>>, vector<8x320xbf16>,
    %c0_294 = arith.constant 0 : index
    %c266_295 = arith.constant 266 : index
    %c0_296 = arith.constant 0 : index
    %218 = vector.load %arg1[%c0_294, %c266_295, %c0_296] : memref<1x400x320xbf16, #tpu.memory_space<vmem>>, vector<1x8x320xbf16>
    %219 = vector.shape_cast %218 : vector<1x8x320xbf16> to vector<8x320xbf16>
    %c8_297 = arith.constant 8 : index
    %c0_298 = arith.constant 0 : index
    %220 = vector.load %arg7[%c8_297, %c0_298] : memref<64x320xbf16, #tpu.memory_space<vmem>>, vector<8x320xbf16>
    tpu.vector_store %arg7[%c8_297, %c0_298], %219 {strides = array<i32>} : memref<64x320xbf16, #tpu.memory_space<vmem>>, vector<8x320xbf16>,
    %c0_299 = arith.constant 0 : index
    %c286 = arith.constant 286 : index
    %c0_300 = arith.constant 0 : index
    %221 = vector.load %arg1[%c0_299, %c286, %c0_300] : memref<1x400x320xbf16, #tpu.memory_space<vmem>>, vector<1x8x320xbf16>
    %222 = vector.shape_cast %221 : vector<1x8x320xbf16> to vector<8x320xbf16>
    %c16_301 = arith.constant 16 : index
    %c0_302 = arith.constant 0 : index
    %223 = vector.load %arg7[%c16_301, %c0_302] : memref<64x320xbf16, #tpu.memory_space<vmem>>, vector<8x320xbf16>
    tpu.vector_store %arg7[%c16_301, %c0_302], %222 {strides = array<i32>} : memref<64x320xbf16, #tpu.memory_space<vmem>>, vector<8x320xbf16>,
    %c0_303 = arith.constant 0 : index
    %c306 = arith.constant 306 : index
    %c0_304 = arith.constant 0 : index
    %224 = vector.load %arg1[%c0_303, %c306, %c0_304] : memref<1x400x320xbf16, #tpu.memory_space<vmem>>, vector<1x8x320xbf16>
    %225 = vector.shape_cast %224 : vector<1x8x320xbf16> to vector<8x320xbf16>
    %c24_305 = arith.constant 24 : index
    %c0_306 = arith.constant 0 : index
    %226 = vector.load %arg7[%c24_305, %c0_306] : memref<64x320xbf16, #tpu.memory_space<vmem>>, vector<8x320xbf16>
    tpu.vector_store %arg7[%c24_305, %c0_306], %225 {strides = array<i32>} : memref<64x320xbf16, #tpu.memory_space<vmem>>, vector<8x320xbf16>,
    %c0_307 = arith.constant 0 : index
    %c326 = arith.constant 326 : index
    %c0_308 = arith.constant 0 : index
    %227 = vector.load %arg1[%c0_307, %c326, %c0_308] : memref<1x400x320xbf16, #tpu.memory_space<vmem>>, vector<1x8x320xbf16>
    %228 = vector.shape_cast %227 : vector<1x8x320xbf16> to vector<8x320xbf16>
    %c32_309 = arith.constant 32 : index
    %c0_310 = arith.constant 0 : index
    %229 = vector.load %arg7[%c32_309, %c0_310] : memref<64x320xbf16, #tpu.memory_space<vmem>>, vector<8x320xbf16>
    tpu.vector_store %arg7[%c32_309, %c0_310], %228 {strides = array<i32>} : memref<64x320xbf16, #tpu.memory_space<vmem>>, vector<8x320xbf16>,
    %c0_311 = arith.constant 0 : index
    %c346 = arith.constant 346 : index
    %c0_312 = arith.constant 0 : index
    %230 = vector.load %arg1[%c0_311, %c346, %c0_312] : memref<1x400x320xbf16, #tpu.memory_space<vmem>>, vector<1x8x320xbf16>
    %231 = vector.shape_cast %230 : vector<1x8x320xbf16> to vector<8x320xbf16>
    %c40_313 = arith.constant 40 : index
    %c0_314 = arith.constant 0 : index
    %232 = vector.load %arg7[%c40_313, %c0_314] : memref<64x320xbf16, #tpu.memory_space<vmem>>, vector<8x320xbf16>
    tpu.vector_store %arg7[%c40_313, %c0_314], %231 {strides = array<i32>} : memref<64x320xbf16, #tpu.memory_space<vmem>>, vector<8x320xbf16>,
    %c0_315 = arith.constant 0 : index
    %c366 = arith.constant 366 : index
    %c0_316 = arith.constant 0 : index
    %233 = vector.load %arg1[%c0_315, %c366, %c0_316] : memref<1x400x320xbf16, #tpu.memory_space<vmem>>, vector<1x8x320xbf16>
    %234 = vector.shape_cast %233 : vector<1x8x320xbf16> to vector<8x320xbf16>
    %c48_317 = arith.constant 48 : index
    %c0_318 = arith.constant 0 : index
    %235 = vector.load %arg7[%c48_317, %c0_318] : memref<64x320xbf16, #tpu.memory_space<vmem>>, vector<8x320xbf16>
    tpu.vector_store %arg7[%c48_317, %c0_318], %234 {strides = array<i32>} : memref<64x320xbf16, #tpu.memory_space<vmem>>, vector<8x320xbf16>,
    %c0_319 = arith.constant 0 : index
    %c386 = arith.constant 386 : index
    %c0_320 = arith.constant 0 : index
    %236 = vector.load %arg1[%c0_319, %c386, %c0_320] : memref<1x400x320xbf16, #tpu.memory_space<vmem>>, vector<1x8x320xbf16>
    %237 = vector.shape_cast %236 : vector<1x8x320xbf16> to vector<8x320xbf16>
    %c56_321 = arith.constant 56 : index
    %c0_322 = arith.constant 0 : index
    %238 = vector.load %arg7[%c56_321, %c0_322] : memref<64x320xbf16, #tpu.memory_space<vmem>>, vector<8x320xbf16>
    tpu.vector_store %arg7[%c56_321, %c0_322], %237 {strides = array<i32>} : memref<64x320xbf16, #tpu.memory_space<vmem>>, vector<8x320xbf16>,
    %c0_323 = arith.constant 0 : index
    %c0_324 = arith.constant 0 : index
    %239 = vector.load %arg7[%c0_323, %c0_324] : memref<64x320xbf16, #tpu.memory_space<vmem>>, vector<64x320xbf16>
    %c7 = arith.constant 7 : index
    %c0_325 = arith.constant 0 : index
    %c0_326 = arith.constant 0 : index
    %240 = vector.load %arg2[%c7, %c0_325, %c0_326] : memref<9x320x320xbf16, #tpu.memory_space<vmem>>, vector<1x320x320xbf16>
    %241 = vector.shape_cast %240 : vector<1x320x320xbf16> to vector<320x320xbf16>
    %cst_327 = arith.constant dense<0.000000e+00> : vector<64x320xf32>
    %242 = tpu.matmul %239, %241, %cst_327 {dimension_numbers = #tpu.dot_dimension_numbers<[1], [0], [0], [1], [0, 0, 1, 1], [], []>} : vector<64x320xbf16>, vector<320x320xbf16>, vector<64x320xf32> -> vector<64x320xf32>
    %c0_328 = arith.constant 0 : index
    %c0_329 = arith.constant 0 : index
    %243 = vector.load %arg8[%c0_328, %c0_329] : memref<64x320xf32, #tpu.memory_space<vmem>>, vector<64x320xf32>
    %244 = arith.addf %243, %242 : vector<64x320xf32>
    %c0_330 = arith.constant 0 : index
    %c0_331 = arith.constant 0 : index
    %245 = vector.load %arg8[%c0_330, %c0_331] : memref<64x320xf32, #tpu.memory_space<vmem>>, vector<64x320xf32>
    tpu.vector_store %arg8[%c0_330, %c0_331], %244 {strides = array<i32>} : memref<64x320xf32, #tpu.memory_space<vmem>>, vector<64x320xf32>,
    %c0_332 = arith.constant 0 : index
    %c252_333 = arith.constant 252 : index
    %c0_334 = arith.constant 0 : index
    %246 = vector.load %arg1[%c0_332, %c252_333, %c0_334] : memref<1x400x320xbf16, #tpu.memory_space<vmem>>, vector<1x8x320xbf16>
    %247 = vector.shape_cast %246 : vector<1x8x320xbf16> to vector<8x320xbf16>
    %c0_335 = arith.constant 0 : index
    %c0_336 = arith.constant 0 : index
    %248 = vector.load %arg7[%c0_335, %c0_336] : memref<64x320xbf16, #tpu.memory_space<vmem>>, vector<8x320xbf16>
    tpu.vector_store %arg7[%c0_335, %c0_336], %247 {strides = array<i32>} : memref<64x320xbf16, #tpu.memory_space<vmem>>, vector<8x320xbf16>,
    %c0_337 = arith.constant 0 : index
    %c272_338 = arith.constant 272 : index
    %c0_339 = arith.constant 0 : index
    %249 = vector.load %arg1[%c0_337, %c272_338, %c0_339] : memref<1x400x320xbf16, #tpu.memory_space<vmem>>, vector<1x8x320xbf16>
    %250 = vector.shape_cast %249 : vector<1x8x320xbf16> to vector<8x320xbf16>
    %c8_340 = arith.constant 8 : index
    %c0_341 = arith.constant 0 : index
    %251 = vector.load %arg7[%c8_340, %c0_341] : memref<64x320xbf16, #tpu.memory_space<vmem>>, vector<8x320xbf16>
    tpu.vector_store %arg7[%c8_340, %c0_341], %250 {strides = array<i32>} : memref<64x320xbf16, #tpu.memory_space<vmem>>, vector<8x320xbf16>,
    %c0_342 = arith.constant 0 : index
    %c292 = arith.constant 292 : index
    %c0_343 = arith.constant 0 : index
    %252 = vector.load %arg1[%c0_342, %c292, %c0_343] : memref<1x400x320xbf16, #tpu.memory_space<vmem>>, vector<1x8x320xbf16>
    %253 = vector.shape_cast %252 : vector<1x8x320xbf16> to vector<8x320xbf16>
    %c16_344 = arith.constant 16 : index
    %c0_345 = arith.constant 0 : index
    %254 = vector.load %arg7[%c16_344, %c0_345] : memref<64x320xbf16, #tpu.memory_space<vmem>>, vector<8x320xbf16>
    tpu.vector_store %arg7[%c16_344, %c0_345], %253 {strides = array<i32>} : memref<64x320xbf16, #tpu.memory_space<vmem>>, vector<8x320xbf16>,
    %c0_346 = arith.constant 0 : index
    %c312 = arith.constant 312 : index
    %c0_347 = arith.constant 0 : index
    %255 = vector.load %arg1[%c0_346, %c312, %c0_347] : memref<1x400x320xbf16, #tpu.memory_space<vmem>>, vector<1x8x320xbf16>
    %256 = vector.shape_cast %255 : vector<1x8x320xbf16> to vector<8x320xbf16>
    %c24_348 = arith.constant 24 : index
    %c0_349 = arith.constant 0 : index
    %257 = vector.load %arg7[%c24_348, %c0_349] : memref<64x320xbf16, #tpu.memory_space<vmem>>, vector<8x320xbf16>
    tpu.vector_store %arg7[%c24_348, %c0_349], %256 {strides = array<i32>} : memref<64x320xbf16, #tpu.memory_space<vmem>>, vector<8x320xbf16>,
    %c0_350 = arith.constant 0 : index
    %c332 = arith.constant 332 : index
    %c0_351 = arith.constant 0 : index
    %258 = vector.load %arg1[%c0_350, %c332, %c0_351] : memref<1x400x320xbf16, #tpu.memory_space<vmem>>, vector<1x8x320xbf16>
    %259 = vector.shape_cast %258 : vector<1x8x320xbf16> to vector<8x320xbf16>
    %c32_352 = arith.constant 32 : index
    %c0_353 = arith.constant 0 : index
    %260 = vector.load %arg7[%c32_352, %c0_353] : memref<64x320xbf16, #tpu.memory_space<vmem>>, vector<8x320xbf16>
    tpu.vector_store %arg7[%c32_352, %c0_353], %259 {strides = array<i32>} : memref<64x320xbf16, #tpu.memory_space<vmem>>, vector<8x320xbf16>,
    %c0_354 = arith.constant 0 : index
    %c352 = arith.constant 352 : index
    %c0_355 = arith.constant 0 : index
    %261 = vector.load %arg1[%c0_354, %c352, %c0_355] : memref<1x400x320xbf16, #tpu.memory_space<vmem>>, vector<1x8x320xbf16>
    %262 = vector.shape_cast %261 : vector<1x8x320xbf16> to vector<8x320xbf16>
    %c40_356 = arith.constant 40 : index
    %c0_357 = arith.constant 0 : index
    %263 = vector.load %arg7[%c40_356, %c0_357] : memref<64x320xbf16, #tpu.memory_space<vmem>>, vector<8x320xbf16>
    tpu.vector_store %arg7[%c40_356, %c0_357], %262 {strides = array<i32>} : memref<64x320xbf16, #tpu.memory_space<vmem>>, vector<8x320xbf16>,
    %c0_358 = arith.constant 0 : index
    %c372 = arith.constant 372 : index
    %c0_359 = arith.constant 0 : index
    %264 = vector.load %arg1[%c0_358, %c372, %c0_359] : memref<1x400x320xbf16, #tpu.memory_space<vmem>>, vector<1x8x320xbf16>
    %265 = vector.shape_cast %264 : vector<1x8x320xbf16> to vector<8x320xbf16>
    %c48_360 = arith.constant 48 : index
    %c0_361 = arith.constant 0 : index
    %266 = vector.load %arg7[%c48_360, %c0_361] : memref<64x320xbf16, #tpu.memory_space<vmem>>, vector<8x320xbf16>
    tpu.vector_store %arg7[%c48_360, %c0_361], %265 {strides = array<i32>} : memref<64x320xbf16, #tpu.memory_space<vmem>>, vector<8x320xbf16>,
    %c0_362 = arith.constant 0 : index
    %c392 = arith.constant 392 : index
    %c0_363 = arith.constant 0 : index
    %267 = vector.load %arg1[%c0_362, %c392, %c0_363] : memref<1x400x320xbf16, #tpu.memory_space<vmem>>, vector<1x8x320xbf16>
    %268 = vector.shape_cast %267 : vector<1x8x320xbf16> to vector<8x320xbf16>
    %c56_364 = arith.constant 56 : index
    %c0_365 = arith.constant 0 : index
    %269 = vector.load %arg7[%c56_364, %c0_365] : memref<64x320xbf16, #tpu.memory_space<vmem>>, vector<8x320xbf16>
    tpu.vector_store %arg7[%c56_364, %c0_365], %268 {strides = array<i32>} : memref<64x320xbf16, #tpu.memory_space<vmem>>, vector<8x320xbf16>,
    %c0_366 = arith.constant 0 : index
    %c0_367 = arith.constant 0 : index
    %270 = vector.load %arg7[%c0_366, %c0_367] : memref<64x320xbf16, #tpu.memory_space<vmem>>, vector<64x320xbf16>
    %c8_368 = arith.constant 8 : index
    %c0_369 = arith.constant 0 : index
    %c0_370 = arith.constant 0 : index
    %271 = vector.load %arg2[%c8_368, %c0_369, %c0_370] : memref<9x320x320xbf16, #tpu.memory_space<vmem>>, vector<1x320x320xbf16>
    %272 = vector.shape_cast %271 : vector<1x320x320xbf16> to vector<320x320xbf16>
    %cst_371 = arith.constant dense<0.000000e+00> : vector<64x320xf32>
    %273 = tpu.matmul %270, %272, %cst_371 {dimension_numbers = #tpu.dot_dimension_numbers<[1], [0], [0], [1], [0, 0, 1, 1], [], []>} : vector<64x320xbf16>, vector<320x320xbf16>, vector<64x320xf32> -> vector<64x320xf32>
    %c0_372 = arith.constant 0 : index
    %c0_373 = arith.constant 0 : index
    %274 = vector.load %arg8[%c0_372, %c0_373] : memref<64x320xf32, #tpu.memory_space<vmem>>, vector<64x320xf32>
    %275 = arith.addf %274, %273 : vector<64x320xf32>
    %c0_374 = arith.constant 0 : index
    %c0_375 = arith.constant 0 : index
    %276 = vector.load %arg8[%c0_374, %c0_375] : memref<64x320xf32, #tpu.memory_space<vmem>>, vector<64x320xf32>
    tpu.vector_store %arg8[%c0_374, %c0_375], %275 {strides = array<i32>} : memref<64x320xf32, #tpu.memory_space<vmem>>, vector<64x320xf32>,
    %c0_376 = arith.constant 0 : index
    %c0_377 = arith.constant 0 : index
    %277 = vector.load %arg8[%c0_376, %c0_377] : memref<64x320xf32, #tpu.memory_space<vmem>>, vector<64x320xf32>
    %c0_378 = arith.constant 0 : index
    %c0_379 = arith.constant 0 : index
    %278 = vector.load %arg3[%c0_378, %c0_379] : memref<1x320xf32, #tpu.memory_space<vmem>>, vector<1x320xf32>
    %279 = vector.broadcast %278 : vector<1x320xf32> to vector<64x320xf32>
    %280 = arith.addf %277, %279 : vector<64x320xf32>
    %281 = arith.truncf %280 : vector<64x320xf32> to vector<64x320xbf16>
    %c0_380 = arith.constant 0 : index
    %c0_381 = arith.constant 0 : index
    %282 = vector.load %arg4[%c0_380, %c0_381] : memref<64x320xbf16, #tpu.memory_space<vmem>>, vector<64x320xbf16>
    tpu.vector_store %arg4[%c0_380, %c0_381], %281 {strides = array<i32>} : memref<64x320xbf16, #tpu.memory_space<vmem>>, vector<64x320xbf16>,
    %cst_382 = arith.constant dense<0.000000e+00> : vector<320xf32>
    %283 = vector.multi_reduction <add>, %280, %cst_382 [0] : vector<64x320xf32> to vector<320xf32>
    %284 = vector.shape_cast %283 : vector<320xf32> to vector<1x320xf32>
    %c0_383 = arith.constant 0 : index
    %c0_384 = arith.constant 0 : index
    %c0_385 = arith.constant 0 : index
    %285 = vector.load %arg5[%c0_383, %c0_384, %c0_385] : memref<1x1x320xf32, #tpu.memory_space<vmem>>, vector<1x1x320xf32>
    %286 = vector.shape_cast %285 : vector<1x1x320xf32> to vector<1x320xf32>
    %287 = vector.shape_cast %284 : vector<1x320xf32> to vector<1x1x320xf32>
    tpu.vector_store %arg5[%c0_383, %c0_384, %c0_385], %287 {strides = array<i32>} : memref<1x1x320xf32, #tpu.memory_space<vmem>>, vector<1x1x320xf32>,
    %288 = arith.mulf %280, %280 : vector<64x320xf32>
    %cst_386 = arith.constant dense<0.000000e+00> : vector<320xf32>
    %289 = vector.multi_reduction <add>, %288, %cst_386 [0] : vector<64x320xf32> to vector<320xf32>
    %290 = vector.shape_cast %289 : vector<320xf32> to vector<1x320xf32>
    %c0_387 = arith.constant 0 : index
    %c0_388 = arith.constant 0 : index
    %c0_389 = arith.constant 0 : index
    %291 = vector.load %arg6[%c0_387, %c0_388, %c0_389] : memref<1x1x320xf32, #tpu.memory_space<vmem>>, vector<1x1x320xf32>
    %292 = vector.shape_cast %291 : vector<1x1x320xf32> to vector<1x320xf32>
    %293 = vector.shape_cast %290 : vector<1x320xf32> to vector<1x1x320xf32>
    tpu.vector_store %arg6[%c0_387, %c0_388, %c0_389], %293 {strides = array<i32>} : memref<1x1x320xf32, #tpu.memory_space<vmem>>, vector<1x1x320xf32>,
    return
  }
  func.func @transform_0(%arg0: i32) -> (i32, i32, i32) {
    %c0_i32 = arith.constant 0 : i32
    %c0_i32_0 = arith.constant 0 : i32
    %c0_i32_1 = arith.constant 0 : i32
    return %arg0, %c0_i32, %c0_i32_0 : i32, i32, i32
  }
  func.func @transform_1(%arg0: i32) -> (i32, i32, i32) {
    %c0_i32 = arith.constant 0 : i32
    %c0_i32_0 = arith.constant 0 : i32
    %c0_i32_1 = arith.constant 0 : i32
    %c0_i32_2 = arith.constant 0 : i32
    return %c0_i32, %c0_i32_0, %c0_i32_1 : i32, i32, i32
  }
  func.func @transform_2(%arg0: i32) -> (i32, i32) {
    %c0_i32 = arith.constant 0 : i32
    %c0_i32_0 = arith.constant 0 : i32
    %c0_i32_1 = arith.constant 0 : i32
    return %c0_i32, %c0_i32_0 : i32, i32
  }
  func.func @transform_3(%arg0: i32) -> (i32, i32) {
    %c0_i32 = arith.constant 0 : i32
    %c0_i32_0 = arith.constant 0 : i32
    return %arg0, %c0_i32 : i32, i32
  }
  func.func @transform_4(%arg0: i32) -> (i32, i32, i32) {
    %c0_i32 = arith.constant 0 : i32
    %c0_i32_0 = arith.constant 0 : i32
    %c0_i32_1 = arith.constant 0 : i32
    return %arg0, %c0_i32, %c0_i32_0 : i32, i32, i32
  }
  func.func @transform_5(%arg0: i32) -> (i32, i32, i32) {
    %c0_i32 = arith.constant 0 : i32
    %c0_i32_0 = arith.constant 0 : i32
    %c0_i32_1 = arith.constant 0 : i32
    return %arg0, %c0_i32, %c0_i32_0 : i32, i32, i32
  }
}

module attributes {stable_mosaic.version = 11 : i64} {
  func.func @_bn_eca_kernel(%arg0: i32, %arg1: memref<1x64x320xbf16, #tpu.memory_space<vmem>>, %arg2: memref<1x1x320xf32, #tpu.memory_space<vmem>>, %arg3: memref<1x1x320xf32, #tpu.memory_space<vmem>>, %arg4: memref<320x320xf32, #tpu.memory_space<vmem>>, %arg5: memref<1x320xf32, #tpu.memory_space<vmem>>, %arg6: memref<1x64x320xf32, #tpu.memory_space<vmem>>) attributes {dimension_semantics = [#tpu.dimension_semantics<parallel>], iteration_bounds = array<i64: 2>, scalar_prefetch = 0 : i64, scratch_operands = 0 : i64, tpu.core_type = #tpu.core_type<tc>, window_params = [{transform_indices = @transform_0, window_bounds = array<i64: 1, 64, 320>}, {pipeline_mode = #tpu.pipeline_mode<synchronous>, transform_indices = @transform_1, window_bounds = array<i64: 1, 1, 320>}, {pipeline_mode = #tpu.pipeline_mode<synchronous>, transform_indices = @transform_2, window_bounds = array<i64: 1, 1, 320>}, {pipeline_mode = #tpu.pipeline_mode<synchronous>, transform_indices = @transform_3, window_bounds = array<i64: 320, 320>}, {pipeline_mode = #tpu.pipeline_mode<synchronous>, transform_indices = @transform_4, window_bounds = array<i64: 1, 320>}, {transform_indices = @transform_5, window_bounds = array<i64: 1, 64, 320>}]} {
    %c0 = arith.constant 0 : index
    %c0_0 = arith.constant 0 : index
    %c0_1 = arith.constant 0 : index
    %0 = vector.load %arg1[%c0, %c0_0, %c0_1] : memref<1x64x320xbf16, #tpu.memory_space<vmem>>, vector<1x64x320xbf16>
    %1 = arith.extf %0 : vector<1x64x320xbf16> to vector<1x64x320xf32>
    %c0_2 = arith.constant 0 : index
    %c0_3 = arith.constant 0 : index
    %c0_4 = arith.constant 0 : index
    %2 = vector.load %arg2[%c0_2, %c0_3, %c0_4] : memref<1x1x320xf32, #tpu.memory_space<vmem>>, vector<1x1x320xf32>
    %3 = vector.broadcast %2 : vector<1x1x320xf32> to vector<1x64x320xf32>
    %4 = arith.mulf %1, %3 : vector<1x64x320xf32>
    %c0_5 = arith.constant 0 : index
    %c0_6 = arith.constant 0 : index
    %c0_7 = arith.constant 0 : index
    %5 = vector.load %arg3[%c0_5, %c0_6, %c0_7] : memref<1x1x320xf32, #tpu.memory_space<vmem>>, vector<1x1x320xf32>
    %6 = vector.broadcast %5 : vector<1x1x320xf32> to vector<1x64x320xf32>
    %7 = arith.addf %4, %6 : vector<1x64x320xf32>
    %cst = arith.constant 0.000000e+00 : f32
    %8 = vector.broadcast %cst : f32 to vector<1x64x320xf32>
    %9 = arith.maximumf %7, %8 : vector<1x64x320xf32>
    %cst_8 = arith.constant dense<0.000000e+00> : vector<1x320xf32>
    %10 = vector.multi_reduction <add>, %9, %cst_8 [1] : vector<1x64x320xf32> to vector<1x320xf32>
    %cst_9 = arith.constant 6.400000e+01 : f32
    %11 = vector.broadcast %cst_9 : f32 to vector<1x320xf32>
    %12 = arith.divf %10, %11 : vector<1x320xf32>
    %c0_10 = arith.constant 0 : index
    %c0_11 = arith.constant 0 : index
    %13 = vector.load %arg4[%c0_10, %c0_11] : memref<320x320xf32, #tpu.memory_space<vmem>>, vector<320x320xf32>
    %cst_12 = arith.constant dense<0.000000e+00> : vector<1x320xf32>
    %14 = tpu.matmul %12, %13, %cst_12 {dimension_numbers = #tpu.dot_dimension_numbers<[1], [0], [0], [1], [0, 0, 1, 1], [], []>} : vector<1x320xf32>, vector<320x320xf32>, vector<1x320xf32> -> vector<1x320xf32>
    %c0_13 = arith.constant 0 : index
    %c0_14 = arith.constant 0 : index
    %15 = vector.load %arg5[%c0_13, %c0_14] : memref<1x320xf32, #tpu.memory_space<vmem>>, vector<1x320xf32>
    %16 = arith.addf %14, %15 : vector<1x320xf32>
    %cst_15 = arith.constant 0.000000e+00 : f32
    %17 = vector.broadcast %cst_15 : f32 to vector<1x320xf32>
    %18 = arith.subf %17, %16 : vector<1x320xf32>
    %19 = math.exp %18 : vector<1x320xf32>
    %cst_16 = arith.constant 1.000000e+00 : f32
    %20 = vector.broadcast %cst_16 : f32 to vector<1x320xf32>
    %21 = arith.addf %20, %19 : vector<1x320xf32>
    %cst_17 = arith.constant 1.000000e+00 : f32
    %22 = vector.broadcast %cst_17 : f32 to vector<1x320xf32>
    %23 = arith.divf %22, %21 : vector<1x320xf32>
    %24 = vector.shape_cast %23 : vector<1x320xf32> to vector<1x1x320xf32>
    %25 = vector.broadcast %24 : vector<1x1x320xf32> to vector<1x64x320xf32>
    %26 = arith.mulf %9, %25 : vector<1x64x320xf32>
    %c0_18 = arith.constant 0 : index
    %c0_19 = arith.constant 0 : index
    %c0_20 = arith.constant 0 : index
    %27 = vector.load %arg6[%c0_18, %c0_19, %c0_20] : memref<1x64x320xf32, #tpu.memory_space<vmem>>, vector<1x64x320xf32>
    tpu.vector_store %arg6[%c0_18, %c0_19, %c0_20], %26 {strides = array<i32>} : memref<1x64x320xf32, #tpu.memory_space<vmem>>, vector<1x64x320xf32>,
    return
  }
  func.func @transform_0(%arg0: i32) -> (i32, i32, i32) {
    %c0_i32 = arith.constant 0 : i32
    %c0_i32_0 = arith.constant 0 : i32
    %c0_i32_1 = arith.constant 0 : i32
    return %arg0, %c0_i32, %c0_i32_0 : i32, i32, i32
  }
  func.func @transform_1(%arg0: i32) -> (i32, i32, i32) {
    %c0_i32 = arith.constant 0 : i32
    %c0_i32_0 = arith.constant 0 : i32
    %c0_i32_1 = arith.constant 0 : i32
    %c0_i32_2 = arith.constant 0 : i32
    return %c0_i32, %c0_i32_0, %c0_i32_1 : i32, i32, i32
  }
  func.func @transform_2(%arg0: i32) -> (i32, i32, i32) {
    %c0_i32 = arith.constant 0 : i32
    %c0_i32_0 = arith.constant 0 : i32
    %c0_i32_1 = arith.constant 0 : i32
    %c0_i32_2 = arith.constant 0 : i32
    return %c0_i32, %c0_i32_0, %c0_i32_1 : i32, i32, i32
  }
  func.func @transform_3(%arg0: i32) -> (i32, i32) {
    %c0_i32 = arith.constant 0 : i32
    %c0_i32_0 = arith.constant 0 : i32
    %c0_i32_1 = arith.constant 0 : i32
    return %c0_i32, %c0_i32_0 : i32, i32
  }
  func.func @transform_4(%arg0: i32) -> (i32, i32) {
    %c0_i32 = arith.constant 0 : i32
    %c0_i32_0 = arith.constant 0 : i32
    %c0_i32_1 = arith.constant 0 : i32
    return %c0_i32, %c0_i32_0 : i32, i32
  }
  func.func @transform_5(%arg0: i32) -> (i32, i32, i32) {
    %c0_i32 = arith.constant 0 : i32
    %c0_i32_0 = arith.constant 0 : i32
    %c0_i32_1 = arith.constant 0 : i32
    return %arg0, %c0_i32, %c0_i32_0 : i32, i32, i32
  }
}

</mosaic_0001>

<bundles_post_ra>
// kernel: eca_attention_forward.3
= control target key start
LH: loop header
LB: loop body
LE: loop exit
PB: predicated region body
PF: predicated region fallthrough
CT: control target
= control target key end

     0   :  { %10 = vsyncpa [#allocation3], 0  ;;  %s2039_s0 = inlined_call_operand.vmem [shape: bf16[2,64,320], index: 0, kind: input, shape index: {}]   ;;  %s2040_s1 = inlined_call_operand.vmem [shape: f32[1,1,320], index: 1, kind: input, shape index: {}]   ;;  %s2041_s2 = inlined_call_operand.vmem [shape: f32[1,1,320], index: 2, kind: input, shape index: {}]   ;;  %s2042_s3 = inlined_call_operand.vmem [shape: f32[320,320], index: 3, kind: input, shape index: {}]   ;;  %s2043_s4 = inlined_call_operand.vmem [shape: f32[1,320], index: 4, kind: input, shape index: {}]   ;;  %s2044_s5 = inlined_call_operand.hbm [shape: f32[2,64,320], index: 5, kind: output, shape index: {}]  }
   0x1   :  { %12 = vsyncpa [#allocation3 + $0x1], 0  ;;  %s1225_s18 = smov 0   ;;  %s1227_s19 = smov 0  }
   0x2   :  { %s1229_s20 = smov 0   ;;  %s1231_s21 = smov 0  }
   0x3 LB: > { %s1246_s22 = sadd.s32 4294967295, %s1188_s21   ;;  %s997_s23 = sadd.s32 4294967294, %s1188_s21   ;;  %s1188_s21 = sphi %s1231_s21, %s2062_s21   ;;  %s1184_s20 = sphi %s1229_s20, %s2061_s20   ;;  %s1180_s19 = sphi %s1227_s19, %s2060_s19   ;;  %s1176_s18 = sphi %s1225_s18, %s2059_s18  }
   0x4   : > { %s1250_s24 = sadd.s32 1, %s1188_s21   ;;  %s135_s25 = sadd.s32 1, %s1184_s20 }
   0x5   : > { %s132_s26 = ssub.s32 %s1188_s21, %s1250_s24  ;;  %p145_p0 = scmp.ne.s32.totalorder %s1184_s20, %s1180_s19 }
   0x6   : > { %p133_p1 = scmp.eq.s32.totalorder %s132_s26, 0  ;;  %p146_p2 = scmp.eq.s32.totalorder %s1246_s22, 1 }
   0x7   : > { %p151_p3 = scmp.ne.s32.totalorder %s1180_s19, %s1176_s18  ;;  %p152_p4 = scmp.eq.s32.totalorder %s997_s23, 1 }
   0x8   : > { %s1261_s27 = scalar_select %p133_p1, %s1184_s20, %s135_s25  }
   0x9   : > { %p1263_p5 = por %p146_p2, %p145_p0  ;;  %p1267_p6 = por %p152_p4, %p151_p3 }
   0xa   : > { %p1000_p7 = scmp.ge.s32.totalorder %s1188_s21, 1  ;;  %p190_p8 = scmp.lt.s32.totalorder %s1188_s21, 3 }
   0xc   : > { %p191_p9 = pnand %p1000_p7, %p190_p8 }
   0xd   : > { %p218_p10 = scmp.lt.s32.totalorder (!%p191_p9), %s1246_s22, 1  ;;  %s215_s26 = sand.u32 (!%p191_p9), 1, %s1180_s19  }
   0xe   : > { %194 = sbr.rel (%p191_p9) target bundleno = 374 (0x176), region = 40  ;;  %s1999_s12 = scalar_lea.sflag (!%p191_p9), [#allocation3], %s215_s26 }
   0xf   : > { %s1070_s6 = smul.u32 (!%p191_p9), 192, %s215_s26 }
  0x10   : > { %s1072_s8 = smul.u32 (!%p191_p9), 3072, %s1246_s22 }
  0x11   : > { %s1920_s7 = scalar_lea.vmem (!%p191_p9), [#allocation2], %s1070_s6 }
  0x12   : > { %s1969_s11 = scalar_lea.hbm (!%p191_p9), %s2044_s5, %s1072_s8 }
  0x13   : > { %v467_v0 = vld [vmem:[%s2042_s3 + $0x170] sm:$0xff]  ;;  %v466_v1 = vld [vmem:[%s2042_s3 + $0x168] sm:$0xff]  ;;  %v464_v2 = vld [vmem:[%s2042_s3 + $0x158] sm:$0xff]  ;;  %v1190_v4 = vmov 0.0   ;;  %s1315_s15 = scalar_select %p218_p10, %s1246_s22, 1  ;;  %v265_v19 = vlaneseq  ;;  %vm395_vm0 = vcmask 523264  }
  0x14   : > { %561 = vmatprep.subr.mxu0 %v467_v0  ;;  %v463_v3 = vld [vmem:[%s2042_s3 + $0x150] sm:$0xff]  ;;  %696 = vmatprep.mubr.f32.mxu1 %v1190_v4  ;;  %v461_v5 = vld [vmem:[%s2042_s3 + $0x140] sm:$0xff]  ;;  %v460_v6 = vld [vmem:[%s2042_s3 + $0x138] sm:$0xff]  ;;  %vm1191_vm1 = vmmov 0  }
  0x15   : > { %562 = vmatpush1.msra.mxu0 %v466_v1  ;;  %v458_v7 = vld [vmem:[%s2042_s3 + $0x128] sm:$0xff]  ;;  %v457_v8 = vld [vmem:[%s2042_s3 + $0x120] sm:$0xff]  ;;  %v455_v9 = vld [vmem:[%s2042_s3 + $0x110] sm:$0xff]  ;;  %s1071_s30 = smul.u32 96, %s1315_s15  ;;  %v1360_v29 = vshrl.u32 %v265_v19, 7  ;;  %s1192_s15 = smov [#allocation2]  }
  0x16   : > { %563 = vmatprep.subr.mxu0 %v464_v2  ;;  %v454_v10 = vld [vmem:[%s2042_s3 + $0x108] sm:$0xff]  ;;  %v452_v11 = vld [vmem:[%s2042_s3 + $0xf8] sm:$0xff]  ;;  %v451_v12 = vld [vmem:[%s2042_s3 + $0xf0] sm:$0xff]  ;;  %s1132_s14 = sshll.u32 %s1192_s15, 4  ;;  %s1133_s14 = int_to_ptr.vmem [resolvable:$false] %s1132_s14 }
  0x17   : > { %564 = vmatpush1.msra.mxu0 %v463_v3  ;;  %v539_v13 = vld [vmem:[%s2042_s3 + $0x3b0] sm:$0xff]  ;;  %v449_v14 = vld [vmem:[%s2042_s3 + $0xe0] sm:$0xff]  ;;  %v538_v15 = vld [vmem:[%s2042_s3 + $0x3a8] sm:$0xff]  ;;  %s1377_s9 = scalar_lea.vmem %s2039_s0, %s1071_s30  ;;  %v1398_v40 = vsub.s32 2, %v1360_v29  ;;  %s1134_s30 = scalar_lea.vmem %s1133_s14, 6144 }
  0x18   : > { %565 = vmatprep.subr.mxu0 %v461_v5  ;;  %648 = vmatprep.subr.mxu1 %v539_v13  ;;  %v536_v16 = vld [vmem:[%s2042_s3 + $0x398] sm:$0xff]  ;;  %v535_v18 = vld [vmem:[%s2042_s3 + $0x390] sm:$0xff]  ;;  %v446_v20 = vld [vmem:[%s2042_s3 + $0xc8] sm:$0xff] }
  0x19   : > { %566 = vmatpush1.msra.mxu0 %v460_v6  ;;  %v448_v17 = vld [vmem:[%s2042_s3 + $0xd8] sm:$0xff]  ;;  %649 = vmatpush1.msra.mxu1 %v538_v15  ;;  %v533_v21 = vld [vmem:[%s2042_s3 + $0x380] sm:$0xff]  ;;  %v530_v24 = vld [vmem:[%s2042_s3 + $0x368] sm:$0xff] }
  0x1a   : > { %567 = vmatprep.subr.mxu0 %v458_v7  ;;  %650 = vmatprep.subr.mxu1 %v536_v16  ;;  %v532_v22 = vld [vmem:[%s2042_s3 + $0x378] sm:$0xff]  ;;  %v445_v23 = vld [vmem:[%s2042_s3 + $0xc0] sm:$0xff]  ;;  %v443_v25 = vld [vmem:[%s2042_s3 + $0xb0] sm:$0xff] }
  0x1b   : > { %568 = vmatpush1.msra.mxu0 %v457_v8  ;;  %651 = vmatpush1.msra.mxu1 %v535_v18  ;;  %v529_v26 = vld [vmem:[%s2042_s3 + $0x360] sm:$0xff]  ;;  %v442_v27 = vld [vmem:[%s2042_s3 + $0xa8] sm:$0xff]  ;;  %v527_v28 = vld [vmem:[%s2042_s3 + $0x350] sm:$0xff] }
  0x1c   : > { %569 = vmatprep.subr.mxu0 %v455_v9  ;;  %652 = vmatprep.subr.mxu1 %v533_v21  ;;  %v440_v30 = vld [vmem:[%s2042_s3 + $0x98] sm:$0xff]  ;;  %v526_v31 = vld [vmem:[%s2042_s3 + $0x348] sm:$0xff]  ;;  %v439_v32 = vld [vmem:[%s2042_s3 + $0x90] sm:$0xff] }
  0x1d   : > { %570 = vmatpush1.msra.mxu0 %v454_v10  ;;  %653 = vmatpush1.msra.mxu1 %v532_v22  ;;  %v524_v33 = vld [vmem:[%s2042_s3 + $0x338] sm:$0xff]  ;;  %v437_v34 = vld [vmem:[%s2042_s3 + $0x80] sm:$0xff]  ;;  %v523_v36 = vld [vmem:[%s2042_s3 + $0x330] sm:$0xff] }
  0x1e   : > { %571 = vmatprep.subr.mxu0 %v452_v11  ;;  %654 = vmatprep.subr.mxu1 %v530_v24  ;;  %v436_v35 = vld [vmem:[%s2042_s3 + $0x78] sm:$0xff]  ;;  %v434_v37 = vld [vmem:[%s2042_s3 + $0x68] sm:$0xff]  ;;  %v433_v38 = vld [vmem:[%s2042_s3 + $0x60] sm:$0xff] }
  0x1f   : > { %572 = vmatpush1.msra.mxu0 %v451_v12  ;;  %655 = vmatpush1.msra.mxu1 %v529_v26  ;;  %v521_v39 = vld [vmem:[%s2042_s3 + $0x320] sm:$0xff]  ;;  %v431_v41 = vld [vmem:[%s2042_s3 + $0x50] sm:$0xff]  ;;  %v520_v42 = vld [vmem:[%s2042_s3 + $0x318] sm:$0xff] }
  0x20   : > { %573 = vmatprep.subr.mxu0 %v449_v14  ;;  %656 = vmatprep.subr.mxu1 %v527_v28  ;;  %v518_v43 = vld [vmem:[%s2042_s3 + $0x308] sm:$0xff]  ;;  %v232_v46 = vld [vmem:[%s1377_s9 + $0x38] ss:$12 sps:$4 sm:$0xff]   ;;  %v236_v47 = vld [vmem:[%s1377_s9 + $0x50] ss:$12 sps:$4 sm:$0xff]  }
  0x21   : > { %574 = vmatpush1.msra.mxu0 %v448_v17  ;;  %657 = vmatpush1.msra.mxu1 %v526_v31  ;;  %v224_v44 = vld [vmem:[%s1377_s9 + $0x8] ss:$12 sps:$4 sm:$0xff]   ;;  %v228_v45 = vld [vmem:[%s1377_s9 + $0x20] ss:$12 sps:$4 sm:$0xff]   ;;  %v253_v53 = vunpack.c.l.bf16 %v232_v46  ;;  %v256_v54 = vunpack.c.h.bf16 %v232_v46  ;;  %v516_v58 = vld [vmem:[%s2042_s3 + $0x2f8] sm:$0xff]  ;;  %v259_v59 = vunpack.c.l.bf16 %v236_v47  ;;  %v262_v60 = vunpack.c.h.bf16 %v236_v47 }
  0x22   : > { %575 = vmatprep.subr.mxu0 %v446_v20  ;;  %658 = vmatprep.subr.mxu1 %v524_v33  ;;  %v241_v48 = vunpack.c.l.bf16 %v224_v44  ;;  %v244_v49 = vunpack.c.h.bf16 %v224_v44  ;;  %v517_v50 = vld [vmem:[%s2042_s3 + $0x300] sm:$0xff]  ;;  %v247_v51 = vunpack.c.l.bf16 %v228_v45  ;;  %v250_v52 = vunpack.c.h.bf16 %v228_v45  ;;  %v430_v57 = vld [vmem:[%s2042_s3 + $0x48] sm:$0xff]  ;;  %v428_v63 = vld [vmem:[%s2042_s3 + $0x38] sm:$0xff] }
  0x23   : > { %576 = vmatpush1.msra.mxu0 %v445_v23  ;;  %659 = vmatpush1.msra.mxu1 %v523_v36  ;;  %v1419_v55 = vld [vmem:[%s2040_s1] sm:$0x7]  ;;  %v427_v0 = vld [vmem:[%s2042_s3 + $0x30] sm:$0xff]  ;;  %v424_v9 = vld [vmem:[%s2042_s3 + $0x18] sm:$0xff] }
  0x24   : > { %577 = vmatprep.subr.mxu0 %v443_v25  ;;  %660 = vmatprep.subr.mxu1 %v521_v39  ;;  %v1424_v56 = vld [vmem:[%s2041_s2] sm:$0x7]  ;;  %v276_v61 = vrot.slane %v1419_v55, %v1398_v40  ;;  %v422_v14 = vld [vmem:[%s2042_s3 + $0x8] sm:$0xff]  ;;  %v515_v22 = vld [vmem:[%s2042_s3 + $0x2f0] sm:$0xff]  ;;  %v1504_v39 = vsub.s32 0, %v1360_v29 }
  0x25   : > { %578 = vmatpush1.msra.mxu0 %v442_v27  ;;  %661 = vmatpush1.msra.mxu1 %v520_v42  ;;  %v317_v62 = vrot.slane %v1424_v56, %v1398_v40  ;;  %v425_v5 = vld [vmem:[%s2042_s3 + $0x20] sm:$0xff]  ;;  %v514_v27 = vld [vmem:[%s2042_s3 + $0x2e8] sm:$0xff]  ;;  %v511_v36 = vld [vmem:[%s2042_s3 + $0x2d0] sm:$0xff] }
  0x26   : > { %579 = vmatprep.subr.mxu0 %v440_v30  ;;  %662 = vmatprep.subr.mxu1 %v518_v43  ;;  %v282_v1 = vmul.f32 %v276_v61, %v241_v48  ;;  %v285_v2 = vmul.f32 %v276_v61, %v244_v49  ;;  %v288_v3 = vmul.f32 %v276_v61, %v247_v51  ;;  %v421_v18 = vld [vmem:[%s2042_s3] sm:$0xff]  ;;  %v508_v45 = vld [vmem:[%s2042_s3 + $0x2b8] sm:$0xff] }
  0x27   : > { %580 = vmatpush1.msra.mxu0 %v439_v32  ;;  %663 = vmatpush1.msra.mxu1 %v517_v50  ;;  %v291_v6 = vmul.f32 %v276_v61, %v250_v52  ;;  %v294_v7 = vmul.f32 %v276_v61, %v253_v53  ;;  %v297_v8 = vmul.f32 %v276_v61, %v256_v54  ;;  %v512_v32 = vld [vmem:[%s2042_s3 + $0x2d8] sm:$0xff]  ;;  %v505_v46 = vld [vmem:[%s2042_s3 + $0x2a0] sm:$0xff]  ;;  %v1527_v50 = vld [vmem:[%s1377_s9 + $0xc] sm:$0xff] }
  0x28   : > { %581 = vmatprep.subr.mxu0 %v437_v34  ;;  %1007 = vmatprep.subr.mxu1 %v516_v58  ;;  %v300_v10 = vmul.f32 %v276_v61, %v259_v59  ;;  %v303_v11 = vmul.f32 %v276_v61, %v262_v60  ;;  %v1448_v12 = vadd.f32 %v317_v62, %v282_v1  ;;  %v1524_v49 = vld [vmem:[%s1377_s9] sm:$0xff]  ;;  %v1530_v51 = vld [vmem:[%s1377_s9 + $0x18] sm:$0xff]  ;;  %v1545_v58 = vld [vmem:[%s1377_s9 + $0x30] sm:$0xff]  ;;  %v243_v61 = vunpack.c.h.bf16 %v1527_v50 }
  0x29   : > { %582 = vmatpush1.msra.mxu0 %v436_v35  ;;  %v1450_v13 = vadd.f32 %v317_v62, %v285_v2  ;;  %v1455_v15 = vadd.f32 %v317_v62, %v288_v3  ;;  %v1457_v16 = vadd.f32 %v317_v62, %v291_v6  ;;  %v1459_v17 = vadd.f32 %v317_v62, %v294_v7  ;;  %v1548_v59 = vld [vmem:[%s1377_s9 + $0x3c] sm:$0xff]  ;;  %v1566_v3 = vld [vmem:[%s1377_s9 + $0x48] sm:$0xff] }
  0x2a   : > { %583 = vmatprep.subr.mxu0 %v434_v37  ;;  %v1464_v19 = vadd.f32 %v317_v62, %v297_v8  ;;  %v347_v20 = vmax.f32 %v1448_v12, 0.0  ;;  %v1471_v23 = vadd.f32 %v317_v62, %v300_v10  ;;  %v1473_v24 = vadd.f32 %v317_v62, %v303_v11  ;;  %v502_v6 = vld [vmem:[%s2042_s3 + $0x288] sm:$0xff]  ;;  %v500_v11 = vld [vmem:[%s2042_s3 + $0x278] sm:$0xff] }
  0x2b   : > { %584 = vmatpush1.msra.mxu0 %v433_v38  ;;  %v350_v21 = vmax.f32 %v1450_v13, 0.0  ;;  %v2050_v25 = vmax.f32 %v1455_v15, 0.0  ;;  %v2049_v26 = vmax.f32 %v1457_v16, 0.0  ;;  %v2048_v28 = vmax.f32 %v1459_v17, 0.0 }
  0x2c   : > { %585 = vmatprep.subr.mxu0 %v431_v41  ;;  %v396_v30 = vsel %vm395_vm0, %v347_v20, 0.0  ;;  %v1494_v35 = vsub.s32 1, %v1360_v29  ;;  %v2047_v37 = vmax.f32 %v1464_v19, 0.0  ;;  %v509_v41 = vld [vmem:[%s2042_s3 + $0x2c0] sm:$0xff]  ;;  %v2046_v42 = vmax.f32 %v1471_v23, 0.0  ;;  %v506_v29 = vld [vmem:[%s2042_s3 + $0x2a8] sm:$0xff] }
  0x2d   : > { %586 = vmatpush1.msra.mxu0 %v430_v57  ;;  %v397_v31 = vsel %vm395_vm0, %v350_v21, 0.0  ;;  %v399_v34 = vsel %vm395_vm0, %v2050_v25, 0.0  ;;  %v401_v38 = vsel %vm395_vm0, %v2049_v26, 0.0  ;;  %v2045_v43 = vmax.f32 %v1473_v24, 0.0  ;;  %v1542_v57 = vld [vmem:[%s1377_s9 + $0x24] sm:$0xff] }
  0x2e   : > { %587 = vmatprep.subr.mxu0 %v428_v63  ;;  %v398_v33 = vadd.f32 %v397_v31, %v396_v30  ;;  %v403_v47 = vsel %vm395_vm0, %v2048_v28, 0.0  ;;  %v272_v52 = vrot.slane %v1419_v55, %v1494_v35  ;;  %v1536_v53 = vrot.slane %v1424_v56, %v1494_v35  ;;  %v503_v63 = vld [vmem:[%s2042_s3 + $0x290] sm:$0xff] }
  0x2f   : > { %588 = vmatpush1.msra.mxu0 %v427_v0  ;;  %v405_v54 = vsel %vm395_vm0, %v2047_v37, 0.0  ;;  %v240_v60 = vunpack.c.h.bf16 %v1524_v49  ;;  %v1554_v62 = vrot.slane %v1419_v55, %v1504_v39  ;;  %v407_v1 = vsel %vm395_vm0, %v2046_v42, 0.0  ;;  %v499_v30 = vld [vmem:[%s2042_s3 + $0x270] sm:$0xff] }
  0x30   : > { %589 = vmatprep.subr.mxu0 %v425_v5  ;;  %v400_v44 = vadd.f32 %v399_v34, %v398_v33  ;;  %v409_v2 = vsel %vm395_vm0, %v2045_v43, 0.0  ;;  %v1569_v5 = vld [vmem:[%s1377_s9 + $0x54] sm:$0xff]  ;;  %v246_v55 = vunpack.c.h.bf16 %v1530_v51  ;;  %v239_v7 = vunpack.c.l.bf16 %v1524_v49  ;;  %v497_v34 = vld [vmem:[%s2042_s3 + $0x260] sm:$0xff]  ;;  %s935_s9 = sshll.u32 %s1920_s7, 4  ;;  %s1979_s9 = int_to_ptr.vmem [resolvable:$true] %s935_s9 }
  0x31   : > { %590 = vmatpush1.msra.mxu0 %v424_v9  ;;  %v249_v8 = vunpack.c.h.bf16 %v1542_v57  ;;  %v252_v9 = vunpack.c.h.bf16 %v1545_v58  ;;  %v1580_v10 = vrot.slane %v1424_v56, %v1504_v39  ;;  %v245_v56 = vunpack.c.l.bf16 %v1530_v51  ;;  %v469_v43 = vld [vmem:[%s2042_s3 + $0x180] sm:$0xff]  ;;  %s1128_s13 = scalar_lea.vmem %s1979_s9, 3072  ;;  %p1135_p0 = scmp.lt.s32.totalorder %s1979_s9, %s1133_s14 }
  0x32   : > { %591 = vmatprep.subr.mxu0 %v422_v14  ;;  %v402_v48 = vadd.f32 %v401_v38, %v400_v44  ;;  %v261_v31 = vunpack.c.h.bf16 %v1569_v5  ;;  %v284_v33 = vmul.f32 %v272_v52, %v243_v61  ;;  %v287_v38 = vmul.f32 %v272_v52, %v246_v55  ;;  %v491_v55 = vld [vmem:[%s2042_s3 + $0x230] sm:$0xff]  ;;  %p1129_p11 = scmp.ne.s32.totalorder %s1979_s9, %s1128_s13  ;;  %p1136_p1 = scmp.lt.s32.totalorder %s1134_s30, %s1128_s13 }
  0x33   : > { %592 = vmatpush1.msra.mxu0 %v421_v18  ;;  %v242_v18 = vunpack.c.l.bf16 %v1527_v50  ;;  %v293_v44 = vmul.f32 %v272_v52, %v252_v9  ;;  %v494_v50 = vld [vmem:[%s2042_s3 + $0x248] sm:$0xff]  ;;  %v251_v61 = vunpack.c.l.bf16 %v1545_v58  ;;  %v257_v58 = vunpack.c.l.bf16 %v1566_v3 }
  0x34   : > { %593 = vmatprep.subr.mxu0 %v515_v22  ;;  %v404_v0 = vadd.f32 %v403_v47, %v402_v48  ;;  %v255_v22 = vunpack.c.h.bf16 %v1548_v59  ;;  %v1607_v51 = vadd.f32 %v1536_v53, %v284_v33  ;;  %v286_v33 = vmul.f32 %v1554_v62, %v245_v56  ;;  %v484_v56 = vld [vmem:[%s2042_s3 + $0x1f8] sm:$0xff]  ;;  %p1130_p12 = pnand %p1129_p11, %p1263_p5  ;;  %p1137_p2 = por %p1136_p1, %p1135_p0 }
  0x35   : > { %594 = vmatpush2.msra.mxu0 %v514_v27  ;;  %v258_v27 = vunpack.c.h.bf16 %v1566_v3  ;;  %v2055_v12 = vmax.f32 %v1459_v17, 0.0  ;;  %v2056_v13 = vmax.f32 %v1464_v19, 0.0 }
  0x36   : > { %595 = vmatprep.subr.mxu0 %v512_v32  ;;  %v406_v14 = vadd.f32 %v405_v54, %v404_v0  ;;  %v281_v32 = vmul.f32 %v272_v52, %v240_v60  ;;  %v1610_v54 = vadd.f32 %v1536_v53, %v287_v38  ;;  %v302_v0 = vmul.f32 %v272_v52, %v261_v31  ;;  %v487_v31 = vld [vmem:[%s2042_s3 + $0x210] sm:$0xff]  ;;  %p1131_p13 = pneg %p1130_p12 }
  0x37   : > { %596 = vmatpush2.msra.mxu0 %v511_v36  ;;  %v299_v47 = vmul.f32 %v272_v52, %v258_v27  ;;  %v488_v27 = vld [vmem:[%s2042_s3 + $0x218] sm:$0xff] }
  0x38   : > { %597 = vmatprep.subr.mxu0 %v509_v41  ;;  %v408_v36 = vadd.f32 %v407_v1, %v406_v14  ;;  %v290_v41 = vmul.f32 %v272_v52, %v249_v8  ;;  %v1601_v48 = vadd.f32 %v1536_v53, %v281_v32  ;;  %v1621_v1 = vadd.f32 %v1536_v53, %v293_v44  ;;  %p1138_p3 = pnand %p1137_p2, %p1131_p13 }
  0x39   : > { %598 = vmatpush2.msra.mxu0 %v508_v45  ;;  %v496_v45 = vld [vmem:[%s2042_s3 + $0x258] sm:$0xff]  ;;  %v349_v8 = vmax.f32 %v1607_v51, 0.0  ;;  %v352_v9 = vmax.f32 %v1610_v54, 0.0  ;;  %v1638_v14 = vadd.f32 %v1536_v53, %v299_v47  ;;  %v283_v32 = vmul.f32 %v1554_v62, %v242_v18 }
  0x3a   : > { %599 = vmatprep.subr.mxu0 %v506_v29  ;;  %v248_v29 = vunpack.c.l.bf16 %v1542_v57  ;;  %v410_v49 = vadd.f32 %v409_v2, %v408_v36  ;;  %v1613_v60 = vadd.f32 %v1536_v53, %v290_v41  ;;  %v493_v57 = vld [vmem:[%s2042_s3 + $0x240] sm:$0xff]  ;;  %v292_v36 = vmul.f32 %v1554_v62, %v251_v61 }
  0x3b   : > { %600 = vmatpush2.msra.mxu0 %v505_v46  ;;  %v296_v46 = vmul.f32 %v272_v52, %v255_v22  ;;  %v490_v52 = vld [vmem:[%s2042_s3 + $0x228] sm:$0xff]  ;;  %v485_v41 = vld [vmem:[%s2042_s3 + $0x200] sm:$0xff]  ;;  %v358_v44 = vmax.f32 %v1621_v1, 0.0 }
  0x3c   : > { %601 = vmatprep.subr.mxu0 %v503_v63  ;;  %v254_v63 = vunpack.c.l.bf16 %v1548_v59  ;;  %v411_v2 = vrot.slane %v410_v49, 4  ;;  %v260_v59 = vunpack.c.l.bf16 %v1569_v5  ;;  %v280_v5 = vmul.f32 %v1554_v62, %v239_v7 }
  0x3d   : > { %602 = vmatpush2.msra.mxu0 %v502_v6  ;;  %v346_v6 = vmax.f32 %v1601_v48, 0.0  ;;  %v1660_v7 = vadd.f32 %v1536_v53, %v302_v0  ;;  %v364_v0 = vmax.f32 %v1638_v14, 0.0  ;;  %v2054_v14 = vmax.f32 %v1457_v16, 0.0 }
  0x3e   : > { %603 = vmatprep.subr.mxu0 %v500_v11  ;;  %v1635_v11 = vadd.f32 %v1536_v53, %v296_v46  ;;  %v412_v22 = vadd.f32 %v411_v2, %v410_v49  ;;  %v1673_v46 = vadd.f32 %v1580_v10, %v283_v32  ;;  %v1676_v53 = vadd.f32 %v1580_v10, %v286_v33  ;;  %v482_v49 = vld [vmem:[%s2042_s3 + $0x1e8] sm:$0xff] }
  0x3f   : > { %604 = vmatpush2.msra.mxu0 %v499_v30  ;;  %v355_v30 = vmax.f32 %v1613_v60, 0.0  ;;  %v382_v3 = vadd.f32 %v349_v8, %v346_v6  ;;  %v298_v2 = vmul.f32 %v1554_v62, %v257_v58  ;;  %v478_v58 = vld [vmem:[%s2042_s3 + $0x1c8] sm:$0xff]  ;;  %v367_v32 = vmax.f32 %v1660_v7, 0.0 }
  0x40   : > { %605 = vmatprep.subr.mxu0 %v497_v34  ;;  %v289_v34 = vmul.f32 %v1554_v62, %v248_v29  ;;  %v413_v38 = vrot.slane %v412_v22, 2  ;;  %v1670_v29 = vadd.f32 %v1580_v10, %v280_v5  ;;  %v348_v5 = vmax.f32 %v1673_v46, 0.0 }
  0x41   : > { %606 = vmatpush2.msra.mxu0 %v496_v45  ;;  %v383_v18 = vadd.f32 %v382_v3, %v352_v9  ;;  %v295_v45 = vmul.f32 %v1554_v62, %v254_v63  ;;  %v481_v63 = vld [vmem:[%s2042_s3 + $0x1e0] sm:$0xff]  ;;  %v301_v33 = vmul.f32 %v1554_v62, %v260_v59  ;;  %v475_v62 = vld [vmem:[%s2042_s3 + $0x1b0] sm:$0xff]  ;;  %v1725_v59 = vadd.f32 %v1580_v10, %v298_v2 }
  0x42   : > { %607 = vmatprep.subr.mxu0 %v494_v50  ;;  %v414_v47 = vadd.f32 %v413_v38, %v412_v22  ;;  %v361_v50 = vmax.f32 %v1635_v11, 0.0  ;;  %v1685_v61 = vadd.f32 %v1580_v10, %v289_v34  ;;  %v476_v38 = vld [vmem:[%s2042_s3 + $0x1b8] sm:$0xff]  ;;  %v2058_v7 = vmax.f32 %v1473_v24, 0.0 }
  0x43   : > { %608 = vmatpush2.msra.mxu0 %v493_v57  ;;  %v384_v57 = vadd.f32 %v383_v18, %v355_v30  ;;  %v1709_v34 = vadd.f32 %v1580_v10, %v295_v45 }
  0x44   : > { %609 = vmatprep.subr.mxu0 %v491_v55  ;;  %v1693_v55 = vadd.f32 %v1580_v10, %v292_v36  ;;  %v415_v22 = vrot.slane %v414_v47, 1  ;;  %v354_v18 = vmax.f32 %v1685_v61, 0.0 }
  0x45   : > { %610 = vmatpush2.msra.mxu0 %v490_v52  ;;  %v345_v52 = vmax.f32 %v1670_v29, 0.0  ;;  %v385_v3 = vadd.f32 %v384_v57, %v358_v44 }
  0x46   : > { %611 = vmatprep.subr.mxu0 %v488_v27  ;;  %v479_v27 = vld [vmem:[%s2042_s3 + $0x1d0] sm:$0xff]  ;;  %v416_v36 = vadd.f32 %v415_v22, %v414_v47  ;;  %v468_v47 = vld [vmem:[%s2042_s3 + $0x178] sm:$0xff]  ;;  %v513_v22 = vld [vmem:[%s2042_s3 + $0x2e0] sm:$0xff] }
  0x47   : > { %612 = vmatpush2.msra.mxu0 %v487_v31  ;;  %v351_v31 = vmax.f32 %v1676_v53, 0.0 }
  0x48   : > { %613 = vmatprep.subr.mxu0 %v485_v41  ;;  %v386_v41 = vadd.f32 %v385_v3, %v361_v50  ;;  %v1727_v45 = vmul.f32 0.015625, %v416_v36  ;;  %v465_v3 = vld [vmem:[%s2042_s3 + $0x160] sm:$0xff] }
  0x49   : > { %614 = vmatpush2.msra.mxu0 %v484_v56  ;;  %v369_v56 = vadd.f32 %v348_v5, %v345_v52 }
  0x4a   : > { %615 = vmatprep.subr.mxu0 %v482_v49  ;;  %v473_v49 = vld [vmem:[%s2042_s3 + $0x1a0] sm:$0xff]  ;;  %v387_v57 = vadd.f32 %v386_v41, %v364_v0  ;;  %1002 = vmatmul.mubr.msk.f32.vlgmr.msra.gmra.mxu1 %vm395_vm0, %v1727_v45  ;;  %v360_v41 = vmax.f32 %v1709_v34, 0.0 }
  0x4b   : > { %616 = vmatpush2.msra.mxu0 %v481_v63  ;;  %v357_v63 = vmax.f32 %v1693_v55, 0.0  ;;  %v370_v2 = vadd.f32 %v369_v56, %v351_v31  ;;  %1008 = vmatpush3.msra.mxu1 %v468_v47 }
  0x4c   : > { %617 = vmatprep.subr.mxu0 %v479_v27  ;;  %v472_v27 = vld [vmem:[%s2042_s3 + $0x198] sm:$0xff]  ;;  %v388_v36 = vadd.f32 %v387_v57, %v367_v32  ;;  %1009 = vmatprep.subr.mxu1 %v513_v22  ;;  %v363_v57 = vmax.f32 %v1725_v59, 0.0 }
  0x4d   : > { %618 = vmatpush2.msra.mxu0 %v478_v58  ;;  %v470_v58 = vld [vmem:[%s2042_s3 + $0x188] sm:$0xff]  ;;  %v371_v56 = vadd.f32 %v370_v2, %v354_v18  ;;  %1010 = vmatpush3.msra.mxu1 %v465_v3  ;;  %v459_v2 = vld [vmem:[%s2042_s3 + $0x130] sm:$0xff]  ;;  %v504_v3 = vld [vmem:[%s2042_s3 + $0x298] sm:$0xff] }
  0x4e   : > { %619 = vmatprep.subr.mxu0 %v476_v38  ;;  %v1757_v38 = vadd.f32 %v1580_v10, %v301_v33  ;;  %v462_v10 = vld [vmem:[%s2042_s3 + $0x148] sm:$0xff]  ;;  %v389_v33 = vrot.slane %v388_v36, 4 }
  0x4f   : > { %620 = vmatpush2.msra.mxu0 %v475_v62  ;;  %v510_v62 = vld [vmem:[%s2042_s3 + $0x2c8] sm:$0xff]  ;;  %v372_v47 = vadd.f32 %v371_v56, %v357_v63 }
  0x50   : > { %621 = vmatprep.subr.mxu0 %v473_v49  ;;  %v507_v49 = vld [vmem:[%s2042_s3 + $0x2b0] sm:$0xff]  ;;  %1011 = vmatprep.subr.mxu1 %v510_v62  ;;  %v390_v22 = vadd.f32 %v389_v33, %v388_v36  ;;  %v501_v36 = vld [vmem:[%s2042_s3 + $0x280] sm:$0xff] }
  0x51   : > { %622 = vmatpush2.msra.mxu0 %v472_v27  ;;  %v366_v27 = vmax.f32 %v1757_v38, 0.0  ;;  %v373_v42 = vadd.f32 %v372_v47, %v360_v41  ;;  %1012 = vmatpush3.msra.mxu1 %v462_v10  ;;  %v453_v62 = vld [vmem:[%s2042_s3 + $0x100] sm:$0xff]  ;;  %v498_v47 = vld [vmem:[%s2042_s3 + $0x268] sm:$0xff] }
  0x52   : > { %623 = vmatprep.subr.mxu0 %v470_v58  ;;  %1013 = vmatprep.subr.mxu1 %v507_v49  ;;  %v456_v58 = vld [vmem:[%s2042_s3 + $0x118] sm:$0xff]  ;;  %v391_v56 = vrot.slane %v390_v22, 2 }
  0x53   : > { %624 = vmatpush2.msra.mxu0 %v469_v43  ;;  %v374_v43 = vadd.f32 %v373_v42, %v363_v57  ;;  %1014 = vmatpush3.msra.mxu1 %v459_v2  ;;  %v450_v42 = vld [vmem:[%s2042_s3 + $0xe8] sm:$0xff] }
  0x54   : > { %1015 = vmatprep.subr.mxu1 %v504_v3  ;;  %v392_v10 = vadd.f32 %v391_v56, %v390_v22  ;;  %v495_v22 = vld [vmem:[%s2042_s3 + $0x250] sm:$0xff] }
  0x55   : > { %v375_v33 = vadd.f32 %v374_v43, %v366_v27  ;;  %1016 = vmatpush3.msra.mxu1 %v456_v58  ;;  %v447_v3 = vld [vmem:[%s2042_s3 + $0xd0] sm:$0xff]  ;;  %v492_v43 = vld [vmem:[%s2042_s3 + $0x238] sm:$0xff] }
  0x56   : > { %1017 = vmatprep.subr.mxu1 %v501_v36  ;;  %v393_v49 = vrot.slane %v392_v10, 1  ;;  %v444_v36 = vld [vmem:[%s2042_s3 + $0xb8] sm:$0xff] }
  0x57   : > { %v376_v2 = vrot.slane %v375_v33, 4  ;;  %1018 = vmatpush3.msra.mxu1 %v453_v62 }
  0x58   : > { %1019 = vmatprep.subr.mxu1 %v498_v47  ;;  %v394_v58 = vadd.f32 %v393_v49, %v392_v10  ;;  %v489_v47 = vld [vmem:[%s2042_s3 + $0x220] sm:$0xff] }
  0x59   : > { %v377_v56 = vadd.f32 %v376_v2, %v375_v33  ;;  %1020 = vmatpush3.msra.mxu1 %v450_v42  ;;  %v441_v10 = vld [vmem:[%s2042_s3 + $0xa0] sm:$0xff]  ;;  %v486_v42 = vld [vmem:[%s2042_s3 + $0x208] sm:$0xff] }
  0x5a   : > { %1021 = vmatprep.subr.mxu1 %v495_v22  ;;  %v419_v62 = vmul.f32 0.015625, %v394_v58  ;;  %v438_v2 = vld [vmem:[%s2042_s3 + $0x88] sm:$0xff]  ;;  %v483_v22 = vld [vmem:[%s2042_s3 + $0x1f0] sm:$0xff]  ;;  %v480_v58 = vld [vmem:[%s2042_s3 + $0x1d8] sm:$0xff] }
  0x5b   : > { %v378_v37 = vrot.slane %v377_v56, 2  ;;  %1022 = vmatpush3.msra.mxu1 %v447_v3 }
  0x5c   : > { %1023 = vmatprep.subr.mxu1 %v492_v43  ;;  %625 = vmatprep.mubr.f32.mxu0 %v419_v62  ;;  %v432_v43 = vld [vmem:[%s2042_s3 + $0x58] sm:$0xff] }
  0x5d   : > { %v379_v33 = vadd.f32 %v378_v37, %v377_v56  ;;  %1024 = vmatpush3.msra.mxu1 %v444_v36  ;;  %767 = vmatprep.mubr.f32.mxu1 %v419_v62  ;;  %v435_v37 = vld [vmem:[%s2042_s3 + $0x70] sm:$0xff]  ;;  %v477_v36 = vld [vmem:[%s2042_s3 + $0x1c0] sm:$0xff] }
  0x5e   : > { %1025 = vmatprep.subr.mxu1 %v489_v47  ;;  %v429_v62 = vld [vmem:[%s2042_s3 + $0x40] sm:$0xff]  ;;  %v474_v47 = vld [vmem:[%s2042_s3 + $0x1a8] sm:$0xff] }
  0x5f   : > { %v380_v49 = vrot.slane %v379_v33, 1  ;;  %1026 = vmatpush3.msra.mxu1 %v441_v10  ;;  %v426_v10 = vld [vmem:[%s2042_s3 + $0x28] sm:$0xff] }
  0x60   : > { %1027 = vmatprep.subr.mxu1 %v486_v42  ;;  %v423_v42 = vld [vmem:[%s2042_s3 + $0x10] sm:$0xff] }
  0x61   : > { %v381_v3 = vadd.f32 %v380_v49, %v379_v33  ;;  %1028 = vmatpush3.msra.mxu1 %v438_v2  ;;  %v471_v33 = vld [vmem:[%s2042_s3 + $0x190] sm:$0xff]  ;;  %v540_v49 = vld [vmem:[%s2042_s3 + $0x3b8] sm:$0xff]  ;;  %v537_v2 = vld [vmem:[%s2042_s3 + $0x3a0] sm:$0xff] }
  0x62   : > { %1029 = vmatprep.subr.mxu1 %v483_v22  ;;  %v534_v22 = vld [vmem:[%s2042_s3 + $0x388] sm:$0xff] }
  0x63   : > { %v418_v56 = vmul.f32 0.015625, %v381_v3  ;;  %1030 = vmatpush3.msra.mxu1 %v435_v37  ;;  %v531_v3 = vld [vmem:[%s2042_s3 + $0x370] sm:$0xff]  ;;  %v528_v37 = vld [vmem:[%s2042_s3 + $0x358] sm:$0xff] }
  0x64   : > { %1031 = vmatprep.subr.mxu1 %v480_v58  ;;  %v525_v58 = vld [vmem:[%s2042_s3 + $0x340] sm:$0xff] }
  0x65   : > { %626 = vmatmul.mubr.f32.vlgmr.msra.gmra.mxu0 %v418_v56  ;;  %1032 = vmatpush3.msra.mxu1 %v432_v43  ;;  %v519_v43 = vld [vmem:[%s2042_s3 + $0x310] sm:$0xff] }
  0x66   : > { %1033 = vmatprep.subr.mxu1 %v477_v36  ;;  %v541_v36 = vld [vmem:[%s2043_s4] sm:$0x7] }
  0x67   : > { %1034 = vmatpush3.msra.mxu1 %v429_v62  ;;  %v546_v62 = vrot.slane %v541_v36, %v1504_v39 }
  0x68   : > { %1035 = vmatprep.subr.mxu1 %v474_v47  ;;  %v550_v47 = vrot.slane %v541_v36, %v1494_v35  ;;  %v554_v35 = vrot.slane %v541_v36, %v1398_v40 }
  0x69   : > { %1036 = vmatpush3.msra.mxu1 %v426_v10 }
  0x6a   : > { %1037 = vmatprep.subr.mxu1 %v471_v33 }
  0x6b   : > { %1038 = vmatpush3.msra.mxu1 %v423_v42 }
  0x6c   : > { %768 = vmatmul.mubr.f32.vlgmr.msra.gmra.mxu1 %v418_v56  ;;  %1051 = vmatprep.subr.mxu1 %v1190_v4  ;;  %v522_v56 = vld [vmem:[%s2042_s3 + $0x328] sm:$0xff] }
  0x6d   : > { %1052 = vmatpush3.msra.mxu1 %v540_v49  ;;  %1067 = vmatprep.mubr.msk.f32.mxu1 %vm1191_vm1, %v1190_v4 }
  0x6e   : > { %1053 = vmatprep.subr.mxu1 %v1190_v4 }
  0x6f   : > { %1054 = vmatpush3.msra.mxu1 %v537_v2 }
  0x70   : > { %1055 = vmatprep.subr.mxu1 %v1190_v4 }
  0x71   : > { %1056 = vmatpush3.msra.mxu1 %v534_v22 }
  0x72   : > { %1057 = vmatprep.subr.mxu1 %v1190_v4 }
  0x73   : > { %1058 = vmatpush3.msra.mxu1 %v531_v3 }
  0x74   : > { %1059 = vmatprep.subr.mxu1 %v1190_v4 }
  0x75   : > { %1060 = vmatpush3.msra.mxu1 %v528_v37 }
  0x76   : > { %1061 = vmatprep.subr.mxu1 %v1190_v4 }
  0x77   : > { %1062 = vmatpush3.msra.mxu1 %v525_v58 }
  0x78   : > { %1063 = vmatprep.subr.mxu1 %v1190_v4 }
  0x79   : > { %1064 = vmatpush3.msra.mxu1 %v522_v56 }
  0x7a   : > { %1065 = vmatprep.subr.mxu1 %v1190_v4 }
  0x7b   : > { %1066 = vmatpush3.msra.mxu1 %v519_v43 }
  0x7c   : > { %1068 = vmatmul.mubr.msk.f32.vlgmr.msra.gmra.mxu1 %vm395_vm0, %v1727_v45 }
 0x10a   : > { %v698_v10 = vpop.f32.mrf.mxu1 }
 0x10c   : > { %v700_v3 = vpop.f32.mrf.mxu1 }
 0x125   : > { %v627_v33 = vpop.f32.mrf.mxu0 }
 0x126   : > { %v628_v42 = vadd.f32 %v627_v33, %v546_v62 }
 0x127   : > { %v629_v49 = vpop.f32.mrf.mxu0 }
 0x128   : > { %v699_v2 = vadd.f32 %v698_v10, %v628_v42  ;;  %v630_v22 = vadd.f32 %v629_v49, %v550_v47 }
 0x12a   : > { %v843_v4 = vsub.f32 0.0, %v699_v2  ;;  %v701_v37 = vadd.f32 %v700_v3, %v630_v22 }
 0x12c   : > { %v846_v58 = vmul.f32 1.442695, %v843_v4  ;;  %v844_v56 = vsub.f32 0.0, %v701_v37  ;;  %v1039_v43 = vpop.f32.mrf.mxu1 }
 0x12e   : > { %1116 = vpow2.f32 %v846_v58  ;;  %v848_v45 = vmul.f32 1.442695, %v844_v56  ;;  %v1040_v28 = vpop.f32.mrf.mxu1 }
 0x12f   : > { %v1041_v26 = vadd.f32 %v1040_v28, %v1039_v43 }
 0x130   : > { %1118 = vpow2.f32 %v848_v45 }
 0x131   : > { %v770_v33 = vadd.f32 %v1041_v26, %v554_v35 }
 0x13b   : > { %v1117_v25 = vpop.eup %1116 }
 0x13c   : > { %v852_v62 = vadd.f32 1.0, %v1117_v25  ;;  %v839_v47 = vpop.f32.mrf.mxu1 }
 0x13d   : > { %v1119_v10 = vpop.eup %1118  ;;  %v840_v49 = vadd.f32 %v839_v47, %v770_v33 }
 0x13e   : > { %1120 = vrcp.f32 %v852_v62  ;;  %v853_v42 = vadd.f32 1.0, %v1119_v10  ;;  %v1069_v2 = vpop.f32.mrf.mxu1 }
 0x13f   : > { %v845_v22 = vsub.f32 0.0, %v840_v49 }
 0x140   : > { %1122 = vrcp.f32 %v853_v42 }
 0x141   : > { %v850_v3 = vmul.f32 1.442695, %v845_v22 }
 0x143   : > { %1124 = vpow2.f32 %v850_v3 }
 0x14b   : > { %v1121_v28 = vpop.eup %1120 }
 0x14c   : > { %v864_v4 = vrot.slane %v1121_v28, %v1504_v39 }
 0x14d   : > { %v1123_v40 = vpop.eup %1122 }
 0x14e   : > { %v873_v25 = vmul.f32 %v864_v4, %v345_v52  ;;  %v876_v26 = vmul.f32 %v864_v4, %v348_v5  ;;  %v879_v36 = vmul.f32 %v864_v4, %v351_v31  ;;  %v882_v37 = vmul.f32 %v864_v4, %v354_v18 }
 0x14f   : > { %v885_v58 = vmul.f32 %v864_v4, %v357_v63  ;;  %v888_v56 = vmul.f32 %v864_v4, %v360_v41  ;;  %v891_v45 = vmul.f32 %v864_v4, %v363_v57  ;;  %v894_v29 = vmul.f32 %v864_v4, %v366_v27 }
 0x150   : > { %897 = vst [vmem:[%s1920_s7] sm:$0xff] %v873_v25  ;;  %900 = vst [vmem:[%s1920_s7 + $0x18] sm:$0xff] %v876_v26  ;;  %v868_v46 = vrot.slane %v1123_v40, %v1504_v39  ;;  %v1125_v53 = vpop.eup %1124 }
 0x151   : > { %903 = vst [vmem:[%s1920_s7 + $0x30] sm:$0xff] %v879_v36  ;;  %906 = vst [vmem:[%s1920_s7 + $0x48] sm:$0xff] %v882_v37  ;;  %v854_v54 = vadd.f32 1.0, %v1125_v53 }
 0x152   : > { %909 = vst [vmem:[%s1920_s7 + $0x60] sm:$0xff] %v885_v58  ;;  %912 = vst [vmem:[%s1920_s7 + $0x78] sm:$0xff] %v888_v56  ;;  %v874_v61 = vmul.f32 %v868_v46, %v346_v6  ;;  %v877_v55 = vmul.f32 %v868_v46, %v349_v8  ;;  %v880_v52 = vmul.f32 %v868_v46, %v352_v9  ;;  %v2053_v9 = vmax.f32 %v1455_v15, 0.0 }
 0x153   : > { %915 = vst [vmem:[%s1920_s7 + $0x90] sm:$0xff] %v891_v45  ;;  %918 = vst [vmem:[%s1920_s7 + $0xa8] sm:$0xff] %v894_v29  ;;  %v883_v5 = vmul.f32 %v868_v46, %v355_v30  ;;  %v886_v31 = vmul.f32 %v868_v46, %v358_v44  ;;  %v889_v34 = vmul.f32 %v868_v46, %v361_v50  ;;  %1126 = vrcp.f32 %v854_v54 }
 0x154   : > { %v892_v48 = vmul.f32 %v868_v46, %v364_v0  ;;  %v895_v51 = vmul.f32 %v868_v46, %v367_v32  ;;  %898 = vst [vmem:[%s1920_s7 + $0x8] sm:$0xff] %v874_v61  ;;  %901 = vst [vmem:[%s1920_s7 + $0x20] sm:$0xff] %v877_v55  ;;  %v2057_v15 = vmax.f32 %v1471_v23, 0.0 }
 0x155   : > { %904 = vst [vmem:[%s1920_s7 + $0x38] sm:$0xff] %v880_v52  ;;  %907 = vst [vmem:[%s1920_s7 + $0x50] sm:$0xff] %v883_v5 }
 0x156   : > { %910 = vst [vmem:[%s1920_s7 + $0x68] sm:$0xff] %v886_v31  ;;  %913 = vst [vmem:[%s1920_s7 + $0x80] sm:$0xff] %v889_v34 }
 0x157   : > { %916 = vst [vmem:[%s1920_s7 + $0x98] sm:$0xff] %v892_v48  ;;  %919 = vst [vmem:[%s1920_s7 + $0xb0] sm:$0xff] %v895_v51 }
 0x160   : > { %v1127_v60 = vpop.eup %1126 }
 0x161   : > { %v872_v1 = vrot.slane %v1127_v60, %v1504_v39 }
 0x163   : > { %v875_v6 = vmul.f32 %v872_v1, %v347_v20  ;;  %v878_v8 = vmul.f32 %v872_v1, %v350_v21  ;;  %v881_v11 = vmul.f32 %v872_v1, %v2053_v9  ;;  %v884_v30 = vmul.f32 %v872_v1, %v2054_v14 }
 0x164   : > { %v887_v20 = vmul.f32 %v872_v1, %v2055_v12  ;;  %v890_v21 = vmul.f32 %v872_v1, %v2056_v13  ;;  %v893_v39 = vmul.f32 %v872_v1, %v2057_v15  ;;  %v896_v16 = vmul.f32 %v872_v1, %v2058_v7 }
 0x165   : > { %899 = vst.msk [vmem:[%s1920_s7 + $0x10] sm:$0xff] %vm395_vm0, %v875_v6  ;;  %902 = vst.msk [vmem:[%s1920_s7 + $0x28] sm:$0xff] %vm395_vm0, %v878_v8 }
 0x166   : > { %905 = vst.msk [vmem:[%s1920_s7 + $0x40] sm:$0xff] %vm395_vm0, %v881_v11  ;;  %908 = vst.msk [vmem:[%s1920_s7 + $0x58] sm:$0xff] %vm395_vm0, %v884_v30 }
 0x167   : > { %911 = vst.msk [vmem:[%s1920_s7 + $0x70] sm:$0xff] %vm395_vm0, %v887_v20  ;;  %914 = vst.msk [vmem:[%s1920_s7 + $0x88] sm:$0xff] %vm395_vm0, %v890_v21 }
 0x168   : > { %917 = vst.msk [vmem:[%s1920_s7 + $0xa0] sm:$0xff] %vm395_vm0, %v893_v39  ;;  %920 = vst.msk [vmem:[%s1920_s7 + $0xb8] sm:$0xff] %vm395_vm0, %v896_v16 }
 0x169   : > { %1141 = shalt.err (!%p1138_p3)
}
 0x16a   : > { %s1142_s16 = scalar_lea.hbm %s1969_s11, 3072  ;;  %s1146_s25 = scalar_lea.hbm %s2044_s5, 6144 }
 0x16b   : > { %p1143_p4 = scmp.ne.s32.totalorder %s1969_s11, %s1142_s16  ;;  %p1147_p9 = scmp.lt.s32.totalorder %s1969_s11, %s2044_s5 }
 0x16c   : > { %p1148_p10 = scmp.lt.s32.totalorder %s1146_s25, %s1142_s16 }
 0x16d   : > { %p1144_p7 = pnand %p1143_p4, %p1263_p5 }
 0x16e   : > { %p1149_p11 = por %p1148_p10, %p1147_p9 }
 0x16f   : > { %p1145_p8 = pneg %p1144_p7 }
 0x171   : > { %p1150_p12 = pnand %p1149_p11, %p1145_p8 }
 0x173   : > { %1153 = shalt.err (!%p1150_p12)
}
 0x174   : > { %s1193_s7 = smov 384   ;;  %s1194_s8 = smov 24  }
 0x175   : > { %1073 = dma.vmem_to_hbm [thread:$0]  (%p1263_p5), %s1979_s9, 3072, %s1969_s11, %s1999_s12, %s1193_s7, %s1193_s7, %s1194_s8  }
 0x176 PF: > { %p1079_p13 = scmp.ge.s32.totalorder %s1188_s21, 2  ;;  %s950_s22 = sand.u32 1, %s1176_s18  }
 0x177   : > { %s951_s10 = scalar_lea.sflag [#allocation3], %s950_s22 }
 0x178   : > { %p1076_p0 = pnand %p1079_p13, %p1267_p6 }
 0x17a   : > { %p1077_p1 = pneg %p1076_p0 }
 0x17c   : > { %1171 = dma.done.wait (%p1077_p1), %s951_s10, 3072  }
 0x17d   : > { %1173 = vsyncadd (%p1077_p1), %s951_s10, 4294964224  ;;  %p15_p2 = scmp.ge.s32.totalorder %s1250_s24, 4   ;;  %s2059_s18 = smov %s1180_s19 }
 0x17e   : > { %s2060_s19 = smov %s1184_s20  ;;  %s2061_s20 = smov %s1261_s27 }
 0x17f   : > { %s2062_s21 = smov %s1250_s24  ;;  %17 = sbr.rel (!%p15_p2) target bundleno = 3 (0x3), region = 75 }
 0x184   :  { %956 = vsyncpa [#allocation3], 1 }
 0x185   :  { %958 = vsyncpa [#allocation3 + $0x1], 1 }

// kernel: eca_attention_forward.2
= control target key start
LH: loop header
LB: loop body
LE: loop exit
PB: predicated region body
PF: predicated region fallthrough
CT: control target
= control target key end

     0   :  { %s12163_s18 = smov 0   ;;  %s15989_s0 = inlined_call_operand.vmem [shape: bf16[2,400,320], index: 0, kind: input, shape index: {}]   ;;  %s15990_s1 = inlined_call_operand.vmem [shape: bf16[9,320,320], index: 1, kind: input, shape index: {}]   ;;  %s15991_s2 = inlined_call_operand.vmem [shape: f32[1,320], index: 2, kind: input, shape index: {}]   ;;  %s15992_s3 = inlined_call_operand.vmem [shape: bf16[128,320], index: 3, kind: output, shape index: {0}]   ;;  %s15993_s4 = inlined_call_operand.vmem [shape: f32[2,1,320], index: 4, kind: output, shape index: {1}]   ;;  %s15994_s5 = inlined_call_operand.vmem [shape: f32[2,1,320], index: 5, kind: output, shape index: {2}]  }
   0x1 LB: > { %s12169_s19 = sadd.s32 4294967295, %s12129_s18   ;;  %p9264_p0 = scmp.ge.s32.totalorder %s12129_s18, 1  ;;  %s12129_s18 = sphi %s12163_s18, %s16_s18  }
   0x2   : > { %p192_p1 = scmp.lt.s32.totalorder %s12129_s18, 3 }
   0x4   : > { %p193_p2 = pnand %p9264_p0, %p192_p1 }
   0x6   : > { %196 = sbr.rel (%p193_p2) target bundleno = 928 (0x3a0), region = 32 }
   0xb   : > { %v11347_v0 = vld [vmem:[%s15990_s1 + $0xac] ss:$12 sps:$4 sm:$0xff]   ;;  %p229_p3 = scmp.lt.s32.totalorder %s12169_s19, 1  ;;  %v11349_v1 = vld [vmem:[%s15990_s1 + $0xa8] ss:$12 sps:$4 sm:$0xff]   ;;  %v15995_v2 = vmov 0  }
   0xc   : > { %944 = vmatprep.mubr.bf16.mxu1 %v15995_v2  ;;  %839 = vmatprep.subr.bf16.mxu0 %v11347_v0  ;;  %v11350_v3 = vld [vmem:[%s15990_s1 + $0x1cc] ss:$12 sps:$4 sm:$0xff]   ;;  %v11352_v4 = vld [vmem:[%s15990_s1 + $0x1c8] ss:$12 sps:$4 sm:$0xff]   ;;  %v11355_v6 = vld [vmem:[%s15990_s1 + $0x90] ss:$12 sps:$4 sm:$0xff]  }
   0xd   : > { %s12188_s28 = scalar_select %p229_p3, %s12169_s19, 1  ;;  %840 = vmatpush1.bf16.msra.mxu0 %v11349_v1  ;;  %v11353_v5 = vld [vmem:[%s15990_s1 + $0x94] ss:$12 sps:$4 sm:$0xff]   ;;  %920 = vmatprep.subr.bf16.mxu1 %v11350_v3  ;;  %v11358_v8 = vld [vmem:[%s15990_s1 + $0x1b0] ss:$12 sps:$4 sm:$0xff]   ;;  %vm253_vm0 = vcmask 519168  }
   0xe   : > { %v11356_v7 = vld [vmem:[%s15990_s1 + $0x1b4] ss:$12 sps:$4 sm:$0xff]   ;;  %921 = vmatpush1.bf16.msra.mxu1 %v11352_v4  ;;  %841 = vmatprep.subr.bf16.mxu0 %v11353_v5  ;;  %v11359_v9 = vld [vmem:[%s15990_s1 + $0x7c] ss:$12 sps:$4 sm:$0xff]   ;;  %v11361_v10 = vld [vmem:[%s15990_s1 + $0x78] ss:$12 sps:$4 sm:$0xff]  }
   0xf   : > { %s11334_s12 = smul.u32 600, %s12188_s28  ;;  %922 = vmatprep.subr.bf16.mxu1 %v11356_v7  ;;  %v11362_v11 = vld [vmem:[%s15990_s1 + $0x19c] ss:$12 sps:$4 sm:$0xff]   ;;  %v11365_v12 = vld [vmem:[%s15990_s1 + $0x64] ss:$12 sps:$4 sm:$0xff]   ;;  %vm263_vm1 = vcmask 1041408  }
  0x10   : > { %v11364_v13 = vld [vmem:[%s15990_s1 + $0x198] ss:$12 sps:$4 sm:$0xff]   ;;  %vm264_vm2 = vcmask 1045508   ;;  %vm1147_vm3 = vcmask 1040384   ;;  %vm1148_vm4 = vcmask 1044484   ;;  %vm1170_vm5 = vcmask 1042432  }
  0x11   : > { %842 = vmatpush1.bf16.msra.mxu0 %v11355_v6  ;;  %s12221_s27 = scalar_lea.vmem %s15989_s0, %s11334_s12  ;;  %v11368_v14 = vld [vmem:[%s15990_s1 + $0x184] ss:$12 sps:$4 sm:$0xff]   ;;  %v11367_v15 = vld [vmem:[%s15990_s1 + $0x60] ss:$12 sps:$4 sm:$0xff]   ;;  %vm1171_vm6 = vcmask 1046532   ;;  %vm12241_vm7 = vmor %vm263_vm1, %vm264_vm2  ;;  %vm826_vm10 = vcmask 523264  }
  0x12   : > { %843 = vmatprep.subr.bf16.mxu0 %v11359_v9  ;;  %923 = vmatpush1.bf16.msra.mxu1 %v11358_v8  ;;  %v11371_v16 = vld [vmem:[%s15990_s1 + $0x4c] ss:$12 sps:$4 sm:$0xff]   ;;  %v251_v17 = vld [vmem:[%s12221_s27 + $0x8] sm:$0xf]  ;;  %v256_v18 = vld [vmem:[%s12221_s27 + $0x20] sm:$0xc] }
  0x13   : > { %924 = vmatprep.subr.bf16.mxu1 %v11362_v11  ;;  %v258_v19 = vld [vmem:[%s12221_s27 + $0x2c] sm:$0x3]  ;;  %254 = vst.msk [vmem:[#allocation2 + $0x8] sm:$0xf] %vm253_vm0, %v251_v17  ;;  %v9269_v22 = vrot.slane %v256_v18, 10  ;;  %vm12260_vm8 = vmor %vm1147_vm3, %vm1148_vm4  ;;  %s9266_s22 = sshll.u32 %s12169_s19, 3 }
  0x14   : > { %v11370_v20 = vld [vmem:[%s15990_s1 + $0x180] ss:$12 sps:$4 sm:$0xff]   ;;  %v272_v23 = vrot.slane %v258_v19, 6  ;;  %v1140_v24 = vld [vmem:[%s12221_s27 + $0x8] sm:$0x8]  ;;  %vm12266_vm9 = vmor %vm1170_vm5, %vm1171_vm6  ;;  %p235_p4 = scmp.lt.s32.totalorder %s9266_s22, 15 }
  0x15   : > { %844 = vmatpush1.bf16.msra.mxu0 %v11361_v10  ;;  %v1142_v25 = vld [vmem:[%s12221_s27 + $0x14] sm:$0x7]  ;;  %v1163_v26 = vld [vmem:[%s12221_s27 + $0x2c] sm:$0xe]  ;;  %v1165_v27 = vld [vmem:[%s12221_s27 + $0x38] sm:$0x1] }
  0x16   : > { %845 = vmatprep.subr.bf16.mxu0 %v11365_v12  ;;  %925 = vmatpush1.bf16.msra.mxu1 %v11364_v13  ;;  %v11373_v28 = vld [vmem:[%s15990_s1 + $0x48] ss:$12 sps:$4 sm:$0xff]   ;;  %v273_v29 = vsel %vm12241_vm7, %v9269_v22, %v272_v23  ;;  %v11375_v30 = vld [vmem:[%s15990_s1 + $0x170] ss:$12 sps:$4 sm:$0xff]   ;;  %v9357_v32 = vrot.slane %v1140_v24, 11  ;;  %v1156_v33 = vrot.slane %v1142_v25, 7 }
  0x17   : > { %926 = vmatprep.subr.bf16.mxu1 %v11368_v14  ;;  %277 = vst.msk [vmem:[#allocation2 + $0x14] sm:$0xf] %vm253_vm0, %v273_v29  ;;  %v9359_v34 = vrot.slane %v1163_v26, 9  ;;  %v1179_v35 = vrot.slane %v1165_v27, 5  ;;  %v11377_v37 = vld [vmem:[%s15990_s1 + $0x34] ss:$12 sps:$4 sm:$0xff]  }
  0x18   : > { %v11379_v38 = vld [vmem:[%s15990_s1 + $0x30] ss:$12 sps:$4 sm:$0xff]   ;;  %v1157_v40 = vsel %vm12260_vm8, %v9357_v32, %v1156_v33  ;;  %v11380_v42 = vld [vmem:[%s15990_s1 + $0x158] ss:$12 sps:$4 sm:$0xff]   ;;  %v285_v48 = vld [vmem:[%s12221_s27 + $0x68] sm:$0x3] }
  0x19   : > { %846 = vmatpush1.bf16.msra.mxu0 %v11367_v15  ;;  %v11376_v39 = vld [vmem:[%s15990_s1 + $0xb0] ss:$12 sps:$4 sm:$0xff]   ;;  %v1180_v41 = vsel %vm12266_vm9, %v9359_v34, %v1179_v35  ;;  %v11384_v44 = vld [vmem:[%s15990_s1 + $0x18] ss:$12 sps:$4 sm:$0xff]   ;;  %v296_v50 = vrot.slane %v285_v48, 6  ;;  %s16055_s22 = smov (!%p235_p4, %s9266_s22), 15 }
  0x1a   : > { %847 = vmatprep.subr.bf16.mxu0 %v11371_v16  ;;  %927 = vmatpush1.bf16.msra.mxu1 %v11370_v20  ;;  %v11382_v43 = vld [vmem:[%s15990_s1 + $0x1c] ss:$12 sps:$4 sm:$0xff]   ;;  %v279_v45 = vld [vmem:[%s12221_s27 + $0x44] sm:$0xf]  ;;  %v11386_v53 = vld [vmem:[%s15990_s1 + $0x140] ss:$12 sps:$4 sm:$0xff]  }
  0x1b   : > { %10758 = vmatprep.subr.bf16.mxu1 %v11375_v30  ;;  %v283_v46 = vld [vmem:[%s12221_s27 + $0x5c] sm:$0xc]  ;;  %281 = vst.msk [vmem:[#allocation2 + $0x20] sm:$0xf] %vm253_vm0, %v279_v45  ;;  %v11381_v51 = vld [vmem:[%s15990_s1 + $0x98] ss:$12 sps:$4 sm:$0xff]  }
  0x1c   : > { %v9271_v49 = vrot.slane %v283_v46, 10  ;;  %v11388_v54 = vld [vmem:[%s15990_s1 + $0x4] ss:$12 sps:$4 sm:$0xff]   ;;  %v11390_v55 = vld [vmem:[%s15990_s1] ss:$12 sps:$4 sm:$0xff]   ;;  %s11335_s19 = smul.u32 12, %s16055_s22 }
  0x1d   : > { %848 = vmatpush1.bf16.msra.mxu0 %v11373_v28  ;;  %v11387_v56 = vld [vmem:[%s15990_s1 + $0x80] ss:$12 sps:$4 sm:$0xff]   ;;  %v11391_v57 = vld [vmem:[%s15990_s1 + $0x128] ss:$12 sps:$4 sm:$0xff]   ;;  %v307_v61 = vld [vmem:[%s12221_s27 + $0x98] sm:$0xc] }
  0x1e   : > { %849 = vmatprep.subr.bf16.mxu0 %v11377_v37  ;;  %v12294_v47 = vld [vmem:[#allocation2 + $0x8] ss:$12 sps:$4 sm:$0xff]   ;;  %v297_v52 = vsel %vm12241_vm7, %v9271_v49, %v296_v50  ;;  %v11393_v58 = vld [vmem:[%s15990_s1 + $0x16c] ss:$12 sps:$4 sm:$0xff]   ;;  %v303_v60 = vld [vmem:[%s12221_s27 + $0x80] sm:$0xf]  ;;  %s15828_s29 = scalar_lea.vmem %s15992_s3, %s11335_s19 }
  0x1f   : > { %1161 = vst.msk [vmem:[#allocation2 + $0x8] sm:$0xf] %vm253_vm0, %v1157_v40  ;;  %1184 = vst.msk [vmem:[#allocation2 + $0x14] sm:$0xf] %vm253_vm0, %v1180_v41  ;;  %9348 = vmatmul.mubr.msk.bf16.vlgmr.msra.gmra.mxu1 %vm826_vm10, %v12294_v47  ;;  %v11395_v59 = vld [vmem:[%s15990_s1 + $0x168] ss:$12 sps:$4 sm:$0xff]  }
  0x20   : > { %10759 = vmatpush3.bf16.msra.mxu1 %v11376_v39  ;;  %954 = vmatprep.mubr.bf16.mxu1 %v15995_v2  ;;  %301 = vst.msk [vmem:[#allocation2 + $0x2c] sm:$0xf] %vm253_vm0, %v297_v52  ;;  %305 = vst.msk [vmem:[#allocation2 + $0x38] sm:$0xf] %vm253_vm0, %v303_v60  ;;  %v309_v62 = vld [vmem:[%s12221_s27 + $0xa4] sm:$0x3] }
  0x21   : > { %850 = vmatpush1.bf16.msra.mxu0 %v11379_v38  ;;  %10760 = vmatprep.subr.bf16.mxu1 %v11380_v42  ;;  %v9273_v63 = vrot.slane %v307_v61, 10  ;;  %v11392_v0 = vld [vmem:[%s15990_s1 + $0x68] ss:$12 sps:$4 sm:$0xff]   ;;  %v320_v1 = vrot.slane %v309_v62, 6  ;;  %v11397_v5 = vld [vmem:[%s15990_s1 + $0x110] ss:$12 sps:$4 sm:$0xff]  }
  0x22   : > { %851 = vmatprep.subr.bf16.mxu0 %v11382_v43  ;;  %v11399_v6 = vld [vmem:[%s15990_s1 + $0x154] ss:$12 sps:$4 sm:$0xff]   ;;  %v11401_v7 = vld [vmem:[%s15990_s1 + $0x150] ss:$12 sps:$4 sm:$0xff]   ;;  %v11402_v9 = vld [vmem:[%s15990_s1 + $0xf8] ss:$12 sps:$4 sm:$0xff]  }
  0x23   : > { %v321_v4 = vsel %vm12241_vm7, %v9273_v63, %v320_v1  ;;  %v11398_v8 = vld [vmem:[%s15990_s1 + $0x50] ss:$12 sps:$4 sm:$0xff]   ;;  %v11406_v11 = vld [vmem:[%s15990_s1 + $0x138] ss:$12 sps:$4 sm:$0xff]   ;;  %v331_v13 = vld [vmem:[%s12221_s27 + $0xd4] sm:$0xc] }
  0x24   : > { %10761 = vmatpush3.bf16.msra.mxu1 %v11381_v51  ;;  %325 = vst.msk [vmem:[#allocation2 + $0x44] sm:$0xf] %vm253_vm0, %v321_v4  ;;  %v11404_v10 = vld [vmem:[%s15990_s1 + $0x13c] ss:$12 sps:$4 sm:$0xff]   ;;  %v333_v14 = vld [vmem:[%s12221_s27 + $0xe0] sm:$0x3] }
  0x25   : > { %852 = vmatpush1.bf16.msra.mxu0 %v11384_v44  ;;  %10762 = vmatprep.subr.bf16.mxu1 %v11386_v53  ;;  %v327_v12 = vld [vmem:[%s12221_s27 + $0xbc] sm:$0xf]  ;;  %v9275_v15 = vrot.slane %v331_v13, 10  ;;  %v344_v16 = vrot.slane %v333_v14, 6  ;;  %v11403_v17 = vld [vmem:[%s15990_s1 + $0x38] ss:$12 sps:$4 sm:$0xff]  }
  0x26   : > { %853 = vmatprep.subr.bf16.mxu0 %v11388_v54  ;;  %329 = vst.msk [vmem:[#allocation2 + $0x50] sm:$0xf] %vm253_vm0, %v327_v12  ;;  %v11408_v20 = vld [vmem:[%s15990_s1 + $0xe0] ss:$12 sps:$4 sm:$0xff]   ;;  %v11410_v22 = vld [vmem:[%s15990_s1 + $0x124] ss:$12 sps:$4 sm:$0xff]  }
  0x27   : > { %v12337_v3 = vld [vmem:[#allocation2 + $0x20] ss:$12 sps:$4 sm:$0xff]   ;;  %v345_v19 = vsel %vm12241_vm7, %v9275_v15, %v344_v16  ;;  %v11413_v25 = vld [vmem:[%s15990_s1 + $0xc8] ss:$12 sps:$4 sm:$0xff]   ;;  %v255_v28 = vld [vmem:[%s12221_s27 + $0x18] sm:$0xcc] }
  0x28   : > { %10763 = vmatpush3.bf16.msra.mxu1 %v11387_v56  ;;  %349 = vst.msk [vmem:[#allocation2 + $0x5c] sm:$0xf] %vm253_vm0, %v345_v19  ;;  %v11412_v23 = vld [vmem:[%s15990_s1 + $0x120] ss:$12 sps:$4 sm:$0xff]   ;;  %v11417_v27 = vld [vmem:[%s15990_s1 + $0x108] ss:$12 sps:$4 sm:$0xff]  }
  0x29   : > { %854 = vmatpush1.bf16.msra.mxu0 %v11390_v55  ;;  %10764 = vmatprep.subr.bf16.mxu1 %v11391_v57  ;;  %v11409_v24 = vld [vmem:[%s15990_s1 + $0x20] ss:$12 sps:$4 sm:$0xff]   ;;  %v257_v29 = vld [vmem:[%s12221_s27 + $0x24] sm:$0x33]  ;;  %v9268_v33 = vrot.slane %v255_v28, 10  ;;  %s11336_s30 = smul.u32 3, %s12188_s28 }
  0x2a   : > { %855 = vmatprep.subr.bf16.mxu0 %v11393_v58  ;;  %9349 = vmatmul.mubr.msk.bf16.gmra.mxu1 %vm826_vm10, %v12337_v3  ;;  %v11415_v26 = vld [vmem:[%s15990_s1 + $0x10c] ss:$12 sps:$4 sm:$0xff]   ;;  %v11414_v30 = vld [vmem:[%s15990_s1 + $0x8] ss:$12 sps:$4 sm:$0xff]   ;;  %v250_v32 = vld [vmem:[%s12221_s27] sm:$0xff]  ;;  %v268_v34 = vrot.slane %v257_v29, 6 }
  0x2b   : > { %964 = vmatprep.mubr.bf16.mxu1 %v15995_v2  ;;  %v12373_v18 = vld [vmem:[#allocation2 + $0x38] ss:$12 sps:$4 sm:$0xff]   ;;  %v11418_v39 = vld [vmem:[%s15990_s1 + $0x1d0] ss:$12 sps:$4 sm:$0xff]   ;;  %v11419_v40 = vld [vmem:[%s15990_s1 + $0xf4] ss:$12 sps:$4 sm:$0xff]   ;;  %s244_s8 = scalar_lea.vmem %s15993_s4, %s11336_s30  ;;  %s248_s28 = scalar_lea.vmem %s15994_s5, %s11336_s30 }
  0x2c   : > { %10765 = vmatpush3.bf16.msra.mxu1 %v11392_v0  ;;  %v269_v37 = vsel %vm12241_vm7, %v9268_v33, %v268_v34  ;;  %v11421_v41 = vld [vmem:[%s15990_s1 + $0xf0] ss:$12 sps:$4 sm:$0xff]   ;;  %v282_v43 = vld [vmem:[%s12221_s27 + $0x54] sm:$0xcc]  ;;  %v284_v46 = vld [vmem:[%s12221_s27 + $0x60] sm:$0x33] }
  0x2d   : > { %856 = vmatpush2.bf16.msra.mxu0 %v11395_v59  ;;  %10766 = vmatprep.subr.bf16.mxu1 %v11397_v5  ;;  %v9277_v38 = vcombine.high %v250_v32, %v269_v37  ;;  %v11422_v42 = vld [vmem:[%s15990_s1 + $0xdc] ss:$12 sps:$4 sm:$0xff]   ;;  %v9276_v44 = vcombine.low %v250_v32, %v269_v37  ;;  %v11424_v45 = vld [vmem:[%s15990_s1 + $0xd8] ss:$12 sps:$4 sm:$0xff]   ;;  %v9270_v48 = vrot.slane %v282_v43, 10  ;;  %v292_v50 = vrot.slane %v284_v46, 6 }
  0x2e   : > { %857 = vmatprep.subr.bf16.mxu0 %v11399_v6  ;;  %v278_v49 = vld [vmem:[%s12221_s27 + $0x3c] sm:$0xff]  ;;  %v11425_v52 = vld [vmem:[%s15990_s1 + $0x1b8] ss:$12 sps:$4 sm:$0xff]   ;;  %v306_v57 = vld [vmem:[%s12221_s27 + $0x90] sm:$0xcc] }
  0x2f   : > { %v12408_v35 = vld [vmem:[#allocation2 + $0x50] ss:$12 sps:$4 sm:$0xff]   ;;  %871 = vmatprep.mubr.bf16.mxu0 %v9277_v38  ;;  %v293_v51 = vsel %vm12241_vm7, %v9270_v48, %v292_v50  ;;  %v11428_v55 = vld [vmem:[%s15990_s1 + $0xc0] ss:$12 sps:$4 sm:$0xff]   ;;  %v9272_v60 = vrot.slane %v306_v57, 10 }
  0x30   : > { %10767 = vmatpush3.bf16.msra.mxu1 %v11398_v8  ;;  %v9280_v53 = vcombine.high %v278_v49, %v293_v51  ;;  %v11426_v54 = vld [vmem:[%s15990_s1 + $0xc4] ss:$12 sps:$4 sm:$0xff]   ;;  %v11431_v56 = vld [vmem:[%s15990_s1 + $0x28c] ss:$12 sps:$4 sm:$0xff]   ;;  %v308_v58 = vld [vmem:[%s12221_s27 + $0x9c] sm:$0x33]  ;;  %v9279_v62 = vcombine.low %v278_v49, %v293_v51 }
  0x31   : > { %858 = vmatpush2.bf16.msra.mxu0 %v11401_v7  ;;  %10768 = vmatprep.subr.bf16.mxu1 %v11402_v9  ;;  %v302_v59 = vld [vmem:[%s12221_s27 + $0x78] sm:$0xff]  ;;  %v316_v61 = vrot.slane %v308_v58, 6  ;;  %v11429_v63 = vld [vmem:[%s15990_s1 + $0x288] ss:$12 sps:$4 sm:$0xff]   ;;  %v11432_v4 = vld [vmem:[%s15990_s1 + $0x1a0] ss:$12 sps:$4 sm:$0xff]  }
  0x32   : > { %859 = vmatprep.subr.bf16.mxu0 %v11404_v10  ;;  %9350 = vmatmul.mubr.msk.bf16.gmra.mxu1 %vm826_vm10, %v12373_v18  ;;  %v11435_v5 = vld [vmem:[%s15990_s1 + $0x274] ss:$12 sps:$4 sm:$0xff]   ;;  %v11433_v6 = vld [vmem:[%s15990_s1 + $0x270] ss:$12 sps:$4 sm:$0xff]   ;;  %v11436_v14 = vld [vmem:[%s15990_s1 + $0x258] ss:$12 sps:$4 sm:$0xff]  }
  0x33   : > { %974 = vmatprep.mubr.bf16.mxu1 %v15995_v2  ;;  %v317_v0 = vsel %vm12241_vm7, %v9272_v60, %v316_v61  ;;  %v11438_v7 = vld [vmem:[%s15990_s1 + $0x25c] ss:$12 sps:$4 sm:$0xff]   ;;  %v330_v8 = vld [vmem:[%s12221_s27 + $0xcc] sm:$0xcc]  ;;  %v326_v10 = vld [vmem:[%s12221_s27 + $0xb4] sm:$0xff] }
  0x34   : > { %10769 = vmatpush3.bf16.msra.mxu1 %v11403_v17  ;;  %v9283_v1 = vcombine.high %v302_v59, %v317_v0  ;;  %v332_v9 = vld [vmem:[%s12221_s27 + $0xd8] sm:$0x33]  ;;  %v9282_v13 = vcombine.low %v302_v59, %v317_v0  ;;  %v11439_v17 = vld [vmem:[%s15990_s1 + $0x188] ss:$12 sps:$4 sm:$0xff]   ;;  %v11442_v19 = vld [vmem:[%s15990_s1 + $0x244] ss:$12 sps:$4 sm:$0xff]  }
  0x35   : > { %860 = vmatpush2.bf16.msra.mxu0 %v11406_v11  ;;  %10770 = vmatprep.subr.bf16.mxu1 %v11408_v20  ;;  %v9274_v11 = vrot.slane %v330_v8, 10  ;;  %v340_v12 = vrot.slane %v332_v9, 6  ;;  %v11440_v20 = vld [vmem:[%s15990_s1 + $0x240] ss:$12 sps:$4 sm:$0xff]   ;;  %v11443_v29 = vld [vmem:[%s15990_s1 + $0x228] ss:$12 sps:$4 sm:$0xff]  }
  0x36   : > { %861 = vmatprep.subr.bf16.mxu0 %v11410_v22  ;;  %v11445_v22 = vld [vmem:[%s15990_s1 + $0x22c] ss:$12 sps:$4 sm:$0xff]   ;;  %v11454_v43 = vld [vmem:[%s15990_s1 + $0x394] ss:$12 sps:$4 sm:$0xff]   ;;  %v1186_v58 = vld [vmem:[%s12221_s27 + $0x44] sm:$0x8] }
  0x37   : > { %v341_v15 = vsel %vm12241_vm7, %v9274_v11, %v340_v12  ;;  %v2143_v46 = vld [vmem:[%s12221_s27 + $0x14] sm:$0xc]  ;;  %v2145_v48 = vld [vmem:[%s12221_s27 + $0x20] sm:$0x3]  ;;  %v2163_v50 = vld [vmem:[%s12221_s27 + $0x38] sm:$0xf] }
  0x38   : > { %10771 = vmatpush3.bf16.msra.mxu1 %v11409_v24  ;;  %v9286_v16 = vcombine.high %v326_v10, %v341_v15  ;;  %v1139_v24 = vld [vmem:[%s12221_s27] sm:$0x88]  ;;  %v9285_v28 = vcombine.low %v326_v10, %v341_v15  ;;  %v9533_v49 = vrot.slane %v2143_v46, 10  ;;  %v2156_v51 = vrot.slane %v2145_v48, 6  ;;  %v1188_v59 = vld [vmem:[%s12221_s27 + $0x50] sm:$0x7] }
  0x39   : > { %862 = vmatpush2.bf16.msra.mxu0 %v11412_v23  ;;  %10772 = vmatprep.subr.bf16.mxu1 %v11413_v25  ;;  %v11448_v23 = vld [vmem:[%s15990_s1 + $0x3ac] ss:$12 sps:$4 sm:$0xff]   ;;  %v9356_v32 = vrot.slane %v1139_v24, 11  ;;  %v9361_v60 = vrot.slane %v1186_v58, 11  ;;  %v1199_v61 = vrot.slane %v1188_v59, 7 }
  0x3a   : > { %863 = vmatprep.subr.bf16.mxu0 %v11415_v26  ;;  %9351 = vmatmul.mubr.msk.bf16.gmra.mxu1 %vm826_vm10, %v12408_v35  ;;  %v1141_v25 = vld [vmem:[%s12221_s27 + $0xc] sm:$0x77]  ;;  %v1162_v26 = vld [vmem:[%s12221_s27 + $0x24] sm:$0xee]  ;;  %v2169_v9 = vld [vmem:[%s12221_s27 + $0x5c] sm:$0x3] }
  0x3b   : > { %1017 = vmatprep.mubr.bf16.mxu1 %v9277_v38  ;;  %v1152_v33 = vrot.slane %v1141_v25, 7  ;;  %v9358_v34 = vrot.slane %v1162_v26, 9  ;;  %v11449_v38 = vld [vmem:[%s15990_s1 + $0x210] ss:$12 sps:$4 sm:$0xff]   ;;  %v11458_v57 = vld [vmem:[%s15990_s1 + $0x378] ss:$12 sps:$4 sm:$0xff]  }
  0x3c   : > { %10773 = vmatpush3.bf16.msra.mxu1 %v11414_v30  ;;  %v11451_v30 = vld [vmem:[%s15990_s1 + $0x214] ss:$12 sps:$4 sm:$0xff]   ;;  %v11466_v0 = vld [vmem:[%s15990_s1 + $0x364] ss:$12 sps:$4 sm:$0xff]   ;;  %v1228_v26 = vld [vmem:[%s12221_s27 + $0x8c] sm:$0x7] }
  0x3d   : > { %864 = vmatpush2.bf16.msra.mxu0 %v11417_v27  ;;  %11190 = vmatprep.subr.bf16.mxu1 %v11418_v39  ;;  %v1164_v27 = vld [vmem:[%s12221_s27 + $0x30] sm:$0x11]  ;;  %v2167_v8 = vld [vmem:[%s12221_s27 + $0x50] sm:$0xc]  ;;  %v1226_v25 = vld [vmem:[%s12221_s27 + $0x80] sm:$0x8] }
  0x3e   : > { %865 = vmatprep.subr.bf16.mxu0 %v11419_v40  ;;  %v1175_v37 = vrot.slane %v1164_v27, 5  ;;  %v11446_v40 = vld [vmem:[%s15990_s1 + $0x3a8] ss:$12 sps:$4 sm:$0xff]   ;;  %v11473_v10 = vld [vmem:[%s15990_s1 + $0x330] ss:$12 sps:$4 sm:$0xff]  }
  0x3f   : > { %v11470_v12 = vld [vmem:[%s15990_s1 + $0x350] ss:$12 sps:$4 sm:$0xff]   ;;  %v12620_v27 = vld [vmem:[%s12221_s27 + $0x48] sm:$0x77]  ;;  %v2193_v48 = vld [vmem:[%s12221_s27 + $0x98] sm:$0x3] }
  0x40   : > { %v11472_v15 = vld [vmem:[%s15990_s1 + $0x290] ss:$12 sps:$4 sm:$0xff]   ;;  %v2191_v46 = vld [vmem:[%s12221_s27 + $0x8c] sm:$0xc]  ;;  %v11488_v59 = vld [vmem:[%s15990_s1 + $0x248] ss:$12 sps:$4 sm:$0xff]  }
  0x41   : > { %866 = vmatpush2.bf16.msra.mxu0 %v11421_v41  ;;  %v11455_v41 = vld [vmem:[%s15990_s1 + $0x1f8] ss:$12 sps:$4 sm:$0xff]  }
  0x42   : > { %867 = vmatprep.subr.bf16.mxu0 %v11422_v42  ;;  %1018 = vmatmul.mubr.bf16.vlgmr.msra.gmra.mxu1 %v9276_v44  ;;  %v12515_v42 = vsel %vm12260_vm8, %v9356_v32, %v1152_v33  ;;  %v11486_v24 = vld [vmem:[%s15990_s1 + $0x304] ss:$12 sps:$4 sm:$0xff]  }
  0x43   : > { %11191 = vmatpush3.bf16.msra.mxu1 %v11418_v39  ;;  %1025 = vmatprep.mubr.bf16.mxu1 %v9280_v53  ;;  %v11457_v39 = vld [vmem:[%s15990_s1 + $0x1fc] ss:$12 sps:$4 sm:$0xff]   ;;  %v1246_v32 = vld [vmem:[%s12221_s27 + $0xa4] sm:$0xe] }
  0x44   : > { %11192 = vmatprep.subr.bf16.mxu1 %v11425_v52  ;;  %v11901_v31 = vld [vmem:[%s15990_s1 + $0xc78] ss:$12 sps:$4 sm:$0xff]  }
  0x45   : > { %868 = vmatpush2.bf16.msra.mxu0 %v11424_v45  ;;  %v12527_v45 = vld [vmem:[#allocation2 + $0x8] ss:$12 sps:$4 sm:$0xff]   ;;  %v11909_v36 = vld [vmem:[%s15990_s1 + $0xc64] ss:$12 sps:$4 sm:$0xff]  }
  0x46   : > { %869 = vmatprep.subr.bf16.mxu0 %v11426_v54  ;;  %2165 = vst.msk [vmem:[#allocation2 + $0x14] sm:$0xf] %vm253_vm0, %v2163_v50  ;;  %v11461_v54 = vld [vmem:[%s15990_s1 + $0x1e0] ss:$12 sps:$4 sm:$0xff]   ;;  %v11991_v21 = vld [vmem:[%s15990_s1 + $0xe78] ss:$12 sps:$4 sm:$0xff]  }
  0x47   : > { %11193 = vmatpush3.bf16.msra.mxu1 %v11425_v52  ;;  %v11452_v52 = vld [vmem:[%s15990_s1 + $0x390] ss:$12 sps:$4 sm:$0xff]   ;;  %v11483_v50 = vld [vmem:[%s15990_s1 + $0x260] ss:$12 sps:$4 sm:$0xff]  }
  0x48   : > { %11194 = vmatprep.subr.bf16.mxu1 %v11432_v4 }
  0x49   : > { %870 = vmatpush2.bf16.msra.mxu0 %v11428_v55  ;;  %v2157_v55 = vsel %vm12241_vm7, %v9533_v49, %v2156_v51 }
  0x4a   : > { %1794 = vmatprep.subr.bf16.mxu0 %v11431_v56  ;;  %1026 = vmatmul.mubr.bf16.gmra.mxu1 %v9279_v62  ;;  %v11469_v56 = vld [vmem:[%s15990_s1 + $0x34c] ss:$12 sps:$4 sm:$0xff]   ;;  %2161 = vst.msk [vmem:[#allocation2 + $0x8] sm:$0xf] %vm253_vm0, %v2157_v55  ;;  %v11489_v55 = vld [vmem:[%s15990_s1 + $0x2e8] ss:$12 sps:$4 sm:$0xff]  }
  0x4b   : > { %1033 = vmatprep.mubr.bf16.mxu1 %v9283_v1  ;;  %11195 = vmatpush3.bf16.msra.mxu1 %v11432_v4 }
  0x4c   : > { %872 = vmatmul.mubr.bf16.vlgmr.msra.gmra.mxu0 %v9276_v44  ;;  %11196 = vmatprep.subr.bf16.mxu1 %v11439_v17  ;;  %v11463_v44 = vld [vmem:[%s15990_s1 + $0x1e4] ss:$12 sps:$4 sm:$0xff]  }
  0x4d   : > { %1795 = vmatpush1.bf16.msra.mxu0 %v11429_v63  ;;  %881 = vmatprep.mubr.bf16.mxu0 %v9280_v53  ;;  %v1208_v63 = vld [vmem:[%s12221_s27 + $0x74] sm:$0x1] }
  0x4e   : > { %1796 = vmatprep.subr.bf16.mxu0 %v11435_v5  ;;  %v1219_v5 = vrot.slane %v1208_v63, 5 }
  0x4f   : > { %11197 = vmatpush3.bf16.msra.mxu1 %v11439_v17  ;;  %v11478_v17 = vld [vmem:[%s15990_s1 + $0x318] ss:$12 sps:$4 sm:$0xff]  }
  0x50   : > { %1875 = vmatprep.subr.bf16.mxu1 %v11448_v23  ;;  %v11484_v23 = vld [vmem:[%s15990_s1 + $0x300] ss:$12 sps:$4 sm:$0xff]  }
  0x51   : > { %1797 = vmatpush1.bf16.msra.mxu0 %v11433_v6  ;;  %v11464_v6 = vld [vmem:[%s15990_s1 + $0x360] ss:$12 sps:$4 sm:$0xff]  }
  0x52   : > { %1798 = vmatprep.subr.bf16.mxu0 %v11438_v7  ;;  %1034 = vmatmul.mubr.bf16.gmra.mxu1 %v9282_v13  ;;  %v1200_v7 = vsel %vm12260_vm8, %v9361_v60, %v1199_v61  ;;  %v2211_v60 = vld [vmem:[%s12221_s27 + $0xb0] sm:$0xf] }
  0x53   : > { %1041 = vmatprep.mubr.bf16.mxu1 %v9286_v16  ;;  %1204 = vst.msk [vmem:[#allocation2 + $0x20] sm:$0xf] %vm253_vm0, %v1200_v7  ;;  %v11492_v61 = vld [vmem:[%s15990_s1 + $0x2f0] ss:$12 sps:$4 sm:$0xff]  }
  0x54   : > { %882 = vmatmul.mubr.bf16.gmra.mxu0 %v9279_v62  ;;  %v1206_v62 = vld [vmem:[%s12221_s27 + $0x68] sm:$0xe] }
  0x55   : > { %1799 = vmatpush1.bf16.msra.mxu0 %v11436_v14  ;;  %891 = vmatprep.mubr.bf16.mxu0 %v9283_v1  ;;  %v11475_v1 = vld [vmem:[%s15990_s1 + $0x334] ss:$12 sps:$4 sm:$0xff]   ;;  %v9363_v4 = vrot.slane %v1206_v62, 9  ;;  %v2180_v14 = vrot.slane %v2169_v9, 6  ;;  %v11495_v62 = vld [vmem:[%s15990_s1 + $0x2d0] ss:$12 sps:$4 sm:$0xff]  }
  0x56   : > { %1800 = vmatprep.subr.bf16.mxu0 %v11442_v19  ;;  %v2187_v19 = vld [vmem:[%s12221_s27 + $0x74] sm:$0xf] }
  0x57   : > { %v1220_v11 = vsel %vm12266_vm9, %v9363_v4, %v1219_v5  ;;  %v1268_v4 = vld [vmem:[%s12221_s27 + $0xc8] sm:$0x7] }
  0x58   : > { %1224 = vst.msk [vmem:[#allocation2 + $0x2c] sm:$0xf] %vm253_vm0, %v1220_v11  ;;  %v11500_v11 = vld [vmem:[%s15990_s1 + $0x2b8] ss:$12 sps:$4 sm:$0xff]  }
  0x59   : > { %1801 = vmatpush1.bf16.msra.mxu0 %v11440_v20  ;;  %v12607_v20 = vld [vmem:[%s12221_s27 + $0x3c] sm:$0x88] }
  0x5a   : > { %1802 = vmatprep.subr.bf16.mxu0 %v11445_v22  ;;  %1042 = vmatmul.mubr.bf16.gmra.mxu1 %v9285_v28  ;;  %v9360_v49 = vrot.slane %v12607_v20, 11 }
  0x5b   : > { %11198 = vmatprep.mubr.msk.bf16.mxu1 %vm826_vm10, %v12294_v47  ;;  %v12519_v47 = vsel %vm12266_vm9, %v9358_v34, %v1175_v37  ;;  %v1248_v34 = vld [vmem:[%s12221_s27 + $0xb0] sm:$0x1]  ;;  %v11481_v37 = vld [vmem:[%s15990_s1 + $0x320] ss:$12 sps:$4 sm:$0xff]  }
  0x5c   : > { %892 = vmatmul.mubr.bf16.gmra.mxu0 %v9282_v13  ;;  %v12538_v53 = vcombine.high %v12515_v42, %v12519_v47  ;;  %v9535_v13 = vrot.slane %v2167_v8, 10  ;;  %v1279_v8 = vrot.slane %v1268_v4, 7 }
  0x5d   : > { %1803 = vmatpush1.bf16.msra.mxu0 %v11443_v29  ;;  %901 = vmatprep.mubr.bf16.mxu0 %v9286_v16  ;;  %v11476_v16 = vld [vmem:[%s15990_s1 + $0x338] ss:$12 sps:$4 sm:$0xff]   ;;  %v9365_v29 = vrot.slane %v1226_v25, 11 }
  0x5e   : > { %1804 = vmatprep.subr.bf16.mxu0 %v11451_v30  ;;  %v2181_v22 = vsel %vm12241_vm7, %v9535_v13, %v2180_v14  ;;  %v1239_v30 = vrot.slane %v1228_v26, 7 }
  0x5f   : > { %v12628_v33 = vld [vmem:[#allocation2 + $0x20] ss:$12 sps:$4 sm:$0xff]  }
  0x60   : > { %2185 = vst.msk [vmem:[#allocation2 + $0x20] sm:$0xf] %vm253_vm0, %v2181_v22  ;;  %2189 = vst.msk [vmem:[#allocation2 + $0x2c] sm:$0xf] %vm253_vm0, %v2187_v19  ;;  %v1227_v19 = vld [vmem:[%s12221_s27 + $0x84] sm:$0x77] }
  0x61   : > { %1805 = vmatpush1.bf16.msra.mxu0 %v11449_v38  ;;  %v11491_v38 = vld [vmem:[%s15990_s1 + $0x2ec] ss:$12 sps:$4 sm:$0xff]   ;;  %v11508_v22 = vld [vmem:[%s15990_s1 + $0x2a4] ss:$12 sps:$4 sm:$0xff]  }
  0x62   : > { %1806 = vmatprep.subr.bf16.mxu0 %v11457_v39  ;;  %11199 = vmatmul.mubr.msk.bf16.vlgmr.msra.gmra.mxu1 %vm826_vm10, %v12337_v3  ;;  %v11460_v3 = vld [vmem:[%s15990_s1 + $0x37c] ss:$12 sps:$4 sm:$0xff]   ;;  %v1240_v39 = vsel %vm12260_vm8, %v9365_v29, %v1239_v30 }
  0x63   : > { %1876 = vmatpush1.bf16.msra.mxu1 %v11446_v40  ;;  %11202 = vmatprep.mubr.msk.bf16.mxu1 %vm826_vm10, %v12373_v18  ;;  %v11467_v18 = vld [vmem:[%s15990_s1 + $0x348] ss:$12 sps:$4 sm:$0xff]   ;;  %v9367_v40 = vrot.slane %v1246_v32, 9  ;;  %1244 = vst.msk [vmem:[#allocation2 + $0x38] sm:$0xf] %vm253_vm0, %v1240_v39  ;;  %v9452_v39 = vcombine.low %v12515_v42, %v12519_v47 }
  0x64   : > { %902 = vmatmul.mubr.bf16.gmra.mxu0 %v9285_v28  ;;  %1877 = vmatprep.subr.bf16.mxu1 %v11454_v43  ;;  %v11477_v28 = vld [vmem:[%s15990_s1 + $0x278] ss:$12 sps:$4 sm:$0xff]   ;;  %v1247_v30 = vld [vmem:[%s12221_s27 + $0xa8] sm:$0x11] }
  0x65   : > { %1807 = vmatpush1.bf16.msra.mxu0 %v11455_v41  ;;  %1826 = vmatprep.mubr.bf16.mxu0 %v12538_v53  ;;  %v1259_v41 = vrot.slane %v1248_v34, 5  ;;  %v12643_v43 = vld [vmem:[%s12221_s27 + $0x60] sm:$0xee]  ;;  %v1265_v42 = vld [vmem:[%s12221_s27 + $0xb4] sm:$0x88] }
  0x66   : > { %1808 = vmatprep.subr.bf16.mxu0 %v11463_v44  ;;  %v12646_v44 = vld [vmem:[%s12221_s27 + $0x6c] sm:$0x11]  ;;  %v1267_v47 = vld [vmem:[%s12221_s27 + $0xc0] sm:$0x77] }
  0x67   : > { %1878 = vmatpush1.bf16.msra.mxu1 %v11452_v52  ;;  %v1260_v51 = vsel %vm12266_vm9, %v9367_v40, %v1259_v41  ;;  %v1195_v52 = vrot.slane %v12620_v27, 7  ;;  %v1215_v58 = vrot.slane %v12646_v44, 5  ;;  %v11499_v27 = vld [vmem:[%s15990_s1 + $0x218] ss:$12 sps:$4 sm:$0xff]   ;;  %v11503_v32 = vld [vmem:[%s15990_s1 + $0x2c0] ss:$12 sps:$4 sm:$0xff]  }
  0x68   : > { %1879 = vmatprep.subr.bf16.mxu1 %v11460_v3  ;;  %1264 = vst.msk [vmem:[#allocation2 + $0x44] sm:$0xf] %vm253_vm0, %v1260_v51  ;;  %v2204_v3 = vrot.slane %v2193_v48, 6  ;;  %v11514_v40 = vld [vmem:[%s15990_s1 + $0x3b0] ss:$12 sps:$4 sm:$0xff]   ;;  %v1255_v44 = vrot.slane %v1247_v30, 5 }
  0x69   : > { %1809 = vmatpush1.bf16.msra.mxu0 %v11461_v54  ;;  %v11487_v54 = vld [vmem:[%s15990_s1 + $0x308] ss:$12 sps:$4 sm:$0xff]   ;;  %v1196_v25 = vsel %vm12260_vm8, %v9360_v49, %v1195_v52  ;;  %v11505_v48 = vld [vmem:[%s15990_s1 + $0x200] ss:$12 sps:$4 sm:$0xff]   ;;  %v1285_v51 = vld [vmem:[%s12221_s27 + $0xd8] sm:$0xee] }
  0x6a   : > { %1810 = vmatprep.subr.bf16.mxu0 %v11469_v56  ;;  %11203 = vmatmul.mubr.msk.bf16.gmra.mxu1 %vm826_vm10, %v12408_v35  ;;  %v11480_v35 = vld [vmem:[%s15990_s1 + $0x31c] ss:$12 sps:$4 sm:$0xff]   ;;  %v9537_v56 = vrot.slane %v2191_v46, 10  ;;  %v3082_v30 = vld [vmem:[%s12221_s27 + $0xe0] sm:$0x3] }
  0x6b   : > { %1880 = vmatpush1.bf16.msra.mxu1 %v11458_v57  ;;  %1899 = vmatprep.mubr.bf16.mxu1 %v15995_v2  ;;  %v11497_v57 = vld [vmem:[%s15990_s1 + $0x2d4] ss:$12 sps:$4 sm:$0xff]  }
  0x6c   : > { %1881 = vmatprep.subr.bf16.mxu1 %v11466_v0  ;;  %v2205_v63 = vsel %vm12241_vm7, %v9537_v56, %v2204_v3  ;;  %v11502_v0 = vld [vmem:[%s15990_s1 + $0x2bc] ss:$12 sps:$4 sm:$0xff]   ;;  %v11521_v3 = vld [vmem:[%s15990_s1 + $0x398] ss:$12 sps:$4 sm:$0xff]  }
  0x6d   : > { %1811 = vmatpush2.bf16.msra.mxu0 %v11467_v18  ;;  %v9362_v18 = vrot.slane %v12643_v43, 9  ;;  %v11510_v56 = vld [vmem:[%s15990_s1 + $0x1e8] ss:$12 sps:$4 sm:$0xff]  }
  0x6e   : > { %1812 = vmatprep.subr.bf16.mxu0 %v11475_v1  ;;  %v1266_v1 = vld [vmem:[%s12221_s27 + $0xbc] sm:$0x8] }
  0x6f   : > { %1882 = vmatpush1.bf16.msra.mxu1 %v11464_v6  ;;  %v9369_v5 = vrot.slane %v1266_v1, 11  ;;  %v1286_v6 = vld [vmem:[%s12221_s27 + $0xe0] sm:$0xe]  ;;  %v12691_v7 = vld [vmem:[#allocation2 + $0x38] ss:$12 sps:$4 sm:$0xff]   ;;  %v1216_v26 = vsel %vm12266_vm9, %v9362_v18, %v1215_v58  ;;  %v9368_v58 = vrot.slane %v1265_v42, 11 }
  0x70   : > { %10806 = vmatprep.subr.bf16.mxu1 %v11470_v12  ;;  %v9371_v9 = vrot.slane %v1286_v6, 9  ;;  %2209 = vst.msk [vmem:[#allocation2 + $0x38] sm:$0xf] %vm253_vm0, %v2205_v63  ;;  %2213 = vst.msk [vmem:[#allocation2 + $0x44] sm:$0xf] %vm253_vm0, %v2211_v60  ;;  %v9456_v41 = vcombine.high %v1196_v25, %v1216_v26  ;;  %v9455_v18 = vcombine.low %v1196_v25, %v1216_v26  ;;  %v12825_v25 = vld [vmem:[%s12221_s27 + $0x30] sm:$0xff] }
  0x71   : > { %1813 = vmatpush2.bf16.msra.mxu0 %v11473_v10  ;;  %v11494_v10 = vld [vmem:[%s15990_s1 + $0x230] ss:$12 sps:$4 sm:$0xff]   ;;  %v1288_v12 = vld [vmem:[%s12221_s27 + $0xec] sm:$0x1]  ;;  %v1280_v13 = vsel %vm12260_vm8, %v9369_v5, %v1279_v8  ;;  %v11517_v63 = vld [vmem:[%s15990_s1 + $0x454] ss:$12 sps:$4 sm:$0xff]  }
  0x72   : > { %1814 = vmatprep.subr.bf16.mxu0 %v11480_v35  ;;  %9524 = vmatmul.mubr.msk.bf16.vlgmr.msra.gmra.mxu1 %vm826_vm10, %v12527_v45  ;;  %v11498_v35 = vld [vmem:[%s15990_s1 + $0x2d8] ss:$12 sps:$4 sm:$0xff]   ;;  %v1299_v14 = vrot.slane %v1288_v12, 5  ;;  %1284 = vst.msk [vmem:[#allocation2 + $0x50] sm:$0xf] %vm253_vm0, %v1280_v13 }
  0x73   : > { %10807 = vmatpush3.bf16.msra.mxu1 %v11472_v15  ;;  %1909 = vmatprep.mubr.bf16.mxu1 %v15995_v2  ;;  %v2215_v15 = vld [vmem:[%s12221_s27 + $0xc8] sm:$0xc]  ;;  %v11515_v5 = vld [vmem:[%s15990_s1 + $0x450] ss:$12 sps:$4 sm:$0xff]   ;;  %v11541_v12 = vld [vmem:[%s15990_s1 + $0x58c] ss:$12 sps:$4 sm:$0xff]  }
  0x74   : > { %10808 = vmatprep.subr.bf16.mxu1 %v11476_v16  ;;  %v1225_v16 = vld [vmem:[%s12221_s27 + $0x78] sm:$0x88]  ;;  %v1300_v20 = vsel %vm12266_vm9, %v9371_v9, %v1299_v14  ;;  %v11535_v9 = vld [vmem:[%s15990_s1 + $0x368] ss:$12 sps:$4 sm:$0xff]   ;;  %v11522_v13 = vld [vmem:[%s15990_s1 + $0x420] ss:$12 sps:$4 sm:$0xff]  }
  0x75   : > { %1815 = vmatpush2.bf16.msra.mxu0 %v11478_v17  ;;  %v2217_v17 = vld [vmem:[%s12221_s27 + $0xd4] sm:$0x3]  ;;  %1304 = vst.msk [vmem:[#allocation2 + $0x5c] sm:$0xf] %vm253_vm0, %v1300_v20  ;;  %v9364_v34 = vrot.slane %v1225_v16, 11 }
  0x76   : > { %1816 = vmatprep.subr.bf16.mxu0 %v11486_v24  ;;  %v11506_v24 = vld [vmem:[%s15990_s1 + $0x2a0] ss:$12 sps:$4 sm:$0xff]   ;;  %v2228_v29 = vrot.slane %v2217_v17, 6  ;;  %v11520_v6 = vld [vmem:[%s15990_s1 + $0x43c] ss:$12 sps:$4 sm:$0xff]  }
  0x77   : > { %10809 = vmatpush3.bf16.msra.mxu1 %v11477_v28  ;;  %v9539_v28 = vrot.slane %v2215_v15, 10  ;;  %v2142_v14 = vld [vmem:[%s12221_s27 + $0xc] sm:$0xcc]  ;;  %v2144_v17 = vld [vmem:[%s12221_s27 + $0x18] sm:$0x33] }
  0x78   : > { %10810 = vmatprep.subr.bf16.mxu1 %v11481_v37  ;;  %v1235_v37 = vrot.slane %v1227_v19, 7  ;;  %v11527_v15 = vld [vmem:[%s15990_s1 + $0x40c] ss:$12 sps:$4 sm:$0xff]   ;;  %v11525_v19 = vld [vmem:[%s15990_s1 + $0x408] ss:$12 sps:$4 sm:$0xff]   ;;  %v9532_v20 = vrot.slane %v2142_v14, 10 }
  0x79   : > { %1817 = vmatpush2.bf16.msra.mxu0 %v11484_v23  ;;  %v1245_v23 = vld [vmem:[%s12221_s27 + $0x9c] sm:$0xee]  ;;  %v2229_v46 = vsel %vm12241_vm7, %v9539_v28, %v2228_v29  ;;  %v3080_v29 = vld [vmem:[%s12221_s27 + $0xd4] sm:$0xc]  ;;  %v11551_v42 = vld [vmem:[%s15990_s1 + $0x558] ss:$12 sps:$4 sm:$0xff]  }
  0x7a   : > { %1818 = vmatprep.subr.bf16.mxu0 %v11491_v38  ;;  %9525 = vmatmul.mubr.msk.bf16.gmra.mxu1 %vm826_vm10, %v12628_v33  ;;  %v2235_v38 = vld [vmem:[%s12221_s27 + $0xec] sm:$0xf]  ;;  %v9366_v43 = vrot.slane %v1245_v23, 9  ;;  %v1236_v52 = vsel %vm12260_vm8, %v9364_v34, %v1235_v37  ;;  %v11531_v23 = vld [vmem:[%s15990_s1 + $0x3f4] ss:$12 sps:$4 sm:$0xff]   ;;  %v3093_v34 = vrot.slane %v3082_v30, 6 }
  0x7b   : > { %10811 = vmatpush3.bf16.msra.mxu1 %v11483_v50  ;;  %1919 = vmatprep.mubr.bf16.mxu1 %v15995_v2  ;;  %v11509_v50 = vld [vmem:[%s15990_s1 + $0x2a8] ss:$12 sps:$4 sm:$0xff]   ;;  %v3076_v28 = vld [vmem:[%s12221_s27 + $0xbc] sm:$0xf] }
  0x7c   : > { %10812 = vmatprep.subr.bf16.mxu1 %v11487_v54  ;;  %v12749_v49 = vld [vmem:[#allocation2 + $0x50] ss:$12 sps:$4 sm:$0xff]   ;;  %v1256_v54 = vsel %vm12266_vm9, %v9366_v43, %v1255_v44  ;;  %v11539_v37 = vld [vmem:[%s15990_s1 + $0x588] ss:$12 sps:$4 sm:$0xff]   ;;  %v11536_v44 = vld [vmem:[%s15990_s1 + $0x3c0] ss:$12 sps:$4 sm:$0xff]  }
  0x7d   : > { %1819 = vmatpush2.bf16.msra.mxu0 %v11489_v55  ;;  %2233 = vst.msk [vmem:[#allocation2 + $0x50] sm:$0xf] %vm253_vm0, %v2229_v46  ;;  %2237 = vst.msk [vmem:[#allocation2 + $0x5c] sm:$0xf] %vm253_vm0, %v2235_v38  ;;  %v1287_v55 = vld [vmem:[%s12221_s27 + $0xe4] sm:$0x11]  ;;  %v9459_v60 = vcombine.high %v1236_v52, %v1256_v54  ;;  %v9458_v8 = vcombine.low %v1236_v52, %v1256_v54 }
  0x7e   : > { %1820 = vmatprep.subr.bf16.mxu0 %v11497_v57  ;;  %v11513_v57 = vld [vmem:[%s15990_s1 + $0x46c] ss:$12 sps:$4 sm:$0xff]   ;;  %v11534_v26 = vld [vmem:[%s15990_s1 + $0x3dc] ss:$12 sps:$4 sm:$0xff]   ;;  %v11547_v38 = vld [vmem:[%s15990_s1 + $0x574] ss:$12 sps:$4 sm:$0xff]  }
  0x7f   : > { %10813 = vmatpush3.bf16.msra.mxu1 %v11488_v59  ;;  %v1275_v59 = vrot.slane %v1267_v47, 7  ;;  %v11538_v43 = vld [vmem:[%s15990_s1 + $0x3c4] ss:$12 sps:$4 sm:$0xff]   ;;  %v12878_v47 = vld [vmem:[#allocation2 + $0x20] ss:$12 sps:$4 sm:$0xff]  }
  0x80   : > { %10814 = vmatprep.subr.bf16.mxu1 %v11492_v61  ;;  %v9370_v61 = vrot.slane %v1285_v51, 9  ;;  %v11545_v46 = vld [vmem:[%s15990_s1 + $0x570] ss:$12 sps:$4 sm:$0xff]   ;;  %v11573_v14 = vld [vmem:[%s15990_s1 + $0x4b4] ss:$12 sps:$4 sm:$0xff]  }
  0x81   : > { %1821 = vmatpush2.bf16.msra.mxu0 %v11495_v62  ;;  %v1295_v62 = vrot.slane %v1287_v55, 5  ;;  %v1276_v1 = vsel %vm12260_vm8, %v9368_v58, %v1275_v59  ;;  %v3106_v51 = vld [vmem:[%s12221_s27 + $0x11c] sm:$0x3]  ;;  %v11559_v55 = vld [vmem:[%s15990_s1 + $0x544] ss:$12 sps:$4 sm:$0xff]  }
  0x82   : > { %1822 = vmatprep.subr.bf16.mxu0 %v11502_v0  ;;  %9526 = vmatmul.mubr.msk.bf16.gmra.mxu1 %vm826_vm10, %v12691_v7  ;;  %v11528_v0 = vld [vmem:[%s15990_s1 + $0x380] ss:$12 sps:$4 sm:$0xff]   ;;  %v3117_v54 = vrot.slane %v3106_v51, 6  ;;  %v11563_v58 = vld [vmem:[%s15990_s1 + $0x530] ss:$12 sps:$4 sm:$0xff]  }
  0x83   : > { %10815 = vmatpush3.bf16.msra.mxu1 %v11494_v10  ;;  %1929 = vmatprep.mubr.bf16.mxu1 %v15995_v2  ;;  %v1296_v4 = vsel %vm12266_vm9, %v9370_v61, %v1295_v62  ;;  %v11556_v59 = vld [vmem:[%s15990_s1 + $0x4fc] ss:$12 sps:$4 sm:$0xff]   ;;  %v11554_v61 = vld [vmem:[%s15990_s1 + $0x4f8] ss:$12 sps:$4 sm:$0xff]  }
  0x84   : > { %10816 = vmatprep.subr.bf16.mxu1 %v11498_v35  ;;  %v9462_v10 = vcombine.high %v1276_v1, %v1296_v4  ;;  %v11524_v35 = vld [vmem:[%s15990_s1 + $0x424] ss:$12 sps:$4 sm:$0xff]   ;;  %v9461_v16 = vcombine.low %v1276_v1, %v1296_v4  ;;  %v3130_v1 = vld [vmem:[%s12221_s27 + $0x158] sm:$0x3]  ;;  %v11579_v30 = vld [vmem:[%s15990_s1 + $0x49c] ss:$12 sps:$4 sm:$0xff]  }
  0x85   : > { %1823 = vmatpush2.bf16.msra.mxu0 %v11500_v11  ;;  %v11518_v11 = vld [vmem:[%s15990_s1 + $0x438] ss:$12 sps:$4 sm:$0xff]   ;;  %v11588_v51 = vld [vmem:[%s15990_s1 + $0x590] ss:$12 sps:$4 sm:$0xff]  }
  0x86   : > { %1824 = vmatprep.subr.bf16.mxu0 %v11508_v22  ;;  %v2152_v22 = vrot.slane %v2144_v17, 6  ;;  %v11569_v62 = vld [vmem:[%s15990_s1 + $0x518] ss:$12 sps:$4 sm:$0xff]   ;;  %v3148_v17 = vld [vmem:[%s12221_s27 + $0x170] sm:$0xf] }
  0x87   : > { %10817 = vmatpush3.bf16.msra.mxu1 %v11499_v27  ;;  %v12830_v27 = vld [vmem:[#allocation2 + $0x8] ss:$12 sps:$4 sm:$0xff]  }
  0x88   : > { %10818 = vmatprep.subr.bf16.mxu1 %v11503_v32  ;;  %v12837_v32 = vsel %vm12241_vm7, %v9532_v20, %v2152_v22  ;;  %3078 = vst.msk [vmem:[#allocation2 + $0x8] sm:$0xf] %vm253_vm0, %v3076_v28  ;;  %v3154_v20 = vld [vmem:[%s12221_s27 + $0x194] sm:$0x3] }
  0x89   : > { %1825 = vmatpush2.bf16.msra.mxu0 %v11506_v24  ;;  %v11529_v24 = vld [vmem:[%s15990_s1 + $0x3f0] ss:$12 sps:$4 sm:$0xff]  }
  0x8a   : > { %11206 = vmatprep.subr.bf16.mxu0 %v11514_v40  ;;  %9527 = vmatmul.mubr.msk.bf16.gmra.mxu1 %vm826_vm10, %v12749_v49 }
  0x8b   : > { %10819 = vmatpush3.bf16.msra.mxu1 %v11505_v48  ;;  %1972 = vmatprep.mubr.bf16.mxu1 %v12538_v53  ;;  %v11511_v53 = vld [vmem:[%s15990_s1 + $0x468] ss:$12 sps:$4 sm:$0xff]   ;;  %v11544_v48 = vld [vmem:[%s15990_s1 + $0x52c] ss:$12 sps:$4 sm:$0xff]  }
  0x8c   : > { %1827 = vmatmul.mubr.bf16.vlgmr.msra.gmra.mxu0 %v9452_v39  ;;  %10820 = vmatprep.subr.bf16.mxu1 %v11509_v50  ;;  %v3104_v50 = vld [vmem:[%s12221_s27 + $0x110] sm:$0xc] }
  0x8d   : > { %11207 = vmatpush3.bf16.msra.mxu0 %v11514_v40  ;;  %1836 = vmatprep.mubr.bf16.mxu0 %v9456_v41  ;;  %v11532_v40 = vld [vmem:[%s15990_s1 + $0x3d8] ss:$12 sps:$4 sm:$0xff]   ;;  %v9703_v52 = vrot.slane %v3104_v50, 10 }
  0x8e   : > { %11208 = vmatprep.subr.bf16.mxu0 %v11521_v3 }
  0x8f   : > { %10821 = vmatpush3.bf16.msra.mxu1 %v11510_v56  ;;  %v11542_v56 = vld [vmem:[%s15990_s1 + $0x528] ss:$12 sps:$4 sm:$0xff]  }
  0x90   : > { %2727 = vmatprep.subr.bf16.mxu1 %v11513_v57  ;;  %v11550_v57 = vld [vmem:[%s15990_s1 + $0x514] ss:$12 sps:$4 sm:$0xff]  }
  0x91   : > { %11209 = vmatpush3.bf16.msra.mxu0 %v11521_v3  ;;  %v3118_v3 = vsel %vm12241_vm7, %v9703_v52, %v3117_v54  ;;  %v2192_v52 = vld [vmem:[%s12221_s27 + $0x90] sm:$0x33]  ;;  %v11593_v54 = vld [vmem:[%s15990_s1 + $0x3e0] ss:$12 sps:$4 sm:$0xff]  }
  0x92   : > { %1973 = vmatmul.mubr.bf16.vlgmr.msra.gmra.mxu1 %v9452_v39  ;;  %11210 = vmatprep.subr.bf16.mxu0 %v11528_v0  ;;  %3122 = vst.msk [vmem:[#allocation2 + $0x2c] sm:$0xf] %vm253_vm0, %v3118_v3 }
  0x93   : > { %2728 = vmatpush1.bf16.msra.mxu1 %v11511_v53  ;;  %1980 = vmatprep.mubr.bf16.mxu1 %v9456_v41  ;;  %v12854_v41 = vcombine.high %v12837_v32, %v12825_v25  ;;  %v12921_v53 = vld [vmem:[#allocation2 + $0x38] ss:$12 sps:$4 sm:$0xff]  }
  0x94   : > { %1837 = vmatmul.mubr.bf16.gmra.mxu0 %v9455_v18  ;;  %2729 = vmatprep.subr.bf16.mxu1 %v11517_v63  ;;  %v3124_v63 = vld [vmem:[%s12221_s27 + $0x134] sm:$0xf] }
  0x95   : > { %1846 = vmatprep.mubr.bf16.mxu0 %v9459_v60  ;;  %11211 = vmatpush3.bf16.msra.mxu0 %v11528_v0  ;;  %v3128_v0 = vld [vmem:[%s12221_s27 + $0x14c] sm:$0xc]  ;;  %3126 = vst.msk [vmem:[#allocation2 + $0x38] sm:$0xf] %vm253_vm0, %v3124_v63 }
  0x96   : > { %11212 = vmatprep.subr.bf16.mxu0 %v11535_v9  ;;  %v9705_v4 = vrot.slane %v3128_v0, 10  ;;  %v11603_v0 = vld [vmem:[%s15990_s1 + $0x634] ss:$12 sps:$4 sm:$0xff]  }
  0x97   : > { %2730 = vmatpush1.bf16.msra.mxu1 %v11515_v5  ;;  %v11562_v5 = vld [vmem:[%s15990_s1 + $0x4e4] ss:$12 sps:$4 sm:$0xff]  }
  0x98   : > { %2731 = vmatprep.subr.bf16.mxu1 %v11520_v6  ;;  %v3141_v6 = vrot.slane %v3130_v1, 6 }
  0x99   : > { %11213 = vmatpush3.bf16.msra.mxu0 %v11535_v9  ;;  %v11574_v9 = vld [vmem:[%s15990_s1 + $0x500] ss:$12 sps:$4 sm:$0xff]  }
  0x9a   : > { %1981 = vmatmul.mubr.bf16.gmra.mxu1 %v9455_v18  ;;  %2808 = vmatprep.subr.bf16.mxu0 %v11541_v12  ;;  %v11557_v18 = vld [vmem:[%s15990_s1 + $0x540] ss:$12 sps:$4 sm:$0xff]  }
  0x9b   : > { %2732 = vmatpush1.bf16.msra.mxu1 %v11518_v11  ;;  %1988 = vmatprep.mubr.bf16.mxu1 %v9459_v60  ;;  %v11565_v60 = vld [vmem:[%s15990_s1 + $0x470] ss:$12 sps:$4 sm:$0xff]   ;;  %v11560_v11 = vld [vmem:[%s15990_s1 + $0x4e0] ss:$12 sps:$4 sm:$0xff]  }
  0x9c   : > { %1847 = vmatmul.mubr.bf16.gmra.mxu0 %v9458_v8  ;;  %2733 = vmatprep.subr.bf16.mxu1 %v11524_v35  ;;  %v11568_v12 = vld [vmem:[%s15990_s1 + $0x4cc] ss:$12 sps:$4 sm:$0xff]   ;;  %v11566_v35 = vld [vmem:[%s15990_s1 + $0x4c8] ss:$12 sps:$4 sm:$0xff]  }
  0x9d   : > { %1856 = vmatprep.mubr.bf16.mxu0 %v9462_v10 }
  0x9f   : > { %2734 = vmatpush1.bf16.msra.mxu1 %v11522_v13  ;;  %v11576_v13 = vld [vmem:[%s15990_s1 + $0x440] ss:$12 sps:$4 sm:$0xff]  }
  0xa0   : > { %2735 = vmatprep.subr.bf16.mxu1 %v11527_v15  ;;  %v11580_v15 = vld [vmem:[%s15990_s1 + $0x4e8] ss:$12 sps:$4 sm:$0xff]  }
  0xa2   : > { %1989 = vmatmul.mubr.bf16.gmra.mxu1 %v9458_v8  ;;  %v11570_v8 = vld [vmem:[%s15990_s1 + $0x458] ss:$12 sps:$4 sm:$0xff]  }
  0xa3   : > { %2736 = vmatpush1.bf16.msra.mxu1 %v11525_v19  ;;  %1996 = vmatprep.mubr.bf16.mxu1 %v9462_v10  ;;  %v3142_v10 = vsel %vm12241_vm7, %v9705_v4, %v3141_v6  ;;  %v3152_v19 = vld [vmem:[%s12221_s27 + $0x188] sm:$0xc] }
  0xa4   : > { %1857 = vmatmul.mubr.bf16.gmra.mxu0 %v9461_v16  ;;  %2737 = vmatprep.subr.bf16.mxu1 %v11531_v23  ;;  %3146 = vst.msk [vmem:[#allocation2 + $0x44] sm:$0xf] %vm253_vm0, %v3142_v10  ;;  %v9707_v22 = vrot.slane %v3152_v19, 10  ;;  %v3165_v23 = vrot.slane %v3154_v20, 6  ;;  %v11607_v6 = vld [vmem:[%s15990_s1 + $0x548] ss:$12 sps:$4 sm:$0xff]  }
  0xa5   : > { %11214 = vmatprep.mubr.msk.bf16.mxu0 %vm826_vm10, %v12527_v45  ;;  %v9701_v45 = vrot.slane %v3080_v29, 10  ;;  %v11571_v29 = vld [vmem:[%s15990_s1 + $0x4b0] ss:$12 sps:$4 sm:$0xff]  }
  0xa6   : > { %v3166_v28 = vsel %vm12241_vm7, %v9707_v22, %v3165_v23  ;;  %v11606_v10 = vld [vmem:[%s15990_s1 + $0x61c] ss:$12 sps:$4 sm:$0xff]   ;;  %v3079_v19 = vld [vmem:[%s12221_s27 + $0xcc] sm:$0xcc]  ;;  %v4031_v23 = vld [vmem:[%s12221_s27 + $0xec] sm:$0x1] }
  0xa7   : > { %v3094_v39 = vsel %vm12241_vm7, %v9701_v45, %v3093_v34  ;;  %2738 = vmatpush1.bf16.msra.mxu1 %v11529_v24  ;;  %v11581_v24 = vld [vmem:[%s15990_s1 + $0x428] ss:$12 sps:$4 sm:$0xff]  }
  0xa8   : > { %3098 = vst.msk [vmem:[#allocation2 + $0x14] sm:$0xf] %vm253_vm0, %v3094_v39  ;;  %2739 = vmatprep.subr.bf16.mxu1 %v11534_v26  ;;  %v11585_v26 = vld [vmem:[%s15990_s1 + $0x4d0] ss:$12 sps:$4 sm:$0xff]   ;;  %v2166_v45 = vld [vmem:[%s12221_s27 + $0x48] sm:$0xcc] }
  0xa9   : > { %v2168_v34 = vld [vmem:[%s12221_s27 + $0x54] sm:$0x33] }
  0xaa   : > { %1997 = vmatmul.mubr.bf16.gmra.mxu1 %v9461_v16  ;;  %v12960_v16 = vld [vmem:[#allocation2 + $0x50] ss:$12 sps:$4 sm:$0xff]   ;;  %v11577_v39 = vld [vmem:[%s15990_s1 + $0x498] ss:$12 sps:$4 sm:$0xff]  }
  0xab   : > { %2740 = vmatpush1.bf16.msra.mxu1 %v11532_v40  ;;  %2759 = vmatprep.mubr.bf16.mxu1 %v12854_v41  ;;  %3150 = vst.msk [vmem:[#allocation2 + $0x50] sm:$0xf] %vm253_vm0, %v3148_v17  ;;  %3170 = vst.msk [vmem:[#allocation2 + $0x5c] sm:$0xf] %vm253_vm0, %v3166_v28  ;;  %v9534_v40 = vrot.slane %v2166_v45, 10 }
  0xac   : > { %11215 = vmatmul.mubr.msk.bf16.vlgmr.msra.gmra.mxu0 %vm826_vm10, %v12628_v33  ;;  %v11553_v33 = vld [vmem:[%s15990_s1 + $0x55c] ss:$12 sps:$4 sm:$0xff]   ;;  %2741 = vmatprep.subr.bf16.mxu1 %v11538_v43  ;;  %v2176_v43 = vrot.slane %v2168_v34, 6  ;;  %v4029_v17 = vld [vmem:[%s12221_s27 + $0xe0] sm:$0xe] }
  0xad   : > { %2809 = vmatpush1.bf16.msra.mxu0 %v11539_v37  ;;  %11218 = vmatprep.mubr.msk.bf16.mxu0 %vm826_vm10, %v12691_v7  ;;  %v3100_v7 = vld [vmem:[%s12221_s27 + $0xf8] sm:$0xf]  ;;  %v11587_v37 = vld [vmem:[%s15990_s1 + $0x410] ss:$12 sps:$4 sm:$0xff]  }
  0xae   : > { %2810 = vmatprep.subr.bf16.mxu0 %v11547_v38  ;;  %3102 = vst.msk [vmem:[#allocation2 + $0x20] sm:$0xf] %vm253_vm0, %v3100_v7  ;;  %v11589_v38 = vld [vmem:[%s15990_s1 + $0x4b8] ss:$12 sps:$4 sm:$0xff]   ;;  %v11582_v7 = vld [vmem:[%s15990_s1 + $0x480] ss:$12 sps:$4 sm:$0xff]   ;;  %v2177_v50 = vsel %vm12241_vm7, %v9534_v40, %v2176_v43 }
  0xaf   : > { %2742 = vmatpush1.bf16.msra.mxu1 %v11536_v44  ;;  %v11584_v44 = vld [vmem:[%s15990_s1 + $0x484] ss:$12 sps:$4 sm:$0xff]   ;;  %v11608_v43 = vld [vmem:[%s15990_s1 + $0x600] ss:$12 sps:$4 sm:$0xff]  }
  0xb0   : > { %2743 = vmatprep.subr.bf16.mxu1 %v11544_v48  ;;  %v2186_v48 = vld [vmem:[%s12221_s27 + $0x6c] sm:$0xff] }
  0xb1   : > { %2811 = vmatpush1.bf16.msra.mxu0 %v11545_v46  ;;  %v11590_v46 = vld [vmem:[%s15990_s1 + $0x3f8] ss:$12 sps:$4 sm:$0xff]   ;;  %v9624_v3 = vcombine.high %v2177_v50, %v2186_v48  ;;  %v9623_v63 = vcombine.low %v2177_v50, %v2186_v48 }
  0xb2   : > { %2812 = vmatprep.subr.bf16.mxu0 %v11553_v33  ;;  %v11591_v33 = vld [vmem:[%s15990_s1 + $0x4a0] ss:$12 sps:$4 sm:$0xff]   ;;  %v11610_v28 = vld [vmem:[%s15990_s1 + $0x604] ss:$12 sps:$4 sm:$0xff]   ;;  %v4049_v50 = vld [vmem:[%s12221_s27 + $0xf8] sm:$0x8] }
  0xb3   : > { %2744 = vmatpush2.bf16.msra.mxu1 %v11542_v56  ;;  %v11595_v56 = vld [vmem:[%s15990_s1 + $0x488] ss:$12 sps:$4 sm:$0xff]   ;;  %v11613_v48 = vld [vmem:[%s15990_s1 + $0x5ec] ss:$12 sps:$4 sm:$0xff]  }
  0xb4   : > { %11219 = vmatmul.mubr.msk.bf16.gmra.mxu0 %vm826_vm10, %v12749_v49  ;;  %v11548_v49 = vld [vmem:[%s15990_s1 + $0x510] ss:$12 sps:$4 sm:$0xff]   ;;  %2745 = vmatprep.subr.bf16.mxu1 %v11550_v57 }
  0xb5   : > { %2813 = vmatpush1.bf16.msra.mxu0 %v11551_v42  ;;  %2832 = vmatprep.mubr.bf16.mxu0 %v15995_v2  ;;  %v2190_v42 = vld [vmem:[%s12221_s27 + $0x84] sm:$0xcc] }
  0xb6   : > { %2814 = vmatprep.subr.bf16.mxu0 %v11559_v55  ;;  %v9620_v55 = vcombine.low %v12837_v32, %v12825_v25  ;;  %v9536_v57 = vrot.slane %v2190_v42, 10  ;;  %v11596_v25 = vld [vmem:[%s15990_s1 + $0x3c8] ss:$12 sps:$4 sm:$0xff]  }
  0xb7   : > { %2746 = vmatpush2.bf16.msra.mxu1 %v11548_v49  ;;  %v2210_v32 = vld [vmem:[%s12221_s27 + $0xa8] sm:$0xff] }
  0xb8   : > { %2747 = vmatprep.subr.bf16.mxu1 %v11556_v59  ;;  %v11599_v49 = vld [vmem:[%s15990_s1 + $0x64c] ss:$12 sps:$4 sm:$0xff]   ;;  %v2214_v59 = vld [vmem:[%s12221_s27 + $0xc0] sm:$0xcc] }
  0xb9   : > { %2815 = vmatpush1.bf16.msra.mxu0 %v11557_v18  ;;  %v2200_v18 = vrot.slane %v2192_v52, 6  ;;  %v9538_v4 = vrot.slane %v2214_v59, 10  ;;  %v4069_v52 = vld [vmem:[%s12221_s27 + $0x11c] sm:$0xe] }
  0xba   : > { %10854 = vmatprep.subr.bf16.mxu0 %v11563_v58  ;;  %v11594_v58 = vld [vmem:[%s15990_s1 + $0x578] ss:$12 sps:$4 sm:$0xff]   ;;  %v11617_v59 = vld [vmem:[%s15990_s1 + $0x5d0] ss:$12 sps:$4 sm:$0xff]  }
  0xbb   : > { %2748 = vmatpush2.bf16.msra.mxu1 %v11554_v61  ;;  %v11600_v61 = vld [vmem:[%s15990_s1 + $0x560] ss:$12 sps:$4 sm:$0xff]  }
  0xbc   : > { %9692 = vmatmul.mubr.msk.bf16.vlgmr.msra.gmra.mxu0 %vm826_vm10, %v12830_v27  ;;  %2749 = vmatprep.subr.bf16.mxu1 %v11562_v5 }
  0xbd   : > { %10855 = vmatpush3.bf16.msra.mxu0 %v11565_v60  ;;  %2842 = vmatprep.mubr.bf16.mxu0 %v15995_v2  ;;  %v2201_v60 = vsel %vm12241_vm7, %v9536_v57, %v2200_v18  ;;  %v9875_v57 = vrot.slane %v4069_v52, 9  ;;  %v4151_v52 = vld [vmem:[%s12221_s27 + $0x1a0] sm:$0x1] }
  0xbe   : > { %10856 = vmatprep.subr.bf16.mxu0 %v11569_v62  ;;  %v2216_v62 = vld [vmem:[%s12221_s27 + $0xcc] sm:$0x33]  ;;  %v9627_v1 = vcombine.high %v2201_v60, %v2210_v32 }
  0xbf   : > { %2750 = vmatpush2.bf16.msra.mxu1 %v11560_v11  ;;  %v2224_v5 = vrot.slane %v2216_v62, 6  ;;  %v11604_v11 = vld [vmem:[%s15990_s1 + $0x618] ss:$12 sps:$4 sm:$0xff]  }
  0xc0   : > { %2751 = vmatprep.subr.bf16.mxu1 %v11568_v12  ;;  %v11616_v12 = vld [vmem:[%s15990_s1 + $0x76c] ss:$12 sps:$4 sm:$0xff]  }
  0xc1   : > { %10857 = vmatpush3.bf16.msra.mxu0 %v11570_v8  ;;  %v11601_v8 = vld [vmem:[%s15990_s1 + $0x630] ss:$12 sps:$4 sm:$0xff]  }
  0xc2   : > { %10858 = vmatprep.subr.bf16.mxu0 %v11574_v9  ;;  %v2234_v9 = vld [vmem:[%s12221_s27 + $0xe4] sm:$0xff] }
  0xc3   : > { %2752 = vmatpush2.bf16.msra.mxu1 %v11566_v35  ;;  %v4009_v35 = vld [vmem:[%s12221_s27 + $0xbc] sm:$0x8] }
  0xc4   : > { %9693 = vmatmul.mubr.msk.bf16.gmra.mxu0 %vm826_vm10, %v12878_v47  ;;  %2753 = vmatprep.subr.bf16.mxu1 %v11573_v14  ;;  %v4011_v14 = vld [vmem:[%s12221_s27 + $0xc8] sm:$0x7] }
  0xc5   : > { %10859 = vmatpush3.bf16.msra.mxu0 %v11576_v13  ;;  %2852 = vmatprep.mubr.bf16.mxu0 %v15995_v2  ;;  %v2225_v13 = vsel %vm12241_vm7, %v9538_v4, %v2224_v5  ;;  %v4022_v22 = vrot.slane %v4011_v14, 7 }
  0xc6   : > { %10860 = vmatprep.subr.bf16.mxu0 %v11580_v15  ;;  %v9869_v15 = vrot.slane %v4009_v35, 11  ;;  %v9630_v34 = vcombine.high %v2225_v13, %v2234_v9  ;;  %v4109_v35 = vld [vmem:[%s12221_s27 + $0x158] sm:$0xe] }
  0xc7   : > { %2754 = vmatpush2.bf16.msra.mxu1 %v11571_v29  ;;  %v4042_v29 = vrot.slane %v4031_v23, 5  ;;  %v9879_v14 = vrot.slane %v4109_v35, 9  ;;  %v11637_v23 = vld [vmem:[%s15990_s1 + $0x70c] ss:$12 sps:$4 sm:$0xff]  }
  0xc8   : > { %2755 = vmatprep.subr.bf16.mxu1 %v11579_v30  ;;  %v3081_v30 = vld [vmem:[%s12221_s27 + $0xd8] sm:$0x33] }
  0xc9   : > { %10861 = vmatpush3.bf16.msra.mxu0 %v11581_v24  ;;  %v9871_v24 = vrot.slane %v4029_v17, 9 }
  0xca   : > { %10862 = vmatprep.subr.bf16.mxu0 %v11585_v26  ;;  %v9626_v26 = vcombine.low %v2201_v60, %v2210_v32  ;;  %v13116_v32 = vld [vmem:[#allocation2 + $0x20] ss:$12 sps:$4 sm:$0xff]  }
  0xcb   : > { %2756 = vmatpush2.bf16.msra.mxu1 %v11577_v39  ;;  %v4043_v39 = vsel %vm12266_vm9, %v9871_v24, %v4042_v29 }
  0xcc   : > { %9694 = vmatmul.mubr.msk.bf16.gmra.mxu0 %vm826_vm10, %v12921_v53  ;;  %2757 = vmatprep.subr.bf16.mxu1 %v11584_v44  ;;  %v9700_v44 = vrot.slane %v3079_v19, 10  ;;  %v13167_v19 = vld [vmem:[#allocation2 + $0x38] ss:$12 sps:$4 sm:$0xff]  }
  0xcd   : > { %10863 = vmatpush3.bf16.msra.mxu0 %v11587_v37  ;;  %2862 = vmatprep.mubr.bf16.mxu0 %v15995_v2  ;;  %v13083_v37 = vld [vmem:[#allocation2 + $0x8] ss:$12 sps:$4 sm:$0xff]  }
  0xce   : > { %10864 = vmatprep.subr.bf16.mxu0 %v11589_v38  ;;  %v4023_v38 = vsel %vm12260_vm8, %v9869_v15, %v4022_v22  ;;  %4047 = vst.msk [vmem:[#allocation2 + $0x14] sm:$0xf] %vm253_vm0, %v4043_v39 }
  0xcf   : > { %2758 = vmatpush2.bf16.msra.mxu1 %v11582_v7  ;;  %4027 = vst.msk [vmem:[#allocation2 + $0x8] sm:$0xf] %vm253_vm0, %v4023_v38  ;;  %v11619_v7 = vld [vmem:[%s15990_s1 + $0x5d4] ss:$12 sps:$4 sm:$0xff]  }
  0xd0   : > { %11222 = vmatprep.subr.bf16.mxu1 %v11588_v51  ;;  %v11643_v38 = vld [vmem:[%s15990_s1 + $0x6f4] ss:$12 sps:$4 sm:$0xff]  }
  0xd1   : > { %10865 = vmatpush3.bf16.msra.mxu0 %v11590_v46  ;;  %v3089_v46 = vrot.slane %v3081_v30, 6  ;;  %v11626_v30 = vld [vmem:[%s15990_s1 + $0x738] ss:$12 sps:$4 sm:$0xff]  }
  0xd2   : > { %10866 = vmatprep.subr.bf16.mxu0 %v11591_v33  ;;  %2760 = vmatmul.mubr.bf16.vlgmr.msra.gmra.mxu1 %v9620_v55  ;;  %v11611_v33 = vld [vmem:[%s15990_s1 + $0x5e8] ss:$12 sps:$4 sm:$0xff]  }
  0xd3   : > { %11223 = vmatpush3.bf16.msra.mxu1 %v11588_v51  ;;  %2769 = vmatprep.mubr.bf16.mxu1 %v9624_v3  ;;  %v4051_v51 = vld [vmem:[%s12221_s27 + $0x104] sm:$0x7] }
  0xd4   : > { %9695 = vmatmul.mubr.msk.bf16.gmra.mxu0 %vm826_vm10, %v12960_v16  ;;  %11224 = vmatprep.subr.bf16.mxu1 %v11594_v58 }
  0xd5   : > { %10867 = vmatpush3.bf16.msra.mxu0 %v11593_v54  ;;  %2905 = vmatprep.mubr.bf16.mxu0 %v12854_v41  ;;  %v11597_v41 = vld [vmem:[%s15990_s1 + $0x648] ss:$12 sps:$4 sm:$0xff]   ;;  %v9629_v54 = vcombine.low %v2225_v13, %v2234_v9  ;;  %v4091_v9 = vld [vmem:[%s12221_s27 + $0x140] sm:$0x7]  ;;  %v4111_v13 = vld [vmem:[%s12221_s27 + $0x164] sm:$0x1] }
  0xd6   : > { %10868 = vmatprep.subr.bf16.mxu0 %v11595_v56  ;;  %v4062_v56 = vrot.slane %v4051_v51, 7  ;;  %v4122_v15 = vrot.slane %v4111_v13, 5  ;;  %v11657_v13 = vld [vmem:[%s15990_s1 + $0x6a8] ss:$12 sps:$4 sm:$0xff]  }
  0xd7   : > { %11225 = vmatpush3.bf16.msra.mxu1 %v11594_v58  ;;  %v13112_v58 = vld [vmem:[%s12221_s27 + $0xb4] sm:$0xff] }
  0xd8   : > { %11226 = vmatprep.subr.bf16.mxu1 %v11600_v61  ;;  %v4123_v24 = vsel %vm12266_vm9, %v9879_v14, %v4122_v15  ;;  %v11665_v14 = vld [vmem:[%s15990_s1 + $0x694] ss:$12 sps:$4 sm:$0xff]  }
  0xd9   : > { %10869 = vmatpush3.bf16.msra.mxu0 %v11596_v25  ;;  %4127 = vst.msk [vmem:[#allocation2 + $0x44] sm:$0xf] %vm253_vm0, %v4123_v24 }
  0xda   : > { %3660 = vmatprep.subr.bf16.mxu0 %v11599_v49  ;;  %2770 = vmatmul.mubr.bf16.gmra.mxu1 %v9623_v63 }
  0xdb   : > { %2779 = vmatprep.mubr.bf16.mxu1 %v9627_v1  ;;  %11227 = vmatpush3.bf16.msra.mxu1 %v11600_v61  ;;  %v13128_v61 = vsel %vm12241_vm7, %v9700_v44, %v3089_v46  ;;  %v11648_v44 = vld [vmem:[%s15990_s1 + $0x6dc] ss:$12 sps:$4 sm:$0xff]   ;;  %v4129_v46 = vld [vmem:[%s12221_s27 + $0x170] sm:$0x8] }
  0xdc   : > { %2906 = vmatmul.mubr.bf16.vlgmr.msra.gmra.mxu0 %v9620_v55  ;;  %11228 = vmatprep.subr.bf16.mxu1 %v11607_v6  ;;  %v9873_v55 = vrot.slane %v4049_v50, 11  ;;  %v13148_v4 = vcombine.high %v13112_v58, %v13128_v61  ;;  %v9881_v50 = vrot.slane %v4129_v46, 11 }
  0xdd   : > { %3661 = vmatpush1.bf16.msra.mxu0 %v11597_v41  ;;  %2913 = vmatprep.mubr.bf16.mxu0 %v9624_v3  ;;  %v4071_v3 = vld [vmem:[%s12221_s27 + $0x128] sm:$0x1] }
  0xde   : > { %3662 = vmatprep.subr.bf16.mxu0 %v11603_v0  ;;  %v4082_v18 = vrot.slane %v4071_v3, 5  ;;  %v4063_v49 = vsel %vm12260_vm8, %v9873_v55, %v4062_v56  ;;  %v11625_v41 = vld [vmem:[%s15990_s1 + $0x5bc] ss:$12 sps:$4 sm:$0xff]   ;;  %v4162_v55 = vrot.slane %v4151_v52, 5  ;;  %v11632_v3 = vld [vmem:[%s15990_s1 + $0x720] ss:$12 sps:$4 sm:$0xff]  }
  0xdf   : > { %v13074_v20 = vpop.f32.mrf.mxu1  ;;  %11229 = vmatpush3.bf16.msra.mxu1 %v11607_v6  ;;  %4067 = vst.msk [vmem:[#allocation2 + $0x20] sm:$0xf] %vm253_vm0, %v4063_v49  ;;  %v11614_v0 = vld [vmem:[%s15990_s1 + $0x768] ss:$12 sps:$4 sm:$0xff]   ;;  %v11631_v6 = vld [vmem:[%s15990_s1 + $0x5a4] ss:$12 sps:$4 sm:$0xff]  }
  0xe0   : > { %3741 = vmatprep.subr.bf16.mxu1 %v11616_v12  ;;  %v4083_v60 = vsel %vm12266_vm9, %v9875_v57, %v4082_v18  ;;  %v4102_v12 = vrot.slane %v4091_v9, 7  ;;  %v13227_v57 = vld [vmem:[#allocation2 + $0x50] ss:$12 sps:$4 sm:$0xff]   ;;  %v11659_v9 = vld [vmem:[%s15990_s1 + $0x6ac] ss:$12 sps:$4 sm:$0xff]  }
  0xe1   : > { %3663 = vmatpush1.bf16.msra.mxu0 %v11601_v8  ;;  %v13081_v45 = vpop.f32.mrf.mxu1  ;;  %4087 = vst.msk [vmem:[#allocation2 + $0x2c] sm:$0xf] %vm253_vm0, %v4083_v60  ;;  %v4089_v8 = vld [vmem:[%s12221_s27 + $0x134] sm:$0x8]  ;;  %v11646_v60 = vld [vmem:[%s15990_s1 + $0x6d8] ss:$12 sps:$4 sm:$0xff]  }
  0xe2   : > { %3664 = vmatprep.subr.bf16.mxu0 %v11606_v10  ;;  %2780 = vmatmul.mubr.bf16.gmra.mxu1 %v9626_v26  ;;  %v11629_v10 = vld [vmem:[%s15990_s1 + $0x5a0] ss:$12 sps:$4 sm:$0xff]   ;;  %v11668_v52 = vld [vmem:[%s15990_s1 + $0x678] ss:$12 sps:$4 sm:$0xff]  }
  0xe3   : > { %v13090_v40 = vpop.f32.mrf.mxu1  ;;  %2789 = vmatprep.mubr.bf16.mxu1 %v9630_v34 }
  0xe4   : > { %2914 = vmatmul.mubr.bf16.gmra.mxu0 %v9623_v63 }
  0xe5   : > { %3665 = vmatpush1.bf16.msra.mxu0 %v11604_v11  ;;  %2921 = vmatprep.mubr.bf16.mxu0 %v9627_v1  ;;  %v13102_v42 = vpop.f32.mrf.mxu1  ;;  %v11623_v1 = vld [vmem:[%s15990_s1 + $0x5b8] ss:$12 sps:$4 sm:$0xff]   ;;  %v9877_v11 = vrot.slane %v4089_v8, 11  ;;  %v11652_v8 = vld [vmem:[%s15990_s1 + $0x6c0] ss:$12 sps:$4 sm:$0xff]  }
  0xe6   : > { %3666 = vmatprep.subr.bf16.mxu0 %v11610_v28  ;;  %16005 = vst [vmem:[#allocation4_spill] sm:$0xff] %v13102_v42  ;;  %v11620_v28 = vld [vmem:[%s15990_s1 + $0x750] ss:$12 sps:$4 sm:$0xff]  }
  0xe7   : > { %v4103_v22 = vsel %vm12260_vm8, %v9877_v11, %v4102_v12  ;;  %v11645_v11 = vld [vmem:[%s15990_s1 + $0x638] ss:$12 sps:$4 sm:$0xff]   ;;  %v11649_v12 = vld [vmem:[%s15990_s1 + $0x6e0] ss:$12 sps:$4 sm:$0xff]  }
  0xe8   : > { %4107 = vst.msk [vmem:[#allocation2 + $0x38] sm:$0xf] %vm253_vm0, %v4103_v22  ;;  %v11651_v22 = vld [vmem:[%s15990_s1 + $0x620] ss:$12 sps:$4 sm:$0xff]  }
  0xe9   : > { %3667 = vmatpush1.bf16.msra.mxu0 %v11608_v43  ;;  %v11641_v43 = vld [vmem:[%s15990_s1 + $0x6f0] ss:$12 sps:$4 sm:$0xff]  }
  0xea   : > { %3668 = vmatprep.subr.bf16.mxu0 %v11613_v48  ;;  %v13114_v25 = vpop.f32.mrf.mxu1  ;;  %2790 = vmatmul.mubr.bf16.gmra.mxu1 %v9629_v54  ;;  %v4131_v48 = vld [vmem:[%s12221_s27 + $0x17c] sm:$0x7] }
  0xeb   : > { %11230 = vmatprep.mubr.msk.bf16.mxu1 %vm826_vm10, %v12830_v27  ;;  %v11622_v27 = vld [vmem:[%s15990_s1 + $0x754] ss:$12 sps:$4 sm:$0xff]   ;;  %v4142_v51 = vrot.slane %v4131_v48, 7  ;;  %v11660_v48 = vld [vmem:[%s15990_s1 + $0x6b0] ss:$12 sps:$4 sm:$0xff]  }
  0xec   : > { %2922 = vmatmul.mubr.bf16.gmra.mxu0 %v9626_v26  ;;  %v13130_v62 = vpop.f32.mrf.mxu1 }
  0xed   : > { %3669 = vmatpush1.bf16.msra.mxu0 %v11611_v33  ;;  %2929 = vmatprep.mubr.bf16.mxu0 %v9630_v34  ;;  %v11634_v34 = vld [vmem:[%s15990_s1 + $0x724] ss:$12 sps:$4 sm:$0xff]   ;;  %v4149_v33 = vld [vmem:[%s12221_s27 + $0x194] sm:$0xe]  ;;  %v4143_v18 = vsel %vm12260_vm8, %v9881_v50, %v4142_v51 }
  0xee   : > { %3670 = vmatprep.subr.bf16.mxu0 %v11619_v7  ;;  %v13138_v63 = vpop.f32.mrf.mxu1  ;;  %4147 = vst.msk [vmem:[#allocation2 + $0x50] sm:$0xf] %vm253_vm0, %v4143_v18 }
  0xf0   : > { %v13150_v5 = vpop.f32.mrf.mxu1 }
  0xf1   : > { %3671 = vmatpush1.bf16.msra.mxu0 %v11617_v59 }
  0xf2   : > { %3672 = vmatprep.subr.bf16.mxu0 %v11625_v41  ;;  %v13165_v17 = vpop.f32.mrf.mxu1  ;;  %11231 = vmatmul.mubr.msk.bf16.vlgmr.msra.gmra.mxu1 %vm826_vm10, %v12878_v47  ;;  %v11628_v47 = vld [vmem:[%s15990_s1 + $0x73c] ss:$12 sps:$4 sm:$0xff]   ;;  %v11654_v41 = vld [vmem:[%s15990_s1 + $0x6c4] ss:$12 sps:$4 sm:$0xff]  }
  0xf3   : > { %3742 = vmatpush1.bf16.msra.mxu1 %v11614_v0  ;;  %11234 = vmatprep.mubr.msk.bf16.mxu1 %vm826_vm10, %v12921_v53  ;;  %v11635_v53 = vld [vmem:[%s15990_s1 + $0x708] ss:$12 sps:$4 sm:$0xff]  }
  0xf4   : > { %2930 = vmatmul.mubr.bf16.gmra.mxu0 %v9629_v54  ;;  %v13180_v26 = vpop.f32.mrf.mxu1  ;;  %3743 = vmatprep.subr.bf16.mxu1 %v11622_v27  ;;  %v9883_v54 = vrot.slane %v4149_v33, 9  ;;  %v11644_v27 = vld [vmem:[%s15990_s1 + $0x6f8] ss:$12 sps:$4 sm:$0xff]  }
  0xf5   : > { %3673 = vmatpush1.bf16.msra.mxu0 %v11623_v1  ;;  %3692 = vmatprep.mubr.bf16.mxu0 %v13148_v4  ;;  %v11640_v1 = vld [vmem:[%s15990_s1 + $0x650] ss:$12 sps:$4 sm:$0xff]  }
  0xf6   : > { %3674 = vmatprep.subr.bf16.mxu0 %v11631_v6  ;;  %v13191_v29 = vpop.f32.mrf.mxu1  ;;  %v4163_v49 = vsel %vm12266_vm9, %v9883_v54, %v4162_v55 }
  0xf7   : > { %3744 = vmatpush1.bf16.msra.mxu1 %v11620_v28  ;;  %4167 = vst.msk [vmem:[#allocation2 + $0x5c] sm:$0xf] %vm253_vm0, %v4163_v49  ;;  %v3103_v28 = vld [vmem:[%s12221_s27 + $0x108] sm:$0xcc]  ;;  %v11666_v49 = vld [vmem:[%s15990_s1 + $0x698] ss:$12 sps:$4 sm:$0xff]  }
  0xf8   : > { %v13205_v39 = vpop.f32.mrf.mxu1  ;;  %3745 = vmatprep.subr.bf16.mxu1 %v11628_v47  ;;  %v9702_v54 = vrot.slane %v3103_v28, 10  ;;  %v13369_v28 = vcombine.low %v13112_v58, %v13128_v61  ;;  %v11689_v58 = vld [vmem:[%s15990_s1 + $0x758] ss:$12 sps:$4 sm:$0xff]  }
  0xf9   : > { %3675 = vmatpush1.bf16.msra.mxu0 %v11629_v10  ;;  %16006 = vst [vmem:[#allocation5_spill] sm:$0xff] %v13205_v39  ;;  %v3151_v61 = vld [vmem:[%s12221_s27 + $0x180] sm:$0xcc] }
  0xfa   : > { %3676 = vmatprep.subr.bf16.mxu0 %v11637_v23  ;;  %v13216_v7 = vpop.f32.mrf.mxu1  ;;  %11235 = vmatmul.mubr.msk.bf16.gmra.mxu1 %vm826_vm10, %v12960_v16  ;;  %v11638_v16 = vld [vmem:[%s15990_s1 + $0x710] ss:$12 sps:$4 sm:$0xff]   ;;  %v11655_v23 = vld [vmem:[%s15990_s1 + $0x6c8] ss:$12 sps:$4 sm:$0xff]  }
  0xfb   : > { %3746 = vmatpush1.bf16.msra.mxu1 %v11626_v30  ;;  %3765 = vmatprep.mubr.bf16.mxu1 %v15995_v2 }
  0xfc   : > { %v13221_v56 = vpop.f32.mrf.mxu1  ;;  %3747 = vmatprep.subr.bf16.mxu1 %v11634_v34 }
  0xfd   : > { %3677 = vmatpush2.bf16.msra.mxu0 %v11635_v53  ;;  %v11663_v53 = vld [vmem:[%s15990_s1 + $0x690] ss:$12 sps:$4 sm:$0xff]  }
  0xfe   : > { %3678 = vmatprep.subr.bf16.mxu0 %v11643_v38  ;;  %v13237_v59 = vpop.f32.mrf.mxu1  ;;  %v11670_v38 = vld [vmem:[%s15990_s1 + $0x67c] ss:$12 sps:$4 sm:$0xff]  }
  0xff   : > { %3748 = vmatpush1.bf16.msra.mxu1 %v11632_v3  ;;  %v11676_v3 = vld [vmem:[%s15990_s1 + $0x664] ss:$12 sps:$4 sm:$0xff]  }
 0x100   : > { %v13246_v0 = vpop.f32.mrf.mxu1  ;;  %10902 = vmatprep.subr.bf16.mxu1 %v11638_v16  ;;  %v3099_v16 = vld [vmem:[%s12221_s27 + $0xf0] sm:$0xff] }
 0x101   : > { %3679 = vmatpush2.bf16.msra.mxu0 %v11641_v43  ;;  %16007 = vst [vmem:[#allocation6_spill] sm:$0xff] %v13246_v0  ;;  %v3105_v43 = vld [vmem:[%s12221_s27 + $0x114] sm:$0x33] }
 0x102   : > { %3680 = vmatprep.subr.bf16.mxu0 %v11648_v44  ;;  %v13254_v6 = vpop.f32.mrf.mxu1  ;;  %9860 = vmatmul.mubr.msk.bf16.vlgmr.msra.gmra.mxu1 %vm826_vm10, %v13083_v37 }
 0x103   : > { %10903 = vmatpush3.bf16.msra.mxu1 %v11640_v1  ;;  %3775 = vmatprep.mubr.bf16.mxu1 %v15995_v2 }
 0x104   : > { %v13264_v10 = vpop.f32.mrf.mxu1  ;;  %10904 = vmatprep.subr.bf16.mxu1 %v11644_v27  ;;  %v11674_v27 = vld [vmem:[%s15990_s1 + $0x660] ss:$12 sps:$4 sm:$0xff]  }
 0x105   : > { %3681 = vmatpush2.bf16.msra.mxu0 %v11646_v60 }
 0x106   : > { %3682 = vmatprep.subr.bf16.mxu0 %v11654_v41  ;;  %v13273_v35 = vpop.f32.mrf.mxu1 }
 0x107   : > { %10905 = vmatpush3.bf16.msra.mxu1 %v11645_v11 }
 0x108   : > { %v13281_v15 = vpop.f32.mrf.mxu1  ;;  %10906 = vmatprep.subr.bf16.mxu1 %v11649_v12  ;;  %v11682_v12 = vld [vmem:[%s15990_s1 + $0x770] ss:$12 sps:$4 sm:$0xff]  }
 0x109   : > { %3683 = vmatpush2.bf16.msra.mxu0 %v11652_v8 }
 0x10a   : > { %3684 = vmatprep.subr.bf16.mxu0 %v11659_v9  ;;  %v13290_v47 = vpop.f32.mrf.mxu1  ;;  %9861 = vmatmul.mubr.msk.bf16.gmra.mxu1 %vm826_vm10, %v13116_v32  ;;  %v3127_v9 = vld [vmem:[%s12221_s27 + $0x144] sm:$0xcc] }
 0x10b   : > { %10907 = vmatpush3.bf16.msra.mxu1 %v11651_v22  ;;  %3785 = vmatprep.mubr.bf16.mxu1 %v15995_v2 }
 0x10c   : > { %v873_v24 = vpop.f32.mrf.mxu0  ;;  %v13304_v44 = vpop.f32.mrf.mxu1  ;;  %10908 = vmatprep.subr.bf16.mxu1 %v11655_v23  ;;  %v11671_v23 = vld [vmem:[%s15990_s1 + $0x680] ss:$12 sps:$4 sm:$0xff]  }
 0x10d   : > { %v13293_v30 = vadd.f32 %v13074_v20, %v873_v24  ;;  %3685 = vmatpush2.bf16.msra.mxu0 %v11657_v13  ;;  %v11656_v20 = vld [vmem:[%s15990_s1 + $0x608] ss:$12 sps:$4 sm:$0xff]  }
 0x10e   : > { %v875_v34 = vpop.f32.mrf.mxu0  ;;  %3686 = vmatprep.subr.bf16.mxu0 %v11665_v14  ;;  %v13316_v50 = vpop.f32.mrf.mxu1  ;;  %v11667_v14 = vld [vmem:[%s15990_s1 + $0x5d8] ss:$12 sps:$4 sm:$0xff]  }
 0x10f   : > { %v13311_v46 = vadd.f32 %v13081_v45, %v875_v34  ;;  %v3113_v45 = vrot.slane %v3105_v43, 6  ;;  %10909 = vmatpush3.bf16.msra.mxu1 %v11656_v20 }
 0x110   : > { %v877_v33 = vpop.f32.mrf.mxu0  ;;  %v13329_v18 = vpop.f32.mrf.mxu1  ;;  %10910 = vmatprep.subr.bf16.mxu1 %v11660_v48 }
 0x111   : > { %v13319_v51 = vadd.f32 %v13090_v40, %v877_v33  ;;  %3687 = vmatpush2.bf16.msra.mxu0 %v11663_v53  ;;  %v11662_v40 = vld [vmem:[%s15990_s1 + $0x5f0] ss:$12 sps:$4 sm:$0xff]   ;;  %v3114_v8 = vsel %vm12241_vm7, %v9702_v54, %v3113_v45  ;;  %v11677_v33 = vld [vmem:[%s15990_s1 + $0x668] ss:$12 sps:$4 sm:$0xff]  }
 0x112   : > { %v13324_v55 = vpop.f32.mrf.mxu0  ;;  %3688 = vmatprep.subr.bf16.mxu0 %v11670_v38  ;;  %v13338_v41 = vpop.f32.mrf.mxu1  ;;  %9862 = vmatmul.mubr.msk.bf16.gmra.mxu1 %vm826_vm10, %v13167_v19  ;;  %v13376_v38 = vcombine.high %v3099_v16, %v3114_v8  ;;  %v3153_v54 = vld [vmem:[%s12221_s27 + $0x18c] sm:$0x33] }
 0x113   : > { %16008 = vst [vmem:[#allocation7_spill] sm:$0xff] %v13324_v55  ;;  %10911 = vmatpush3.bf16.msra.mxu1 %v11662_v40  ;;  %3795 = vmatprep.mubr.bf16.mxu1 %v15995_v2  ;;  %v13401_v40 = vld [vmem:[%s12221_s27 + $0x12c] sm:$0xff] }
 0x114   : > { %v883_v60 = vpop.f32.mrf.mxu0  ;;  %v13355_v13 = vpop.f32.mrf.mxu1  ;;  %10912 = vmatprep.subr.bf16.mxu1 %v11666_v49  ;;  %v5026_v2 = vld [vmem:[%s12221_s27 + $0xec] sm:$0xf] }
 0x115   : > { %v13341_v1 = vadd.f32 %v13114_v25, %v883_v60  ;;  %3689 = vmatpush2.bf16.msra.mxu0 %v11668_v52  ;;  %v3129_v25 = vld [vmem:[%s12221_s27 + $0x150] sm:$0x33] }
 0x116   : > { %v885_v11 = vpop.f32.mrf.mxu0  ;;  %3690 = vmatprep.subr.bf16.mxu0 %v11676_v3  ;;  %v13371_v53 = vpop.f32.mrf.mxu1  ;;  %v3137_v43 = vrot.slane %v3129_v25, 6  ;;  %v3161_v25 = vrot.slane %v3153_v54, 6 }
 0x117   : > { %v13362_v22 = vadd.f32 %v13130_v62, %v885_v11  ;;  %v9704_v62 = vrot.slane %v3127_v9, 10  ;;  %10913 = vmatpush3.bf16.msra.mxu1 %v11667_v14  ;;  %v11678_v9 = vld [vmem:[%s15990_s1 + $0x5a8] ss:$12 sps:$4 sm:$0xff]   ;;  %v11681_v14 = vld [vmem:[%s15990_s1 + $0x82c] ss:$12 sps:$4 sm:$0xff]  }
 0x118   : > { %v887_v24 = vpop.f32.mrf.mxu0  ;;  %v13384_v48 = vpop.f32.mrf.mxu1  ;;  %10914 = vmatprep.subr.bf16.mxu1 %v11671_v23 }
 0x119   : > { %v13374_v34 = vadd.f32 %v13138_v63, %v887_v24  ;;  %3691 = vmatpush2.bf16.msra.mxu0 %v11674_v27  ;;  %v11673_v63 = vld [vmem:[%s15990_s1 + $0x5c0] ss:$12 sps:$4 sm:$0xff]   ;;  %v13405_v49 = vsel %vm12241_vm7, %v9704_v62, %v3137_v43  ;;  %v13424_v24 = vcombine.low %v3099_v16, %v3114_v8 }
 0x11a   : > { %v13378_v20 = vpop.f32.mrf.mxu0  ;;  %11238 = vmatprep.subr.bf16.mxu0 %v11682_v12  ;;  %v13394_v45 = vpop.f32.mrf.mxu1  ;;  %9863 = vmatmul.mubr.msk.bf16.gmra.mxu1 %vm826_vm10, %v13227_v57  ;;  %v11696_v27 = vld [vmem:[%s15990_s1 + $0x740] ss:$12 sps:$4 sm:$0xff]   ;;  %v13436_v43 = vcombine.high %v13401_v40, %v13405_v49 }
 0x11b   : > { %10915 = vmatpush3.bf16.msra.mxu1 %v11673_v63  ;;  %3838 = vmatprep.mubr.bf16.mxu1 %v13148_v4  ;;  %v11679_v4 = vld [vmem:[%s15990_s1 + $0x828] ss:$12 sps:$4 sm:$0xff]  }
 0x11c   : > { %3693 = vmatmul.mubr.bf16.vlgmr.msra.gmra.mxu0 %v13369_v28  ;;  %v893_v52 = vpop.f32.mrf.mxu0  ;;  %10916 = vmatprep.subr.bf16.mxu1 %v11677_v33  ;;  %v11685_v16 = vld [vmem:[%s15990_s1 + $0x814] ss:$12 sps:$4 sm:$0xff]   ;;  %v5006_v63 = vld [vmem:[%s12221_s27 + $0xc8] sm:$0xc] }
 0x11d   : > { %v13397_v3 = vadd.f32 %v13165_v17, %v893_v52  ;;  %11239 = vmatpush3.bf16.msra.mxu0 %v11682_v12  ;;  %3702 = vmatprep.mubr.bf16.mxu0 %v13376_v38  ;;  %v13412_v17 = vpop.f32.mrf.mxu1  ;;  %v9706_v12 = vrot.slane %v3151_v61, 10  ;;  %v11703_v61 = vld [vmem:[%s15990_s1 + $0x728] ss:$12 sps:$4 sm:$0xff]   ;;  %v10782_v52 = vadd.f32 %v13304_v44, %v13290_v47  ;;  %v10776_v44 = vadd.f32 %v13264_v10, %v13254_v6 }
 0x11e   : > { %v895_v60 = vpop.f32.mrf.mxu0  ;;  %11240 = vmatprep.subr.bf16.mxu0 %v11689_v58  ;;  %v5008_v33 = vld [vmem:[%s12221_s27 + $0xd4] sm:$0x3]  ;;  %v13466_v47 = vld [vmem:[%s12221_s27 + $0x168] sm:$0xff] }
 0x11f   : > { %v13419_v11 = vadd.f32 %v13180_v26, %v895_v60  ;;  %v13426_v62 = vpop.f32.mrf.mxu1  ;;  %10917 = vmatpush3.bf16.msra.mxu1 %v11678_v9  ;;  %v10045_v60 = vrot.slane %v5006_v63, 10  ;;  %v13458_v9 = vsel %vm12241_vm7, %v9706_v12, %v3161_v25 }
 0x120   : > { %v897_v23 = vpop.f32.mrf.mxu0  ;;  %4657 = vmatprep.subr.bf16.mxu1 %v11681_v14 }
 0x121   : > { %v13432_v26 = vadd.f32 %v13191_v29, %v897_v23  ;;  %11241 = vmatpush3.bf16.msra.mxu0 %v11689_v58  ;;  %v13446_v29 = vpop.f32.mrf.mxu1  ;;  %v13448_v58 = vld [vmem:[#allocation2 + $0x8] ss:$12 sps:$4 sm:$0xff]   ;;  %v5019_v23 = vrot.slane %v5008_v33, 6 }
 0x122   : > { %v13441_v8 = vpop.f32.mrf.mxu0  ;;  %11242 = vmatprep.subr.bf16.mxu0 %v11696_v27  ;;  %5028 = vst.msk [vmem:[#allocation2 + $0x14] sm:$0xf] %vm253_vm0, %v5026_v2  ;;  %3839 = vmatmul.mubr.bf16.vlgmr.msra.gmra.mxu1 %v13369_v28  ;;  %v11683_v2 = vld [vmem:[%s15990_s1 + $0x810] ss:$12 sps:$4 sm:$0xff]  }
 0x123   : > { %16009 = vst [vmem:[#allocation8_spill] sm:$0xff] %v13441_v8  ;;  %v11200_v42 = vpop.f32.mrf.mxu1  ;;  %v5020_v12 = vsel %vm12241_vm7, %v10045_v60, %v5019_v23  ;;  %4658 = vmatpush1.bf16.msra.mxu1 %v11679_v4  ;;  %3846 = vmatprep.mubr.bf16.mxu1 %v13376_v38  ;;  %v11688_v28 = vld [vmem:[%s15990_s1 + $0x7fc] ss:$12 sps:$4 sm:$0xff]   ;;  %v5032_v60 = vld [vmem:[%s12221_s27 + $0x110] sm:$0x3] }
 0x124   : > { %3703 = vmatmul.mubr.bf16.gmra.mxu0 %v13424_v24  ;;  %v903_v54 = vpop.f32.mrf.mxu0  ;;  %v1093_v14 = vadd.f32 %v11200_v42, %v10782_v52  ;;  %5024 = vst.msk [vmem:[#allocation2 + $0x8] sm:$0xf] %vm253_vm0, %v5020_v12  ;;  %v10785_v42 = vadd.f32 %v13329_v18, %v13316_v50  ;;  %4659 = vmatprep.subr.bf16.mxu1 %v11685_v16  ;;  %v13520_v52 = vld [vmem:[#allocation2 + $0x20] ss:$12 sps:$4 sm:$0xff]   ;;  %v4030_v12 = vld [vmem:[%s12221_s27 + $0xe4] sm:$0x11] }
 0x125   : > { %v13461_v55 = vadd.f32 %v13216_v7, %v903_v54  ;;  %3712 = vmatprep.mubr.bf16.mxu0 %v13436_v43  ;;  %11243 = vmatpush3.bf16.msra.mxu0 %v11696_v27  ;;  %v11709_v7 = vld [vmem:[%s15990_s1 + $0x94c] ss:$12 sps:$4 sm:$0xff]   ;;  %v1084_v27 = vpop.f32.mrf.mxu1  ;;  %v13499_v50 = vcombine.high %v13466_v47, %v13458_v9  ;;  %v10779_v18 = vadd.f32 %v13281_v15, %v13273_v35  ;;  %v5030_v54 = vld [vmem:[%s12221_s27 + $0x104] sm:$0xc] }
 0x126   : > { %v905_v63 = vpop.f32.mrf.mxu0  ;;  %11244 = vmatprep.subr.bf16.mxu0 %v11703_v61  ;;  %1123 = vst.msk [vmem:[#allocation3 + $0x40] sm:$0xff] %vm826_vm10, %v1093_v14  ;;  %v1085_v10 = vadd.f32 %v10776_v44, %v1084_v27  ;;  %v10794_v35 = vadd.f32 %v13412_v17, %v13394_v45  ;;  %v13513_v15 = vld [vmem:[%s12221_s27 + $0xb4] sm:$0x88]  ;;  %v10047_v45 = vrot.slane %v5030_v54, 10  ;;  %v5043_v17 = vrot.slane %v5032_v60, 6 }
 0x127   : > { %v13480_v6 = vadd.f32 %v13221_v56, %v905_v63  ;;  %v13492_v56 = vcombine.low %v13401_v40, %v13405_v49  ;;  %v11201_v38 = vpop.f32.mrf.mxu1  ;;  %v11686_v40 = vld [vmem:[%s15990_s1 + $0x7f8] ss:$12 sps:$4 sm:$0xff]   ;;  %4660 = vmatpush1.bf16.msra.mxu1 %v11683_v2  ;;  %v5050_v44 = vld [vmem:[%s12221_s27 + $0x128] sm:$0xf]  ;;  %v10788_v14 = vadd.f32 %v13355_v13, %v13338_v41  ;;  %v11690_v2 = vld [vmem:[%s15990_s1 + $0x7e0] ss:$12 sps:$4 sm:$0xff]   ;;  %v10797_v13 = vadd.f32 %v13446_v29, %v13426_v62 }
 0x128   : > { %v907_v25 = vpop.f32.mrf.mxu0  ;;  %1117 = vst.msk [vmem:[#allocation3 + $0x10] sm:$0xff] %vm826_vm10, %v1085_v10  ;;  %v1096_v16 = vadd.f32 %v11201_v38, %v10785_v42  ;;  %v11692_v49 = vld [vmem:[%s15990_s1 + $0x7e4] ss:$12 sps:$4 sm:$0xff]   ;;  %4661 = vmatprep.subr.bf16.mxu1 %v11688_v28  ;;  %v4028_v63 = vld [vmem:[%s12221_s27 + $0xd8] sm:$0xee]  ;;  %v5044_v41 = vsel %vm12241_vm7, %v10047_v45, %v5043_v17  ;;  %v13547_v10 = vcombine.low %v13466_v47, %v13458_v9  ;;  %v4038_v38 = vrot.slane %v4030_v12, 5 }
 0x129   : > { %v13495_v4 = vadd.f32 %v13237_v59, %v907_v25  ;;  %11245 = vmatpush3.bf16.msra.mxu0 %v11703_v61  ;;  %v1087_v59 = vpop.f32.mrf.mxu1  ;;  %v13516_v61 = vld [vmem:[%s12221_s27 + $0xc0] sm:$0x77]  ;;  %5052 = vst.msk [vmem:[#allocation2 + $0x2c] sm:$0xf] %vm253_vm0, %v5050_v44  ;;  %v11695_v42 = vld [vmem:[%s15990_s1 + $0x7cc] ss:$12 sps:$4 sm:$0xff]   ;;  %v10791_v29 = vadd.f32 %v13384_v48, %v13371_v53 }
 0x12a   : > { %4738 = vmatprep.subr.bf16.mxu0 %v11709_v7  ;;  %1126 = vst.msk [vmem:[#allocation3 + $0x58] sm:$0xff] %vm826_vm10, %v1096_v16  ;;  %v1088_v33 = vadd.f32 %v10779_v18, %v1087_v59  ;;  %3847 = vmatmul.mubr.bf16.gmra.mxu1 %v13424_v24  ;;  %v4018_v28 = vrot.slane %v13516_v61, 7  ;;  %v9870_v25 = vrot.slane %v4028_v63, 9  ;;  %v11693_v47 = vld [vmem:[%s15990_s1 + $0x7c8] ss:$12 sps:$4 sm:$0xff]  }
 0x12b   : > { %v11204_v23 = vpop.f32.mrf.mxu1  ;;  %4662 = vmatpush1.bf16.msra.mxu1 %v11686_v40  ;;  %3854 = vmatprep.mubr.bf16.mxu1 %v13436_v43  ;;  %5048 = vst.msk [vmem:[#allocation2 + $0x20] sm:$0xf] %vm253_vm0, %v5044_v41  ;;  %v9868_v43 = vrot.slane %v13513_v15, 11  ;;  %v11699_v53 = vld [vmem:[%s15990_s1 + $0x7b4] ss:$12 sps:$4 sm:$0xff]   ;;  %v5025_v61 = vld [vmem:[%s12221_s27 + $0xe4] sm:$0xff] }
 0x12c   : > { %3713 = vmatmul.mubr.bf16.gmra.mxu0 %v13492_v56  ;;  %1120 = vst.msk [vmem:[#allocation3 + $0x28] sm:$0xff] %vm826_vm10, %v1088_v33  ;;  %v1109_v7 = vadd.f32 %v11204_v23, %v10794_v35  ;;  %4663 = vmatprep.subr.bf16.mxu1 %v11692_v49  ;;  %v5005_v48 = vld [vmem:[%s12221_s27 + $0xc0] sm:$0xcc]  ;;  %v5007_v40 = vld [vmem:[%s12221_s27 + $0xcc] sm:$0x33]  ;;  %5027 = vst [vmem:[#allocation2 + $0xc] sm:$0xff] %v5025_v61 }
 0x12d   : > { %3722 = vmatprep.mubr.bf16.mxu0 %v13499_v50  ;;  %v1100_v27 = vpop.f32.mrf.mxu1  ;;  %v11697_v49 = vld [vmem:[%s15990_s1 + $0x7b0] ss:$12 sps:$4 sm:$0xff]   ;;  %v10044_v35 = vrot.slane %v5005_v48, 10  ;;  %v5015_v15 = vrot.slane %v5007_v40, 6  ;;  %v5049_v33 = vld [vmem:[%s12221_s27 + $0x120] sm:$0xff]  ;;  %v13591_v63 = vsel %vm12260_vm8, %v9868_v43, %v4018_v28 }
 0x12e   : > { %1135 = vst.msk [vmem:[#allocation3 + $0xa0] sm:$0xff] %vm826_vm10, %v1109_v7  ;;  %v1101_v24 = vadd.f32 %v10788_v14, %v1100_v27  ;;  %v11702_v54 = vld [vmem:[%s15990_s1 + $0x79c] ss:$12 sps:$4 sm:$0xff]   ;;  %v13579_v60 = vld [vmem:[#allocation2 + $0x38] ss:$12 sps:$4 sm:$0xff]   ;;  %5051 = vst [vmem:[#allocation2 + $0x24] sm:$0xff] %v5049_v33 }
 0x12f   : > { %v11205_v62 = vpop.f32.mrf.mxu1  ;;  %4664 = vmatpush1.bf16.msra.mxu1 %v11690_v2  ;;  %v5054_v23 = vld [vmem:[%s12221_s27 + $0x140] sm:$0xc]  ;;  %v5016_v45 = vsel %vm12241_vm7, %v10044_v35, %v5015_v15  ;;  %v5056_v17 = vld [vmem:[%s12221_s27 + $0x14c] sm:$0x3]  ;;  %v5074_v14 = vld [vmem:[%s12221_s27 + $0x164] sm:$0xf] }
 0x130   : > { %1129 = vst.msk [vmem:[#allocation3 + $0x70] sm:$0xff] %vm826_vm10, %v1101_v24  ;;  %v1112_v18 = vadd.f32 %v11205_v62, %v10797_v13  ;;  %4665 = vmatprep.subr.bf16.mxu1 %v11695_v42  ;;  %v10049_v44 = vrot.slane %v5054_v23, 10  ;;  %5023 = vst [vmem:[#allocation2] sm:$0xff] %v5016_v45  ;;  %v5067_v7 = vrot.slane %v5056_v17, 6  ;;  %v11700_v12 = vld [vmem:[%s15990_s1 + $0x798] ss:$12 sps:$4 sm:$0xff]  }
 0x131   : > { %v1103_v9 = vpop.f32.mrf.mxu1  ;;  %5076 = vst.msk [vmem:[#allocation2 + $0x44] sm:$0xf] %vm253_vm0, %v5074_v14  ;;  %v11707_v27 = vld [vmem:[%s15990_s1 + $0x948] ss:$12 sps:$4 sm:$0xff]   ;;  %v11706_v24 = vld [vmem:[%s15990_s1 + $0x784] ss:$12 sps:$4 sm:$0xff]  }
 0x132   : > { %1138 = vst.msk [vmem:[#allocation3 + $0xb8] sm:$0xff] %vm826_vm10, %v1112_v18  ;;  %v1104_v16 = vadd.f32 %v10791_v29, %v1103_v9  ;;  %3855 = vmatmul.mubr.bf16.gmra.mxu1 %v13492_v56  ;;  %v13595_v56 = vsel %vm12266_vm9, %v9870_v25, %v4038_v38  ;;  %v11715_v2 = vld [vmem:[%s15990_s1 + $0x934] ss:$12 sps:$4 sm:$0xff]   ;;  %v5068_v41 = vsel %vm12241_vm7, %v10049_v44, %v5067_v7  ;;  %v11713_v43 = vld [vmem:[%s15990_s1 + $0x930] ss:$12 sps:$4 sm:$0xff]   ;;  %v16011_v14 = vmov 0  }
 0x133   : > { %v13565_v59 = vpop.f32.mrf.mxu1  ;;  %4666 = vmatpush1.bf16.msra.mxu1 %v11693_v47  ;;  %3862 = vmatprep.mubr.bf16.mxu1 %v13499_v50  ;;  %v13618_v42 = vcombine.high %v13591_v63, %v13595_v56  ;;  %5072 = vst.msk [vmem:[#allocation2 + $0x38] sm:$0xf] %vm253_vm0, %v5068_v41  ;;  %v11704_v62 = vld [vmem:[%s15990_s1 + $0x780] ss:$12 sps:$4 sm:$0xff]   ;;  %v11727_v61 = vld [vmem:[%s15990_s1 + $0x904] ss:$12 sps:$4 sm:$0xff]  }
 0x134   : > { %3723 = vmatmul.mubr.bf16.gmra.mxu0 %v13547_v10  ;;  %1132 = vst.msk [vmem:[#allocation3 + $0x88] sm:$0xff] %vm826_vm10, %v1104_v16  ;;  %4667 = vmatprep.subr.bf16.mxu1 %v11699_v53  ;;  %v5029_v29 = vld [vmem:[%s12221_s27 + $0xfc] sm:$0xcc]  ;;  %v5031_v25 = vld [vmem:[%s12221_s27 + $0x108] sm:$0x33] }
 0x135   : > { %11246 = vmatprep.mubr.msk.bf16.mxu0 %vm826_vm10, %v13083_v37  ;;  %v13582_v37 = vpop.f32.mrf.mxu1  ;;  %v11712_v38 = vld [vmem:[%s15990_s1 + $0x8ec] ss:$12 sps:$4 sm:$0xff]   ;;  %v10046_v18 = vrot.slane %v5029_v29, 10  ;;  %v5039_v9 = vrot.slane %v5031_v25, 6  ;;  %v5078_v16 = vld [vmem:[%s12221_s27 + $0x17c] sm:$0xc] }
 0x136   : > { %v5080_v53 = vld [vmem:[%s12221_s27 + $0x188] sm:$0x3]  ;;  %v10051_v40 = vrot.slane %v5078_v16, 10  ;;  %v5098_v35 = vld [vmem:[%s12221_s27 + $0x1a0] sm:$0xf] }
 0x137   : > { %v13598_v50 = vpop.f32.mrf.mxu1  ;;  %4668 = vmatpush1.bf16.msra.mxu1 %v11697_v49  ;;  %v5040_v48 = vsel %vm12241_vm7, %v10046_v18, %v5039_v9  ;;  %v5091_v49 = vrot.slane %v5080_v53, 6  ;;  %v11710_v23 = vld [vmem:[%s15990_s1 + $0x8e8] ss:$12 sps:$4 sm:$0xff]   ;;  %v11725_v17 = vld [vmem:[%s15990_s1 + $0x900] ss:$12 sps:$4 sm:$0xff]   ;;  %v13704_v18 = vpop.f32.mrf.mxu0 }
 0x138   : > { %4669 = vmatprep.subr.bf16.mxu1 %v11702_v54  ;;  %5047 = vst [vmem:[#allocation2 + $0x18] sm:$0xff] %v5040_v48  ;;  %v11718_v45 = vld [vmem:[%s15990_s1 + $0x8d4] ss:$12 sps:$4 sm:$0xff]   ;;  %v11731_v7 = vld [vmem:[%s15990_s1 + $0x8f0] ss:$12 sps:$4 sm:$0xff]   ;;  %16012 = vst [vmem:[#allocation10_spill] sm:$0xff] %v13704_v18 }
 0x139   : > { %v13611_v13 = vpop.f32.mrf.mxu1  ;;  %v5092_v33 = vsel %vm12241_vm7, %v10051_v40, %v5091_v49  ;;  %v11722_v25 = vld [vmem:[%s15990_s1 + $0x8b8] ss:$12 sps:$4 sm:$0xff]  }
 0x13a   : > { %16010 = vst [vmem:[#allocation9_spill] sm:$0xff] %v13611_v13  ;;  %3863 = vmatmul.mubr.bf16.gmra.mxu1 %v13547_v10  ;;  %v11719_v10 = vld [vmem:[%s15990_s1 + $0x918] ss:$12 sps:$4 sm:$0xff]   ;;  %v5943_v13 = vld [vmem:[%s12221_s27 + $0x188] sm:$0xc] }
 0x13b   : > { %v13626_v28 = vpop.f32.mrf.mxu1  ;;  %4670 = vmatpush1.bf16.msra.mxu1 %v11700_v12  ;;  %4689 = vmatprep.mubr.bf16.mxu1 %v13618_v42  ;;  %v5053_v12 = vld [vmem:[%s12221_s27 + $0x138] sm:$0xcc]  ;;  %v11730_v53 = vld [vmem:[%s15990_s1 + $0x8a4] ss:$12 sps:$4 sm:$0xff]  }
 0x13c   : > { %11247 = vmatmul.mubr.msk.bf16.vlgmr.msra.gmra.mxu0 %vm826_vm10, %v13116_v32  ;;  %v11721_v32 = vld [vmem:[%s15990_s1 + $0x91c] ss:$12 sps:$4 sm:$0xff]   ;;  %4671 = vmatprep.subr.bf16.mxu1 %v11706_v24  ;;  %v11737_v9 = vld [vmem:[%s15990_s1 + $0x8d8] ss:$12 sps:$4 sm:$0xff]  }
 0x13d   : > { %4739 = vmatpush1.bf16.msra.mxu0 %v11707_v27  ;;  %11250 = vmatprep.mubr.msk.bf16.mxu0 %vm826_vm10, %v13167_v19  ;;  %v13642_v47 = vpop.f32.mrf.mxu1  ;;  %v13645_v19 = vld [vmem:[#allocation2 + $0x50] ss:$12 sps:$4 sm:$0xff]   ;;  %v5055_v27 = vld [vmem:[%s12221_s27 + $0x144] sm:$0x33]  ;;  %v5077_v48 = vld [vmem:[%s12221_s27 + $0x174] sm:$0xcc] }
 0x13e   : > { %4740 = vmatprep.subr.bf16.mxu0 %v11715_v2  ;;  %5100 = vst.msk [vmem:[#allocation2 + $0x5c] sm:$0xf] %vm253_vm0, %v5098_v35  ;;  %5096 = vst.msk [vmem:[#allocation2 + $0x50] sm:$0xf] %vm253_vm0, %v5092_v33  ;;  %v10048_v2 = vrot.slane %v5053_v12, 10  ;;  %v5063_v41 = vrot.slane %v5055_v27, 6 }
 0x13f   : > { %v13652_v15 = vpop.f32.mrf.mxu1  ;;  %4672 = vmatpush1.bf16.msra.mxu1 %v11704_v62  ;;  %v5073_v24 = vld [vmem:[%s12221_s27 + $0x15c] sm:$0xff]  ;;  %v10050_v35 = vrot.slane %v5077_v48, 10 }
 0x140   : > { %4673 = vmatprep.subr.bf16.mxu1 %v11712_v38  ;;  %5075 = vst [vmem:[#allocation2 + $0x3c] sm:$0xff] %v5073_v24  ;;  %v11724_v62 = vld [vmem:[%s15990_s1 + $0x8bc] ss:$12 sps:$4 sm:$0xff]   ;;  %v5079_v40 = vld [vmem:[%s12221_s27 + $0x180] sm:$0x33] }
 0x141   : > { %4741 = vmatpush1.bf16.msra.mxu0 %v11713_v43  ;;  %v13663_v54 = vpop.f32.mrf.mxu1  ;;  %v11716_v43 = vld [vmem:[%s15990_s1 + $0x8d0] ss:$12 sps:$4 sm:$0xff]   ;;  %v11736_v24 = vld [vmem:[%s15990_s1 + $0x88c] ss:$12 sps:$4 sm:$0xff]  }
 0x142   : > { %4742 = vmatprep.subr.bf16.mxu0 %v11721_v32  ;;  %v5064_v32 = vsel %vm12241_vm7, %v10048_v2, %v5063_v41  ;;  %v11733_v38 = vld [vmem:[%s15990_s1 + $0x830] ss:$12 sps:$4 sm:$0xff]  }
 0x143   : > { %v13677_v44 = vpop.f32.mrf.mxu1  ;;  %4674 = vmatpush2.bf16.msra.mxu1 %v11710_v23  ;;  %5071 = vst [vmem:[#allocation2 + $0x30] sm:$0xff] %v5064_v32  ;;  %v11738_v23 = vld [vmem:[%s15990_s1 + $0x818] ss:$12 sps:$4 sm:$0xff]  }
 0x144   : > { %11251 = vmatmul.mubr.msk.bf16.gmra.mxu0 %vm826_vm10, %v13227_v57  ;;  %4675 = vmatprep.subr.bf16.mxu1 %v11718_v45 }
 0x145   : > { %4743 = vmatpush1.bf16.msra.mxu0 %v11719_v10  ;;  %4762 = vmatprep.mubr.bf16.mxu0 %v16011_v14  ;;  %v13686_v57 = vpop.f32.mrf.mxu1  ;;  %v5087_v10 = vrot.slane %v5079_v40, 6  ;;  %v11741_v40 = vld [vmem:[%s15990_s1 + $0x874] ss:$12 sps:$4 sm:$0xff]  }
 0x146   : > { %4744 = vmatprep.subr.bf16.mxu0 %v11727_v61  ;;  %v5097_v61 = vld [vmem:[%s12221_s27 + $0x198] sm:$0xff] }
 0x147   : > { %v13696_v29 = vpop.f32.mrf.mxu1  ;;  %4676 = vmatpush2.bf16.msra.mxu1 %v11716_v43  ;;  %5099 = vst [vmem:[#allocation2 + $0x54] sm:$0xff] %v5097_v61  ;;  %v5088_v12 = vsel %vm12241_vm7, %v10050_v35, %v5087_v10  ;;  %v4068_v10 = vld [vmem:[%s12221_s27 + $0x114] sm:$0xee] }
 0x148   : > { %4677 = vmatprep.subr.bf16.mxu1 %v11724_v62  ;;  %5095 = vst [vmem:[#allocation2 + $0x48] sm:$0xff] %v5088_v12 }
 0x149   : > { %4745 = vmatpush1.bf16.msra.mxu0 %v11725_v17  ;;  %v13709_v16 = vpop.f32.mrf.mxu1 }
 0x14a   : > { %10950 = vmatprep.subr.bf16.mxu0 %v11731_v7  ;;  %v11742_v7 = vld [vmem:[%s15990_s1 + $0x8c0] ss:$12 sps:$4 sm:$0xff]  }
 0x14b   : > { %v13724_v45 = vpop.f32.mrf.mxu1  ;;  %4678 = vmatpush2.bf16.msra.mxu1 %v11722_v25 }
 0x14c   : > { %10036 = vmatmul.mubr.msk.bf16.vlgmr.msra.gmra.mxu0 %vm826_vm10, %v13448_v58  ;;  %v1828_v49 = vpop.f32.mrf.mxu0  ;;  %4679 = vmatprep.subr.bf16.mxu1 %v11730_v53  ;;  %v4050_v53 = vld [vmem:[%s12221_s27 + $0xfc] sm:$0x77] }
 0x14d   : > { %10951 = vmatpush3.bf16.msra.mxu0 %v11733_v38  ;;  %v1902_v33 = vadd.f32 %v13565_v59, %v1828_v49  ;;  %4772 = vmatprep.mubr.bf16.mxu0 %v16011_v14  ;;  %v11728_v59 = vld [vmem:[%s15990_s1 + $0x8a0] ss:$12 sps:$4 sm:$0xff]   ;;  %v13738_v41 = vpop.f32.mrf.mxu1  ;;  %v11748_v38 = vld [vmem:[%s15990_s1 + $0x8a8] ss:$12 sps:$4 sm:$0xff]  }
 0x14e   : > { %v1830_v17 = vpop.f32.mrf.mxu0  ;;  %10952 = vmatprep.subr.bf16.mxu0 %v11737_v9  ;;  %v4048_v9 = vld [vmem:[%s12221_s27 + $0xf0] sm:$0x88] }
 0x14f   : > { %v13735_v27 = vadd.f32 %v1902_v33, %v13293_v30  ;;  %v1904_v2 = vadd.f32 %v13582_v37, %v1830_v17  ;;  %v11744_v30 = vld [vmem:[%s15990_s1 + $0x800] ss:$12 sps:$4 sm:$0xff]   ;;  %v13750_v37 = vpop.f32.mrf.mxu1  ;;  %4680 = vmatpush2.bf16.msra.mxu1 %v11728_v59  ;;  %v9872_v59 = vrot.slane %v4048_v9, 11 }
 0x150   : > { %v1832_v43 = vpop.f32.mrf.mxu0  ;;  %4681 = vmatprep.subr.bf16.mxu1 %v11736_v24  ;;  %v4070_v17 = vld [vmem:[%s12221_s27 + $0x120] sm:$0x11]  ;;  %v11747_v24 = vld [vmem:[%s15990_s1 + $0x85c] ss:$12 sps:$4 sm:$0xff]  }
 0x151   : > { %v13744_v62 = vadd.f32 %v1904_v2, %v13311_v46  ;;  %10953 = vmatpush3.bf16.msra.mxu0 %v11738_v23  ;;  %v1906_v32 = vadd.f32 %v13598_v50, %v1832_v43  ;;  %v11734_v46 = vld [vmem:[%s15990_s1 + $0x888] ss:$12 sps:$4 sm:$0xff]   ;;  %v13765_v48 = vpop.f32.mrf.mxu1  ;;  %v11753_v23 = vld [vmem:[%s15990_s1 + $0x890] ss:$12 sps:$4 sm:$0xff]   ;;  %v4078_v9 = vrot.slane %v4070_v17, 5 }
 0x152   : > { %v13752_v25 = vpop.f32.mrf.mxu0  ;;  %10954 = vmatprep.subr.bf16.mxu0 %v11742_v7  ;;  %16014 = vst [vmem:[#allocation12_spill] sm:$0xff] %v13765_v48  ;;  %v13834_v17 = vld [vmem:[#allocation2 + $0x8] ss:$12 sps:$4 sm:$0xff]   ;;  %v4110_v48 = vld [vmem:[%s12221_s27 + $0x15c] sm:$0x11] }
 0x153   : > { %16013 = vst [vmem:[#allocation11_spill] sm:$0xff] %v13752_v25  ;;  %v13762_v50 = vadd.f32 %v1906_v32, %v13319_v51  ;;  %v11749_v51 = vld [vmem:[%s15990_s1 + $0x7e8] ss:$12 sps:$4 sm:$0xff]   ;;  %v13778_v61 = vpop.f32.mrf.mxu1  ;;  %4682 = vmatpush2.bf16.msra.mxu1 %v11734_v46  ;;  %v4058_v32 = vrot.slane %v4050_v53, 7  ;;  %v11752_v53 = vld [vmem:[%s15990_s1 + $0x844] ss:$12 sps:$4 sm:$0xff]  }
 0x154   : > { %10037 = vmatmul.mubr.msk.bf16.gmra.mxu0 %vm826_vm10, %v13520_v52  ;;  %v1838_v49 = vpop.f32.mrf.mxu0  ;;  %4683 = vmatprep.subr.bf16.mxu1 %v11741_v40  ;;  %v11745_v40 = vld [vmem:[%s15990_s1 + $0x858] ss:$12 sps:$4 sm:$0xff]   ;;  %v5945_v25 = vld [vmem:[%s12221_s27 + $0x194] sm:$0x3] }
 0x155   : > { %10955 = vmatpush3.bf16.msra.mxu0 %v11744_v30  ;;  %v1912_v35 = vadd.f32 %v13626_v28, %v1838_v49  ;;  %4782 = vmatprep.mubr.bf16.mxu0 %v16011_v14  ;;  %v11739_v28 = vld [vmem:[%s15990_s1 + $0x870] ss:$12 sps:$4 sm:$0xff]   ;;  %v13791_v2 = vpop.f32.mrf.mxu1  ;;  %v9874_v30 = vrot.slane %v4068_v10, 9 }
 0x156   : > { %v1840_v33 = vpop.f32.mrf.mxu0  ;;  %10956 = vmatprep.subr.bf16.mxu0 %v11748_v38 }
 0x157   : > { %v13788_v7 = vadd.f32 %v1912_v35, %v13341_v1  ;;  %v1914_v12 = vadd.f32 %v13642_v47, %v1840_v33  ;;  %v11755_v47 = vld [vmem:[%s15990_s1 + $0x7d0] ss:$12 sps:$4 sm:$0xff]   ;;  %v13803_v46 = vpop.f32.mrf.mxu1  ;;  %4684 = vmatpush2.bf16.msra.mxu1 %v11739_v28  ;;  %v11758_v35 = vld [vmem:[%s15990_s1 + $0x7b8] ss:$12 sps:$4 sm:$0xff]   ;;  %v11750_v33 = vld [vmem:[%s15990_s1 + $0x840] ss:$12 sps:$4 sm:$0xff]   ;;  %v13838_v28 = vsel %vm12260_vm8, %v9872_v59, %v4058_v32 }
 0x158   : > { %v1842_v43 = vpop.f32.mrf.mxu0  ;;  %4685 = vmatprep.subr.bf16.mxu1 %v11747_v24  ;;  %v13845_v24 = vld [vmem:[%s12221_s27 + $0x12c] sm:$0x88] }
 0x159   : > { %v13797_v38 = vadd.f32 %v1914_v12, %v13362_v22  ;;  %10957 = vmatpush3.bf16.msra.mxu0 %v11749_v51  ;;  %v1916_v1 = vadd.f32 %v13652_v15, %v1842_v43  ;;  %v11757_v22 = vld [vmem:[%s15990_s1 + $0x878] ss:$12 sps:$4 sm:$0xff]   ;;  %v13822_v51 = vpop.f32.mrf.mxu1  ;;  %v13842_v12 = vsel %vm12266_vm9, %v9874_v30, %v4078_v9  ;;  %v10213_v30 = vrot.slane %v5943_v13, 10 }
 0x15a   : > { %v13808_v49 = vpop.f32.mrf.mxu0  ;;  %10958 = vmatprep.subr.bf16.mxu0 %v11753_v23  ;;  %v13848_v43 = vld [vmem:[%s12221_s27 + $0x138] sm:$0x77]  ;;  %v5956_v9 = vrot.slane %v5945_v25, 6  ;;  %v13878_v25 = vcombine.low %v13591_v63, %v13595_v56 }
 0x15b   : > { %v13814_v15 = vadd.f32 %v1916_v1, %v13374_v34  ;;  %v11759_v34 = vld [vmem:[%s15990_s1 + $0x860] ss:$12 sps:$4 sm:$0xff]   ;;  %v13851_v1 = vld [vmem:[%s12221_s27 + $0x150] sm:$0xee]  ;;  %4686 = vmatpush2.bf16.msra.mxu1 %v11745_v40  ;;  %v4098_v63 = vrot.slane %v13848_v43, 7 }
 0x15c   : > { %10038 = vmatmul.mubr.msk.bf16.gmra.mxu0 %vm826_vm10, %v13579_v60  ;;  %v1848_v10 = vpop.f32.mrf.mxu0  ;;  %4687 = vmatprep.subr.bf16.mxu1 %v11752_v53  ;;  %v5957_v13 = vsel %vm12241_vm7, %v10213_v30, %v5956_v9  ;;  %v9876_v53 = vrot.slane %v13845_v24, 11  ;;  %v9878_v56 = vrot.slane %v13851_v1, 9  ;;  %v11762_v24 = vld [vmem:[%s15990_s1 + $0x938] ss:$12 sps:$4 sm:$0xff]   ;;  %v11764_v1 = vld [vmem:[%s15990_s1 + $0x788] ss:$12 sps:$4 sm:$0xff]  }
 0x15d   : > { %10959 = vmatpush3.bf16.msra.mxu0 %v11755_v47  ;;  %v1922_v23 = vadd.f32 %v13677_v44, %v1848_v10  ;;  %4792 = vmatprep.mubr.bf16.mxu0 %v16011_v14  ;;  %v13853_v44 = vpop.f32.mrf.mxu1  ;;  %v5939_v10 = vld [vmem:[%s12221_s27 + $0x170] sm:$0xf]  ;;  %5961 = vst.msk [vmem:[#allocation2 + $0x14] sm:$0xf] %vm253_vm0, %v5957_v13  ;;  %v13929_v9 = vld [vmem:[%s12221_s27 + $0x198] sm:$0x11] }
 0x15e   : > { %v1850_v47 = vpop.f32.mrf.mxu0  ;;  %10960 = vmatprep.subr.bf16.mxu0 %v11757_v22  ;;  %5941 = vst.msk [vmem:[#allocation2 + $0x8] sm:$0xf] %vm253_vm0, %v5939_v10  ;;  %v11756_v22 = vld [vmem:[%s15990_s1 + $0x950] ss:$12 sps:$4 sm:$0xff]   ;;  %v5963_v13 = vld [vmem:[%s12221_s27 + $0x1ac] sm:$0xf] }
 0x15f   : > { %v13859_v59 = vadd.f32 %v1922_v23, %v13397_v3  ;;  %v1924_v32 = vadd.f32 %v13686_v57, %v1850_v47  ;;  %v10829_v18 = vpop.f32.mrf.mxu1  ;;  %v11761_v57 = vld [vmem:[%s15990_s1 + $0x7a0] ss:$12 sps:$4 sm:$0xff]   ;;  %4688 = vmatpush2.bf16.msra.mxu1 %v11750_v33  ;;  %v13915_v47 = vld [vmem:[%s12221_s27 + $0x174] sm:$0x77] }
 0x160   : > { %v1852_v0 = vpop.f32.mrf.mxu0  ;;  %11254 = vmatprep.subr.bf16.mxu1 %v11756_v22  ;;  %v13907_v33 = vld [vmem:[%s12221_s27 + $0x168] sm:$0x88] }
 0x161   : > { %v13868_v39 = vadd.f32 %v1924_v32, %v13419_v11  ;;  %10961 = vmatpush3.bf16.msra.mxu0 %v11758_v35  ;;  %v1926_v3 = vadd.f32 %v13696_v29, %v1852_v0  ;;  %v13884_v11 = vcombine.high %v13838_v28, %v13842_v12  ;;  %v13886_v0 = vpop.f32.mrf.mxu1  ;;  %v11763_v29 = vld [vmem:[%s15990_s1 + $0x848] ss:$12 sps:$4 sm:$0xff]   ;;  %v13918_v10 = vld [vmem:[%s12221_s27 + $0x18c] sm:$0xee] }
 0x162   : > { %v13880_v40 = vpop.f32.mrf.mxu0  ;;  %10962 = vmatprep.subr.bf16.mxu0 %v11759_v34  ;;  %v4118_v34 = vrot.slane %v4110_v48, 5  ;;  %v11767_v48 = vld [vmem:[%s15990_s1 + $0xa0c] ss:$12 sps:$4 sm:$0xff]   ;;  %4690 = vmatmul.mubr.bf16.vlgmr.msra.gmra.mxu1 %v13878_v25 }
 0x163   : > { %16015 = vst [vmem:[#allocation13_spill] sm:$0xff] %v13868_v39  ;;  %v13896_v35 = vadd.f32 %v1926_v3, %v13432_v26  ;;  %v10832_v43 = vpop.f32.mrf.mxu1  ;;  %11255 = vmatpush3.bf16.msra.mxu1 %v11756_v22  ;;  %4699 = vmatprep.mubr.bf16.mxu1 %v13884_v11 }
 0x164   : > { %10039 = vmatmul.mubr.msk.bf16.gmra.mxu0 %vm826_vm10, %v13645_v19  ;;  %v1858_v23 = vpop.f32.mrf.mxu0  ;;  %v13945_v39 = vsel %vm12266_vm9, %v9878_v56, %v4118_v34  ;;  %11256 = vmatprep.subr.bf16.mxu1 %v11762_v24  ;;  %v9880_v56 = vrot.slane %v13907_v33, 11  ;;  %v13961_v34 = vcombine.low %v13838_v28, %v13842_v12  ;;  %v4158_v33 = vrot.slane %v13929_v9, 5  ;;  %v11774_v9 = vld [vmem:[%s15990_s1 + $0x9dc] ss:$12 sps:$4 sm:$0xff]  }
 0x165   : > { %16016 = vst [vmem:[#allocation14_spill] sm:$0xff] %v13896_v35  ;;  %10963 = vmatpush3.bf16.msra.mxu0 %v11761_v57  ;;  %v1932_v26 = vadd.f32 %v13724_v45, %v1858_v23  ;;  %4835 = vmatprep.mubr.bf16.mxu0 %v13618_v42  ;;  %v13921_v30 = vpop.f32.mrf.mxu1  ;;  %v11768_v42 = vld [vmem:[%s15990_s1 + $0x920] ss:$12 sps:$4 sm:$0xff]   ;;  %v5969_v23 = vld [vmem:[%s12221_s27 + $0x1d0] sm:$0x3]  ;;  %v13941_v35 = vsel %vm12260_vm8, %v9876_v53, %v4098_v63 }
 0x166   : > { %v1860_v32 = vpop.f32.mrf.mxu0  ;;  %10964 = vmatprep.subr.bf16.mxu0 %v11763_v29  ;;  %v13926_v45 = vld [vmem:[#allocation2 + $0x20] ss:$12 sps:$4 sm:$0xff]   ;;  %v5967_v29 = vld [vmem:[%s12221_s27 + $0x1c4] sm:$0xc]  ;;  %v11765_v63 = vld [vmem:[%s15990_s1 + $0xa08] ss:$12 sps:$4 sm:$0xff]   ;;  %v13979_v12 = vcombine.high %v13941_v35, %v13945_v39 }
 0x167   : > { %v13933_v3 = vadd.f32 %v1932_v26, %v13461_v55  ;;  %v1934_v57 = vadd.f32 %v13738_v41, %v1860_v32  ;;  %v13947_v8 = vpop.f32.mrf.mxu1  ;;  %5965 = vst.msk [vmem:[#allocation2 + $0x20] sm:$0xf] %vm253_vm0, %v5963_v13  ;;  %v10215_v55 = vrot.slane %v5967_v29, 10  ;;  %v5980_v26 = vrot.slane %v5969_v23, 6  ;;  %11257 = vmatpush3.bf16.msra.mxu1 %v11762_v24 }
 0x168   : > { %v1862_v22 = vpop.f32.mrf.mxu0  ;;  %v10830_v41 = vadd.f32 %v10829_v18, %v13853_v44  ;;  %v4138_v44 = vrot.slane %v13915_v47, 7  ;;  %11258 = vmatprep.subr.bf16.mxu1 %v11768_v42  ;;  %v10824_v24 = vadd.f32 %v13791_v2, %v13778_v61  ;;  %v11784_v2 = vld [vmem:[%s15990_s1 + $0xb2c] ss:$12 sps:$4 sm:$0xff]  }
 0x169   : > { %v13952_v32 = vadd.f32 %v1934_v57, %v13480_v6  ;;  %10965 = vmatpush3.bf16.msra.mxu0 %v11764_v1  ;;  %v1936_v53 = vadd.f32 %v13750_v37, %v1862_v22  ;;  %v13965_v18 = vpop.f32.mrf.mxu1  ;;  %v11771_v6 = vld [vmem:[%s15990_s1 + $0x9f4] ss:$12 sps:$4 sm:$0xff]   ;;  %v5981_v37 = vsel %vm12241_vm7, %v10215_v55, %v5980_v26  ;;  %v9882_v1 = vrot.slane %v13918_v10, 9  ;;  %v14007_v55 = vld [vmem:[#allocation2 + $0x38] ss:$12 sps:$4 sm:$0xff]  }
 0x16a   : > { %v13963_v13 = vpop.f32.mrf.mxu0  ;;  %5590 = vmatprep.subr.bf16.mxu0 %v11767_v48  ;;  %5985 = vst.msk [vmem:[#allocation2 + $0x2c] sm:$0xf] %vm253_vm0, %v5981_v37  ;;  %v2078_v57 = vld [vmem:[#allocation3 + $0x40] sm:$0xff]  ;;  %v10833_v10 = vadd.f32 %v10832_v43, %v13886_v0  ;;  %4700 = vmatmul.mubr.bf16.gmra.mxu1 %v13961_v34  ;;  %v2072_v22 = vld [vmem:[#allocation3 + $0x10] sm:$0xff]  ;;  %v14011_v26 = vsel %vm12260_vm8, %v9880_v56, %v4138_v44 }
 0x16b   : > { %v13975_v28 = vadd.f32 %v1936_v53, %v13495_v4  ;;  %v13984_v47 = vpop.f32.mrf.mxu1  ;;  %v11775_v4 = vld [vmem:[%s15990_s1 + $0x908] ss:$12 sps:$4 sm:$0xff]   ;;  %4709 = vmatprep.mubr.bf16.mxu1 %v13979_v12  ;;  %11259 = vmatpush3.bf16.msra.mxu1 %v11768_v42  ;;  %v11772_v43 = vld [vmem:[%s15990_s1 + $0x9d8] ss:$12 sps:$4 sm:$0xff]   ;;  %v10827_v53 = vadd.f32 %v13822_v51, %v13803_v46  ;;  %v5991_v37 = vld [vmem:[%s12221_s27 + $0x200] sm:$0xc] }
 0x16c   : > { %4836 = vmatmul.mubr.bf16.vlgmr.msra.gmra.mxu0 %v13878_v25  ;;  %v11216_v48 = vpop.f32.mrf.mxu0  ;;  %v11769_v25 = vld [vmem:[%s15990_s1 + $0x9f0] ss:$12 sps:$4 sm:$0xff]   ;;  %11260 = vmatprep.subr.bf16.mxu1 %v11775_v4  ;;  %v10217_v44 = vrot.slane %v5991_v37, 10 }
 0x16d   : > { %5591 = vmatpush1.bf16.msra.mxu0 %v11765_v63  ;;  %v2048_v29 = vadd.f32 %v11216_v48, %v10830_v41  ;;  %4843 = vmatprep.mubr.bf16.mxu0 %v13884_v11  ;;  %v10840_v61 = vpop.f32.mrf.mxu1  ;;  %v14015_v41 = vsel %vm12266_vm9, %v9882_v1, %v4158_v33  ;;  %v5993_v48 = vld [vmem:[%s12221_s27 + $0x20c] sm:$0x3]  ;;  %v9970_v1 = vcombine.low %v13941_v35, %v13945_v39  ;;  %v2081_v33 = vld [vmem:[#allocation3 + $0x58] sm:$0xff] }
 0x16e   : > { %v2039_v23 = vpop.f32.mrf.mxu0  ;;  %5592 = vmatprep.subr.bf16.mxu0 %v11771_v6  ;;  %v5987_v6 = vld [vmem:[%s12221_s27 + $0x1e8] sm:$0xf]  ;;  %v9974_v39 = vcombine.high %v14011_v26, %v14015_v41 }
 0x16f   : > { %v2102_v11 = vadd.f32 %v2078_v57, %v2048_v29  ;;  %v2040_v0 = vadd.f32 %v10824_v24, %v2039_v23  ;;  %v10841_v42 = vpop.f32.mrf.mxu1  ;;  %5989 = vst.msk [vmem:[#allocation2 + $0x38] sm:$0xf] %vm253_vm0, %v5987_v6  ;;  %v11778_v29 = vld [vmem:[%s15990_s1 + $0x9c4] ss:$12 sps:$4 sm:$0xff]   ;;  %v6004_v23 = vrot.slane %v5993_v48, 6  ;;  %11261 = vmatpush3.bf16.msra.mxu1 %v11775_v4  ;;  %v2093_v48 = vld [vmem:[#allocation3 + $0xb8] sm:$0xff] }
 0x170   : > { %v11217_v63 = vpop.f32.mrf.mxu0  ;;  %v10842_v56 = vadd.f32 %v10841_v42, %v10840_v61  ;;  %v2075_v61 = vld [vmem:[#allocation3 + $0x28] sm:$0xff]  ;;  %5671 = vmatprep.subr.bf16.mxu1 %v11784_v2  ;;  %v2084_v4 = vld [vmem:[#allocation3 + $0x70] sm:$0xff] }
 0x171   : > { %2126 = vst.msk [vmem:[#allocation3 + $0x40] sm:$0xff] %vm826_vm10, %v2102_v11  ;;  %v2096_v57 = vadd.f32 %v2072_v22, %v2040_v0  ;;  %5593 = vmatpush1.bf16.msra.mxu0 %v11769_v25  ;;  %v2051_v24 = vadd.f32 %v11217_v63, %v10833_v10  ;;  %v10843_v51 = vpop.f32.mrf.mxu1  ;;  %v10836_v25 = vadd.f32 %v13947_v8, %v13921_v30  ;;  %v11776_v63 = vld [vmem:[%s15990_s1 + $0x9c0] ss:$12 sps:$4 sm:$0xff]   ;;  %v11779_v6 = vld [vmem:[%s15990_s1 + $0x9a8] ss:$12 sps:$4 sm:$0xff]  }
 0x172   : > { %v2042_v46 = vpop.f32.mrf.mxu0  ;;  %5594 = vmatprep.subr.bf16.mxu0 %v11774_v9  ;;  %v2090_v9 = vld [vmem:[#allocation3 + $0xa0] sm:$0xff]  ;;  %v6005_v0 = vsel %vm12241_vm7, %v10217_v44, %v6004_v23  ;;  %4710 = vmatmul.mubr.bf16.gmra.mxu1 %v9970_v1  ;;  %v11781_v2 = vld [vmem:[%s15990_s1 + $0x9ac] ss:$12 sps:$4 sm:$0xff]   ;;  %v6017_v44 = vld [vmem:[%s12221_s27 + $0x248] sm:$0x3] }
 0x173   : > { %2120 = vst.msk [vmem:[#allocation3 + $0x10] sm:$0xff] %vm826_vm10, %v2096_v57  ;;  %v2105_v10 = vadd.f32 %v2081_v33, %v2051_v24  ;;  %v2043_v22 = vadd.f32 %v10827_v53, %v2042_v46  ;;  %v10844_v11 = vpop.f32.mrf.mxu1  ;;  %4719 = vmatprep.mubr.bf16.mxu1 %v9974_v39  ;;  %v14052_v57 = vld [vmem:[#allocation2 + $0x50] ss:$12 sps:$4 sm:$0xff]   ;;  %v6011_v24 = vld [vmem:[%s12221_s27 + $0x224] sm:$0xf]  ;;  %v9973_v33 = vcombine.low %v14011_v26, %v14015_v41  ;;  %v6028_v23 = vrot.slane %v6017_v44, 6 }
 0x174   : > { %4844 = vmatmul.mubr.bf16.gmra.mxu0 %v13961_v34  ;;  %v11220_v35 = vpop.f32.mrf.mxu0  ;;  %v10845_v53 = vadd.f32 %v10844_v11, %v10843_v51  ;;  %6009 = vst.msk [vmem:[#allocation2 + $0x44] sm:$0xf] %vm253_vm0, %v6005_v0  ;;  %6013 = vst.msk [vmem:[#allocation2 + $0x50] sm:$0xf] %vm253_vm0, %v6011_v24  ;;  %v11787_v51 = vld [vmem:[%s15990_s1 + $0x994] ss:$12 sps:$4 sm:$0xff]  }
 0x175   : > { %2129 = vst.msk [vmem:[#allocation3 + $0x58] sm:$0xff] %vm826_vm10, %v2105_v10  ;;  %v2099_v8 = vadd.f32 %v2075_v61, %v2043_v22  ;;  %5595 = vmatpush1.bf16.msra.mxu0 %v11772_v43  ;;  %v2064_v30 = vadd.f32 %v11220_v35, %v10842_v56  ;;  %4851 = vmatprep.mubr.bf16.mxu0 %v13979_v12  ;;  %v2087_v22 = vld [vmem:[#allocation3 + $0x88] sm:$0xff]  ;;  %v11785_v41 = vld [vmem:[%s15990_s1 + $0x990] ss:$12 sps:$4 sm:$0xff]  }
 0x176   : > { %v2055_v34 = vpop.f32.mrf.mxu0  ;;  %5596 = vmatprep.subr.bf16.mxu0 %v11778_v29  ;;  %v10839_v43 = vadd.f32 %v13984_v47, %v13965_v18  ;;  %v6015_v47 = vld [vmem:[%s12221_s27 + $0x23c] sm:$0xc]  ;;  %v14087_v0 = vld [vmem:[#allocation2 + $0x4] ss:$12 sps:$4 sm:$0xff]   ;;  %v11800_v44 = vld [vmem:[%s15990_s1 + $0xae0] ss:$12 sps:$4 sm:$0xff]  }
 0x177   : > { %2123 = vst.msk [vmem:[#allocation3 + $0x28] sm:$0xff] %vm826_vm10, %v2099_v8  ;;  %v2114_v12 = vadd.f32 %v2090_v9, %v2064_v30  ;;  %v2056_v42 = vadd.f32 %v10836_v25, %v2055_v34  ;;  %v10219_v29 = vrot.slane %v6015_v47, 10  ;;  %v11799_v30 = vld [vmem:[%s15990_s1 + $0x964] ss:$12 sps:$4 sm:$0xff]   ;;  %v11797_v34 = vld [vmem:[%s15990_s1 + $0x960] ss:$12 sps:$4 sm:$0xff]  }
 0x178   : > { %v11221_v37 = vpop.f32.mrf.mxu0  ;;  %v11816_v47 = vld [vmem:[%s15990_s1 + $0xa9c] ss:$12 sps:$4 sm:$0xff]  }
 0x179   : > { %2138 = vst.msk [vmem:[#allocation3 + $0xa0] sm:$0xff] %vm826_vm10, %v2114_v12  ;;  %v2108_v56 = vadd.f32 %v2084_v4, %v2056_v42  ;;  %5597 = vmatpush1.bf16.msra.mxu0 %v11776_v63  ;;  %v2067_v18 = vadd.f32 %v11221_v37, %v10845_v53  ;;  %v6029_v35 = vsel %vm12241_vm7, %v10219_v29, %v6028_v23  ;;  %v11790_v53 = vld [vmem:[%s15990_s1 + $0xb14] ss:$12 sps:$4 sm:$0xff]   ;;  %v11822_v29 = vld [vmem:[%s15990_s1 + $0xa84] ss:$12 sps:$4 sm:$0xff]  }
 0x17a   : > { %v2058_v46 = vpop.f32.mrf.mxu0  ;;  %5598 = vmatprep.subr.bf16.mxu0 %v11781_v2  ;;  %6033 = vst.msk [vmem:[#allocation2 + $0x5c] sm:$0xf] %vm253_vm0, %v6029_v35  ;;  %4720 = vmatmul.mubr.bf16.gmra.mxu1 %v9973_v33  ;;  %v11805_v2 = vld [vmem:[%s15990_s1 + $0xacc] ss:$12 sps:$4 sm:$0xff]   ;;  %v11803_v42 = vld [vmem:[%s15990_s1 + $0xac8] ss:$12 sps:$4 sm:$0xff]  }
 0x17b   : > { %2132 = vst.msk [vmem:[#allocation3 + $0x70] sm:$0xff] %vm826_vm10, %v2108_v56  ;;  %v2117_v25 = vadd.f32 %v2093_v48, %v2067_v18  ;;  %v2059_v10 = vadd.f32 %v10839_v43, %v2058_v46  ;;  %11262 = vmatprep.mubr.msk.bf16.mxu1 %vm826_vm10, %v13448_v58  ;;  %v11782_v58 = vld [vmem:[%s15990_s1 + $0xb28] ss:$12 sps:$4 sm:$0xff]   ;;  %v11788_v43 = vld [vmem:[%s15990_s1 + $0xb10] ss:$12 sps:$4 sm:$0xff]  }
 0x17c   : > { %4852 = vmatmul.mubr.bf16.gmra.mxu0 %v9970_v1  ;;  %v14065_v61 = vpop.f32.mrf.mxu0  ;;  %v11793_v1 = vld [vmem:[%s15990_s1 + $0x97c] ss:$12 sps:$4 sm:$0xff]   ;;  %v11811_v37 = vld [vmem:[%s15990_s1 + $0xab4] ss:$12 sps:$4 sm:$0xff]   ;;  %v11802_v48 = vld [vmem:[%s15990_s1 + $0xae4] ss:$12 sps:$4 sm:$0xff]  }
 0x17d   : > { %2141 = vst.msk [vmem:[#allocation3 + $0xb8] sm:$0xff] %vm826_vm10, %v2117_v25  ;;  %v2111_v26 = vadd.f32 %v2087_v22, %v2059_v10  ;;  %5599 = vmatpush1.bf16.msra.mxu0 %v11779_v6  ;;  %4859 = vmatprep.mubr.bf16.mxu0 %v9974_v39  ;;  %v11791_v39 = vld [vmem:[%s15990_s1 + $0x978] ss:$12 sps:$4 sm:$0xff]   ;;  %v11809_v56 = vld [vmem:[%s15990_s1 + $0xab0] ss:$12 sps:$4 sm:$0xff]  }
 0x17e   : > { %v14074_v9 = vpop.f32.mrf.mxu0  ;;  %5600 = vmatprep.subr.bf16.mxu0 %v11787_v51  ;;  %v11814_v46 = vld [vmem:[%s15990_s1 + $0xa98] ss:$12 sps:$4 sm:$0xff]   ;;  %v11808_v23 = vld [vmem:[%s15990_s1 + $0xa10] ss:$12 sps:$4 sm:$0xff]   ;;  %v11820_v22 = vld [vmem:[%s15990_s1 + $0xa80] ss:$12 sps:$4 sm:$0xff]  }
 0x17f   : > { %2135 = vst.msk [vmem:[#allocation3 + $0x88] sm:$0xff] %vm826_vm10, %v2111_v26  ;;  %v11812_v25 = vld [vmem:[%s15990_s1 + $0xab8] ss:$12 sps:$4 sm:$0xff]  }
 0x180   : > { %v14082_v11 = vpop.f32.mrf.mxu0 }
 0x181   : > { %5601 = vmatpush1.bf16.msra.mxu0 %v11785_v41  ;;  %v11827_v41 = vld [vmem:[%s15990_s1 + $0xa6c] ss:$12 sps:$4 sm:$0xff]  }
 0x182   : > { %v14089_v8 = vpop.f32.mrf.mxu0  ;;  %5602 = vmatprep.subr.bf16.mxu0 %v11793_v1  ;;  %11263 = vmatmul.mubr.msk.bf16.vlgmr.msra.gmra.mxu1 %vm826_vm10, %v13520_v52  ;;  %v11796_v52 = vld [vmem:[%s15990_s1 + $0xafc] ss:$12 sps:$4 sm:$0xff]  }
 0x183   : > { %5672 = vmatpush1.bf16.msra.mxu1 %v11782_v58  ;;  %11266 = vmatprep.mubr.msk.bf16.mxu1 %vm826_vm10, %v13579_v60  ;;  %v11794_v60 = vld [vmem:[%s15990_s1 + $0xaf8] ss:$12 sps:$4 sm:$0xff]   ;;  %v11817_v58 = vld [vmem:[%s15990_s1 + $0xaa0] ss:$12 sps:$4 sm:$0xff]  }
 0x184   : > { %4860 = vmatmul.mubr.bf16.gmra.mxu0 %v9973_v33  ;;  %v14100_v63 = vpop.f32.mrf.mxu0  ;;  %5673 = vmatprep.subr.bf16.mxu1 %v11790_v53  ;;  %v11806_v33 = vld [vmem:[%s15990_s1 + $0xad0] ss:$12 sps:$4 sm:$0xff]  }
 0x185   : > { %5603 = vmatpush1.bf16.msra.mxu0 %v11791_v39  ;;  %5622 = vmatprep.mubr.bf16.mxu0 %v14087_v0  ;;  %v11813_v39 = vld [vmem:[%s15990_s1 + $0x9f8] ss:$12 sps:$4 sm:$0xff]  }
 0x186   : > { %v14108_v4 = vpop.f32.mrf.mxu0  ;;  %5604 = vmatprep.subr.bf16.mxu0 %v11799_v30 }
 0x187   : > { %5674 = vmatpush1.bf16.msra.mxu1 %v11788_v43 }
 0x188   : > { %v14121_v12 = vpop.f32.mrf.mxu0  ;;  %5675 = vmatprep.subr.bf16.mxu1 %v11796_v52 }
 0x189   : > { %5605 = vmatpush1.bf16.msra.mxu0 %v11797_v34 }
 0x18a   : > { %v14126_v6 = vpop.f32.mrf.mxu0  ;;  %5606 = vmatprep.subr.bf16.mxu0 %v11805_v2  ;;  %11267 = vmatmul.mubr.msk.bf16.gmra.mxu1 %vm826_vm10, %v13645_v19 }
 0x18b   : > { %5676 = vmatpush1.bf16.msra.mxu1 %v11794_v60  ;;  %5695 = vmatprep.mubr.bf16.mxu1 %v16011_v14 }
 0x18c   : > { %v14137_v24 = vpop.f32.mrf.mxu0  ;;  %5677 = vmatprep.subr.bf16.mxu1 %v11802_v48  ;;  %v11823_v48 = vld [vmem:[%s15990_s1 + $0xa88] ss:$12 sps:$4 sm:$0xff]  }
 0x18d   : > { %5607 = vmatpush2.bf16.msra.mxu0 %v11803_v42  ;;  %v11833_v42 = vld [vmem:[%s15990_s1 + $0xa54] ss:$12 sps:$4 sm:$0xff]  }
 0x18e   : > { %v14144_v18 = vpop.f32.mrf.mxu0  ;;  %5608 = vmatprep.subr.bf16.mxu0 %v11811_v37 }
 0x18f   : > { %5678 = vmatpush1.bf16.msra.mxu1 %v11800_v44 }
 0x190   : > { %v14156_v19 = vpop.f32.mrf.mxu0  ;;  %10998 = vmatprep.subr.bf16.mxu1 %v11806_v33  ;;  %v11838_v33 = vld [vmem:[%s15990_s1 + $0xa3c] ss:$12 sps:$4 sm:$0xff]  }
 0x191   : > { %5609 = vmatpush2.bf16.msra.mxu0 %v11809_v56 }
 0x192   : > { %v14161_v51 = vpop.f32.mrf.mxu0  ;;  %5610 = vmatprep.subr.bf16.mxu0 %v11816_v47  ;;  %10204 = vmatmul.mubr.msk.bf16.vlgmr.msra.gmra.mxu1 %vm826_vm10, %v13834_v17  ;;  %v2761_v35 = vpop.f32.mrf.mxu1 }
 0x193   : > { %10999 = vmatpush3.bf16.msra.mxu1 %v11808_v23  ;;  %v2835_v1 = vadd.f32 %v14065_v61, %v2761_v35  ;;  %5705 = vmatprep.mubr.bf16.mxu1 %v16011_v14  ;;  %v11825_v61 = vld [vmem:[%s15990_s1 + $0xa68] ss:$12 sps:$4 sm:$0xff]   ;;  %v11828_v23 = vld [vmem:[%s15990_s1 + $0xa70] ss:$12 sps:$4 sm:$0xff]  }
 0x194   : > { %v14172_v10 = vpop.f32.mrf.mxu0  ;;  %v2763_v30 = vpop.f32.mrf.mxu1  ;;  %11000 = vmatprep.subr.bf16.mxu1 %v11812_v25 }
 0x195   : > { %5611 = vmatpush2.bf16.msra.mxu0 %v11814_v46  ;;  %v14195_v34 = vadd.f32 %v2835_v1, %v13735_v27  ;;  %v2837_v2 = vadd.f32 %v14074_v9, %v2763_v30  ;;  %v11819_v9 = vld [vmem:[%s15990_s1 + $0x9e0] ss:$12 sps:$4 sm:$0xff]   ;;  %v11824_v46 = vld [vmem:[%s15990_s1 + $0x9c8] ss:$12 sps:$4 sm:$0xff]   ;;  %v11836_v1 = vld [vmem:[%s15990_s1 + $0xa38] ss:$12 sps:$4 sm:$0xff]  }
 0x196   : > { %v14179_v26 = vpop.f32.mrf.mxu0  ;;  %5612 = vmatprep.subr.bf16.mxu0 %v11822_v29  ;;  %v2765_v43 = vpop.f32.mrf.mxu1 }
 0x197   : > { %v14207_v37 = vadd.f32 %v2837_v2, %v13744_v62  ;;  %11001 = vmatpush3.bf16.msra.mxu1 %v11813_v39  ;;  %v2839_v27 = vadd.f32 %v14082_v11, %v2765_v43  ;;  %v11831_v62 = vld [vmem:[%s15990_s1 + $0xa50] ss:$12 sps:$4 sm:$0xff]   ;;  %v11835_v43 = vld [vmem:[%s15990_s1 + $0x998] ss:$12 sps:$4 sm:$0xff]  }
 0x198   : > { %v14192_v53 = vpop.f32.mrf.mxu0  ;;  %v14213_v60 = vpop.f32.mrf.mxu1  ;;  %11002 = vmatprep.subr.bf16.mxu1 %v11817_v58  ;;  %v11834_v58 = vld [vmem:[%s15990_s1 + $0xa58] ss:$12 sps:$4 sm:$0xff]  }
 0x199   : > { %5613 = vmatpush2.bf16.msra.mxu0 %v11820_v22  ;;  %v14221_v47 = vadd.f32 %v2839_v27, %v13762_v50  ;;  %v1918_v22 = vadd.f32 %v13663_v54, %v13808_v49  ;;  %v11844_v54 = vld [vmem:[%s15990_s1 + $0xa24] ss:$12 sps:$4 sm:$0xff]  }
 0x19a   : > { %v14201_v52 = vpop.f32.mrf.mxu0  ;;  %5614 = vmatprep.subr.bf16.mxu0 %v11827_v41  ;;  %10205 = vmatmul.mubr.msk.bf16.gmra.mxu1 %vm826_vm10, %v13926_v45  ;;  %v2771_v11 = vpop.f32.mrf.mxu1  ;;  %v11830_v41 = vld [vmem:[%s15990_s1 + $0x9b0] ss:$12 sps:$4 sm:$0xff]  }
 0x19b   : > { %11003 = vmatpush3.bf16.msra.mxu1 %v11819_v9  ;;  %v2845_v50 = vadd.f32 %v14100_v63, %v2771_v11  ;;  %5715 = vmatprep.mubr.bf16.mxu1 %v16011_v14  ;;  %v6872_v27 = vld [vmem:[%s12221_s27 + $0x170] sm:$0x8]  ;;  %v6874_v9 = vld [vmem:[%s12221_s27 + $0x17c] sm:$0x7] }
 0x19c   : > { %v14218_v56 = vpop.f32.mrf.mxu0  ;;  %v2773_v29 = vpop.f32.mrf.mxu1  ;;  %11004 = vmatprep.subr.bf16.mxu1 %v11823_v48  ;;  %v6885_v11 = vrot.slane %v6874_v9, 7  ;;  %v11845_v9 = vld [vmem:[%s15990_s1 + $0xa28] ss:$12 sps:$4 sm:$0xff]  }
 0x19d   : > { %5615 = vmatpush2.bf16.msra.mxu0 %v11825_v61  ;;  %v3033_v35 = vadd.f32 %v2845_v50, %v13788_v7  ;;  %v2847_v63 = vadd.f32 %v14108_v4, %v2773_v29  ;;  %v963_v7 = vadd.f32 %v13150_v5, %v13378_v20  ;;  %v11842_v5 = vld [vmem:[%s15990_s1 + $0xa20] ss:$12 sps:$4 sm:$0xff]  }
 0x19e   : > { %v14228_v44 = vpop.f32.mrf.mxu0  ;;  %5616 = vmatprep.subr.bf16.mxu0 %v11833_v42  ;;  %v2775_v39 = vpop.f32.mrf.mxu1  ;;  %v11853_v42 = vld [vmem:[%s15990_s1 + $0xb30] ss:$12 sps:$4 sm:$0xff]   ;;  %v6894_v50 = vld [vmem:[%s12221_s27 + $0x1a0] sm:$0x1] }
 0x19f   : > { %3057 = vst [vmem:[#allocation3 + $0x30] sm:$0xff] %v3033_v35  ;;  %v3034_v49 = vadd.f32 %v2847_v63, %v13797_v38  ;;  %11005 = vmatpush3.bf16.msra.mxu1 %v11824_v46  ;;  %v2849_v4 = vadd.f32 %v14121_v12, %v2775_v39  ;;  %v2104_v20 = vadd.f32 %v1918_v22, %v963_v7  ;;  %v14293_v63 = vld [vmem:[#allocation2] ss:$12 sps:$4 sm:$0xff]  }
 0x1a0   : > { %v14241_v25 = vpop.f32.mrf.mxu0  ;;  %v2777_v2 = vpop.f32.mrf.mxu1  ;;  %11006 = vmatprep.subr.bf16.mxu1 %v11828_v23 }
 0x1a1   : > { %5617 = vmatpush2.bf16.msra.mxu0 %v11831_v62  ;;  %3058 = vst [vmem:[#allocation3 + $0x38] sm:$0xff] %v3034_v49  ;;  %v3036_v38 = vadd.f32 %v2849_v4, %v13814_v15  ;;  %v2851_v12 = vadd.f32 %v14126_v6, %v2777_v2  ;;  %v11839_v15 = vld [vmem:[%s15990_s1 + $0xa40] ss:$12 sps:$4 sm:$0xff]   ;;  %v10381_v62 = vrot.slane %v6872_v27, 11  ;;  %v14303_v49 = vld [vmem:[#allocation2 + $0x1c] ss:$12 sps:$4 sm:$0xff]  }
 0x1a2   : > { %v14253_v30 = vpop.f32.mrf.mxu0  ;;  %5618 = vmatprep.subr.bf16.mxu0 %v11838_v33  ;;  %10206 = vmatmul.mubr.msk.bf16.gmra.mxu1 %vm826_vm10, %v14007_v55  ;;  %v2781_v48 = vpop.f32.mrf.mxu1  ;;  %v6892_v33 = vld [vmem:[%s12221_s27 + $0x194] sm:$0xe]  ;;  %v11863_v2 = vld [vmem:[%s15990_s1 + $0xb18] ss:$12 sps:$4 sm:$0xff]  }
 0x1a3   : > { %3060 = vst [vmem:[#allocation3 + $0x48] sm:$0xff] %v3036_v38  ;;  %v3037_v46 = vadd.f32 %v2851_v12, %v2104_v20  ;;  %11007 = vmatpush3.bf16.msra.mxu1 %v11830_v41  ;;  %v2855_v29 = vadd.f32 %v14137_v24, %v2781_v48  ;;  %5725 = vmatprep.mubr.bf16.mxu1 %v16011_v14  ;;  %v10383_v23 = vrot.slane %v6892_v33, 9  ;;  %v11841_v12 = vld [vmem:[%s15990_s1 + $0x980] ss:$12 sps:$4 sm:$0xff]   ;;  %v11846_v33 = vld [vmem:[%s15990_s1 + $0x968] ss:$12 sps:$4 sm:$0xff]  }
 0x1a4   : > { %v14265_v61 = vpop.f32.mrf.mxu0  ;;  %v2783_v22 = vpop.f32.mrf.mxu1  ;;  %11008 = vmatprep.subr.bf16.mxu1 %v11834_v58  ;;  %v6886_v39 = vsel %vm12260_vm8, %v10381_v62, %v6885_v11  ;;  %v1928_v41 = vadd.f32 %v13709_v16, %v13880_v40  ;;  %v16017_v40 = vld [vmem:[#allocation8_spill] sm:$0xff] }
 0x1a5   : > { %5619 = vmatpush2.bf16.msra.mxu0 %v11836_v1  ;;  %v14295_v1 = vld [vmem:[#allocation2 + $0x8] ss:$12 sps:$4 sm:$0xff]   ;;  %3061 = vst [vmem:[#allocation3 + $0x50] sm:$0xff] %v3037_v46  ;;  %v3039_v24 = vadd.f32 %v2855_v29, %v13859_v59  ;;  %v2857_v7 = vadd.f32 %v14144_v18, %v2783_v22  ;;  %v6912_v29 = vld [vmem:[%s12221_s27 + $0x1ac] sm:$0x8] }
 0x1a6   : > { %v14285_v6 = vpop.f32.mrf.mxu0  ;;  %5620 = vmatprep.subr.bf16.mxu0 %v11844_v54  ;;  %v6905_v54 = vrot.slane %v6894_v50, 5  ;;  %6890 = vst.msk [vmem:[#allocation2 + $0x8] sm:$0xf] %vm253_vm0, %v6886_v39  ;;  %v2785_v4 = vpop.f32.mrf.mxu1  ;;  %v16018_v59 = vld [vmem:[#allocation5_spill] sm:$0xff]  ;;  %v6914_v39 = vld [vmem:[%s12221_s27 + $0x1b8] sm:$0x7] }
 0x1a7   : > { %v973_v20 = vadd.f32 %v16018_v59, %v16017_v40  ;;  %3063 = vst [vmem:[#allocation3 + $0x60] sm:$0xff] %v3039_v24  ;;  %v16019_v18 = vld [vmem:[#allocation13_spill] sm:$0xff]  ;;  %11009 = vmatpush3.bf16.msra.mxu1 %v11835_v43  ;;  %v2859_v38 = vadd.f32 %v14156_v19, %v2785_v4  ;;  %v16020_v19 = vld [vmem:[#allocation14_spill] sm:$0xff]  ;;  %v6925_v4 = vrot.slane %v6914_v39, 7  ;;  %v16021_v59 = vld [vmem:[#allocation12_spill] sm:$0xff] }
 0x1a8   : > { %v14291_v35 = vpop.f32.mrf.mxu0  ;;  %v6906_v16 = vsel %vm12266_vm9, %v10383_v23, %v6905_v54  ;;  %v2787_v27 = vpop.f32.mrf.mxu1  ;;  %11010 = vmatprep.subr.bf16.mxu1 %v11839_v15  ;;  %v11852_v50 = vld [vmem:[%s15990_s1 + $0xbec] ss:$12 sps:$4 sm:$0xff]   ;;  %v10385_v54 = vrot.slane %v6912_v29, 11 }
 0x1a9   : > { %5621 = vmatpush2.bf16.msra.mxu0 %v11842_v5  ;;  %v3040_v5 = vadd.f32 %v2857_v7, %v16019_v18  ;;  %6910 = vst.msk [vmem:[#allocation2 + $0x14] sm:$0xf] %vm253_vm0, %v6906_v16  ;;  %v2110_v43 = vadd.f32 %v1928_v41, %v973_v20  ;;  %v3042_v62 = vadd.f32 %v2859_v38, %v16020_v19  ;;  %v6932_v41 = vld [vmem:[%s12221_s27 + $0x1d0] sm:$0xe]  ;;  %v6934_v16 = vld [vmem:[%s12221_s27 + $0x1dc] sm:$0x1] }
 0x1aa   : > { %v14306_v58 = vpop.f32.mrf.mxu0  ;;  %11270 = vmatprep.subr.bf16.mxu0 %v11853_v42  ;;  %v2861_v11 = vadd.f32 %v14161_v51, %v2787_v27  ;;  %10207 = vmatmul.mubr.msk.bf16.gmra.mxu1 %vm826_vm10, %v14052_v57  ;;  %v2791_v15 = vpop.f32.mrf.mxu1  ;;  %v14340_v51 = vld [vmem:[#allocation2 + $0x18] ss:$12 sps:$4 sm:$0xff]   ;;  %v10387_v40 = vrot.slane %v6932_v41, 9  ;;  %v1938_v20 = vadd.f32 %v16021_v59, %v13963_v13  ;;  %v16022_v38 = vld [vmem:[#allocation10_spill] sm:$0xff]  ;;  %v14366_v19 = vld [vmem:[#allocation2 + $0x20] ss:$12 sps:$4 sm:$0xff]  }
 0x1ab   : > { %3064 = vst [vmem:[#allocation3 + $0x68] sm:$0xff] %v3040_v5  ;;  %3066 = vst [vmem:[#allocation3 + $0x78] sm:$0xff] %v3042_v62  ;;  %11011 = vmatpush3.bf16.msra.mxu1 %v11841_v12  ;;  %v2865_v22 = vadd.f32 %v14172_v10, %v2791_v15  ;;  %5768 = vmatprep.mubr.bf16.mxu1 %v14087_v0  ;;  %v14357_v0 = vld [vmem:[#allocation2 + $0x34] ss:$12 sps:$4 sm:$0xff]   ;;  %v6945_v5 = vrot.slane %v6934_v16, 5 }
 0x1ac   : > { %5623 = vmatmul.mubr.bf16.vlgmr.msra.gmra.mxu0 %v14293_v63  ;;  %v14325_v48 = vpop.f32.mrf.mxu0  ;;  %v3043_v23 = vadd.f32 %v2861_v11, %v2110_v43  ;;  %v2793_v24 = vpop.f32.mrf.mxu1  ;;  %11012 = vmatprep.subr.bf16.mxu1 %v11845_v9  ;;  %v16023_v12 = vld [vmem:[#allocation6_spill] sm:$0xff]  ;;  %v14405_v59 = vld [vmem:[#allocation2 + $0x4c] ss:$12 sps:$4 sm:$0xff]  }
 0x1ad   : > { %11271 = vmatpush3.bf16.msra.mxu0 %v11853_v42  ;;  %5632 = vmatprep.mubr.bf16.mxu0 %v14303_v49  ;;  %v11872_v42 = vld [vmem:[%s15990_s1 + $0xb00] ss:$12 sps:$4 sm:$0xff]   ;;  %v3045_v18 = vadd.f32 %v2865_v22, %v13933_v3  ;;  %v2867_v10 = vadd.f32 %v14179_v26, %v2793_v24  ;;  %v983_v27 = vadd.f32 %v16023_v12, %v16022_v38  ;;  %v11882_v13 = vld [vmem:[%s15990_s1 + $0xae8] ss:$12 sps:$4 sm:$0xff]   ;;  %v11854_v41 = vld [vmem:[%s15990_s1 + $0xbd0] ss:$12 sps:$4 sm:$0xff]  }
 0x1ae   : > { %v14338_v46 = vpop.f32.mrf.mxu0  ;;  %11272 = vmatprep.subr.bf16.mxu0 %v11863_v2  ;;  %3067 = vst [vmem:[#allocation3 + $0x80] sm:$0xff] %v3043_v23  ;;  %v2795_v9 = vpop.f32.mrf.mxu1  ;;  %v6926_v3 = vsel %vm12260_vm8, %v10385_v54, %v6925_v4  ;;  %v10878_v26 = vadd.f32 %v14285_v6, %v14265_v61  ;;  %v11850_v11 = vld [vmem:[%s15990_s1 + $0xbe8] ss:$12 sps:$4 sm:$0xff]   ;;  %v6946_v15 = vsel %vm12266_vm9, %v10387_v40, %v6945_v5  ;;  %v5111_v22 = vld [vmem:[#allocation2 + $0x3c] sm:$0xff]  ;;  %v6891_v38 = vld [vmem:[%s12221_s27 + $0x18c] sm:$0xee] }
 0x1af   : > { %3069 = vst [vmem:[#allocation3 + $0x90] sm:$0xff] %v3045_v18  ;;  %11013 = vmatpush3.bf16.msra.mxu1 %v11846_v33  ;;  %v2869_v62 = vadd.f32 %v14192_v53, %v2795_v9  ;;  %6930 = vst.msk [vmem:[#allocation2 + $0x20] sm:$0xf] %vm253_vm0, %v6926_v3  ;;  %v11856_v61 = vld [vmem:[%s15990_s1 + $0xbd4] ss:$12 sps:$4 sm:$0xff]   ;;  %v2116_v53 = vadd.f32 %v1938_v20, %v983_v27  ;;  %v10875_v27 = vadd.f32 %v14253_v30, %v14241_v25  ;;  %v3014_v3 = vld [vmem:[#allocation3 + $0x58] sm:$0xff] }
 0x1b0   : > { %v14350_v7 = vpop.f32.mrf.mxu0  ;;  %v2797_v29 = vpop.f32.mrf.mxu1  ;;  %6523 = vmatprep.subr.bf16.mxu1 %v11852_v50  ;;  %6950 = vst.msk [vmem:[#allocation2 + $0x2c] sm:$0xf] %vm253_vm0, %v6946_v15  ;;  %v5109_v23 = vld [vmem:[#allocation2 + $0x30] sm:$0xff]  ;;  %v10872_v50 = vadd.f32 %v14228_v44, %v14218_v56  ;;  %v3011_v54 = vld [vmem:[#allocation3 + $0x40] sm:$0xff]  ;;  %v6893_v12 = vld [vmem:[%s12221_s27 + $0x198] sm:$0x11] }
 0x1b1   : > { %11273 = vmatpush3.bf16.msra.mxu0 %v11863_v2  ;;  %v3046_v2 = vadd.f32 %v2867_v10, %v13952_v32  ;;  %v3048_v6 = vadd.f32 %v2869_v62, %v13975_v28  ;;  %v2871_v33 = vadd.f32 %v14201_v52, %v2797_v29  ;;  %v11888_v28 = vld [vmem:[%s15990_s1 + $0xd0c] ss:$12 sps:$4 sm:$0xff]   ;;  %v10881_v52 = vadd.f32 %v14306_v58, %v14291_v35  ;;  %v3005_v4 = vld [vmem:[#allocation3 + $0x10] sm:$0xff]  ;;  %v6952_v30 = vld [vmem:[%s12221_s27 + $0x1e8] sm:$0x8] }
 0x1b2   : > { %v14361_v43 = vpop.f32.mrf.mxu0  ;;  %11274 = vmatprep.subr.bf16.mxu0 %v11872_v42  ;;  %5769 = vmatmul.mubr.bf16.vlgmr.msra.gmra.mxu1 %v14293_v63  ;;  %v11232_v39 = vpop.f32.mrf.mxu1  ;;  %v11862_v63 = vld [vmem:[%s15990_s1 + $0xbbc] ss:$12 sps:$4 sm:$0xff]   ;;  %v14403_v40 = vcombine.low %v5109_v23, %v5111_v22  ;;  %v6873_v58 = vld [vmem:[%s12221_s27 + $0x174] sm:$0x77]  ;;  %v11866_v15 = vld [vmem:[%s15990_s1 + $0xba4] ss:$12 sps:$4 sm:$0xff]  }
 0x1b3   : > { %3070 = vst [vmem:[#allocation3 + $0x98] sm:$0xff] %v3046_v2  ;;  %3072 = vst [vmem:[#allocation3 + $0xa8] sm:$0xff] %v3048_v6  ;;  %v3049_v56 = vadd.f32 %v2871_v33, %v2116_v53  ;;  %6524 = vmatpush1.bf16.msra.mxu1 %v11850_v11  ;;  %v2981_v44 = vadd.f32 %v11232_v39, %v10878_v26  ;;  %5776 = vmatprep.mubr.bf16.mxu1 %v14303_v49  ;;  %v6871_v35 = vld [vmem:[%s12221_s27 + $0x168] sm:$0x88]  ;;  %v11860_v10 = vld [vmem:[%s15990_s1 + $0xbb8] ss:$12 sps:$4 sm:$0xff]  }
 0x1b4   : > { %5633 = vmatmul.mubr.bf16.gmra.mxu0 %v14340_v51  ;;  %v10888_v32 = vpop.f32.mrf.mxu0  ;;  %6525 = vmatprep.subr.bf16.mxu1 %v11856_v61  ;;  %v10380_v49 = vrot.slane %v6871_v35, 11  ;;  %v6881_v5 = vrot.slane %v6873_v58, 7  ;;  %v10382_v26 = vrot.slane %v6891_v38, 9  ;;  %v6901_v2 = vrot.slane %v6893_v12, 5  ;;  %v6954_v61 = vld [vmem:[%s12221_s27 + $0x1f4] sm:$0x7] }
 0x1b5   : > { %5642 = vmatprep.mubr.bf16.mxu0 %v14357_v0  ;;  %11275 = vmatpush3.bf16.msra.mxu0 %v11872_v42  ;;  %v2972_v42 = vpop.f32.mrf.mxu1  ;;  %3073 = vst [vmem:[#allocation3 + $0xb0] sm:$0xff] %v3049_v56  ;;  %v3035_v20 = vadd.f32 %v3011_v54, %v2981_v44  ;;  %v14425_v53 = vld [vmem:[%s12221_s27 + $0x180] sm:$0xcc]  ;;  %v10884_v6 = vadd.f32 %v14338_v46, %v14325_v48  ;;  %v10389_v22 = vrot.slane %v6952_v30, 11  ;;  %v6972_v39 = vld [vmem:[%s12221_s27 + $0x20c] sm:$0xe] }
 0x1b6   : > { %v10889_v24 = vpop.f32.mrf.mxu0  ;;  %11276 = vmatprep.subr.bf16.mxu0 %v11882_v13  ;;  %v2973_v18 = vadd.f32 %v10872_v50, %v2972_v42  ;;  %v6882_v25 = vsel %vm12260_vm8, %v10380_v49, %v6881_v5  ;;  %v6902_v23 = vsel %vm12266_vm9, %v10382_v26, %v6901_v2  ;;  %v6965_v50 = vrot.slane %v6954_v61, 7  ;;  %v6974_v54 = vld [vmem:[%s12221_s27 + $0x218] sm:$0x1]  ;;  %v3023_v56 = vld [vmem:[#allocation3 + $0xa0] sm:$0xff]  ;;  %v3017_v12 = vld [vmem:[#allocation3 + $0x70] sm:$0xff] }
 0x1b7   : > { %v11233_v9 = vpop.f32.mrf.mxu1  ;;  %3059 = vst.msk [vmem:[#allocation3 + $0x40] sm:$0xff] %vm826_vm10, %v3035_v20  ;;  %6526 = vmatpush1.bf16.msra.mxu1 %v11854_v41  ;;  %v10890_v11 = vadd.f32 %v10889_v24, %v10888_v32  ;;  %v3008_v32 = vld [vmem:[#allocation3 + $0x28] sm:$0xff]  ;;  %6889 = vst [vmem:[#allocation2] sm:$0xff] %v6882_v25  ;;  %v10391_v48 = vrot.slane %v6972_v39, 9  ;;  %v6985_v46 = vrot.slane %v6974_v54, 5  ;;  %v10887_v49 = vadd.f32 %v14361_v43, %v14350_v7  ;;  %v3026_v2 = vld [vmem:[#allocation3 + $0xb8] sm:$0xff] }
 0x1b8   : > { %v10891_v16 = vpop.f32.mrf.mxu0  ;;  %v3029_v62 = vadd.f32 %v3005_v4, %v2973_v18  ;;  %6527 = vmatprep.subr.bf16.mxu1 %v11862_v63  ;;  %v14435_v41 = vld [vmem:[%s12221_s27 + $0x18c] sm:$0x33]  ;;  %6909 = vst [vmem:[#allocation2 + $0xc] sm:$0xff] %v6902_v23  ;;  %v14440_v63 = vld [vmem:[#allocation2 + $0x38] ss:$12 sps:$4 sm:$0xff]   ;;  %v6966_v42 = vsel %vm12260_vm8, %v10389_v22, %v6965_v50 }
 0x1b9   : > { %11277 = vmatpush3.bf16.msra.mxu0 %v11882_v13  ;;  %v2984_v13 = vadd.f32 %v11233_v9, %v10881_v52  ;;  %v2975_v33 = vpop.f32.mrf.mxu1  ;;  %v11864_v58 = vld [vmem:[%s15990_s1 + $0xba0] ss:$12 sps:$4 sm:$0xff]   ;;  %6970 = vst.msk [vmem:[#allocation2 + $0x38] sm:$0xf] %vm253_vm0, %v6966_v42  ;;  %v14455_v18 = vld [vmem:[#allocation2 + $0x48] ss:$12 sps:$4 sm:$0xff]  }
 0x1ba   : > { %6604 = vmatprep.subr.bf16.mxu0 %v11888_v28  ;;  %v10892_v29 = vpop.f32.mrf.mxu0  ;;  %3053 = vst.msk [vmem:[#allocation3 + $0x10] sm:$0xff] %vm826_vm10, %v3029_v62  ;;  %v2976_v28 = vadd.f32 %v10875_v27, %v2975_v33  ;;  %5777 = vmatmul.mubr.bf16.gmra.mxu1 %v14340_v51  ;;  %v6986_v51 = vsel %vm12266_vm9, %v10391_v48, %v6985_v46  ;;  %v5952_v38 = vrot.slane %v14435_v41, 6  ;;  %v11869_v9 = vld [vmem:[%s15990_s1 + $0xb88] ss:$12 sps:$4 sm:$0xff]   ;;  %v11873_v30 = vld [vmem:[%s15990_s1 + $0xb70] ss:$12 sps:$4 sm:$0xff]  }
 0x1bb   : > { %v3038_v24 = vadd.f32 %v3014_v3, %v2984_v13  ;;  %v11236_v52 = vpop.f32.mrf.mxu1  ;;  %v10893_v44 = vadd.f32 %v10892_v29, %v10891_v16  ;;  %6528 = vmatpush1.bf16.msra.mxu1 %v11860_v10  ;;  %v11871_v16 = vld [vmem:[%s15990_s1 + $0xb8c] ss:$12 sps:$4 sm:$0xff]   ;;  %5784 = vmatprep.mubr.bf16.mxu1 %v14357_v0  ;;  %6990 = vst.msk [vmem:[#allocation2 + $0x44] sm:$0xf] %vm253_vm0, %v6986_v51  ;;  %v10212_v10 = vrot.slane %v14425_v53, 10 }
 0x1bc   : > { %5643 = vmatmul.mubr.bf16.gmra.mxu0 %v14403_v40  ;;  %v3032_v4 = vadd.f32 %v3008_v32, %v2976_v28  ;;  %v2997_v35 = vadd.f32 %v11236_v52, %v10890_v11  ;;  %6529 = vmatprep.subr.bf16.mxu1 %v11866_v15  ;;  %v11875_v7 = vld [vmem:[%s15990_s1 + $0xb74] ss:$12 sps:$4 sm:$0xff]   ;;  %v6911_v43 = vld [vmem:[%s12221_s27 + $0x1a4] sm:$0x88]  ;;  %v6994_v41 = vld [vmem:[%s12221_s27 + $0x230] sm:$0x7] }
 0x1bd   : > { %5652 = vmatprep.mubr.bf16.mxu0 %v14405_v59  ;;  %3062 = vst.msk [vmem:[#allocation3 + $0x58] sm:$0xff] %vm826_vm10, %v3038_v24  ;;  %v2988_v20 = vpop.f32.mrf.mxu1  ;;  %v6913_v13 = vld [vmem:[%s12221_s27 + $0x1b0] sm:$0x77]  ;;  %v10384_v11 = vrot.slane %v6911_v43, 11  ;;  %v6931_v15 = vld [vmem:[%s12221_s27 + $0x1c8] sm:$0xee] }
 0x1be   : > { %3056 = vst.msk [vmem:[#allocation3 + $0x28] sm:$0xff] %vm826_vm10, %v3032_v4  ;;  %v3047_v0 = vadd.f32 %v3023_v56, %v2997_v35  ;;  %v2989_v5 = vadd.f32 %v10884_v6, %v2988_v20  ;;  %v6921_v61 = vrot.slane %v6913_v13, 7  ;;  %v6933_v53 = vld [vmem:[%s12221_s27 + $0x1d4] sm:$0x11]  ;;  %v10386_v6 = vrot.slane %v6931_v15, 9  ;;  %v3020_v33 = vld [vmem:[#allocation3 + $0x88] sm:$0xff] }
 0x1bf   : > { %v11237_v27 = vpop.f32.mrf.mxu1  ;;  %6530 = vmatpush1.bf16.msra.mxu1 %v11864_v58  ;;  %v11881_v23 = vld [vmem:[%s15990_s1 + $0xb5c] ss:$12 sps:$4 sm:$0xff]   ;;  %v6941_v22 = vrot.slane %v6933_v53, 5  ;;  %v11894_v46 = vld [vmem:[%s15990_s1 + $0xcf4] ss:$12 sps:$4 sm:$0xff]   ;;  %v7005_v56 = vrot.slane %v6994_v41, 7 }
 0x1c0   : > { %3071 = vst.msk [vmem:[#allocation3 + $0xa0] sm:$0xff] %vm826_vm10, %v3047_v0  ;;  %v3041_v3 = vadd.f32 %v3017_v12, %v2989_v5  ;;  %v3000_v26 = vadd.f32 %v11237_v27, %v10893_v44  ;;  %6531 = vmatprep.subr.bf16.mxu1 %v11871_v16  ;;  %v11886_v39 = vld [vmem:[%s15990_s1 + $0xd08] ss:$12 sps:$4 sm:$0xff]   ;;  %v6922_v54 = vsel %vm12260_vm8, %v10384_v11, %v6921_v61  ;;  %v14515_v58 = vld [vmem:[#allocation2 + $0x50] ss:$12 sps:$4 sm:$0xff]  }
 0x1c1   : > { %v2991_v62 = vpop.f32.mrf.mxu1  ;;  %v7012_v24 = vld [vmem:[%s12221_s27 + $0x248] sm:$0xe]  ;;  %6929 = vst [vmem:[#allocation2 + $0x18] sm:$0xff] %v6922_v54  ;;  %v6942_v52 = vsel %vm12266_vm9, %v10386_v6, %v6941_v22  ;;  %v7014_v44 = vld [vmem:[%s12221_s27 + $0x254] sm:$0x1] }
 0x1c2   : > { %3065 = vst.msk [vmem:[#allocation3 + $0x70] sm:$0xff] %vm826_vm10, %v3041_v3  ;;  %v3050_v29 = vadd.f32 %v3026_v2, %v3000_v26  ;;  %v2992_v25 = vadd.f32 %v10887_v49, %v2991_v62  ;;  %5785 = vmatmul.mubr.bf16.gmra.mxu1 %v14403_v40  ;;  %v6992_v40 = vld [vmem:[%s12221_s27 + $0x224] sm:$0x8]  ;;  %v14502_v28 = vld [vmem:[%s12221_s27 + $0x168] sm:$0xff]  ;;  %v10395_v42 = vrot.slane %v7012_v24, 9  ;;  %6949 = vst [vmem:[#allocation2 + $0x24] sm:$0xff] %v6942_v52 }
 0x1c3   : > { %v14481_v32 = vpop.f32.mrf.mxu1  ;;  %6532 = vmatpush1.bf16.msra.mxu1 %v11869_v9  ;;  %5792 = vmatprep.mubr.bf16.mxu1 %v14405_v59  ;;  %v10393_v59 = vrot.slane %v6992_v40, 11  ;;  %v7025_v4 = vrot.slane %v7014_v44, 5  ;;  %v11879_v51 = vld [vmem:[%s15990_s1 + $0xb58] ss:$12 sps:$4 sm:$0xff]   ;;  %v11883_v5 = vld [vmem:[%s15990_s1 + $0xb40] ss:$12 sps:$4 sm:$0xff]  }
 0x1c4   : > { %5653 = vmatmul.mubr.bf16.gmra.mxu0 %v14455_v18  ;;  %3074 = vst.msk [vmem:[#allocation3 + $0xb8] sm:$0xff] %vm826_vm10, %v3050_v29  ;;  %v3044_v50 = vadd.f32 %v3020_v33, %v2992_v25  ;;  %6533 = vmatprep.subr.bf16.mxu1 %v11875_v7  ;;  %v11885_v0 = vld [vmem:[%s15990_s1 + $0xb44] ss:$12 sps:$4 sm:$0xff]   ;;  %v11900_v27 = vld [vmem:[%s15990_s1 + $0xcdc] ss:$12 sps:$4 sm:$0xff]  }
 0x1c5   : > { %11278 = vmatprep.mubr.msk.bf16.mxu0 %vm826_vm10, %v13834_v17  ;;  %v14489_v17 = vsel %vm12241_vm7, %v10212_v10, %v5952_v38  ;;  %v14504_v48 = vpop.f32.mrf.mxu1  ;;  %v7006_v16 = vsel %vm12260_vm8, %v10393_v59, %v7005_v56  ;;  %v7026_v10 = vsel %vm12266_vm9, %v10395_v42, %v7025_v4  ;;  %v11892_v38 = vld [vmem:[%s15990_s1 + $0xcf0] ss:$12 sps:$4 sm:$0xff]   ;;  %v6951_v9 = vld [vmem:[%s12221_s27 + $0x1e0] sm:$0x88]  ;;  %v11889_v25 = vld [vmem:[%s15990_s1 + $0xca8] ss:$12 sps:$4 sm:$0xff]  }
 0x1c6   : > { %3068 = vst.msk [vmem:[#allocation3 + $0x88] sm:$0xff] %vm826_vm10, %v3044_v50  ;;  %v14524_v20 = vcombine.high %v14502_v28, %v14489_v17  ;;  %v6953_v3 = vld [vmem:[%s12221_s27 + $0x1ec] sm:$0x77]  ;;  %v10388_v26 = vrot.slane %v6951_v9, 11  ;;  %v11903_v59 = vld [vmem:[%s15990_s1 + $0xc7c] ss:$12 sps:$4 sm:$0xff]  }
 0x1c7   : > { %v14513_v35 = vpop.f32.mrf.mxu1  ;;  %6534 = vmatpush1.bf16.msra.mxu1 %v11873_v30  ;;  %7010 = vst.msk [vmem:[#allocation2 + $0x50] sm:$0xf] %vm253_vm0, %v7006_v16  ;;  %7030 = vst.msk [vmem:[#allocation2 + $0x5c] sm:$0xf] %vm253_vm0, %v7026_v10  ;;  %v6961_v43 = vrot.slane %v6953_v3, 7 }
 0x1c8   : > { %6535 = vmatprep.subr.bf16.mxu1 %v11881_v23  ;;  %v6973_v2 = vld [vmem:[%s12221_s27 + $0x210] sm:$0x11]  ;;  %v11904_v6 = vld [vmem:[%s15990_s1 + $0xcc0] ss:$12 sps:$4 sm:$0xff]   ;;  %v11916_v16 = vld [vmem:[%s15990_s1 + $0xc98] ss:$12 sps:$4 sm:$0xff]  }
 0x1c9   : > { %v14529_v49 = vpop.f32.mrf.mxu1  ;;  %v6981_v13 = vrot.slane %v6973_v2, 5  ;;  %v11906_v15 = vld [vmem:[%s15990_s1 + $0xcc4] ss:$12 sps:$4 sm:$0xff]   ;;  %v6962_v29 = vsel %vm12260_vm8, %v10388_v26, %v6961_v43  ;;  %v11897_v30 = vld [vmem:[%s15990_s1 + $0xc94] ss:$12 sps:$4 sm:$0xff]  }
 0x1ca   : > { %5793 = vmatmul.mubr.bf16.gmra.mxu1 %v14455_v18  ;;  %v11898_v18 = vld [vmem:[%s15990_s1 + $0xcd8] ss:$12 sps:$4 sm:$0xff]   ;;  %6969 = vst [vmem:[#allocation2 + $0x30] sm:$0xff] %v6962_v29  ;;  %v11910_v33 = vld [vmem:[%s15990_s1 + $0xcb0] ss:$12 sps:$4 sm:$0xff]  }
 0x1cb   : > { %v14545_v12 = vpop.f32.mrf.mxu1  ;;  %6536 = vmatpush1.bf16.msra.mxu1 %v11879_v51  ;;  %6555 = vmatprep.mubr.bf16.mxu1 %v14524_v20  ;;  %v6991_v23 = vld [vmem:[%s12221_s27 + $0x21c] sm:$0x88]  ;;  %v6993_v22 = vld [vmem:[%s12221_s27 + $0x228] sm:$0x77] }
 0x1cc   : > { %11279 = vmatmul.mubr.msk.bf16.vlgmr.msra.gmra.mxu0 %vm826_vm10, %v13926_v45  ;;  %v11891_v45 = vld [vmem:[%s15990_s1 + $0xcac] ss:$12 sps:$4 sm:$0xff]   ;;  %6537 = vmatprep.subr.bf16.mxu1 %v11885_v0  ;;  %v7001_v54 = vrot.slane %v6993_v22, 7  ;;  %v11895_v41 = vld [vmem:[%s15990_s1 + $0xc90] ss:$12 sps:$4 sm:$0xff]  }
 0x1cd   : > { %6605 = vmatpush1.bf16.msra.mxu0 %v11886_v39  ;;  %11282 = vmatprep.mubr.msk.bf16.mxu0 %vm826_vm10, %v14007_v55  ;;  %v6971_v55 = vld [vmem:[%s12221_s27 + $0x204] sm:$0xee]  ;;  %v14558_v7 = vpop.f32.mrf.mxu1  ;;  %v10392_v39 = vrot.slane %v6991_v23, 11  ;;  %v7013_v40 = vld [vmem:[%s12221_s27 + $0x24c] sm:$0x11] }
 0x1ce   : > { %6606 = vmatprep.subr.bf16.mxu0 %v11894_v46  ;;  %v10390_v62 = vrot.slane %v6971_v55, 9  ;;  %v7021_v46 = vrot.slane %v7013_v40, 5  ;;  %v11912_v44 = vld [vmem:[%s15990_s1 + $0xbf0] ss:$12 sps:$4 sm:$0xff]   ;;  %v11907_v9 = vld [vmem:[%s15990_s1 + $0xc60] ss:$12 sps:$4 sm:$0xff]  }
 0x1cf   : > { %v14564_v11 = vpop.f32.mrf.mxu1  ;;  %6538 = vmatpush1.bf16.msra.mxu1 %v11883_v5  ;;  %v7002_v56 = vsel %vm12260_vm8, %v10392_v39, %v7001_v54  ;;  %v11917_v5 = vld [vmem:[%s15990_s1 + $0xbd8] ss:$12 sps:$4 sm:$0xff]   ;;  %v11920_v29 = vld [vmem:[%s15990_s1 + $0xc34] ss:$12 sps:$4 sm:$0xff]   ;;  %v11926_v22 = vld [vmem:[%s15990_s1 + $0xc1c] ss:$12 sps:$4 sm:$0xff]  }
 0x1d0   : > { %v6982_v61 = vsel %vm12266_vm9, %v10390_v62, %v6981_v13  ;;  %6539 = vmatprep.subr.bf16.mxu1 %v11891_v45  ;;  %7009 = vst [vmem:[#allocation2 + $0x48] sm:$0xff] %v7002_v56  ;;  %v11915_v55 = vld [vmem:[%s15990_s1 + $0xc4c] ss:$12 sps:$4 sm:$0xff]   ;;  %v11927_v13 = vld [vmem:[%s15990_s1 + $0xc68] ss:$12 sps:$4 sm:$0xff]  }
 0x1d1   : > { %6607 = vmatpush1.bf16.msra.mxu0 %v11892_v38  ;;  %v14579_v53 = vpop.f32.mrf.mxu1  ;;  %6989 = vst [vmem:[#allocation2 + $0x3c] sm:$0xff] %v6982_v61 }
 0x1d2   : > { %6608 = vmatprep.subr.bf16.mxu0 %v11900_v27  ;;  %16024 = vst [vmem:[#allocation8_spill] sm:$0xff] %v14579_v53  ;;  %v11921_v27 = vld [vmem:[%s15990_s1 + $0xc80] ss:$12 sps:$4 sm:$0xff]  }
 0x1d3   : > { %v14592_v50 = vpop.f32.mrf.mxu1  ;;  %6540 = vmatpush2.bf16.msra.mxu1 %v11889_v25 }
 0x1d4   : > { %11283 = vmatmul.mubr.msk.bf16.gmra.mxu0 %vm826_vm10, %v14052_v57  ;;  %v7011_v57 = vld [vmem:[%s12221_s27 + $0x240] sm:$0xee]  ;;  %6541 = vmatprep.subr.bf16.mxu1 %v11897_v30  ;;  %v11918_v30 = vld [vmem:[%s15990_s1 + $0xc30] ss:$12 sps:$4 sm:$0xff]  }
 0x1d5   : > { %6609 = vmatpush1.bf16.msra.mxu0 %v11898_v18  ;;  %6628 = vmatprep.mubr.bf16.mxu0 %v16011_v14  ;;  %v10394_v24 = vrot.slane %v7011_v57, 9  ;;  %v14599_v52 = vpop.f32.mrf.mxu1  ;;  %v11934_v57 = vld [vmem:[%s15990_s1 + $0xb90] ss:$12 sps:$4 sm:$0xff]  }
 0x1d6   : > { %6610 = vmatprep.subr.bf16.mxu0 %v11906_v15 }
 0x1d7   : > { %v7022_v42 = vsel %vm12266_vm9, %v10394_v24, %v7021_v46  ;;  %v14611_v4 = vpop.f32.mrf.mxu1  ;;  %6542 = vmatpush2.bf16.msra.mxu1 %v11895_v41  ;;  %v11936_v24 = vld [vmem:[%s15990_s1 + $0xc38] ss:$12 sps:$4 sm:$0xff]   ;;  %v14706_v46 = vld [vmem:[#allocation2 + $0x8] ss:$12 sps:$4 sm:$0xff]  }
 0x1d8   : > { %7029 = vst [vmem:[#allocation2 + $0x54] sm:$0xff] %v7022_v42  ;;  %6543 = vmatprep.subr.bf16.mxu1 %v11903_v59  ;;  %v7869_v59 = vld [vmem:[%s12221_s27 + $0x17c] sm:$0xc]  ;;  %v7889_v42 = vld [vmem:[%s12221_s27 + $0x1a0] sm:$0xf] }
 0x1d9   : > { %6611 = vmatpush1.bf16.msra.mxu0 %v11904_v6  ;;  %v14619_v51 = vpop.f32.mrf.mxu1  ;;  %v5966_v6 = vld [vmem:[%s12221_s27 + $0x1bc] sm:$0xcc]  ;;  %7891 = vst.msk [vmem:[#allocation2 + $0x14] sm:$0xf] %vm253_vm0, %v7889_v42 }
 0x1da   : > { %11046 = vmatprep.subr.bf16.mxu0 %v11910_v33  ;;  %16025 = vst [vmem:[#allocation5_spill] sm:$0xff] %v14619_v51  ;;  %v5968_v33 = vld [vmem:[%s12221_s27 + $0x1c8] sm:$0x33] }
 0x1db   : > { %v14631_v38 = vpop.f32.mrf.mxu1  ;;  %6544 = vmatpush2.bf16.msra.mxu1 %v11901_v31 }
 0x1dc   : > { %10372 = vmatmul.mubr.msk.bf16.vlgmr.msra.gmra.mxu0 %vm826_vm10, %v14295_v1  ;;  %v3694_v10 = vpop.f32.mrf.mxu0  ;;  %6545 = vmatprep.subr.bf16.mxu1 %v11909_v36 }
 0x1dd   : > { %11047 = vmatpush3.bf16.msra.mxu0 %v11912_v44  ;;  %v3768_v0 = vadd.f32 %v14481_v32, %v3694_v10  ;;  %6638 = vmatprep.mubr.bf16.mxu0 %v16011_v14  ;;  %v14643_v26 = vpop.f32.mrf.mxu1  ;;  %v10557_v44 = vrot.slane %v7869_v59, 10  ;;  %v10214_v10 = vrot.slane %v5966_v6, 10 }
 0x1de   : > { %v3696_v45 = vpop.f32.mrf.mxu0  ;;  %11048 = vmatprep.subr.bf16.mxu0 %v11916_v16 }
 0x1df   : > { %v14640_v32 = vadd.f32 %v3768_v0, %v14195_v34  ;;  %v3770_v3 = vadd.f32 %v14504_v48, %v3696_v45  ;;  %v11923_v34 = vld [vmem:[%s15990_s1 + $0xbc0] ss:$12 sps:$4 sm:$0xff]   ;;  %v14655_v18 = vpop.f32.mrf.mxu1  ;;  %6546 = vmatpush2.bf16.msra.mxu1 %v11907_v9  ;;  %v5976_v0 = vrot.slane %v5968_v33, 6  ;;  %v11931_v45 = vld [vmem:[%s15990_s1 + $0xc04] ss:$12 sps:$4 sm:$0xff]  }
 0x1e0   : > { %v3698_v43 = vpop.f32.mrf.mxu0  ;;  %6547 = vmatprep.subr.bf16.mxu1 %v11915_v55 }
 0x1e1   : > { %v14649_v2 = vadd.f32 %v3770_v3, %v14207_v37  ;;  %11049 = vmatpush3.bf16.msra.mxu0 %v11917_v5  ;;  %v3772_v62 = vadd.f32 %v14513_v35, %v3698_v43  ;;  %v11913_v37 = vld [vmem:[%s15990_s1 + $0xc48] ss:$12 sps:$4 sm:$0xff]   ;;  %v14668_v15 = vpop.f32.mrf.mxu1  ;;  %v11929_v3 = vld [vmem:[%s15990_s1 + $0xc00] ss:$12 sps:$4 sm:$0xff]   ;;  %v11937_v43 = vld [vmem:[%s15990_s1 + $0xb78] ss:$12 sps:$4 sm:$0xff]   ;;  %v5977_v6 = vsel %vm12241_vm7, %v10214_v10, %v5976_v0 }
 0x1e2   : > { %v14657_v48 = vpop.f32.mrf.mxu0  ;;  %11050 = vmatprep.subr.bf16.mxu0 %v11921_v27  ;;  %16026 = vst [vmem:[#allocation13_spill] sm:$0xff] %v14668_v15 }
 0x1e3   : > { %v14666_v35 = vadd.f32 %v3772_v62, %v14221_v47  ;;  %v11928_v47 = vld [vmem:[%s15990_s1 + $0xba8] ss:$12 sps:$4 sm:$0xff]   ;;  %v14687_v23 = vpop.f32.mrf.mxu1  ;;  %6548 = vmatpush2.bf16.msra.mxu1 %v11913_v37 }
 0x1e4   : > { %10373 = vmatmul.mubr.msk.bf16.gmra.mxu0 %vm826_vm10, %v14366_v19  ;;  %v3704_v25 = vpop.f32.mrf.mxu0  ;;  %6549 = vmatprep.subr.bf16.mxu1 %v11920_v29  ;;  %v14743_v62 = vld [vmem:[%s12221_s27 + $0x1a4] sm:$0xff]  ;;  %v11938_v29 = vld [vmem:[%s15990_s1 + $0xc20] ss:$12 sps:$4 sm:$0xff]  }
 0x1e5   : > { %11051 = vmatpush3.bf16.msra.mxu0 %v11923_v34  ;;  %v14679_v61 = vadd.f32 %v14545_v12, %v3704_v25  ;;  %6648 = vmatprep.mubr.bf16.mxu0 %v16011_v14  ;;  %v11932_v12 = vld [vmem:[%s15990_s1 + $0xc50] ss:$12 sps:$4 sm:$0xff]   ;;  %v14701_v40 = vpop.f32.mrf.mxu1  ;;  %v5992_v25 = vld [vmem:[%s12221_s27 + $0x204] sm:$0x33] }
 0x1e6   : > { %v3706_v39 = vpop.f32.mrf.mxu0  ;;  %11052 = vmatprep.subr.bf16.mxu0 %v11927_v13  ;;  %v5990_v34 = vld [vmem:[%s12221_s27 + $0x1f8] sm:$0xcc]  ;;  %v6000_v0 = vrot.slane %v5992_v25, 6 }
 0x1e7   : > { %v14696_v54 = vadd.f32 %v14558_v7, %v3706_v39  ;;  %v7871_v7 = vld [vmem:[%s12221_s27 + $0x188] sm:$0x3]  ;;  %v14714_v16 = vpop.f32.mrf.mxu1  ;;  %6550 = vmatpush2.bf16.msra.mxu1 %v11918_v30  ;;  %v11935_v13 = vld [vmem:[%s15990_s1 + $0xd10] ss:$12 sps:$4 sm:$0xff]   ;;  %v10216_v10 = vrot.slane %v5990_v34, 10 }
 0x1e8   : > { %v3708_v41 = vpop.f32.mrf.mxu0  ;;  %v7882_v36 = vrot.slane %v7871_v7, 6  ;;  %6551 = vmatprep.subr.bf16.mxu1 %v11926_v22  ;;  %v11942_v39 = vld [vmem:[%s15990_s1 + $0xc08] ss:$12 sps:$4 sm:$0xff]  }
 0x1e9   : > { %11053 = vmatpush3.bf16.msra.mxu0 %v11928_v47  ;;  %v14710_v56 = vadd.f32 %v14564_v11, %v3708_v41  ;;  %v11924_v11 = vld [vmem:[%s15990_s1 + $0xc18] ss:$12 sps:$4 sm:$0xff]   ;;  %v14722_v5 = vpop.f32.mrf.mxu1  ;;  %v11940_v47 = vld [vmem:[%s15990_s1 + $0xb60] ss:$12 sps:$4 sm:$0xff]  }
 0x1ea   : > { %v14716_v31 = vpop.f32.mrf.mxu0  ;;  %11054 = vmatprep.subr.bf16.mxu0 %v11932_v12  ;;  %v7883_v9 = vsel %vm12241_vm7, %v10557_v44, %v7882_v36  ;;  %v7895_v41 = vld [vmem:[%s12221_s27 + $0x1c4] sm:$0x3]  ;;  %v7913_v36 = vld [vmem:[%s12221_s27 + $0x1dc] sm:$0xf] }
 0x1eb   : > { %16027 = vst [vmem:[#allocation14_spill] sm:$0xff] %v14716_v31  ;;  %7887 = vst.msk [vmem:[#allocation2 + $0x8] sm:$0xf] %vm253_vm0, %v7883_v9  ;;  %6552 = vmatpush2.bf16.msra.mxu1 %v11924_v11  ;;  %v7906_v42 = vrot.slane %v7895_v41, 6  ;;  %v14779_v11 = vld [vmem:[%s12221_s27 + $0x234] sm:$0xcc] }
 0x1ec   : > { %10374 = vmatmul.mubr.msk.bf16.gmra.mxu0 %vm826_vm10, %v14440_v63  ;;  %v3714_v27 = vpop.f32.mrf.mxu0  ;;  %6553 = vmatprep.subr.bf16.mxu1 %v11931_v45  ;;  %v10218_v25 = vrot.slane %v14779_v11, 10  ;;  %v7917_v11 = vld [vmem:[%s12221_s27 + $0x1f4] sm:$0xc] }
 0x1ed   : > { %11055 = vmatpush3.bf16.msra.mxu0 %v11934_v57  ;;  %v14735_v55 = vadd.f32 %v14592_v50, %v3714_v27  ;;  %6658 = vmatprep.mubr.bf16.mxu0 %v16011_v14  ;;  %v10924_v50 = vpop.f32.mrf.mxu1  ;;  %v7893_v57 = vld [vmem:[%s12221_s27 + $0x1b8] sm:$0xc] }
 0x1ee   : > { %v3716_v37 = vpop.f32.mrf.mxu0  ;;  %11056 = vmatprep.subr.bf16.mxu0 %v11936_v24  ;;  %v10300_v24 = vcombine.low %v14502_v28, %v14489_v17  ;;  %v10559_v44 = vrot.slane %v7893_v57, 10  ;;  %v11941_v28 = vld [vmem:[%s15990_s1 + $0xcf8] ss:$12 sps:$4 sm:$0xff]  }
 0x1ef   : > { %v14754_v30 = vadd.f32 %v14599_v52, %v3716_v37  ;;  %v10925_v22 = vpop.f32.mrf.mxu1  ;;  %v14767_v52 = vld [vmem:[#allocation2 + $0x20] ss:$12 sps:$4 sm:$0xff]   ;;  %6554 = vmatpush2.bf16.msra.mxu1 %v11929_v3  ;;  %v11943_v3 = vld [vmem:[%s15990_s1 + $0xb48] ss:$12 sps:$4 sm:$0xff]  }
 0x1f0   : > { %v3718_v33 = vpop.f32.mrf.mxu0  ;;  %7915 = vst.msk [vmem:[#allocation2 + $0x2c] sm:$0xf] %vm253_vm0, %v7913_v36  ;;  %11286 = vmatprep.subr.bf16.mxu1 %v11935_v13  ;;  %v7907_v27 = vsel %vm12241_vm7, %v10559_v44, %v7906_v42  ;;  %v11950_v44 = vld [vmem:[%s15990_s1 + $0xdb4] ss:$12 sps:$4 sm:$0xff]   ;;  %v14826_v42 = vcombine.low %v14743_v62, %v5977_v6 }
 0x1f1   : > { %11057 = vmatpush3.bf16.msra.mxu0 %v11937_v43  ;;  %v14765_v12 = vadd.f32 %v14611_v4, %v3718_v33  ;;  %v10927_v7 = vpop.f32.mrf.mxu1  ;;  %v10304_v4 = vcombine.high %v14743_v62, %v5977_v6  ;;  %7911 = vst.msk [vmem:[#allocation2 + $0x20] sm:$0xf] %vm253_vm0, %v7907_v27  ;;  %v14797_v43 = vld [vmem:[%s12221_s27 + $0x1e0] sm:$0xff]  ;;  %v6001_v33 = vsel %vm12241_vm7, %v10216_v10, %v6000_v0  ;;  %v7937_v27 = vld [vmem:[%s12221_s27 + $0x218] sm:$0xf] }
 0x1f2   : > { %v14773_v59 = vpop.f32.mrf.mxu0  ;;  %11058 = vmatprep.subr.bf16.mxu0 %v11938_v29  ;;  %6556 = vmatmul.mubr.bf16.vlgmr.msra.gmra.mxu1 %v10300_v24  ;;  %v6016_v29 = vld [vmem:[%s12221_s27 + $0x240] sm:$0x33] }
 0x1f3   : > { %16028 = vst [vmem:[#allocation12_spill] sm:$0xff] %v14773_v59  ;;  %v10928_v45 = vpop.f32.mrf.mxu1  ;;  %11287 = vmatpush3.bf16.msra.mxu1 %v11935_v13  ;;  %6565 = vmatprep.mubr.bf16.mxu1 %v10304_v4  ;;  %v11947_v13 = vld [vmem:[%s15990_s1 + $0xce0] ss:$12 sps:$4 sm:$0xff]   ;;  %v14832_v0 = vld [vmem:[#allocation2 + $0x38] ss:$12 sps:$4 sm:$0xff]  }
 0x1f4   : > { %10375 = vmatmul.mubr.msk.bf16.gmra.mxu0 %vm826_vm10, %v14515_v58  ;;  %v3724_v17 = vpop.f32.mrf.mxu0  ;;  %11288 = vmatprep.subr.bf16.mxu1 %v11941_v28  ;;  %7939 = vst.msk [vmem:[#allocation2 + $0x44] sm:$0xf] %vm253_vm0, %v7937_v27 }
 0x1f5   : > { %11059 = vmatpush3.bf16.msra.mxu0 %v11940_v47  ;;  %v14789_v9 = vadd.f32 %v14631_v38, %v3724_v17  ;;  %6701 = vmatprep.mubr.bf16.mxu0 %v14524_v20  ;;  %v14799_v37 = vpop.f32.mrf.mxu1  ;;  %v11946_v38 = vld [vmem:[%s15990_s1 + $0xdcc] ss:$12 sps:$4 sm:$0xff]   ;;  %v11944_v47 = vld [vmem:[%s15990_s1 + $0xdc8] ss:$12 sps:$4 sm:$0xff]  }
 0x1f6   : > { %v3726_v34 = vpop.f32.mrf.mxu0  ;;  %11060 = vmatprep.subr.bf16.mxu0 %v11942_v39 }
 0x1f7   : > { %v14807_v20 = vadd.f32 %v14643_v26, %v3726_v34  ;;  %v14814_v57 = vpop.f32.mrf.mxu1  ;;  %v10926_v26 = vadd.f32 %v10925_v22, %v10924_v50  ;;  %v7919_v50 = vld [vmem:[%s12221_s27 + $0x200] sm:$0x3]  ;;  %11289 = vmatpush3.bf16.msra.mxu1 %v11941_v28  ;;  %v10561_v22 = vrot.slane %v7917_v11, 10  ;;  %v11954_v34 = vld [vmem:[%s15990_s1 + $0xcc8] ss:$12 sps:$4 sm:$0xff]   ;;  %v10920_v28 = vadd.f32 %v14701_v40, %v14687_v23 }
 0x1f8   : > { %v3728_v39 = vpop.f32.mrf.mxu0  ;;  %v7930_v17 = vrot.slane %v7919_v50, 6  ;;  %11290 = vmatprep.subr.bf16.mxu1 %v11947_v13  ;;  %v3944_v11 = vld [vmem:[#allocation3 + $0x40] sm:$0xff]  ;;  %v11953_v23 = vld [vmem:[%s15990_s1 + $0xd9c] ss:$12 sps:$4 sm:$0xff]  }
 0x1f9   : > { %11061 = vmatpush3.bf16.msra.mxu0 %v11943_v3  ;;  %v14820_v41 = vadd.f32 %v14655_v18, %v3728_v39  ;;  %v14830_v10 = vpop.f32.mrf.mxu1  ;;  %v14837_v18 = vcombine.high %v14797_v43, %v6001_v33  ;;  %v6024_v3 = vrot.slane %v6016_v29, 6  ;;  %v14852_v29 = vld [vmem:[%s12221_s27 + $0x21c] sm:$0xff] }
 0x1fa   : > { %v14828_v36 = vpop.f32.mrf.mxu0  ;;  %7520 = vmatprep.subr.bf16.mxu0 %v11946_v38  ;;  %v10929_v38 = vadd.f32 %v10928_v45, %v10927_v7  ;;  %6566 = vmatmul.mubr.bf16.gmra.mxu1 %v14826_v42  ;;  %v7931_v40 = vsel %vm12241_vm7, %v10561_v22, %v7930_v17  ;;  %v11963_v22 = vld [vmem:[%s15990_s1 + $0xeec] ss:$12 sps:$4 sm:$0xff]   ;;  %v10923_v17 = vadd.f32 %v14722_v5, %v14714_v16  ;;  %v11957_v16 = vld [vmem:[%s15990_s1 + $0xd84] ss:$12 sps:$4 sm:$0xff]  }
 0x1fb   : > { %16029 = vst [vmem:[#allocation10_spill] sm:$0xff] %v14828_v36  ;;  %v14840_v6 = vpop.f32.mrf.mxu1  ;;  %6575 = vmatprep.mubr.bf16.mxu1 %v14837_v18  ;;  %11291 = vmatpush3.bf16.msra.mxu1 %v11947_v13  ;;  %7935 = vst.msk [vmem:[#allocation2 + $0x38] sm:$0xf] %vm253_vm0, %v7931_v40 }
 0x1fc   : > { %6702 = vmatmul.mubr.bf16.vlgmr.msra.gmra.mxu0 %v10300_v24  ;;  %v11248_v62 = vpop.f32.mrf.mxu0  ;;  %v11948_v24 = vld [vmem:[%s15990_s1 + $0xdb0] ss:$12 sps:$4 sm:$0xff]   ;;  %11292 = vmatprep.subr.bf16.mxu1 %v11954_v34 }
 0x1fd   : > { %7521 = vmatpush1.bf16.msra.mxu0 %v11944_v47  ;;  %v3914_v39 = vadd.f32 %v11248_v62, %v10926_v26  ;;  %6709 = vmatprep.mubr.bf16.mxu0 %v10304_v4  ;;  %v10936_v15 = vpop.f32.mrf.mxu1  ;;  %v3938_v4 = vld [vmem:[#allocation3 + $0x10] sm:$0xff]  ;;  %v14864_v47 = vsel %vm12241_vm7, %v10218_v25, %v6024_v3  ;;  %v11951_v25 = vld [vmem:[%s15990_s1 + $0xd98] ss:$12 sps:$4 sm:$0xff]   ;;  %v14876_v3 = vcombine.low %v14797_v43, %v6001_v33 }
 0x1fe   : > { %v3905_v50 = vpop.f32.mrf.mxu0  ;;  %7522 = vmatprep.subr.bf16.mxu0 %v11950_v44  ;;  %v3947_v44 = vld [vmem:[#allocation3 + $0x58] sm:$0xff]  ;;  %v10310_v43 = vcombine.high %v14852_v29, %v14864_v47 }
 0x1ff   : > { %v3968_v7 = vadd.f32 %v3944_v11, %v3914_v39  ;;  %v3906_v45 = vadd.f32 %v10920_v28, %v3905_v50  ;;  %v10937_v27 = vpop.f32.mrf.mxu1  ;;  %v3941_v11 = vld [vmem:[#allocation3 + $0x28] sm:$0xff]  ;;  %11293 = vmatpush3.bf16.msra.mxu1 %v11954_v34  ;;  %v14886_v33 = vld [vmem:[#allocation2 + $0x50] ss:$12 sps:$4 sm:$0xff]  }
 0x200   : > { %v11249_v26 = vpop.f32.mrf.mxu0  ;;  %v10938_v28 = vadd.f32 %v10937_v27, %v10936_v15  ;;  %v10932_v15 = vadd.f32 %v14814_v57, %v14799_v37  ;;  %7601 = vmatprep.subr.bf16.mxu1 %v11963_v22  ;;  %v7961_v37 = vld [vmem:[%s12221_s27 + $0x254] sm:$0xf]  ;;  %v11955_v34 = vld [vmem:[%s15990_s1 + $0xd80] ss:$12 sps:$4 sm:$0xff]  }
 0x201   : > { %3992 = vst.msk [vmem:[#allocation3 + $0x40] sm:$0xff] %vm826_vm10, %v3968_v7  ;;  %v3962_v13 = vadd.f32 %v3938_v4, %v3906_v45  ;;  %7523 = vmatpush1.bf16.msra.mxu0 %v11948_v24  ;;  %v3917_v62 = vadd.f32 %v11249_v26, %v10929_v38  ;;  %v10939_v50 = vpop.f32.mrf.mxu1  ;;  %v7941_v24 = vld [vmem:[%s12221_s27 + $0x230] sm:$0xc]  ;;  %v11960_v22 = vld [vmem:[%s15990_s1 + $0xd6c] ss:$12 sps:$4 sm:$0xff]  }
 0x202   : > { %v3908_v39 = vpop.f32.mrf.mxu0  ;;  %7524 = vmatprep.subr.bf16.mxu0 %v11953_v23  ;;  %v7943_v23 = vld [vmem:[%s12221_s27 + $0x23c] sm:$0x3]  ;;  %v10563_v45 = vrot.slane %v7941_v24, 10  ;;  %7963 = vst.msk [vmem:[#allocation2 + $0x5c] sm:$0xf] %vm253_vm0, %v7961_v37  ;;  %6576 = vmatmul.mubr.bf16.gmra.mxu1 %v14876_v3  ;;  %v3953_v37 = vld [vmem:[#allocation3 + $0x88] sm:$0xff] }
 0x203   : > { %3986 = vst.msk [vmem:[#allocation3 + $0x10] sm:$0xff] %vm826_vm10, %v3962_v13  ;;  %v3971_v5 = vadd.f32 %v3947_v44, %v3917_v62  ;;  %v3909_v38 = vadd.f32 %v10923_v17, %v3908_v39  ;;  %v10940_v7 = vpop.f32.mrf.mxu1  ;;  %v7954_v4 = vrot.slane %v7943_v23, 6  ;;  %v10935_v13 = vadd.f32 %v14840_v6, %v14830_v10  ;;  %6585 = vmatprep.mubr.bf16.mxu1 %v10310_v43  ;;  %v3959_v39 = vld [vmem:[#allocation3 + $0xb8] sm:$0xff]  ;;  %v7870_v24 = vld [vmem:[%s12221_s27 + $0x180] sm:$0x33] }
 0x204   : > { %6710 = vmatmul.mubr.bf16.gmra.mxu0 %v14826_v42  ;;  %v11252_v40 = vpop.f32.mrf.mxu0  ;;  %v10941_v44 = vadd.f32 %v10940_v7, %v10939_v50  ;;  %v3956_v42 = vld [vmem:[#allocation3 + $0xa0] sm:$0xff] }
 0x205   : > { %3995 = vst.msk [vmem:[#allocation3 + $0x58] sm:$0xff] %vm826_vm10, %v3971_v5  ;;  %v3965_v57 = vadd.f32 %v3941_v11, %v3909_v38  ;;  %7525 = vmatpush1.bf16.msra.mxu0 %v11951_v25  ;;  %v3930_v26 = vadd.f32 %v11252_v40, %v10938_v28  ;;  %6717 = vmatprep.mubr.bf16.mxu0 %v14837_v18  ;;  %v3950_v28 = vld [vmem:[#allocation3 + $0x70] sm:$0xff]  ;;  %v14917_v5 = vld [vmem:[#allocation2] ss:$12 sps:$4 sm:$0xff]  }
 0x206   : > { %v3921_v27 = vpop.f32.mrf.mxu0  ;;  %7526 = vmatprep.subr.bf16.mxu0 %v11957_v16  ;;  %v7955_v17 = vsel %vm12241_vm7, %v10563_v45, %v7954_v4  ;;  %v11958_v11 = vld [vmem:[%s15990_s1 + $0xd68] ss:$12 sps:$4 sm:$0xff]   ;;  %v10309_v16 = vcombine.low %v14852_v29, %v14864_v47  ;;  %v7878_v45 = vrot.slane %v7870_v24, 6  ;;  %v7888_v4 = vld [vmem:[%s12221_s27 + $0x198] sm:$0xff] }
 0x207   : > { %3989 = vst.msk [vmem:[#allocation3 + $0x28] sm:$0xff] %vm826_vm10, %v3965_v57  ;;  %v3980_v18 = vadd.f32 %v3956_v42, %v3930_v26  ;;  %v3922_v62 = vadd.f32 %v10932_v15, %v3921_v27  ;;  %v11966_v50 = vld [vmem:[%s15990_s1 + $0xd54] ss:$12 sps:$4 sm:$0xff]   ;;  %7890 = vst [vmem:[#allocation2 + $0xc] sm:$0xff] %v7888_v4  ;;  %v11964_v47 = vld [vmem:[%s15990_s1 + $0xd50] ss:$12 sps:$4 sm:$0xff]  }
 0x208   : > { %7959 = vst.msk [vmem:[#allocation2 + $0x50] sm:$0xf] %vm253_vm0, %v7955_v17  ;;  %v11253_v25 = vpop.f32.mrf.mxu0  ;;  %v7868_v38 = vld [vmem:[%s12221_s27 + $0x174] sm:$0xcc]  ;;  %v14951_v17 = vld [vmem:[#allocation2 + $0x1c] ss:$12 sps:$4 sm:$0xff]  }
 0x209   : > { %4004 = vst.msk [vmem:[#allocation3 + $0xa0] sm:$0xff] %vm826_vm10, %v3980_v18  ;;  %v3974_v10 = vadd.f32 %v3950_v28, %v3922_v62  ;;  %7527 = vmatpush1.bf16.msra.mxu0 %v11955_v34  ;;  %v3933_v6 = vadd.f32 %v11253_v25, %v10941_v44  ;;  %v10556_v7 = vrot.slane %v7868_v38, 10  ;;  %v11972_v44 = vld [vmem:[%s15990_s1 + $0xd3c] ss:$12 sps:$4 sm:$0xff]   ;;  %v11970_v27 = vld [vmem:[%s15990_s1 + $0xd38] ss:$12 sps:$4 sm:$0xff]  }
 0x20a   : > { %v3924_v15 = vpop.f32.mrf.mxu0  ;;  %7528 = vmatprep.subr.bf16.mxu0 %v11960_v22  ;;  %6586 = vmatmul.mubr.bf16.gmra.mxu1 %v10309_v16  ;;  %v7894_v18 = vld [vmem:[%s12221_s27 + $0x1bc] sm:$0x33]  ;;  %v7912_v62 = vld [vmem:[%s12221_s27 + $0x1d4] sm:$0xff] }
 0x20b   : > { %3998 = vst.msk [vmem:[#allocation3 + $0x70] sm:$0xff] %vm826_vm10, %v3974_v10  ;;  %v3983_v23 = vadd.f32 %v3959_v39, %v3933_v6  ;;  %v3925_v40 = vadd.f32 %v10935_v13, %v3924_v15  ;;  %v7879_v26 = vsel %vm12241_vm7, %v10556_v7, %v7878_v45  ;;  %11294 = vmatprep.mubr.msk.bf16.mxu1 %vm826_vm10, %v14295_v1  ;;  %v7892_v13 = vld [vmem:[%s12221_s27 + $0x1b0] sm:$0xcc]  ;;  %v7902_v39 = vrot.slane %v7894_v18, 6  ;;  %v11976_v15 = vld [vmem:[%s15990_s1 + $0xd20] ss:$12 sps:$4 sm:$0xff]  }
 0x20c   : > { %6718 = vmatmul.mubr.bf16.gmra.mxu0 %v14876_v3  ;;  %v14924_v57 = vpop.f32.mrf.mxu0  ;;  %7886 = vst [vmem:[#allocation2] sm:$0xff] %v7879_v26  ;;  %v14937_v34 = vcombine.low %v7879_v26, %v7888_v4  ;;  %v14939_v42 = vcombine.high %v7879_v26, %v7888_v4  ;;  %v11978_v1 = vld [vmem:[%s15990_s1 + $0xd24] ss:$12 sps:$4 sm:$0xff]   ;;  %v10558_v25 = vrot.slane %v7892_v13, 10  ;;  %7914 = vst [vmem:[#allocation2 + $0x24] sm:$0xff] %v7912_v62 }
 0x20d   : > { %4007 = vst.msk [vmem:[#allocation3 + $0xb8] sm:$0xff] %vm826_vm10, %v3983_v23  ;;  %v3977_v29 = vadd.f32 %v3953_v37, %v3925_v40  ;;  %7529 = vmatpush1.bf16.msra.mxu0 %v11958_v11  ;;  %6725 = vmatprep.mubr.bf16.mxu0 %v10310_v43  ;;  %v11961_v11 = vld [vmem:[%s15990_s1 + $0xee8] ss:$12 sps:$4 sm:$0xff]   ;;  %v11984_v23 = vld [vmem:[%s15990_s1 + $0xe8c] ss:$12 sps:$4 sm:$0xff]  }
 0x20e   : > { %v14932_v3 = vpop.f32.mrf.mxu0  ;;  %7530 = vmatprep.subr.bf16.mxu0 %v11966_v50  ;;  %v11969_v10 = vld [vmem:[%s15990_s1 + $0xed4] ss:$12 sps:$4 sm:$0xff]   ;;  %v7903_v50 = vsel %vm12241_vm7, %v10558_v25, %v7902_v39  ;;  %v11967_v40 = vld [vmem:[%s15990_s1 + $0xed0] ss:$12 sps:$4 sm:$0xff]   ;;  %v11973_v13 = vld [vmem:[%s15990_s1 + $0xeb8] ss:$12 sps:$4 sm:$0xff]  }
 0x20f   : > { %4001 = vst.msk [vmem:[#allocation3 + $0x88] sm:$0xff] %vm826_vm10, %v3977_v29  ;;  %7910 = vst [vmem:[#allocation2 + $0x18] sm:$0xff] %v7903_v50  ;;  %v14975_v38 = vcombine.low %v7903_v50, %v7912_v62  ;;  %v14977_v24 = vcombine.high %v7903_v50, %v7912_v62  ;;  %v11975_v7 = vld [vmem:[%s15990_s1 + $0xebc] ss:$12 sps:$4 sm:$0xff]   ;;  %v14997_v4 = vld [vmem:[#allocation2 + $0x34] ss:$12 sps:$4 sm:$0xff]  }
 0x210   : > { %v14944_v43 = vpop.f32.mrf.mxu0  ;;  %v7918_v37 = vld [vmem:[%s12221_s27 + $0x1f8] sm:$0x33]  ;;  %v11982_v26 = vld [vmem:[%s15990_s1 + $0xe88] ss:$12 sps:$4 sm:$0xff]   ;;  %v11981_v62 = vld [vmem:[%s15990_s1 + $0xea4] ss:$12 sps:$4 sm:$0xff]  }
 0x211   : > { %7531 = vmatpush1.bf16.msra.mxu0 %v11964_v47  ;;  %v7936_v47 = vld [vmem:[%s12221_s27 + $0x210] sm:$0xff]  ;;  %v15029_v50 = vld [vmem:[#allocation2 + $0x4c] ss:$12 sps:$4 sm:$0xff]  }
 0x212   : > { %v14956_v28 = vpop.f32.mrf.mxu0  ;;  %7532 = vmatprep.subr.bf16.mxu0 %v11972_v44  ;;  %11295 = vmatmul.mubr.msk.bf16.vlgmr.msra.gmra.mxu1 %vm826_vm10, %v14366_v19  ;;  %v7916_v19 = vld [vmem:[%s12221_s27 + $0x1ec] sm:$0xcc]  ;;  %v7926_v44 = vrot.slane %v7918_v37, 6  ;;  %7938 = vst [vmem:[#allocation2 + $0x3c] sm:$0xff] %v7936_v47 }
 0x213   : > { %v14949_v22 = vld [vmem:[#allocation2 + $0x4] ss:$12 sps:$4 sm:$0xff]   ;;  %7602 = vmatpush1.bf16.msra.mxu1 %v11961_v11  ;;  %11298 = vmatprep.mubr.msk.bf16.mxu1 %vm826_vm10, %v14440_v63  ;;  %v10560_v29 = vrot.slane %v7916_v19, 10  ;;  %v11979_v19 = vld [vmem:[%s15990_s1 + $0xea0] ss:$12 sps:$4 sm:$0xff]  }
 0x214   : > { %6726 = vmatmul.mubr.bf16.gmra.mxu0 %v10309_v16  ;;  %v14967_v6 = vpop.f32.mrf.mxu0  ;;  %7603 = vmatprep.subr.bf16.mxu1 %v11969_v10  ;;  %v11988_v11 = vld [vmem:[%s15990_s1 + $0xe70] ss:$12 sps:$4 sm:$0xff]  }
 0x215   : > { %7533 = vmatpush1.bf16.msra.mxu0 %v11970_v27  ;;  %7552 = vmatprep.mubr.bf16.mxu0 %v14949_v22  ;;  %v11990_v27 = vld [vmem:[%s15990_s1 + $0xe74] ss:$12 sps:$4 sm:$0xff]   ;;  %v7927_v18 = vsel %vm12241_vm7, %v10560_v29, %v7926_v44  ;;  %v11995_v10 = vld [vmem:[%s15990_s1 + $0xe5c] ss:$12 sps:$4 sm:$0xff]  }
 0x216   : > { %v14981_v16 = vpop.f32.mrf.mxu0  ;;  %7534 = vmatprep.subr.bf16.mxu0 %v11978_v1  ;;  %7934 = vst [vmem:[#allocation2 + $0x30] sm:$0xff] %v7927_v18  ;;  %v15019_v25 = vcombine.low %v7927_v18, %v7936_v47  ;;  %v15021_v39 = vcombine.high %v7927_v18, %v7936_v47 }
 0x217   : > { %7604 = vmatpush1.bf16.msra.mxu1 %v11967_v40  ;;  %v7942_v40 = vld [vmem:[%s12221_s27 + $0x234] sm:$0x33] }
 0x218   : > { %v14995_v45 = vpop.f32.mrf.mxu0  ;;  %7605 = vmatprep.subr.bf16.mxu1 %v11975_v7  ;;  %v7960_v7 = vld [vmem:[%s12221_s27 + $0x24c] sm:$0xff]  ;;  %v7950_v29 = vrot.slane %v7942_v40, 6 }
 0x219   : > { %7535 = vmatpush1.bf16.msra.mxu0 %v11976_v15  ;;  %7962 = vst [vmem:[#allocation2 + $0x54] sm:$0xff] %v7960_v7 }
 0x21a   : > { %v15004_v63 = vpop.f32.mrf.mxu0  ;;  %7536 = vmatprep.subr.bf16.mxu0 %v11984_v23  ;;  %11299 = vmatmul.mubr.msk.bf16.gmra.mxu1 %vm826_vm10, %v14515_v58  ;;  %v7940_v23 = vld [vmem:[%s12221_s27 + $0x228] sm:$0xcc]  ;;  %v11985_v58 = vld [vmem:[%s15990_s1 + $0xe90] ss:$12 sps:$4 sm:$0xff]  }
 0x21b   : > { %16030 = vst [vmem:[#allocation6_spill] sm:$0xff] %v15004_v63  ;;  %7606 = vmatpush1.bf16.msra.mxu1 %v11973_v13  ;;  %7625 = vmatprep.mubr.bf16.mxu1 %v16011_v14  ;;  %v10562_v37 = vrot.slane %v7940_v23, 10  ;;  %v12001_v13 = vld [vmem:[%s15990_s1 + $0xe44] ss:$12 sps:$4 sm:$0xff]   ;;  %v11999_v23 = vld [vmem:[%s15990_s1 + $0xe40] ss:$12 sps:$4 sm:$0xff]  }
 0x21c   : > { %v15017_v1 = vpop.f32.mrf.mxu0  ;;  %7607 = vmatprep.subr.bf16.mxu1 %v11981_v62 }
 0x21d   : > { %7537 = vmatpush2.bf16.msra.mxu0 %v11982_v26  ;;  %v11993_v26 = vld [vmem:[%s15990_s1 + $0xe58] ss:$12 sps:$4 sm:$0xff]   ;;  %v7951_v44 = vsel %vm12241_vm7, %v10562_v37, %v7950_v29 }
 0x21e   : > { %v15033_v15 = vpop.f32.mrf.mxu0  ;;  %7538 = vmatprep.subr.bf16.mxu0 %v11990_v27  ;;  %7958 = vst [vmem:[#allocation2 + $0x48] sm:$0xff] %v7951_v44  ;;  %v15057_v18 = vcombine.low %v7951_v44, %v7960_v7  ;;  %v15059_v62 = vcombine.high %v7951_v44, %v7960_v7  ;;  %v11992_v29 = vld [vmem:[%s15990_s1 + $0xdb8] ss:$12 sps:$4 sm:$0xff]  }
 0x21f   : > { %7608 = vmatpush1.bf16.msra.mxu1 %v11979_v19  ;;  %v12006_v19 = vld [vmem:[%s15990_s1 + $0xe2c] ss:$12 sps:$4 sm:$0xff]  }
 0x220   : > { %v15045_v47 = vpop.f32.mrf.mxu0  ;;  %16032 = vst [vmem:[#allocation16_spill] sm:$0xff] %v15057_v18  ;;  %16033 = vst [vmem:[#allocation17_spill] sm:$0xff] %v15059_v62  ;;  %11094 = vmatprep.subr.bf16.mxu1 %v11985_v58 }
 0x221   : > { %7539 = vmatpush2.bf16.msra.mxu0 %v11988_v11  ;;  %v11987_v11 = vld [vmem:[%s15990_s1 + $0xdd0] ss:$12 sps:$4 sm:$0xff]  }
 0x222   : > { %v15052_v27 = vpop.f32.mrf.mxu0  ;;  %7540 = vmatprep.subr.bf16.mxu0 %v11995_v10  ;;  %10548 = vmatmul.mubr.msk.bf16.vlgmr.msra.gmra.mxu1 %vm826_vm10, %v14706_v46  ;;  %v4691_v40 = vpop.f32.mrf.mxu1 }
 0x223   : > { %16031 = vst [vmem:[#allocation15_spill] sm:$0xff] %v15052_v27  ;;  %11095 = vmatpush3.bf16.msra.mxu1 %v11987_v11  ;;  %v4765_v37 = vadd.f32 %v14924_v57, %v4691_v40  ;;  %7635 = vmatprep.mubr.bf16.mxu1 %v16011_v14  ;;  %v12004_v57 = vld [vmem:[%s15990_s1 + $0xe28] ss:$12 sps:$4 sm:$0xff]  }
 0x224   : > { %v15067_v10 = vpop.f32.mrf.mxu0  ;;  %v4693_v58 = vpop.f32.mrf.mxu1  ;;  %11096 = vmatprep.subr.bf16.mxu1 %v11991_v21  ;;  %v12012_v21 = vld [vmem:[%s15990_s1 + $0xe14] ss:$12 sps:$4 sm:$0xff]  }
 0x225   : > { %7541 = vmatpush2.bf16.msra.mxu0 %v11993_v26  ;;  %v11996_v26 = vld [vmem:[%s15990_s1 + $0xe60] ss:$12 sps:$4 sm:$0xff]   ;;  %v4767_v11 = vadd.f32 %v14932_v3, %v4693_v58 }
 0x226   : > { %v15074_v7 = vpop.f32.mrf.mxu0  ;;  %7542 = vmatprep.subr.bf16.mxu0 %v12001_v13  ;;  %v15090_v13 = vadd.f32 %v4765_v37, %v14640_v32  ;;  %v4695_v40 = vpop.f32.mrf.mxu1  ;;  %v11998_v3 = vld [vmem:[%s15990_s1 + $0xda0] ss:$12 sps:$4 sm:$0xff]  }
 0x227   : > { %v15102_v27 = vadd.f32 %v4767_v11, %v14649_v2  ;;  %11097 = vmatpush3.bf16.msra.mxu1 %v11992_v29  ;;  %v4769_v32 = vadd.f32 %v14944_v43, %v4695_v40  ;;  %v12010_v43 = vld [vmem:[%s15990_s1 + $0xe10] ss:$12 sps:$4 sm:$0xff]  }
 0x228   : > { %v15087_v44 = vpop.f32.mrf.mxu0  ;;  %v15108_v37 = vpop.f32.mrf.mxu1  ;;  %11098 = vmatprep.subr.bf16.mxu1 %v11996_v26  ;;  %v3943_v29 = vld [vmem:[#allocation3 + $0x38] sm:$0xff] }
 0x229   : > { %7543 = vmatpush2.bf16.msra.mxu0 %v11999_v23  ;;  %v3942_v23 = vld [vmem:[#allocation3 + $0x30] sm:$0xff]  ;;  %v15116_v2 = vadd.f32 %v4769_v32, %v14666_v35  ;;  %v12017_v40 = vld [vmem:[%s15990_s1 + $0xdfc] ss:$12 sps:$4 sm:$0xff]  }
 0x22a   : > { %v15096_v36 = vpop.f32.mrf.mxu0  ;;  %7544 = vmatprep.subr.bf16.mxu0 %v12006_v19  ;;  %v12002_v19 = vld [vmem:[%s15990_s1 + $0xe48] ss:$12 sps:$4 sm:$0xff]   ;;  %10549 = vmatmul.mubr.msk.bf16.gmra.mxu1 %vm826_vm10, %v14767_v52  ;;  %v4701_v11 = vpop.f32.mrf.mxu1  ;;  %v3966_v35 = vadd.f32 %v3942_v23, %v14679_v61  ;;  %v3967_v61 = vadd.f32 %v3943_v29, %v14696_v54  ;;  %v12015_v23 = vld [vmem:[%s15990_s1 + $0xdf8] ss:$12 sps:$4 sm:$0xff]  }
 0x22b   : > { %16034 = vst [vmem:[#allocation18_spill] sm:$0xff] %v15096_v36  ;;  %11099 = vmatpush3.bf16.msra.mxu1 %v11998_v3  ;;  %v12003_v32 = vld [vmem:[%s15990_s1 + $0xd88] ss:$12 sps:$4 sm:$0xff]   ;;  %7645 = vmatprep.mubr.bf16.mxu1 %v16011_v14 }
 0x22c   : > { %v15113_v58 = vpop.f32.mrf.mxu0  ;;  %v3945_v36 = vld [vmem:[#allocation3 + $0x48] sm:$0xff]  ;;  %v4703_v51 = vpop.f32.mrf.mxu1  ;;  %11100 = vmatprep.subr.bf16.mxu1 %v12002_v19  ;;  %v12023_v19 = vld [vmem:[%s15990_s1 + $0xde4] ss:$12 sps:$4 sm:$0xff]  }
 0x22d   : > { %7545 = vmatpush2.bf16.msra.mxu0 %v12004_v57  ;;  %v4775_v57 = vadd.f32 %v14967_v6, %v4701_v11  ;;  %v4777_v6 = vadd.f32 %v14981_v16, %v4703_v51  ;;  %v3969_v53 = vadd.f32 %v3945_v36, %v14710_v56  ;;  %v12009_v16 = vld [vmem:[%s15990_s1 + $0xd70] ss:$12 sps:$4 sm:$0xff]   ;;  %v12021_v36 = vld [vmem:[%s15990_s1 + $0xde0] ss:$12 sps:$4 sm:$0xff]  }
 0x22e   : > { %v15123_v26 = vpop.f32.mrf.mxu0  ;;  %7546 = vmatprep.subr.bf16.mxu0 %v12012_v21  ;;  %v12007_v21 = vld [vmem:[%s15990_s1 + $0xe30] ss:$12 sps:$4 sm:$0xff]   ;;  %v4705_v11 = vpop.f32.mrf.mxu1 }
 0x22f   : > { %v15140_v3 = vadd.f32 %v4775_v57, %v3966_v35  ;;  %v15152_v54 = vadd.f32 %v4777_v6, %v3967_v61  ;;  %11101 = vmatpush3.bf16.msra.mxu1 %v12003_v32  ;;  %v4779_v51 = vadd.f32 %v14995_v45, %v4705_v11  ;;  %v3949_v45 = vld [vmem:[#allocation3 + $0x68] sm:$0xff]  ;;  %v12014_v6 = vld [vmem:[%s15990_s1 + $0xd58] ss:$12 sps:$4 sm:$0xff]  }
 0x230   : > { %v15137_v59 = vpop.f32.mrf.mxu0  ;;  %v15158_v29 = vpop.f32.mrf.mxu1  ;;  %11102 = vmatprep.subr.bf16.mxu1 %v12007_v21  ;;  %v12032_v21 = vld [vmem:[%s15990_s1 + $0xef0] ss:$12 sps:$4 sm:$0xff]   ;;  %v12018_v11 = vld [vmem:[%s15990_s1 + $0xe00] ss:$12 sps:$4 sm:$0xff]  }
 0x231   : > { %7547 = vmatpush2.bf16.msra.mxu0 %v12010_v43  ;;  %v3948_v43 = vld [vmem:[#allocation3 + $0x60] sm:$0xff]  ;;  %16035 = vst [vmem:[#allocation19_spill] sm:$0xff] %v15158_v29  ;;  %v15165_v56 = vadd.f32 %v4779_v51, %v3969_v53  ;;  %v3973_v51 = vadd.f32 %v3949_v45, %v14754_v30  ;;  %v3954_v45 = vld [vmem:[#allocation3 + $0x90] sm:$0xff] }
 0x232   : > { %v15146_v63 = vpop.f32.mrf.mxu0  ;;  %7548 = vmatprep.subr.bf16.mxu0 %v12017_v40  ;;  %v12013_v40 = vld [vmem:[%s15990_s1 + $0xe18] ss:$12 sps:$4 sm:$0xff]   ;;  %10550 = vmatmul.mubr.msk.bf16.gmra.mxu1 %vm826_vm10, %v14832_v0  ;;  %v4711_v57 = vpop.f32.mrf.mxu1  ;;  %v3972_v53 = vadd.f32 %v3948_v43, %v14735_v55 }
 0x233   : > { %11103 = vmatpush3.bf16.msra.mxu1 %v12009_v16  ;;  %v4785_v61 = vadd.f32 %v15017_v1, %v4711_v57  ;;  %7655 = vmatprep.mubr.bf16.mxu1 %v16011_v14  ;;  %v3951_v55 = vld [vmem:[#allocation3 + $0x78] sm:$0xff] }
 0x234   : > { %v15163_v35 = vpop.f32.mrf.mxu0  ;;  %11104 = vmatprep.subr.bf16.mxu1 %v12013_v40  ;;  %v12041_v40 = vld [vmem:[%s15990_s1 + $0xed8] ss:$12 sps:$4 sm:$0xff]   ;;  %v3975_v29 = vadd.f32 %v3951_v55, %v14765_v12 }
 0x235   : > { %7549 = vmatpush2.bf16.msra.mxu0 %v12015_v23  ;;  %v4713_v23 = vpop.f32.mrf.mxu1  ;;  %v15189_v16 = vadd.f32 %v4785_v61, %v3972_v53  ;;  %v7035_v61 = vld [vmem:[#allocation2 + $0x18] sm:$0xff] }
 0x236   : > { %v15172_v32 = vpop.f32.mrf.mxu0  ;;  %7550 = vmatprep.subr.bf16.mxu0 %v12023_v19  ;;  %v4787_v1 = vadd.f32 %v15033_v15, %v4713_v23  ;;  %v12020_v15 = vld [vmem:[%s15990_s1 + $0xd40] ss:$12 sps:$4 sm:$0xff]   ;;  %v3955_v23 = vld [vmem:[#allocation3 + $0x98] sm:$0xff] }
 0x237   : > { %v4715_v43 = vpop.f32.mrf.mxu1  ;;  %11105 = vmatpush3.bf16.msra.mxu1 %v12014_v6 }
 0x238   : > { %v15186_v19 = vpop.f32.mrf.mxu0  ;;  %v15198_v31 = vadd.f32 %v4787_v1, %v3973_v51  ;;  %v4789_v30 = vadd.f32 %v15045_v47, %v4715_v43  ;;  %11106 = vmatprep.subr.bf16.mxu1 %v12018_v11  ;;  %v7037_v47 = vld [vmem:[#allocation2 + $0x24] sm:$0xff]  ;;  %v12050_v11 = vld [vmem:[%s15990_s1 + $0xec0] ss:$12 sps:$4 sm:$0xff]   ;;  %v3978_v1 = vadd.f32 %v3954_v45, %v14789_v9  ;;  %v3979_v9 = vadd.f32 %v3955_v23, %v14807_v20 }
 0x239   : > { %7551 = vmatpush2.bf16.msra.mxu0 %v12021_v36  ;;  %v12024_v36 = vld [vmem:[%s15990_s1 + $0xde8] ss:$12 sps:$4 sm:$0xff]   ;;  %v15207_v53 = vpop.f32.mrf.mxu1  ;;  %v15233_v62 = vcombine.low %v7035_v61, %v7037_v47  ;;  %v10974_v20 = vadd.f32 %v15172_v32, %v15163_v35  ;;  %v4941_v35 = vld [vmem:[#allocation3 + $0x40] sm:$0xff] }
 0x23a   : > { %v15192_v57 = vpop.f32.mrf.mxu0  ;;  %11302 = vmatprep.subr.bf16.mxu0 %v12032_v21  ;;  %16036 = vst [vmem:[#allocation20_spill] sm:$0xff] %v15207_v53  ;;  %v15212_v6 = vadd.f32 %v4789_v30, %v3975_v29  ;;  %10551 = vmatmul.mubr.msk.bf16.gmra.mxu1 %vm826_vm10, %v14886_v33  ;;  %v3957_v43 = vld [vmem:[#allocation3 + $0xa8] sm:$0xff] }
 0x23b   : > { %v4721_v51 = vpop.f32.mrf.mxu1  ;;  %11107 = vmatpush3.bf16.msra.mxu1 %v12020_v15  ;;  %7698 = vmatprep.mubr.bf16.mxu1 %v14949_v22  ;;  %v12031_v53 = vld [vmem:[%s15990_s1 + $0xfac] ss:$12 sps:$4 sm:$0xff]   ;;  %v12029_v22 = vld [vmem:[%s15990_s1 + $0xfa8] ss:$12 sps:$4 sm:$0xff]   ;;  %v3981_v47 = vadd.f32 %v3957_v43, %v14820_v41  ;;  %v7041_v43 = vld [vmem:[#allocation2 + $0x3c] sm:$0xff] }
 0x23c   : > { %7553 = vmatmul.mubr.bf16.vlgmr.msra.gmra.mxu0 %v14917_v5  ;;  %v15210_v12 = vpop.f32.mrf.mxu0  ;;  %v4795_v29 = vadd.f32 %v15067_v10, %v4721_v51  ;;  %11108 = vmatprep.subr.bf16.mxu1 %v12024_v36  ;;  %v12059_v61 = vld [vmem:[%s15990_s1 + $0xea8] ss:$12 sps:$4 sm:$0xff]  }
 0x23d   : > { %11303 = vmatpush3.bf16.msra.mxu0 %v12032_v21  ;;  %7562 = vmatprep.mubr.bf16.mxu0 %v14951_v17  ;;  %v12025_v21 = vld [vmem:[%s15990_s1 + $0xd28] ss:$12 sps:$4 sm:$0xff]   ;;  %v4723_v30 = vpop.f32.mrf.mxu1 }
 0x23e   : > { %v15217_v55 = vpop.f32.mrf.mxu0  ;;  %11304 = vmatprep.subr.bf16.mxu0 %v12041_v40  ;;  %v15236_v10 = vadd.f32 %v4795_v29, %v3978_v1  ;;  %v4797_v15 = vadd.f32 %v15074_v7, %v4723_v30  ;;  %v7039_v29 = vld [vmem:[#allocation2 + $0x30] sm:$0xff]  ;;  %v10977_v30 = vadd.f32 %v15192_v57, %v15186_v19 }
 0x23f   : > { %v4725_v36 = vpop.f32.mrf.mxu1  ;;  %11109 = vmatpush3.bf16.msra.mxu1 %v12025_v21  ;;  %v10968_v21 = vadd.f32 %v15123_v26, %v15113_v58  ;;  %v4935_v19 = vld [vmem:[#allocation3 + $0x10] sm:$0xff] }
 0x240   : > { %v15231_v18 = vpop.f32.mrf.mxu0  ;;  %v15250_v23 = vadd.f32 %v4797_v15, %v3979_v9  ;;  %v4799_v7 = vadd.f32 %v15087_v44, %v4725_v36  ;;  %8453 = vmatprep.subr.bf16.mxu1 %v12031_v53  ;;  %v12065_v53 = vld [vmem:[%s15990_s1 + $0x10cc] ss:$12 sps:$4 sm:$0xff]   ;;  %v12040_v15 = vld [vmem:[%s15990_s1 + $0xf7c] ss:$12 sps:$4 sm:$0xff]  }
 0x241   : > { %11305 = vmatpush3.bf16.msra.mxu0 %v12041_v40  ;;  %v12035_v40 = vld [vmem:[%s15990_s1 + $0xf94] ss:$12 sps:$4 sm:$0xff]   ;;  %v15256_v51 = vpop.f32.mrf.mxu1 }
 0x242   : > { %v15242_v45 = vpop.f32.mrf.mxu0  ;;  %11306 = vmatprep.subr.bf16.mxu0 %v12050_v11  ;;  %v15259_v41 = vadd.f32 %v4799_v7, %v3981_v47  ;;  %7699 = vmatmul.mubr.bf16.vlgmr.msra.gmra.mxu1 %v14917_v5  ;;  %v12033_v5 = vld [vmem:[%s15990_s1 + $0xf90] ss:$12 sps:$4 sm:$0xff]   ;;  %v15277_v47 = vcombine.low %v7039_v29, %v7041_v43  ;;  %v12038_v7 = vld [vmem:[%s15990_s1 + $0xf78] ss:$12 sps:$4 sm:$0xff]  }
 0x243   : > { %v11264_v44 = vpop.f32.mrf.mxu1  ;;  %8454 = vmatpush1.bf16.msra.mxu1 %v12029_v22  ;;  %7706 = vmatprep.mubr.bf16.mxu1 %v14951_v17  ;;  %v10971_v22 = vadd.f32 %v15146_v63, %v15137_v59  ;;  %v4944_v29 = vld [vmem:[#allocation3 + $0x58] sm:$0xff]  ;;  %v10980_v59 = vadd.f32 %v15217_v55, %v15210_v12  ;;  %v12042_v12 = vld [vmem:[%s15990_s1 + $0xf60] ss:$12 sps:$4 sm:$0xff]  }
 0x244   : > { %7563 = vmatmul.mubr.bf16.gmra.mxu0 %v15233_v62  ;;  %v10984_v1 = vpop.f32.mrf.mxu0  ;;  %v4911_v9 = vadd.f32 %v11264_v44, %v10974_v20  ;;  %8455 = vmatprep.subr.bf16.mxu1 %v12035_v40 }
 0x245   : > { %7572 = vmatprep.mubr.bf16.mxu0 %v14997_v4  ;;  %11307 = vmatpush3.bf16.msra.mxu0 %v12050_v11  ;;  %v4902_v11 = vpop.f32.mrf.mxu1 }
 0x246   : > { %v10985_v32 = vpop.f32.mrf.mxu0  ;;  %11308 = vmatprep.subr.bf16.mxu0 %v12059_v61  ;;  %v4965_v58 = vadd.f32 %v4941_v35, %v4911_v9  ;;  %v4903_v26 = vadd.f32 %v10968_v21, %v4902_v11  ;;  %v7045_v21 = vld [vmem:[#allocation2 + $0x54] sm:$0xff] }
 0x247   : > { %v11265_v57 = vpop.f32.mrf.mxu1  ;;  %8456 = vmatpush1.bf16.msra.mxu1 %v12033_v5  ;;  %v10986_v40 = vadd.f32 %v10985_v32, %v10984_v1  ;;  %v4938_v1 = vld [vmem:[#allocation3 + $0x28] sm:$0xff]  ;;  %v4953_v5 = vld [vmem:[#allocation3 + $0xa0] sm:$0xff] }
 0x248   : > { %v10987_v36 = vpop.f32.mrf.mxu0  ;;  %4989 = vst.msk [vmem:[#allocation3 + $0x40] sm:$0xff] %vm826_vm10, %v4965_v58  ;;  %v4959_v17 = vadd.f32 %v4935_v19, %v4903_v26  ;;  %v4914_v20 = vadd.f32 %v11265_v57, %v10977_v30  ;;  %8457 = vmatprep.subr.bf16.mxu1 %v12040_v15  ;;  %v12049_v15 = vld [vmem:[%s15990_s1 + $0xf4c] ss:$12 sps:$4 sm:$0xff]   ;;  %v10983_v58 = vadd.f32 %v15242_v45, %v15231_v18  ;;  %v4947_v57 = vld [vmem:[#allocation3 + $0x70] sm:$0xff] }
 0x249   : > { %11309 = vmatpush3.bf16.msra.mxu0 %v12059_v61  ;;  %v4905_v43 = vpop.f32.mrf.mxu1  ;;  %v12044_v61 = vld [vmem:[%s15990_s1 + $0xf64] ss:$12 sps:$4 sm:$0xff]   ;;  %v12053_v18 = vld [vmem:[%s15990_s1 + $0xf34] ss:$12 sps:$4 sm:$0xff]  }
 0x24a   : > { %8534 = vmatprep.subr.bf16.mxu0 %v12065_v53  ;;  %v10988_v44 = vpop.f32.mrf.mxu0  ;;  %4983 = vst.msk [vmem:[#allocation3 + $0x10] sm:$0xff] %vm826_vm10, %v4959_v17  ;;  %v4968_v63 = vadd.f32 %v4944_v29, %v4914_v20  ;;  %v4906_v35 = vadd.f32 %v10971_v22, %v4905_v43  ;;  %v7043_v53 = vld [vmem:[#allocation2 + $0x48] sm:$0xff]  ;;  %7707 = vmatmul.mubr.bf16.gmra.mxu1 %v15233_v62  ;;  %v4956_v20 = vld [vmem:[#allocation3 + $0xb8] sm:$0xff] }
 0x24b   : > { %v11268_v32 = vpop.f32.mrf.mxu1  ;;  %8458 = vmatpush1.bf16.msra.mxu1 %v12038_v7  ;;  %v10989_v55 = vadd.f32 %v10988_v44, %v10987_v36  ;;  %7714 = vmatprep.mubr.bf16.mxu1 %v14997_v4  ;;  %v10485_v62 = vcombine.low %v7043_v53, %v7045_v21  ;;  %v12047_v17 = vld [vmem:[%s15990_s1 + $0xf48] ss:$12 sps:$4 sm:$0xff]   ;;  %v12051_v44 = vld [vmem:[%s15990_s1 + $0xf30] ss:$12 sps:$4 sm:$0xff]  }
 0x24c   : > { %7573 = vmatmul.mubr.bf16.gmra.mxu0 %v15277_v47  ;;  %4992 = vst.msk [vmem:[#allocation3 + $0x58] sm:$0xff] %vm826_vm10, %v4968_v63  ;;  %v4962_v30 = vadd.f32 %v4938_v1, %v4906_v35  ;;  %v4927_v9 = vadd.f32 %v11268_v32, %v10986_v40  ;;  %8459 = vmatprep.subr.bf16.mxu1 %v12044_v61  ;;  %v4950_v29 = vld [vmem:[#allocation3 + $0x88] sm:$0xff]  ;;  %v12071_v35 = vld [vmem:[%s15990_s1 + $0x10b4] ss:$12 sps:$4 sm:$0xff]   ;;  %v12062_v21 = vld [vmem:[%s15990_s1 + $0xf04] ss:$12 sps:$4 sm:$0xff]  }
 0x24d   : > { %7582 = vmatprep.mubr.bf16.mxu0 %v15029_v50  ;;  %v4918_v11 = vpop.f32.mrf.mxu1  ;;  %v12069_v1 = vld [vmem:[%s15990_s1 + $0x10b0] ss:$12 sps:$4 sm:$0xff]  }
 0x24e   : > { %4986 = vst.msk [vmem:[#allocation3 + $0x28] sm:$0xff] %vm826_vm10, %v4962_v30  ;;  %v4977_v26 = vadd.f32 %v4953_v5, %v4927_v9  ;;  %v4919_v19 = vadd.f32 %v10980_v59, %v4918_v11  ;;  %v12077_v30 = vld [vmem:[%s15990_s1 + $0x109c] ss:$12 sps:$4 sm:$0xff]   ;;  %v12083_v5 = vld [vmem:[%s15990_s1 + $0x1084] ss:$12 sps:$4 sm:$0xff]  }
 0x24f   : > { %v11269_v22 = vpop.f32.mrf.mxu1  ;;  %8460 = vmatpush1.bf16.msra.mxu1 %v12042_v12  ;;  %v12075_v12 = vld [vmem:[%s15990_s1 + $0x1098] ss:$12 sps:$4 sm:$0xff]   ;;  %v12066_v11 = vld [vmem:[%s15990_s1 + $0x1068] ss:$12 sps:$4 sm:$0xff]  }
 0x250   : > { %5001 = vst.msk [vmem:[#allocation3 + $0xa0] sm:$0xff] %vm826_vm10, %v4977_v26  ;;  %v4971_v4 = vadd.f32 %v4947_v57, %v4919_v19  ;;  %v4930_v36 = vadd.f32 %v11269_v22, %v10989_v55  ;;  %8461 = vmatprep.subr.bf16.mxu1 %v12049_v15  ;;  %v12088_v19 = vld [vmem:[%s15990_s1 + $0x1070] ss:$12 sps:$4 sm:$0xff]  }
 0x251   : > { %v4921_v7 = vpop.f32.mrf.mxu1  ;;  %v12072_v57 = vld [vmem:[%s15990_s1 + $0x1050] ss:$12 sps:$4 sm:$0xff]  }
 0x252   : > { %4995 = vst.msk [vmem:[#allocation3 + $0x70] sm:$0xff] %vm826_vm10, %v4971_v4  ;;  %v4980_v45 = vadd.f32 %v4956_v20, %v4930_v36  ;;  %v4922_v40 = vadd.f32 %v10983_v58, %v4921_v7  ;;  %7715 = vmatmul.mubr.bf16.gmra.mxu1 %v15277_v47  ;;  %v12063_v47 = vld [vmem:[%s15990_s1 + $0x10c8] ss:$12 sps:$4 sm:$0xff]   ;;  %v12081_v58 = vld [vmem:[%s15990_s1 + $0x1080] ss:$12 sps:$4 sm:$0xff]   ;;  %v16037_v36 = vld [vmem:[#allocation11_spill] sm:$0xff] }
 0x253   : > { %v15315_v43 = vpop.f32.mrf.mxu1  ;;  %8462 = vmatpush1.bf16.msra.mxu1 %v12047_v17  ;;  %7722 = vmatprep.mubr.bf16.mxu1 %v15029_v50  ;;  %v12056_v50 = vld [vmem:[%s15990_s1 + $0xf18] ss:$12 sps:$4 sm:$0xff]   ;;  %v12080_v22 = vld [vmem:[%s15990_s1 + $0x103c] ss:$12 sps:$4 sm:$0xff]  }
 0x254   : > { %7583 = vmatmul.mubr.bf16.gmra.mxu0 %v10485_v62  ;;  %5004 = vst.msk [vmem:[#allocation3 + $0xb8] sm:$0xff] %vm826_vm10, %v4980_v45  ;;  %v4974_v61 = vadd.f32 %v4950_v29, %v4922_v40  ;;  %8463 = vmatprep.subr.bf16.mxu1 %v12053_v18  ;;  %v15401_v4 = vld [vmem:[#allocation2 + $0x8] ss:$12 sps:$4 sm:$0xff]   ;;  %v12092_v7 = vld [vmem:[%s15990_s1 + $0xfb0] ss:$12 sps:$4 sm:$0xff]   ;;  %v16040_v29 = vld [vmem:[#allocation4_spill] sm:$0xff] }
 0x255   : > { %11310 = vmatprep.mubr.msk.bf16.mxu0 %vm826_vm10, %v14706_v46  ;;  %v15323_v59 = vpop.f32.mrf.mxu1  ;;  %v12058_v46 = vld [vmem:[%s15990_s1 + $0xf1c] ss:$12 sps:$4 sm:$0xff]   ;;  %v12093_v45 = vld [vmem:[%s15990_s1 + $0x1058] ss:$12 sps:$4 sm:$0xff]  }
 0x256   : > { %4998 = vst.msk [vmem:[#allocation3 + $0x88] sm:$0xff] %vm826_vm10, %v4974_v61  ;;  %v16038_v17 = vld [vmem:[#allocation9_spill] sm:$0xff]  ;;  %v16039_v40 = vld [vmem:[#allocation7_spill] sm:$0xff] }
 0x257   : > { %v15332_v63 = vpop.f32.mrf.mxu1  ;;  %8464 = vmatpush1.bf16.msra.mxu1 %v12051_v44  ;;  %v1908_v20 = vadd.f32 %v16038_v17, %v16037_v36  ;;  %v953_v61 = vadd.f32 %v16040_v29, %v16039_v40  ;;  %v2841_v44 = vadd.f32 %v14089_v8, %v14213_v60  ;;  %v3774_v8 = vadd.f32 %v14529_v49, %v14657_v48  ;;  %v12084_v48 = vld [vmem:[%s15990_s1 + $0x1020] ss:$12 sps:$4 sm:$0xff]   ;;  %v12104_v36 = vld [vmem:[%s15990_s1 + $0x1028] ss:$12 sps:$4 sm:$0xff]  }
 0x258   : > { %8465 = vmatprep.subr.bf16.mxu1 %v12058_v46  ;;  %v12078_v46 = vld [vmem:[%s15990_s1 + $0x1038] ss:$12 sps:$4 sm:$0xff]   ;;  %v4771_v49 = vadd.f32 %v14956_v28, %v15108_v37 }
 0x259   : > { %v15340_v53 = vpop.f32.mrf.mxu1 }
 0x25a   : > { %7723 = vmatmul.mubr.bf16.gmra.mxu1 %v10485_v62  ;;  %v12074_v62 = vld [vmem:[%s15990_s1 + $0x1054] ss:$12 sps:$4 sm:$0xff]  }
 0x25b   : > { %v15352_v32 = vpop.f32.mrf.mxu1  ;;  %8466 = vmatpush1.bf16.msra.mxu1 %v12056_v50  ;;  %8485 = vmatprep.mubr.bf16.mxu1 %v14939_v42 }
 0x25c   : > { %11311 = vmatmul.mubr.msk.bf16.vlgmr.msra.gmra.mxu0 %vm826_vm10, %v14767_v52  ;;  %v12060_v52 = vld [vmem:[%s15990_s1 + $0xf00] ss:$12 sps:$4 sm:$0xff]   ;;  %8467 = vmatprep.subr.bf16.mxu1 %v12062_v21  ;;  %v2098_v21 = vadd.f32 %v1908_v20, %v953_v61 }
 0x25d   : > { %8535 = vmatpush1.bf16.msra.mxu0 %v12063_v47  ;;  %11314 = vmatprep.mubr.msk.bf16.mxu0 %vm826_vm10, %v14832_v0  ;;  %v15361_v9 = vpop.f32.mrf.mxu1  ;;  %v12068_v0 = vld [vmem:[%s15990_s1 + $0x106c] ss:$12 sps:$4 sm:$0xff]  }
 0x25e   : > { %8536 = vmatprep.subr.bf16.mxu0 %v12071_v35  ;;  %v12086_v35 = vld [vmem:[%s15990_s1 + $0x1024] ss:$12 sps:$4 sm:$0xff]  }
 0x25f   : > { %v15369_v55 = vpop.f32.mrf.mxu1  ;;  %8468 = vmatpush1.bf16.msra.mxu1 %v12060_v52 }
 0x260   : > { %8469 = vmatprep.subr.bf16.mxu1 %v12068_v0  ;;  %v12099_v0 = vld [vmem:[%s15990_s1 + $0x1040] ss:$12 sps:$4 sm:$0xff]  }
 0x261   : > { %8537 = vmatpush1.bf16.msra.mxu0 %v12069_v1  ;;  %v15377_v15 = vpop.f32.mrf.mxu1  ;;  %v12097_v1 = vld [vmem:[%s15990_s1 + $0xf98] ss:$12 sps:$4 sm:$0xff]  }
 0x262   : > { %8538 = vmatprep.subr.bf16.mxu0 %v12077_v30 }
 0x263   : > { %v15388_v26 = vpop.f32.mrf.mxu1  ;;  %8470 = vmatpush2.bf16.msra.mxu1 %v12066_v11 }
 0x264   : > { %11315 = vmatmul.mubr.msk.bf16.gmra.mxu0 %vm826_vm10, %v14886_v33  ;;  %8471 = vmatprep.subr.bf16.mxu1 %v12074_v62  ;;  %v12091_v62 = vld [vmem:[%s15990_s1 + $0x100c] ss:$12 sps:$4 sm:$0xff]  }
 0x265   : > { %8539 = vmatpush1.bf16.msra.mxu0 %v12075_v12  ;;  %8558 = vmatprep.mubr.bf16.mxu0 %v16011_v14  ;;  %v15396_v33 = vpop.f32.mrf.mxu1  ;;  %v3031_v12 = vadd.f32 %v2841_v44, %v2098_v21 }
 0x266   : > { %8540 = vmatprep.subr.bf16.mxu0 %v12083_v5 }
 0x267   : > { %v15408_v18 = vpop.f32.mrf.mxu1  ;;  %8472 = vmatpush2.bf16.msra.mxu1 %v12072_v57  ;;  %v3964_v28 = vadd.f32 %v3774_v8, %v3031_v12  ;;  %v12102_v8 = vld [vmem:[%s15990_s1 + $0xfdc] ss:$12 sps:$4 sm:$0xff]  }
 0x268   : > { %8473 = vmatprep.subr.bf16.mxu1 %v12080_v22 }
 0x269   : > { %8541 = vmatpush1.bf16.msra.mxu0 %v12081_v58  ;;  %v15420_v47 = vpop.f32.mrf.mxu1  ;;  %v4961_v17 = vadd.f32 %v4771_v49, %v3964_v28  ;;  %v12113_v49 = vld [vmem:[%s15990_s1 + $0xff8] ss:$12 sps:$4 sm:$0xff]  }
 0x26a   : > { %11142 = vmatprep.subr.bf16.mxu0 %v12088_v19  ;;  %v15453_v19 = vld [vmem:[#allocation2 + $0x20] ss:$12 sps:$4 sm:$0xff]  }
 0x26b   : > { %v15434_v30 = vpop.f32.mrf.mxu1  ;;  %8474 = vmatpush2.bf16.msra.mxu1 %v12078_v46  ;;  %v12110_v46 = vld [vmem:[%s15990_s1 + $0x1010] ss:$12 sps:$4 sm:$0xff]  }
 0x26c   : > { %10716 = vmatmul.mubr.msk.bf16.vlgmr.msra.gmra.mxu0 %vm826_vm10, %v15401_v4  ;;  %v5624_v50 = vpop.f32.mrf.mxu0  ;;  %8475 = vmatprep.subr.bf16.mxu1 %v12086_v35 }
 0x26d   : > { %v5698_v60 = vadd.f32 %v15315_v43, %v5624_v50  ;;  %11143 = vmatpush3.bf16.msra.mxu0 %v12092_v7  ;;  %8568 = vmatprep.mubr.bf16.mxu0 %v16011_v14  ;;  %v15448_v11 = vpop.f32.mrf.mxu1 }
 0x26e   : > { %v5626_v52 = vpop.f32.mrf.mxu0  ;;  %11144 = vmatprep.subr.bf16.mxu0 %v12093_v45  ;;  %v12096_v45 = vld [vmem:[%s15990_s1 + $0xff4] ss:$12 sps:$4 sm:$0xff]  }
 0x26f   : > { %v15445_v43 = vadd.f32 %v5698_v60, %v15090_v13  ;;  %v5700_v5 = vadd.f32 %v15323_v59, %v5626_v52  ;;  %v12103_v13 = vld [vmem:[%s15990_s1 + $0xf80] ss:$12 sps:$4 sm:$0xff]   ;;  %v15462_v59 = vpop.f32.mrf.mxu1  ;;  %8476 = vmatpush2.bf16.msra.mxu1 %v12084_v48 }
 0x270   : > { %v5628_v58 = vpop.f32.mrf.mxu0  ;;  %8477 = vmatprep.subr.bf16.mxu1 %v12091_v62  ;;  %v12107_v62 = vld [vmem:[%s15990_s1 + $0xfc4] ss:$12 sps:$4 sm:$0xff]  }
 0x271   : > { %v15456_v37 = vadd.f32 %v5700_v5, %v15102_v27  ;;  %v5702_v57 = vadd.f32 %v15332_v63, %v5628_v58  ;;  %11145 = vmatpush3.bf16.msra.mxu0 %v12097_v1  ;;  %v12089_v27 = vld [vmem:[%s15990_s1 + $0x1008] ss:$12 sps:$4 sm:$0xff]   ;;  %v15474_v7 = vpop.f32.mrf.mxu1  ;;  %v15505_v1 = vld [vmem:[#allocation2 + $0x38] ss:$12 sps:$4 sm:$0xff]  }
 0x272   : > { %v5630_v22 = vpop.f32.mrf.mxu0  ;;  %11146 = vmatprep.subr.bf16.mxu0 %v12099_v0 }
 0x273   : > { %v15471_v63 = vadd.f32 %v5702_v57, %v15116_v2  ;;  %v5704_v20 = vadd.f32 %v15340_v53, %v5630_v22  ;;  %v12108_v2 = vld [vmem:[%s15990_s1 + $0xf68] ss:$12 sps:$4 sm:$0xff]   ;;  %v15488_v53 = vpop.f32.mrf.mxu1  ;;  %8478 = vmatpush2.bf16.msra.mxu1 %v12089_v27  ;;  %v12105_v22 = vld [vmem:[%s15990_s1 + $0xfc0] ss:$12 sps:$4 sm:$0xff]  }
 0x274   : > { %10717 = vmatmul.mubr.msk.bf16.gmra.mxu0 %vm826_vm10, %v15453_v19  ;;  %v5634_v40 = vpop.f32.mrf.mxu0  ;;  %8479 = vmatprep.subr.bf16.mxu1 %v12096_v45 }
 0x275   : > { %v15481_v29 = vadd.f32 %v5704_v20, %v4961_v17  ;;  %v5708_v61 = vadd.f32 %v15352_v32, %v5634_v40  ;;  %11147 = vmatpush3.bf16.msra.mxu0 %v12103_v13  ;;  %8578 = vmatprep.mubr.bf16.mxu0 %v16011_v14  ;;  %v12094_v32 = vld [vmem:[%s15990_s1 + $0xff0] ss:$12 sps:$4 sm:$0xff]   ;;  %v15500_v21 = vpop.f32.mrf.mxu1  ;;  %v12116_v13 = vld [vmem:[%s15990_s1 + $0xfe0] ss:$12 sps:$4 sm:$0xff]  }
 0x276   : > { %v5636_v44 = vpop.f32.mrf.mxu0  ;;  %11148 = vmatprep.subr.bf16.mxu0 %v12104_v36  ;;  %v15553_v20 = vld [vmem:[#allocation2 + $0x50] ss:$12 sps:$4 sm:$0xff]  }
 0x277   : > { %v15497_v35 = vadd.f32 %v5708_v61, %v15140_v3  ;;  %v5710_v50 = vadd.f32 %v15361_v9, %v5636_v44  ;;  %v12111_v3 = vld [vmem:[%s15990_s1 + $0xf50] ss:$12 sps:$4 sm:$0xff]   ;;  %v15514_v9 = vpop.f32.mrf.mxu1  ;;  %8480 = vmatpush2.bf16.msra.mxu1 %v12094_v32 }
 0x278   : > { %v5638_v60 = vpop.f32.mrf.mxu0  ;;  %8481 = vmatprep.subr.bf16.mxu1 %v12102_v8 }
 0x279   : > { %v15508_v52 = vadd.f32 %v5710_v50, %v15152_v54  ;;  %v5712_v0 = vadd.f32 %v15369_v55, %v5638_v60  ;;  %11149 = vmatpush3.bf16.msra.mxu0 %v12108_v2  ;;  %v12100_v54 = vld [vmem:[%s15990_s1 + $0xfd8] ss:$12 sps:$4 sm:$0xff]   ;;  %v15528_v5 = vpop.f32.mrf.mxu1  ;;  %v12119_v2 = vld [vmem:[%s15990_s1 + $0xfc8] ss:$12 sps:$4 sm:$0xff]  }
 0x27a   : > { %v5640_v12 = vpop.f32.mrf.mxu0  ;;  %11150 = vmatprep.subr.bf16.mxu0 %v12110_v46  ;;  %v12118_v46 = vld [vmem:[%s15990_s1 + $0x10b8] ss:$12 sps:$4 sm:$0xff]  }
 0x27b   : > { %v15523_v55 = vadd.f32 %v5712_v0, %v15165_v56  ;;  %v15526_v48 = vadd.f32 %v15377_v15, %v5640_v12  ;;  %v12114_v56 = vld [vmem:[%s15990_s1 + $0xf38] ss:$12 sps:$4 sm:$0xff]   ;;  %v11020_v57 = vpop.f32.mrf.mxu1  ;;  %8482 = vmatpush2.bf16.msra.mxu1 %v12100_v54 }
 0x27c   : > { %10718 = vmatmul.mubr.msk.bf16.gmra.mxu0 %vm826_vm10, %v15505_v1  ;;  %v5644_v58 = vpop.f32.mrf.mxu0  ;;  %8483 = vmatprep.subr.bf16.mxu1 %v12107_v62 }
 0x27d   : > { %v5718_v28 = vadd.f32 %v15388_v26, %v5644_v58  ;;  %11151 = vmatpush3.bf16.msra.mxu0 %v12111_v3  ;;  %8588 = vmatprep.mubr.bf16.mxu0 %v16011_v14  ;;  %v12112_v14 = vld [vmem:[%s15990_s1 + $0x10d0] ss:$12 sps:$4 sm:$0xff]   ;;  %v11021_v27 = vpop.f32.mrf.mxu1 }
 0x27e   : > { %v5646_v15 = vpop.f32.mrf.mxu0  ;;  %11152 = vmatprep.subr.bf16.mxu0 %v12113_v49  ;;  %v11022_v12 = vadd.f32 %v11021_v27, %v11020_v57 }
 0x27f   : > { %v15547_v26 = vadd.f32 %v5718_v28, %v15189_v16  ;;  %v5720_v36 = vadd.f32 %v15396_v33, %v5646_v15  ;;  %v12117_v16 = vld [vmem:[%s15990_s1 + $0xf20] ss:$12 sps:$4 sm:$0xff]   ;;  %v11023_v61 = vpop.f32.mrf.mxu1  ;;  %8484 = vmatpush2.bf16.msra.mxu1 %v12105_v22 }
 0x280   : > { %v5648_v17 = vpop.f32.mrf.mxu0  ;;  %11318 = vmatprep.subr.bf16.mxu1 %v12112_v14 }
 0x281   : > { %v15556_v45 = vadd.f32 %v5720_v36, %v15198_v31  ;;  %v5722_v40 = vadd.f32 %v15408_v18, %v5648_v17  ;;  %11153 = vmatpush3.bf16.msra.mxu0 %v12114_v56  ;;  %v11024_v32 = vpop.f32.mrf.mxu1  ;;  %v5868_v36 = vld [vmem:[#allocation3 + $0x10] sm:$0xff] }
 0x282   : > { %v5650_v33 = vpop.f32.mrf.mxu0  ;;  %11154 = vmatprep.subr.bf16.mxu0 %v12116_v13  ;;  %8486 = vmatmul.mubr.bf16.vlgmr.msra.gmra.mxu1 %v14937_v34  ;;  %v11025_v15 = vadd.f32 %v11024_v32, %v11023_v61 }
 0x283   : > { %v15566_v44 = vadd.f32 %v5722_v40, %v15212_v6  ;;  %v15569_v31 = vadd.f32 %v15420_v47, %v5650_v33  ;;  %v12120_v6 = vld [vmem:[%s15990_s1 + $0xf08] ss:$12 sps:$4 sm:$0xff]   ;;  %v11026_v8 = vpop.f32.mrf.mxu1  ;;  %11319 = vmatpush3.bf16.msra.mxu1 %v12112_v14  ;;  %8495 = vmatprep.mubr.bf16.mxu1 %v14977_v24  ;;  %v5877_v40 = vld [vmem:[#allocation3 + $0x58] sm:$0xff] }
 0x284   : > { %10719 = vmatmul.mubr.msk.bf16.gmra.mxu0 %vm826_vm10, %v15553_v20  ;;  %v5654_v18 = vpop.f32.mrf.mxu0  ;;  %11320 = vmatprep.subr.bf16.mxu1 %v12118_v46 }
 0x285   : > { %v5728_v50 = vadd.f32 %v15434_v30, %v5654_v18  ;;  %11155 = vmatpush3.bf16.msra.mxu0 %v12117_v16  ;;  %8631 = vmatprep.mubr.bf16.mxu0 %v14939_v42  ;;  %v11027_v3 = vpop.f32.mrf.mxu1  ;;  %v12121_v42 = vld [vmem:[%s15990_s1 + $0x10a0] ss:$12 sps:$4 sm:$0xff]  }
 0x286   : > { %v5656_v47 = vpop.f32.mrf.mxu0  ;;  %11156 = vmatprep.subr.bf16.mxu0 %v12119_v2  ;;  %v11028_v61 = vadd.f32 %v11027_v3, %v11026_v8 }
 0x287   : > { %v15584_v60 = vadd.f32 %v5728_v50, %v15236_v10  ;;  %v5730_v30 = vadd.f32 %v15448_v11, %v5656_v47  ;;  %v11029_v58 = vpop.f32.mrf.mxu1  ;;  %11321 = vmatpush3.bf16.msra.mxu1 %v12118_v46  ;;  %v5871_v46 = vld [vmem:[#allocation3 + $0x28] sm:$0xff]  ;;  %v5886_v47 = vld [vmem:[#allocation3 + $0xa0] sm:$0xff] }
 0x288   : > { %v5658_v0 = vpop.f32.mrf.mxu0  ;;  %11322 = vmatprep.subr.bf16.mxu1 %v12121_v42 }
 0x289   : > { %v15591_v49 = vadd.f32 %v5730_v30, %v15250_v23  ;;  %v5732_v54 = vadd.f32 %v15462_v59, %v5658_v0  ;;  %11157 = vmatpush3.bf16.msra.mxu0 %v12120_v6  ;;  %v11030_v56 = vpop.f32.mrf.mxu1  ;;  %v12122_v23 = vld [vmem:[%s15990_s1 + $0x1088] ss:$12 sps:$4 sm:$0xff]   ;;  %v11016_v59 = vadd.f32 %v15500_v21, %v15488_v53  ;;  %v11019_v53 = vadd.f32 %v15528_v5, %v15514_v9 }
 0x28a   : > { %v5660_v62 = vpop.f32.mrf.mxu0  ;;  %8496 = vmatmul.mubr.bf16.gmra.mxu1 %v14975_v38  ;;  %v11031_v30 = vadd.f32 %v11030_v56, %v11029_v58  ;;  %v16041_v0 = vld [vmem:[#allocation17_spill] sm:$0xff] }
 0x28b   : > { %v15595_v10 = vadd.f32 %v5732_v54, %v15259_v41  ;;  %v15598_v11 = vadd.f32 %v15474_v7, %v5660_v62  ;;  %v5874_v41 = vld [vmem:[#allocation3 + $0x40] sm:$0xff]  ;;  %v11032_v13 = vpop.f32.mrf.mxu1  ;;  %8505 = vmatprep.mubr.bf16.mxu1 %v15021_v39  ;;  %11323 = vmatpush3.bf16.msra.mxu1 %v12121_v42  ;;  %v5880_v42 = vld [vmem:[#allocation3 + $0x70] sm:$0xff] }
 0x28c   : > { %8632 = vmatmul.mubr.bf16.vlgmr.msra.gmra.mxu0 %v14937_v34  ;;  %v11280_v28 = vpop.f32.mrf.mxu0  ;;  %11324 = vmatprep.subr.bf16.mxu1 %v12122_v23 }
 0x28d   : > { %v5844_v57 = vadd.f32 %v11280_v28, %v11022_v12  ;;  %8639 = vmatprep.mubr.bf16.mxu0 %v14977_v24  ;;  %v11033_v17 = vpop.f32.mrf.mxu1  ;;  %v5889_v28 = vld [vmem:[#allocation3 + $0xb8] sm:$0xff] }
 0x28e   : > { %v5835_v7 = vpop.f32.mrf.mxu0  ;;  %v11034_v27 = vadd.f32 %v11033_v17, %v11032_v13 }
 0x28f   : > { %v5898_v34 = vadd.f32 %v5874_v41, %v5844_v57  ;;  %v5836_v22 = vadd.f32 %v11016_v59, %v5835_v7  ;;  %v11035_v33 = vpop.f32.mrf.mxu1  ;;  %11325 = vmatpush3.bf16.msra.mxu1 %v12122_v23  ;;  %v16042_v57 = vld [vmem:[#allocation16_spill] sm:$0xff] }
 0x290   : > { %v11281_v14 = vpop.f32.mrf.mxu0 }
 0x291   : > { %5922 = vst.msk [vmem:[#allocation3 + $0x40] sm:$0xff] %vm826_vm10, %v5898_v34  ;;  %v5892_v24 = vadd.f32 %v5868_v36, %v5836_v22  ;;  %v5847_v21 = vadd.f32 %v11281_v14, %v11025_v15  ;;  %v11036_v50 = vpop.f32.mrf.mxu1  ;;  %v5883_v15 = vld [vmem:[#allocation3 + $0x88] sm:$0xff] }
 0x292   : > { %v5838_v16 = vpop.f32.mrf.mxu0  ;;  %v11037_v6 = vadd.f32 %v11036_v50, %v11035_v33  ;;  %8506 = vmatmul.mubr.bf16.gmra.mxu1 %v15019_v25  ;;  %v16043_v50 = vld [vmem:[#allocation14_spill] sm:$0xff] }
 0x293   : > { %5916 = vst.msk [vmem:[#allocation3 + $0x10] sm:$0xff] %vm826_vm10, %v5892_v24  ;;  %v5901_v2 = vadd.f32 %v5877_v40, %v5847_v21  ;;  %v5839_v18 = vadd.f32 %v11019_v53, %v5838_v16  ;;  %8515 = vmatprep.mubr.bf16.mxu1 %v16041_v0 }
 0x294   : > { %8640 = vmatmul.mubr.bf16.gmra.mxu0 %v14975_v38  ;;  %v11284_v32 = vpop.f32.mrf.mxu0 }
 0x295   : > { %5925 = vst.msk [vmem:[#allocation3 + $0x58] sm:$0xff] %vm826_vm10, %v5901_v2  ;;  %v5895_v9 = vadd.f32 %v5871_v46, %v5839_v18  ;;  %v5860_v5 = vadd.f32 %v11284_v32, %v11034_v27  ;;  %8647 = vmatprep.mubr.bf16.mxu0 %v15021_v39 }
 0x296   : > { %v5851_v8 = vpop.f32.mrf.mxu0 }
 0x297   : > { %5919 = vst.msk [vmem:[#allocation3 + $0x28] sm:$0xff] %vm826_vm10, %v5895_v9  ;;  %v5910_v3 = vadd.f32 %v5886_v47, %v5860_v5  ;;  %v5852_v38 = vadd.f32 %v11028_v61, %v5851_v8  ;;  %v16044_v9 = vld [vmem:[#allocation8_spill] sm:$0xff] }
 0x298   : > { %v11285_v12 = vpop.f32.mrf.mxu0  ;;  %v3784_v5 = vadd.f32 %v16044_v9, %v16043_v50 }
 0x299   : > { %5934 = vst.msk [vmem:[#allocation3 + $0xa0] sm:$0xff] %vm826_vm10, %v5910_v3  ;;  %v5904_v54 = vadd.f32 %v5880_v42, %v5852_v38  ;;  %v5863_v62 = vadd.f32 %v11285_v12, %v11037_v6  ;;  %v3946_v42 = vld [vmem:[#allocation3 + $0x50] sm:$0xff] }
 0x29a   : > { %v5854_v23 = vpop.f32.mrf.mxu0  ;;  %8516 = vmatmul.mubr.bf16.gmra.mxu1 %v16042_v57 }
 0x29b   : > { %5928 = vst.msk [vmem:[#allocation3 + $0x70] sm:$0xff] %vm826_vm10, %v5904_v54  ;;  %v5913_v39 = vadd.f32 %v5889_v28, %v5863_v62  ;;  %v5855_v59 = vadd.f32 %v11031_v30, %v5854_v23  ;;  %11326 = vmatprep.mubr.msk.bf16.mxu1 %vm826_vm10, %v15401_v4  ;;  %v16045_v30 = vld [vmem:[#allocation19_spill] sm:$0xff]  ;;  %v3970_v62 = vadd.f32 %v3946_v42, %v3784_v5 }
 0x29c   : > { %8648 = vmatmul.mubr.bf16.gmra.mxu0 %v15019_v25  ;;  %v6630_v58 = vpop.f32.mrf.mxu0 }
 0x29d   : > { %5937 = vst.msk [vmem:[#allocation3 + $0xb8] sm:$0xff] %vm826_vm10, %v5913_v39  ;;  %v5907_v56 = vadd.f32 %v5883_v15, %v5855_v59  ;;  %8655 = vmatprep.mubr.bf16.mxu0 %v16041_v0  ;;  %v16046_v0 = vld [vmem:[#allocation6_spill] sm:$0xff] }
 0x29e   : > { %v6632_v41 = vpop.f32.mrf.mxu0  ;;  %v4781_v3 = vadd.f32 %v16046_v0, %v16045_v30 }
 0x29f   : > { %5931 = vst.msk [vmem:[#allocation3 + $0x88] sm:$0xff] %vm826_vm10, %v5907_v56 }
 0x2a0   : > { %v6634_v7 = vpop.f32.mrf.mxu0  ;;  %v4967_v59 = vadd.f32 %v4781_v3, %v3970_v62  ;;  %v16051_v3 = vld [vmem:[#allocation10_spill] sm:$0xff] }
 0x2a2   : > { %v6636_v13 = vpop.f32.mrf.mxu0  ;;  %11327 = vmatmul.mubr.msk.bf16.vlgmr.msra.gmra.mxu1 %vm826_vm10, %v15453_v19 }
 0x2a3   : > { %11330 = vmatprep.mubr.msk.bf16.mxu1 %vm826_vm10, %v15505_v1 }
 0x2a4   : > { %8656 = vmatmul.mubr.bf16.gmra.mxu0 %v16042_v57  ;;  %v6640_v34 = vpop.f32.mrf.mxu0  ;;  %v16047_v57 = vld [vmem:[#allocation12_spill] sm:$0xff] }
 0x2a6   : > { %v6642_v25 = vpop.f32.mrf.mxu0 }
 0x2a8   : > { %v6644_v22 = vpop.f32.mrf.mxu0 }
 0x2aa   : > { %v6646_v36 = vpop.f32.mrf.mxu0  ;;  %11331 = vmatmul.mubr.msk.bf16.gmra.mxu1 %vm826_vm10, %v15553_v20 }
 0x2ac   : > { %v6650_v14 = vpop.f32.mrf.mxu0 }
 0x2ae   : > { %v6652_v17 = vpop.f32.mrf.mxu0 }
 0x2b0   : > { %v6654_v4 = vpop.f32.mrf.mxu0 }
 0x2b2   : > { %v6656_v53 = vpop.f32.mrf.mxu0  ;;  %v6557_v21 = vpop.f32.mrf.mxu1 }
 0x2b3   : > { %v6631_v40 = vadd.f32 %v6630_v58, %v6557_v21 }
 0x2b4   : > { %v15635_v24 = vpop.f32.mrf.mxu0  ;;  %v6559_v19 = vpop.f32.mrf.mxu1 }
 0x2b5   : > { %v15642_v1 = vadd.f32 %v6631_v40, %v15445_v43  ;;  %v6633_v33 = vadd.f32 %v6632_v41, %v6559_v19  ;;  %v16048_v41 = vld [vmem:[#allocation5_spill] sm:$0xff]  ;;  %v16049_v40 = vld [vmem:[#allocation20_spill] sm:$0xff]  ;;  %v16050_v19 = vld [vmem:[#allocation15_spill] sm:$0xff] }
 0x2b6   : > { %v15637_v27 = vpop.f32.mrf.mxu0  ;;  %v6561_v61 = vpop.f32.mrf.mxu1 }
 0x2b7   : > { %v15647_v20 = vadd.f32 %v6633_v33, %v15456_v37  ;;  %v6635_v18 = vadd.f32 %v6634_v7, %v6561_v61  ;;  %v3794_v7 = vadd.f32 %v16048_v41, %v16047_v57  ;;  %v4791_v33 = vadd.f32 %v16050_v19, %v16049_v40 }
 0x2b8   : > { %v15639_v16 = vpop.f32.mrf.mxu0  ;;  %v6563_v46 = vpop.f32.mrf.mxu1 }
 0x2b9   : > { %v15654_v6 = vadd.f32 %v6635_v18, %v15471_v63  ;;  %v6637_v47 = vadd.f32 %v6636_v13, %v6563_v46  ;;  %v5900_v13 = vadd.f32 %v15526_v48, %v4967_v59 }
 0x2ba   : > { %v15644_v2 = vpop.f32.mrf.mxu0  ;;  %v6567_v43 = vpop.f32.mrf.mxu1 }
 0x2bb   : > { %v15661_v37 = vadd.f32 %v6637_v47, %v15481_v29  ;;  %v6641_v38 = vadd.f32 %v6640_v34, %v6567_v43 }
 0x2bc   : > { %v15649_v32 = vpop.f32.mrf.mxu0  ;;  %v6569_v12 = vpop.f32.mrf.mxu1 }
 0x2bd   : > { %v15666_v28 = vadd.f32 %v6641_v38, %v15497_v35  ;;  %v6643_v63 = vadd.f32 %v6642_v25, %v6569_v12  ;;  %v16052_v38 = vld [vmem:[#allocation13_spill] sm:$0xff] }
 0x2be   : > { %v15656_v8 = vpop.f32.mrf.mxu0  ;;  %v6571_v23 = vpop.f32.mrf.mxu1 }
 0x2bf   : > { %v15671_v15 = vadd.f32 %v6643_v63, %v15508_v52  ;;  %v6645_v58 = vadd.f32 %v6644_v22, %v6571_v23  ;;  %v3952_v22 = vld [vmem:[#allocation3 + $0x80] sm:$0xff]  ;;  %v16053_v63 = vld [vmem:[#allocation18_spill] sm:$0xff] }
 0x2c0   : > { %v15663_v54 = vpop.f32.mrf.mxu0  ;;  %v6573_v29 = vpop.f32.mrf.mxu1  ;;  %v3976_v50 = vadd.f32 %v3952_v22, %v3794_v7  ;;  %v4801_v23 = vadd.f32 %v16053_v63, %v15256_v51  ;;  %v6807_v22 = vld [vmem:[#allocation3 + $0x40] sm:$0xff] }
 0x2c1   : > { %v15677_v34 = vadd.f32 %v6645_v58, %v15523_v55  ;;  %v6647_v35 = vadd.f32 %v6646_v36, %v6573_v29 }
 0x2c2   : > { %v15668_v39 = vpop.f32.mrf.mxu0  ;;  %v6577_v25 = vpop.f32.mrf.mxu1  ;;  %v4973_v47 = vadd.f32 %v4791_v33, %v3976_v50 }
 0x2c3   : > { %v15681_v61 = vadd.f32 %v6647_v35, %v5900_v13  ;;  %v6651_v52 = vadd.f32 %v6650_v14, %v6577_v25  ;;  %v3804_v14 = vadd.f32 %v16052_v38, %v16051_v3  ;;  %v6804_v38 = vld [vmem:[#allocation3 + $0x28] sm:$0xff] }
 0x2c4   : > { %v11068_v56 = vpop.f32.mrf.mxu0  ;;  %v6579_v18 = vpop.f32.mrf.mxu1  ;;  %v5906_v42 = vadd.f32 %v15569_v31, %v4973_v47 }
 0x2c5   : > { %v15684_v9 = vadd.f32 %v6651_v52, %v15547_v26  ;;  %v6653_v48 = vadd.f32 %v6652_v17, %v6579_v18  ;;  %v11064_v52 = vadd.f32 %v15656_v8, %v15649_v32  ;;  %v6810_v32 = vld [vmem:[#allocation3 + $0x58] sm:$0xff] }
 0x2c6   : > { %v11069_v21 = vpop.f32.mrf.mxu0  ;;  %v6581_v5 = vpop.f32.mrf.mxu1 }
 0x2c7   : > { %v15687_v36 = vadd.f32 %v6653_v48, %v15556_v45  ;;  %v6655_v43 = vadd.f32 %v6654_v4, %v6581_v5  ;;  %v3958_v4 = vld [vmem:[#allocation3 + $0xb0] sm:$0xff]  ;;  %v11070_v13 = vadd.f32 %v11069_v21, %v11068_v56 }
 0x2c8   : > { %v11071_v46 = vpop.f32.mrf.mxu0  ;;  %v6583_v30 = vpop.f32.mrf.mxu1  ;;  %v3982_v57 = vadd.f32 %v3958_v4, %v3804_v14  ;;  %v6813_v4 = vld [vmem:[#allocation3 + $0x70] sm:$0xff] }
 0x2c9   : > { %v15693_v12 = vadd.f32 %v6655_v43, %v15566_v44  ;;  %v6657_v26 = vadd.f32 %v6656_v53, %v6583_v30 }
 0x2ca   : > { %v11072_v55 = vpop.f32.mrf.mxu0  ;;  %v6587_v62 = vpop.f32.mrf.mxu1  ;;  %v4979_v7 = vadd.f32 %v4801_v23, %v3982_v57  ;;  %v6822_v57 = vld [vmem:[#allocation3 + $0xb8] sm:$0xff] }
 0x2cb   : > { %v15697_v59 = vadd.f32 %v6657_v26, %v5906_v42  ;;  %v6661_v45 = vadd.f32 %v15635_v24, %v6587_v62  ;;  %v11073_v56 = vadd.f32 %v11072_v55, %v11071_v46 }
 0x2cc   : > { %v11074_v0 = vpop.f32.mrf.mxu0  ;;  %v6589_v58 = vpop.f32.mrf.mxu1  ;;  %v5912_v40 = vadd.f32 %v15598_v11, %v4979_v7  ;;  %v6801_v11 = vld [vmem:[#allocation3 + $0x10] sm:$0xff] }
 0x2cd   : > { %v15701_v41 = vadd.f32 %v6661_v45, %v15584_v60  ;;  %v6663_v44 = vadd.f32 %v15637_v27, %v6589_v58 }
 0x2ce   : > { %v11075_v17 = vpop.f32.mrf.mxu0  ;;  %v6591_v31 = vpop.f32.mrf.mxu1 }
 0x2cf   : > { %v15705_v35 = vadd.f32 %v6663_v44, %v15591_v49  ;;  %v6665_v51 = vadd.f32 %v15639_v16, %v6591_v31  ;;  %v11076_v55 = vadd.f32 %v11075_v17, %v11074_v0 }
 0x2d0   : > { %v11077_v29 = vpop.f32.mrf.mxu0  ;;  %v6593_v25 = vpop.f32.mrf.mxu1 }
 0x2d1   : > { %v15710_v19 = vadd.f32 %v6665_v51, %v15595_v10  ;;  %v6667_v60 = vadd.f32 %v15644_v2, %v6593_v25  ;;  %v11067_v10 = vadd.f32 %v15668_v39, %v15663_v54  ;;  %v6819_v39 = vld [vmem:[#allocation3 + $0xa0] sm:$0xff] }
 0x2d2   : > { %v11078_v53 = vpop.f32.mrf.mxu0  ;;  %v11296_v33 = vpop.f32.mrf.mxu1 }
 0x2d3   : > { %v15715_v21 = vadd.f32 %v6667_v60, %v5912_v40  ;;  %v6777_v49 = vadd.f32 %v11296_v33, %v11070_v13  ;;  %v11079_v63 = vadd.f32 %v11078_v53, %v11077_v29  ;;  %v6816_v13 = vld [vmem:[#allocation3 + $0x88] sm:$0xff] }
 0x2d4   : > { %v11080_v24 = vpop.f32.mrf.mxu0  ;;  %v6768_v16 = vpop.f32.mrf.mxu1 }
 0x2d5   : > { %v6831_v50 = vadd.f32 %v6807_v22, %v6777_v49  ;;  %v6769_v48 = vadd.f32 %v11064_v52, %v6768_v16 }
 0x2d6   : > { %v11081_v27 = vpop.f32.mrf.mxu0  ;;  %v11297_v5 = vpop.f32.mrf.mxu1 }
 0x2d7   : > { %6855 = vst.msk [vmem:[#allocation3 + $0x40] sm:$0xff] %vm826_vm10, %v6831_v50  ;;  %v6825_v2 = vadd.f32 %v6801_v11, %v6769_v48  ;;  %v6780_v47 = vadd.f32 %v11297_v5, %v11073_v56  ;;  %v11082_v43 = vadd.f32 %v11081_v27, %v11080_v24 }
 0x2d8   : > { %v11083_v18 = vpop.f32.mrf.mxu0  ;;  %v6771_v8 = vpop.f32.mrf.mxu1 }
 0x2d9   : > { %6849 = vst.msk [vmem:[#allocation3 + $0x10] sm:$0xff] %vm826_vm10, %v6825_v2  ;;  %v6834_v30 = vadd.f32 %v6810_v32, %v6780_v47  ;;  %v6772_v3 = vadd.f32 %v11067_v10, %v6771_v8 }
 0x2da   : > { %v11084_v46 = vpop.f32.mrf.mxu0  ;;  %v11300_v14 = vpop.f32.mrf.mxu1 }
 0x2db   : > { %6858 = vst.msk [vmem:[#allocation3 + $0x58] sm:$0xff] %vm826_vm10, %v6834_v30  ;;  %v6828_v42 = vadd.f32 %v6804_v38, %v6772_v3  ;;  %v6793_v26 = vadd.f32 %v11300_v14, %v11082_v43  ;;  %v11085_v54 = vadd.f32 %v11084_v46, %v11083_v18 }
 0x2dc   : > { %v6784_v62 = vpop.f32.mrf.mxu1 }
 0x2dd   : > { %6852 = vst.msk [vmem:[#allocation3 + $0x28] sm:$0xff] %vm826_vm10, %v6828_v42  ;;  %v6843_v23 = vadd.f32 %v6819_v39, %v6793_v26  ;;  %v6785_v45 = vadd.f32 %v11076_v55, %v6784_v62 }
 0x2de   : > { %v11301_v0 = vpop.f32.mrf.mxu1 }
 0x2df   : > { %6867 = vst.msk [vmem:[#allocation3 + $0xa0] sm:$0xff] %vm826_vm10, %v6843_v23  ;;  %v6837_v17 = vadd.f32 %v6813_v4, %v6785_v45  ;;  %v6796_v58 = vadd.f32 %v11301_v0, %v11085_v54 }
 0x2e0   : > { %v6787_v44 = vpop.f32.mrf.mxu1 }
 0x2e1   : > { %6861 = vst.msk [vmem:[#allocation3 + $0x70] sm:$0xff] %vm826_vm10, %v6837_v17  ;;  %v6846_v31 = vadd.f32 %v6822_v57, %v6796_v58  ;;  %v6788_v7 = vadd.f32 %v11079_v63, %v6787_v44 }
 0x2e2   : > { %v7627_v51 = vpop.f32.mrf.mxu1 }
 0x2e3   : > { %6870 = vst.msk [vmem:[#allocation3 + $0xb8] sm:$0xff] %vm826_vm10, %v6846_v31  ;;  %v6840_v29 = vadd.f32 %v6816_v13, %v6788_v7 }
 0x2e4   : > { %v7629_v53 = vpop.f32.mrf.mxu1 }
 0x2e5   : > { %6864 = vst.msk [vmem:[#allocation3 + $0x88] sm:$0xff] %vm826_vm10, %v6840_v29 }
 0x2e6   : > { %v7631_v25 = vpop.f32.mrf.mxu1 }
 0x2e8   : > { %v7633_v24 = vpop.f32.mrf.mxu1 }
 0x2ea   : > { %v7637_v40 = vpop.f32.mrf.mxu1 }
 0x2ec   : > { %v7639_v60 = vpop.f32.mrf.mxu1 }
 0x2ee   : > { %v7641_v33 = vpop.f32.mrf.mxu1 }
 0x2f0   : > { %v7643_v27 = vpop.f32.mrf.mxu1 }
 0x2f2   : > { %v7647_v52 = vpop.f32.mrf.mxu1 }
 0x2f4   : > { %v7649_v56 = vpop.f32.mrf.mxu1 }
 0x2f6   : > { %v7651_v49 = vpop.f32.mrf.mxu1 }
 0x2f8   : > { %v7653_v22 = vpop.f32.mrf.mxu1 }
 0x2fa   : > { %v7657_v50 = vpop.f32.mrf.mxu1 }
 0x2fc   : > { %v7554_v16 = vpop.f32.mrf.mxu0  ;;  %v7659_v10 = vpop.f32.mrf.mxu1 }
 0x2fd   : > { %v7628_v18 = vadd.f32 %v7627_v51, %v7554_v16 }
 0x2fe   : > { %v7556_v48 = vpop.f32.mrf.mxu0  ;;  %v7661_v32 = vpop.f32.mrf.mxu1 }
 0x2ff   : > { %v15728_v11 = vadd.f32 %v7628_v18, %v15642_v1  ;;  %v7630_v5 = vadd.f32 %v7629_v53, %v7556_v48 }
 0x300   : > { %v7558_v2 = vpop.f32.mrf.mxu0  ;;  %v7663_v30 = vpop.f32.mrf.mxu1 }
 0x301   : > { %v15731_v47 = vadd.f32 %v7630_v5, %v15647_v20  ;;  %v7632_v43 = vadd.f32 %v7631_v25, %v7558_v2 }
 0x302   : > { %v7560_v8 = vpop.f32.mrf.mxu0  ;;  %v11110_v14 = vpop.f32.mrf.mxu1 }
 0x303   : > { %v15734_v46 = vadd.f32 %v7632_v43, %v15654_v6  ;;  %v7634_v55 = vadd.f32 %v7633_v24, %v7560_v8  ;;  %v7804_v8 = vld [vmem:[#allocation3 + $0x40] sm:$0xff] }
 0x304   : > { %v7564_v3 = vpop.f32.mrf.mxu0  ;;  %v11111_v54 = vpop.f32.mrf.mxu1 }
 0x305   : > { %v15737_v38 = vadd.f32 %v7634_v55, %v15661_v37  ;;  %v7638_v1 = vadd.f32 %v7637_v40, %v7564_v3  ;;  %v11112_v2 = vadd.f32 %v11111_v54, %v11110_v14  ;;  %v7807_v14 = vld [vmem:[#allocation3 + $0x58] sm:$0xff] }
 0x306   : > { %v7566_v42 = vpop.f32.mrf.mxu0  ;;  %v11113_v63 = vpop.f32.mrf.mxu1 }
 0x307   : > { %v15740_v26 = vadd.f32 %v7638_v1, %v15666_v28  ;;  %v7640_v20 = vadd.f32 %v7639_v60, %v7566_v42 }
 0x308   : > { %v7568_v39 = vpop.f32.mrf.mxu0  ;;  %v11114_v4 = vpop.f32.mrf.mxu1 }
 0x309   : > { %v15743_v62 = vadd.f32 %v7640_v20, %v15671_v15  ;;  %v7642_v6 = vadd.f32 %v7641_v33, %v7568_v39  ;;  %v11115_v39 = vadd.f32 %v11114_v4, %v11113_v63 }
 0x30a   : > { %v7570_v23 = vpop.f32.mrf.mxu0  ;;  %v11116_v57 = vpop.f32.mrf.mxu1 }
 0x30b   : > { %v15746_v45 = vadd.f32 %v7642_v6, %v15677_v34  ;;  %v7644_v37 = vadd.f32 %v7643_v27, %v7570_v23 }
 0x30c   : > { %v7574_v0 = vpop.f32.mrf.mxu0  ;;  %v11117_v7 = vpop.f32.mrf.mxu1 }
 0x30d   : > { %v15749_v17 = vadd.f32 %v7644_v37, %v15681_v61  ;;  %v7648_v28 = vadd.f32 %v7647_v52, %v7574_v0 }
 0x30e   : > { %v7576_v58 = vpop.f32.mrf.mxu0  ;;  %v11119_v29 = vpop.f32.mrf.mxu1 }
 0x30f   : > { %v15752_v44 = vadd.f32 %v7648_v28, %v15684_v9  ;;  %v7650_v15 = vadd.f32 %v7649_v56, %v7576_v58  ;;  %v7801_v28 = vld [vmem:[#allocation3 + $0x28] sm:$0xff] }
 0x310   : > { %v7578_v31 = vpop.f32.mrf.mxu0  ;;  %v11120_v24 = vpop.f32.mrf.mxu1 }
 0x311   : > { %v15755_v13 = vadd.f32 %v7650_v15, %v15687_v36  ;;  %v7652_v34 = vadd.f32 %v7651_v49, %v7578_v31  ;;  %v11118_v49 = vadd.f32 %v11117_v7, %v11116_v57  ;;  %v11121_v43 = vadd.f32 %v11120_v24, %v11119_v29  ;;  %v7816_v31 = vld [vmem:[#allocation3 + $0xa0] sm:$0xff] }
 0x312   : > { %v7580_v51 = vpop.f32.mrf.mxu0  ;;  %v11122_v33 = vpop.f32.mrf.mxu1 }
 0x313   : > { %v15758_v53 = vadd.f32 %v7652_v34, %v15693_v12  ;;  %v7654_v61 = vadd.f32 %v7653_v22, %v7580_v51 }
 0x314   : > { %v7584_v25 = vpop.f32.mrf.mxu0  ;;  %v11123_v56 = vpop.f32.mrf.mxu1 }
 0x315   : > { %v15761_v40 = vadd.f32 %v7654_v61, %v15697_v59  ;;  %v7658_v9 = vadd.f32 %v7657_v50, %v7584_v25  ;;  %v7810_v61 = vld [vmem:[#allocation3 + $0x70] sm:$0xff] }
 0x316   : > { %v7586_v60 = vpop.f32.mrf.mxu0  ;;  %v11125_v18 = vpop.f32.mrf.mxu1 }
 0x317   : > { %v15764_v27 = vadd.f32 %v7658_v9, %v15701_v41  ;;  %v7660_v36 = vadd.f32 %v7659_v10, %v7586_v60  ;;  %v7819_v60 = vld [vmem:[#allocation3 + $0xb8] sm:$0xff] }
 0x318   : > { %v7588_v52 = vpop.f32.mrf.mxu0  ;;  %v11126_v5 = vpop.f32.mrf.mxu1 }
 0x319   : > { %v15767_v16 = vadd.f32 %v7660_v36, %v15705_v35  ;;  %v7662_v12 = vadd.f32 %v7661_v32, %v7588_v52  ;;  %v7798_v32 = vld [vmem:[#allocation3 + $0x10] sm:$0xff]  ;;  %v11127_v34 = vadd.f32 %v11126_v5, %v11125_v18 }
 0x31a   : > { %v7590_v22 = vpop.f32.mrf.mxu0  ;;  %v11128_v3 = vpop.f32.mrf.mxu1 }
 0x31b   : > { %v15770_v48 = vadd.f32 %v7662_v12, %v15710_v19  ;;  %v7664_v59 = vadd.f32 %v7663_v30, %v7590_v22 }
 0x31c   : > { %v11312_v50 = vpop.f32.mrf.mxu0  ;;  %v11129_v20 = vpop.f32.mrf.mxu1 }
 0x31d   : > { %v15773_v41 = vadd.f32 %v7664_v59, %v15715_v21  ;;  %v7774_v10 = vadd.f32 %v11312_v50, %v11118_v49  ;;  %v11130_v6 = vadd.f32 %v11129_v20, %v11128_v3  ;;  %v11124_v21 = vadd.f32 %v11123_v56, %v11122_v33  ;;  %v7813_v56 = vld [vmem:[#allocation3 + $0x88] sm:$0xff]  ;;  %v15803_v20 = vld [vmem:[%s15991_s2] sm:$0x7] }
 0x31e   : > { %v7765_v55 = vpop.f32.mrf.mxu0  ;;  %v11131_v23 = vpop.f32.mrf.mxu1 }
 0x31f   : > { %v7828_v35 = vadd.f32 %v7804_v8, %v7774_v10  ;;  %v7766_v1 = vadd.f32 %v11112_v2, %v7765_v55  ;;  %v8827_v8 = vlaneseq }
 0x320   : > { %v11313_v42 = vpop.f32.mrf.mxu0  ;;  %v11132_v57 = vpop.f32.mrf.mxu1 }
 0x321   : > { %7852 = vst.msk [vmem:[#allocation3 + $0x40] sm:$0xff] %vm826_vm10, %v7828_v35  ;;  %v7822_v19 = vadd.f32 %v7798_v32, %v7766_v1  ;;  %v7777_v30 = vadd.f32 %v11313_v42, %v11121_v43  ;;  %v11133_v4 = vadd.f32 %v11132_v57, %v11131_v23  ;;  %v15791_v3 = vshrl.u32 %v8827_v8, 7 }
 0x322   : > { %v7768_v54 = vpop.f32.mrf.mxu0  ;;  %vm9038_vm11 = vcmp.lt.s32.totalorder %v8827_v8, 320 }
 0x323   : > { %7846 = vst.msk [vmem:[#allocation3 + $0x10] sm:$0xff] %vm826_vm10, %v7822_v19  ;;  %v7831_v37 = vadd.f32 %v7807_v14, %v7777_v30  ;;  %v7769_v0 = vadd.f32 %v11115_v39, %v7768_v54  ;;  %v8829_v32 = vsub.s32 0, %v15791_v3  ;;  %v8833_v39 = vsub.s32 1, %v15791_v3 }
 0x324   : > { %v11316_v58 = vpop.f32.mrf.mxu0 }
 0x325   : > { %7855 = vst.msk [vmem:[#allocation3 + $0x58] sm:$0xff] %vm826_vm10, %v7831_v37  ;;  %v7825_v15 = vadd.f32 %v7801_v28, %v7769_v0  ;;  %v7790_v63 = vadd.f32 %v11316_v58, %v11130_v6  ;;  %v15809_v14 = vrot.slane %v15803_v20, %v8829_v32  ;;  %v15815_v0 = vrot.slane %v15803_v20, %v8833_v39 }
 0x326   : > { %v7781_v7 = vpop.f32.mrf.mxu0 }
 0x327   : > { %7849 = vst.msk [vmem:[#allocation3 + $0x28] sm:$0xff] %vm826_vm10, %v7825_v15  ;;  %v7840_v51 = vadd.f32 %v7816_v31, %v7790_v63  ;;  %v7782_v29 = vadd.f32 %v11124_v21, %v7781_v7 }
 0x328   : > { %v11317_v25 = vpop.f32.mrf.mxu0 }
 0x329   : > { %7864 = vst.msk [vmem:[#allocation3 + $0xa0] sm:$0xff] %vm826_vm10, %v7840_v51  ;;  %v7834_v24 = vadd.f32 %v7810_v61, %v7782_v29  ;;  %v7793_v9 = vadd.f32 %v11317_v25, %v11133_v4 }
 0x32a   : > { %v7784_v33 = vpop.f32.mrf.mxu0 }
 0x32b   : > { %7858 = vst.msk [vmem:[#allocation3 + $0x70] sm:$0xff] %vm826_vm10, %v7834_v24  ;;  %v7843_v36 = vadd.f32 %v7819_v60, %v7793_v9  ;;  %v7785_v52 = vadd.f32 %v11127_v34, %v7784_v33 }
 0x32c   : > { %v8560_v49 = vpop.f32.mrf.mxu0 }
 0x32d   : > { %7867 = vst.msk [vmem:[#allocation3 + $0xb8] sm:$0xff] %vm826_vm10, %v7843_v36  ;;  %v7837_v12 = vadd.f32 %v7813_v56, %v7785_v52 }
 0x32e   : > { %v8562_v22 = vpop.f32.mrf.mxu0 }
 0x32f   : > { %7861 = vst.msk [vmem:[#allocation3 + $0x88] sm:$0xff] %vm826_vm10, %v7837_v12 }
 0x330   : > { %v8564_v18 = vpop.f32.mrf.mxu0 }
 0x332   : > { %v8566_v59 = vpop.f32.mrf.mxu0 }
 0x334   : > { %v8570_v50 = vpop.f32.mrf.mxu0 }
 0x336   : > { %v8572_v5 = vpop.f32.mrf.mxu0 }
 0x338   : > { %v8574_v2 = vpop.f32.mrf.mxu0 }
 0x33a   : > { %v15783_v43 = vpop.f32.mrf.mxu0 }
 0x33c   : > { %v15785_v10 = vpop.f32.mrf.mxu0 }
 0x33e   : > { %v15787_v55 = vpop.f32.mrf.mxu0 }
 0x340   : > { %v15793_v35 = vpop.f32.mrf.mxu0 }
 0x342   : > { %v15795_v1 = vpop.f32.mrf.mxu0  ;;  %v8487_v19 = vpop.f32.mrf.mxu1 }
 0x343   : > { %v8561_v6 = vadd.f32 %v8560_v49, %v8487_v19 }
 0x344   : > { %v15798_v42 = vpop.f32.mrf.mxu0  ;;  %v8489_v54 = vpop.f32.mrf.mxu1 }
 0x345   : > { %v8753_v21 = vadd.f32 %v8561_v6, %v15728_v11  ;;  %v8563_v37 = vadd.f32 %v8562_v22, %v8489_v54 }
 0x346   : > { %v15806_v30 = vpop.f32.mrf.mxu0  ;;  %v8491_v28 = vpop.f32.mrf.mxu1 }
 0x347   : > { %v8754_v57 = vadd.f32 %v8563_v37, %v15731_v47  ;;  %v8565_v15 = vadd.f32 %v8564_v18, %v8491_v28  ;;  %v8842_v63 = vadd.f32 %v15809_v14, %v8753_v21 }
 0x348   : > { %v15811_v23 = vpop.f32.mrf.mxu0  ;;  %v8493_v4 = vpop.f32.mrf.mxu1 }
 0x349   : > { %v8843_v7 = vadd.f32 %v15815_v0, %v8754_v57  ;;  %v8756_v11 = vadd.f32 %v8565_v15, %v15734_v46  ;;  %v8567_v34 = vadd.f32 %v8566_v59, %v8493_v4  ;;  %v9041_v24 = vmul.f32 %v8842_v63, %v8842_v63 }
 0x34a   : > { %v15817_v58 = vpop.f32.mrf.mxu0  ;;  %v8497_v51 = vpop.f32.mrf.mxu1 }
 0x34b   : > { %v10742_v47 = vpack.c.bf16 %v8843_v7, %v8842_v63  ;;  %v8845_v61 = vadd.f32 %v15809_v14, %v8756_v11  ;;  %v8757_v25 = vadd.f32 %v8567_v34, %v15737_v38  ;;  %v8571_v9 = vadd.f32 %v8570_v50, %v8497_v51 }
 0x34c   : > { %v15821_v31 = vpop.f32.mrf.mxu0  ;;  %v8499_v60 = vpop.f32.mrf.mxu1  ;;  %v9042_v49 = vmul.f32 %v8843_v7, %v8843_v7 }
 0x34d   : > { %8946 = vst [vmem:[%s15828_s29] sm:$0xff] %v10742_v47  ;;  %v8962_v46 = vadd.f32 %v8845_v61, %v8842_v63  ;;  %v9044_v36 = vmul.f32 %v8845_v61, %v8845_v61  ;;  %v8846_v52 = vadd.f32 %v15815_v0, %v8757_v25  ;;  %v8573_v56 = vadd.f32 %v8572_v5, %v8499_v60 }
 0x34e   : > { %v15830_v29 = vpop.f32.mrf.mxu0  ;;  %v8759_v12 = vadd.f32 %v8571_v9, %v15740_v26  ;;  %v8501_v22 = vpop.f32.mrf.mxu1 }
 0x34f   : > { %v9065_v59 = vadd.f32 %v9044_v36, %v9041_v24  ;;  %v10744_v38 = vpack.c.bf16 %v8846_v52, %v8845_v61  ;;  %v8975_v32 = vadd.f32 %v8846_v52, %v8843_v7  ;;  %v9045_v50 = vmul.f32 %v8846_v52, %v8846_v52 }
 0x350   : > { %v15834_v33 = vpop.f32.mrf.mxu0  ;;  %8783 = vst [vmem:[#allocation3 + $0x30] sm:$0xff] %v8759_v12  ;;  %v8848_v39 = vadd.f32 %v15809_v14, %v8759_v12  ;;  %v8760_v19 = vadd.f32 %v8573_v56, %v15743_v62  ;;  %v8575_v6 = vadd.f32 %v8574_v2, %v8501_v22  ;;  %v8503_v54 = vpop.f32.mrf.mxu1 }
 0x351   : > { %8948 = vst [vmem:[%s15828_s29 + $0xc] sm:$0xff] %v10744_v38  ;;  %v9078_v5 = vadd.f32 %v9045_v50, %v9042_v49  ;;  %v8577_v26 = vadd.f32 %v15783_v43, %v8503_v54 }
 0x352   : > { %v15839_v18 = vpop.f32.mrf.mxu0  ;;  %v8963_v37 = vadd.f32 %v8962_v46, %v8848_v39  ;;  %v9047_v28 = vmul.f32 %v8848_v39, %v8848_v39  ;;  %8784 = vst [vmem:[#allocation3 + $0x38] sm:$0xff] %v8760_v19  ;;  %v8849_v57 = vadd.f32 %v15815_v0, %v8760_v19  ;;  %v8762_v15 = vadd.f32 %v8575_v6, %v15746_v45  ;;  %v8507_v63 = vpop.f32.mrf.mxu1 }
 0x353   : > { %v8763_v62 = vadd.f32 %v8577_v26, %v15749_v17  ;;  %v8581_v2 = vadd.f32 %v15785_v10, %v8507_v63 }
 0x354   : > { %v15843_v21 = vpop.f32.mrf.mxu0  ;;  %v9066_v7 = vadd.f32 %v9065_v59, %v9047_v28  ;;  %v10746_v11 = vpack.c.bf16 %v8849_v57, %v8848_v39  ;;  %v8976_v34 = vadd.f32 %v8975_v32, %v8849_v57  ;;  %v9048_v51 = vmul.f32 %v8849_v57, %v8849_v57  ;;  %8786 = vst [vmem:[#allocation3 + $0x48] sm:$0xff] %v8762_v15  ;;  %v8509_v43 = vpop.f32.mrf.mxu1 }
 0x355   : > { %v8851_v61 = vadd.f32 %v15809_v14, %v8762_v15  ;;  %8787 = vst [vmem:[#allocation3 + $0x50] sm:$0xff] %v8763_v62  ;;  %v8852_v45 = vadd.f32 %v15815_v0, %v8763_v62  ;;  %v8765_v25 = vadd.f32 %v8581_v2, %v15752_v44  ;;  %v8583_v24 = vadd.f32 %v15787_v55, %v8509_v43 }
 0x356   : > { %v15849_v4 = vpop.f32.mrf.mxu0  ;;  %8950 = vst [vmem:[%s15828_s29 + $0x18] sm:$0xff] %v10746_v11  ;;  %v9079_v17 = vadd.f32 %v9078_v5, %v9048_v51  ;;  %v8511_v10 = vpop.f32.mrf.mxu1 }
 0x357   : > { %v8964_v60 = vadd.f32 %v8963_v37, %v8851_v61  ;;  %v9050_v46 = vmul.f32 %v8851_v61, %v8851_v61  ;;  %v10748_v36 = vpack.c.bf16 %v8852_v45, %v8851_v61  ;;  %v8977_v52 = vadd.f32 %v8976_v34, %v8852_v45  ;;  %8789 = vst [vmem:[#allocation3 + $0x60] sm:$0xff] %v8765_v25 }
 0x358   : > { %v15853_v47 = vpop.f32.mrf.mxu0  ;;  %v9051_v56 = vmul.f32 %v8852_v45, %v8852_v45  ;;  %v8854_v49 = vadd.f32 %v15809_v14, %v8765_v25  ;;  %v8766_v12 = vadd.f32 %v8583_v24, %v15755_v13  ;;  %v8585_v44 = vadd.f32 %v15793_v35, %v8511_v10  ;;  %v8513_v22 = vpop.f32.mrf.mxu1 }
 0x359   : > { %v9067_v59 = vadd.f32 %v9066_v7, %v9050_v46  ;;  %8952 = vst [vmem:[%s15828_s29 + $0x24] sm:$0xff] %v10748_v36  ;;  %v8587_v38 = vadd.f32 %v15795_v1, %v8513_v22  ;;  %v11166_v10 = vadd.f32 %v15849_v4, %v15843_v21  ;;  %v12132_v46 = vmov 1966171168  }
 0x35a   : > { %v15860_v9 = vpop.f32.mrf.mxu0  ;;  %v9080_v32 = vadd.f32 %v9079_v17, %v9051_v56  ;;  %v8965_v50 = vadd.f32 %v8964_v60, %v8854_v49  ;;  %v9053_v39 = vmul.f32 %v8854_v49, %v8854_v49  ;;  %8790 = vst [vmem:[#allocation3 + $0x68] sm:$0xff] %v8766_v12  ;;  %v8855_v19 = vadd.f32 %v15815_v0, %v8766_v12  ;;  %v8517_v6 = vpop.f32.mrf.mxu1 }
 0x35b   : > { %v8768_v13 = vadd.f32 %v8585_v44, %v15758_v53  ;;  %v8769_v35 = vadd.f32 %v8587_v38, %v15761_v40  ;;  %v8591_v5 = vadd.f32 %v15798_v42, %v8517_v6  ;;  %v15891_v36 = vunpack.c.l.s4 %v12132_v46 }
 0x35c   : > { %v15865_v55 = vpop.f32.mrf.mxu0  ;;  %v9068_v26 = vadd.f32 %v9067_v59, %v9053_v39  ;;  %v10750_v37 = vpack.c.bf16 %v8855_v19, %v8854_v49  ;;  %v8978_v28 = vadd.f32 %v8977_v52, %v8855_v19  ;;  %v9054_v1 = vmul.f32 %v8855_v19, %v8855_v19  ;;  %v8519_v57 = vpop.f32.mrf.mxu1 }
 0x35d   : > { %8792 = vst [vmem:[#allocation3 + $0x78] sm:$0xff] %v8768_v13  ;;  %v8857_v63 = vadd.f32 %v15809_v14, %v8768_v13  ;;  %8793 = vst [vmem:[#allocation3 + $0x80] sm:$0xff] %v8769_v35  ;;  %v8858_v62 = vadd.f32 %v15815_v0, %v8769_v35  ;;  %v8771_v2 = vadd.f32 %v8591_v5, %v15764_v27  ;;  %v8837_v5 = vsub.s32 2, %v15791_v3 }
 0x35e   : > { %v15870_v54 = vpop.f32.mrf.mxu0  ;;  %v8593_v53 = vadd.f32 %v15806_v30, %v8519_v57  ;;  %8954 = vst [vmem:[%s15828_s29 + $0x30] sm:$0xff] %v10750_v37  ;;  %v9081_v40 = vadd.f32 %v9080_v32, %v9054_v1  ;;  %v8521_v42 = vpop.f32.mrf.mxu1  ;;  %v11160_v44 = vadd.f32 %v15830_v29, %v15821_v31  ;;  %v11169_v35 = vadd.f32 %v15860_v9, %v15853_v47  ;;  %v8740_v9 = vld [vmem:[#allocation3 + $0x58] sm:$0xff] }
 0x35f   : > { %v8966_v11 = vadd.f32 %v8965_v50, %v8857_v63  ;;  %v9056_v34 = vmul.f32 %v8857_v63, %v8857_v63  ;;  %v10752_v51 = vpack.c.bf16 %v8858_v62, %v8857_v63  ;;  %v8979_v43 = vadd.f32 %v8978_v28, %v8858_v62  ;;  %8795 = vst [vmem:[#allocation3 + $0x90] sm:$0xff] %v8771_v2  ;;  %v8737_v50 = vld [vmem:[#allocation3 + $0x40] sm:$0xff] }
 0x360   : > { %v15875_v15 = vpop.f32.mrf.mxu0  ;;  %v9057_v61 = vmul.f32 %v8858_v62, %v8858_v62  ;;  %v8860_v45 = vadd.f32 %v15809_v14, %v8771_v2  ;;  %v8772_v25 = vadd.f32 %v8593_v53, %v15767_v16  ;;  %v8595_v27 = vadd.f32 %v15811_v23, %v8521_v42  ;;  %v8523_v24 = vpop.f32.mrf.mxu1 }
 0x361   : > { %v9069_v17 = vadd.f32 %v9068_v26, %v9056_v34  ;;  %8956 = vst [vmem:[%s15828_s29 + $0x3c] sm:$0xff] %v10752_v51  ;;  %v8597_v60 = vadd.f32 %v15817_v58, %v8523_v24  ;;  %v15909_v34 = vrot.slane %v15803_v20, %v8837_v5  ;;  %v11172_v51 = vadd.f32 %v15870_v54, %v15865_v55  ;;  %v8749_v55 = vld [vmem:[#allocation3 + $0xa0] sm:$0xff] }
 0x362   : > { %v15882_v7 = vpop.f32.mrf.mxu0  ;;  %v9082_v52 = vadd.f32 %v9081_v40, %v9057_v61  ;;  %v8967_v56 = vadd.f32 %v8966_v11, %v8860_v45  ;;  %v9059_v49 = vmul.f32 %v8860_v45, %v8860_v45  ;;  %8796 = vst [vmem:[#allocation3 + $0x98] sm:$0xff] %v8772_v25  ;;  %v8861_v16 = vadd.f32 %v15815_v0, %v8772_v25  ;;  %v11328_v12 = vpop.f32.mrf.mxu1  ;;  %v8734_v61 = vld [vmem:[#allocation3 + $0x28] sm:$0xff] }
 0x363   : > { %v8774_v22 = vadd.f32 %v8595_v27, %v15770_v48  ;;  %v8775_v21 = vadd.f32 %v8597_v60, %v15773_v41  ;;  %v8707_v58 = vadd.f32 %v11328_v12, %v11166_v10  ;;  %v11163_v48 = vadd.f32 %v15839_v18, %v15834_v33 }
 0x364   : > { %v11176_v30 = vpop.f32.mrf.mxu0  ;;  %v9070_v4 = vadd.f32 %v9069_v17, %v9059_v49  ;;  %v10754_v59 = vpack.c.bf16 %v8861_v16, %v8860_v45  ;;  %v8980_v38 = vadd.f32 %v8979_v43, %v8861_v16  ;;  %v9060_v32 = vmul.f32 %v8861_v16, %v8861_v16  ;;  %v8698_v39 = vpop.f32.mrf.mxu1 }
 0x365   : > { %8798 = vst [vmem:[#allocation3 + $0xa8] sm:$0xff] %v8774_v22  ;;  %v8863_v19 = vadd.f32 %v15809_v14, %v8774_v22  ;;  %8799 = vst [vmem:[#allocation3 + $0xb0] sm:$0xff] %v8775_v21  ;;  %v8864_v6 = vadd.f32 %v15815_v0, %v8775_v21  ;;  %v8761_v13 = vadd.f32 %v8737_v50, %v8707_v58  ;;  %v8731_v0 = vld [vmem:[#allocation3 + $0x10] sm:$0xff]  ;;  %v9015_v49 = vunpack.c.0.s8 %v15891_v36 }
 0x366   : > { %v11177_v23 = vpop.f32.mrf.mxu0  ;;  %v8699_v31 = vadd.f32 %v11160_v44, %v8698_v39  ;;  %8958 = vst [vmem:[%s15828_s29 + $0x48] sm:$0xff] %v10754_v59  ;;  %v9083_v41 = vadd.f32 %v9082_v52, %v9060_v32  ;;  %v11329_v26 = vpop.f32.mrf.mxu1 }
 0x367   : > { %v8968_v37 = vadd.f32 %v8967_v56, %v8863_v19  ;;  %v9062_v14 = vmul.f32 %v8863_v19, %v8863_v19  ;;  %v10756_v28 = vpack.c.bf16 %v8864_v6, %v8863_v19  ;;  %v8981_v1 = vadd.f32 %v8980_v38, %v8864_v6  ;;  %8785 = vst.msk [vmem:[#allocation3 + $0x40] sm:$0xff] %vm826_vm10, %v8761_v13 }
 0x368   : > { %v11179_v29 = vpop.f32.mrf.mxu0  ;;  %v9063_v57 = vmul.f32 %v8864_v6, %v8864_v6  ;;  %v8755_v63 = vadd.f32 %v8731_v0, %v8699_v31  ;;  %v8710_v62 = vadd.f32 %v11329_v26, %v11169_v35  ;;  %v8701_v33 = vpop.f32.mrf.mxu1  ;;  %v11178_v18 = vadd.f32 %v11177_v23, %v11176_v30 }
 0x369   : > { %v8969_v2 = vrot.slane %v8968_v37, 4  ;;  %v9071_v53 = vadd.f32 %v9070_v4, %v9062_v14  ;;  %8960 = vst [vmem:[%s15828_s29 + $0x54] sm:$0xff] %v10756_v28  ;;  %v8982_v47 = vrot.slane %v8981_v1, 4  ;;  %v8702_v40 = vadd.f32 %v11163_v48, %v8701_v33  ;;  %v8743_v4 = vld [vmem:[#allocation3 + $0x70] sm:$0xff] }
 0x36a   : > { %v11180_v42 = vpop.f32.mrf.mxu0  ;;  %v9084_v11 = vadd.f32 %v9083_v41, %v9063_v57  ;;  %8779 = vst.msk [vmem:[#allocation3 + $0x10] sm:$0xff] %vm826_vm10, %v8755_v63  ;;  %v8764_v43 = vadd.f32 %v8740_v9, %v8710_v62  ;;  %v11332_v45 = vpop.f32.mrf.mxu1  ;;  %v15920_v31 = vsub.s32 %v9015_v49, %v15791_v3  ;;  %v8752_v41 = vld [vmem:[#allocation3 + $0xb8] sm:$0xff]  ;;  %v11175_v3 = vadd.f32 %v15882_v7, %v15875_v15 }
 0x36b   : > { %v8970_v25 = vadd.f32 %v8969_v2, %v8968_v37  ;;  %v9072_v27 = vrot.slane %v9071_v53, 4  ;;  %v8983_v24 = vadd.f32 %v8982_v47, %v8981_v1  ;;  %v8758_v30 = vadd.f32 %v8734_v61, %v8702_v40  ;;  %v8746_v61 = vld [vmem:[#allocation3 + $0x88] sm:$0xff] }
 0x36c   : > { %v9085_v17 = vrot.slane %v9084_v11, 4  ;;  %8788 = vst.msk [vmem:[#allocation3 + $0x58] sm:$0xff] %vm826_vm10, %v8764_v43  ;;  %v8723_v10 = vadd.f32 %v11332_v45, %v11178_v18  ;;  %v8714_v60 = vpop.f32.mrf.mxu1  ;;  %v11181_v46 = vadd.f32 %v11180_v42, %v11179_v29 }
 0x36d   : > { %v8971_v20 = vrot.slane %v8970_v25, 2  ;;  %v9073_v52 = vadd.f32 %v9072_v27, %v9071_v53  ;;  %v8984_v56 = vrot.slane %v8983_v24, 2  ;;  %8782 = vst.msk [vmem:[#allocation3 + $0x28] sm:$0xff] %vm826_vm10, %v8758_v30  ;;  %v8715_v54 = vadd.f32 %v11172_v51, %v8714_v60 }
 0x36e   : > { %v9086_v16 = vadd.f32 %v9085_v17, %v9084_v11  ;;  %v8809_v12 = vld [vmem:[#allocation3 + $0x40] sm:$0xff]  ;;  %v8773_v23 = vadd.f32 %v8749_v55, %v8723_v10  ;;  %v11333_v59 = vpop.f32.mrf.mxu1 }
 0x36f   : > { %v8972_v44 = vadd.f32 %v8971_v20, %v8970_v25  ;;  %v9074_v22 = vrot.slane %v9073_v52, 2  ;;  %v8985_v21 = vadd.f32 %v8984_v56, %v8983_v24  ;;  %v8850_v58 = vadd.f32 %v15909_v34, %v8809_v12 }
 0x370   : > { %v9087_v38 = vrot.slane %v9086_v16, 2  ;;  %8797 = vst.msk [vmem:[#allocation3 + $0xa0] sm:$0xff] %vm826_vm10, %v8773_v23  ;;  %v8767_v32 = vadd.f32 %v8743_v4, %v8715_v54  ;;  %v8726_v50 = vadd.f32 %v11333_v59, %v11181_v46  ;;  %v8717_v28 = vpop.f32.mrf.mxu1 }
 0x371   : > { %v8973_v39 = vrot.slane %v8972_v44, 1  ;;  %v9075_v19 = vadd.f32 %v9074_v22, %v9073_v52  ;;  %v8986_v6 = vrot.slane %v8985_v21, 1  ;;  %v10747_v36 = vpack.c.bf16 %v8850_v58, %v8850_v58  ;;  %v8803_v13 = vld [vmem:[#allocation3 + $0x10] sm:$0xff] }
 0x372   : > { %v9088_v29 = vadd.f32 %v9087_v38, %v9086_v16  ;;  %v8844_v48 = vadd.f32 %v15909_v34, %v8803_v13  ;;  %8791 = vst.msk [vmem:[#allocation3 + $0x70] sm:$0xff] %vm826_vm10, %v8767_v32  ;;  %v8776_v14 = vadd.f32 %v8752_v41, %v8726_v50  ;;  %v8718_v47 = vadd.f32 %v11175_v3, %v8717_v28 }
 0x373   : > { %v8974_v35 = vadd.f32 %v8973_v39, %v8972_v44  ;;  %v9076_v5 = vrot.slane %v9075_v19, 1  ;;  %v8987_v26 = vadd.f32 %v8986_v6, %v8985_v21  ;;  %8951 = vst.msk [vmem:[%s15828_s29 + $0x20] sm:$0xf] %vm253_vm0, %v10747_v36  ;;  %v8812_v37 = vld [vmem:[#allocation3 + $0x58] sm:$0xff]  ;;  %v9049_v40 = vmul.f32 %v8850_v58, %v8850_v58 }
 0x374   : > { %v9089_v1 = vrot.slane %v9088_v29, 1  ;;  %v10743_v0 = vpack.c.bf16 %v8844_v48, %v8844_v48  ;;  %v8806_v57 = vld [vmem:[#allocation3 + $0x28] sm:$0xff]  ;;  %v8853_v33 = vadd.f32 %v15909_v34, %v8812_v37  ;;  %8800 = vst.msk [vmem:[#allocation3 + $0xb8] sm:$0xff] %vm826_vm10, %v8776_v14  ;;  %v9043_v2 = vmul.f32 %v8844_v48, %v8844_v48 }
 0x375   : > { %v9077_v63 = vadd.f32 %v9076_v5, %v9075_v19  ;;  %v9012_v62 = vcombine.low %v8974_v35, %v8987_v26  ;;  %v8847_v53 = vadd.f32 %v15909_v34, %v8806_v57  ;;  %v8988_v11 = vsel %vm826_vm10, %v8844_v48, 0.0 }
 0x376   : > { %v9090_v18 = vadd.f32 %v9089_v1, %v9088_v29  ;;  %8947 = vst.msk [vmem:[%s15828_s29 + $0x8] sm:$0xf] %vm253_vm0, %v10743_v0  ;;  %v10749_v15 = vpack.c.bf16 %v8853_v33, %v8853_v33  ;;  %v8770_v30 = vadd.f32 %v8746_v61, %v8718_v47  ;;  %v8991_v10 = vsel %vm826_vm10, %v8850_v58, 0.0 }
 0x377   : > { %v15934_v9 = vrot.slane %v9012_v62, %v15920_v31  ;;  %v8821_v7 = vld [vmem:[#allocation3 + $0xa0] sm:$0xff]  ;;  %v10745_v51 = vpack.c.bf16 %v8847_v53, %v8847_v53  ;;  %v8989_v43 = vsel %vm826_vm10, %v8847_v53, 0.0  ;;  %v9046_v25 = vmul.f32 %v8847_v53, %v8847_v53 }
 0x378   : > { %v9115_v42 = vcombine.low %v9077_v63, %v9090_v18  ;;  %8953 = vst.msk [vmem:[%s15828_s29 + $0x2c] sm:$0xf] %vm253_vm0, %v10749_v15  ;;  %v8990_v45 = vadd.f32 %v8989_v43, %v8988_v11  ;;  %v8862_v27 = vadd.f32 %v15909_v34, %v8821_v7  ;;  %v9091_v60 = vsel %vm826_vm10, %v9043_v2, 0.0 }
 0x379   : > { %v8815_v24 = vld [vmem:[#allocation3 + $0x70] sm:$0xff]  ;;  %8949 = vst.msk [vmem:[%s15828_s29 + $0x14] sm:$0xf] %vm253_vm0, %v10745_v51  ;;  %v9052_v20 = vmul.f32 %v8853_v33, %v8853_v33  ;;  %v9092_v56 = vsel %vm826_vm10, %v9046_v25, 0.0  ;;  %v9094_v12 = vsel %vm826_vm10, %v9049_v40, 0.0  ;;  %v8993_v23 = vsel %vm826_vm10, %v8853_v33, 0.0 }
 0x37a   : > { %v15942_v17 = vrot.slane %v9115_v42, %v15920_v31  ;;  %v8856_v46 = vadd.f32 %v15909_v34, %v8815_v24  ;;  %v8992_v52 = vadd.f32 %v8991_v10, %v8990_v45  ;;  %v10755_v55 = vpack.c.bf16 %v8862_v27, %v8862_v27  ;;  %8794 = vst.msk [vmem:[#allocation3 + $0x88] sm:$0xff] %vm826_vm10, %v8770_v30 }
 0x37b   : > { %v9093_v54 = vadd.f32 %v9092_v56, %v9091_v60  ;;  %v8824_v16 = vld [vmem:[#allocation3 + $0xb8] sm:$0xff]  ;;  %v9096_v58 = vsel %vm826_vm10, %v9052_v20, 0.0  ;;  %v9061_v13 = vmul.f32 %v8862_v27, %v8862_v27  ;;  %v8999_v5 = vsel %vm826_vm10, %v8862_v27, 0.0 }
 0x37c   : > { %v10751_v49 = vpack.c.bf16 %v8856_v46, %v8856_v46  ;;  %8959 = vst.msk [vmem:[%s15828_s29 + $0x50] sm:$0xf] %vm253_vm0, %v10755_v55  ;;  %v8865_v44 = vadd.f32 %v15909_v34, %v8824_v16  ;;  %v8994_v21 = vadd.f32 %v8993_v23, %v8992_v52  ;;  %v9055_v4 = vmul.f32 %v8856_v46, %v8856_v46 }
 0x37d   : > { %v9095_v22 = vadd.f32 %v9094_v12, %v9093_v54  ;;  %v8995_v32 = vsel %vm826_vm10, %v8856_v46, 0.0  ;;  %v9102_v1 = vsel %vm826_vm10, %v9061_v13, 0.0 }
 0x37e   : > { %8955 = vst.msk [vmem:[%s15828_s29 + $0x38] sm:$0xf] %vm253_vm0, %v10751_v49  ;;  %v10757_v59 = vpack.c.bf16 %v8865_v44, %v8865_v44  ;;  %v8996_v50 = vadd.f32 %v8995_v32, %v8994_v21  ;;  %v9098_v19 = vsel %vm826_vm10, %v9055_v4, 0.0  ;;  %v9064_v26 = vmul.f32 %v8865_v44, %v8865_v44 }
 0x37f   : > { %v9097_v38 = vadd.f32 %v9096_v58, %v9095_v22 }
 0x380   : > { %8961 = vst.msk [vmem:[%s15828_s29 + $0x5c] sm:$0xf] %vm253_vm0, %v10757_v59  ;;  %v9104_v57 = vsel %vm826_vm10, %v9064_v26, 0.0 }
 0x381   : > { %v8818_v39 = vld [vmem:[#allocation3 + $0x88] sm:$0xff]  ;;  %v9099_v36 = vadd.f32 %v9098_v19, %v9097_v38 }
 0x382   : > { %v8859_v6 = vadd.f32 %v15909_v34, %v8818_v39  ;;  %v9001_v34 = vsel %vm826_vm10, %v8865_v44, 0.0 }
 0x384   : > { %v10753_v29 = vpack.c.bf16 %v8859_v6, %v8859_v6  ;;  %v8997_v48 = vsel %vm826_vm10, %v8859_v6, 0.0  ;;  %v9058_v41 = vmul.f32 %v8859_v6, %v8859_v6 }
 0x385   : > { %v8998_v35 = vadd.f32 %v8997_v48, %v8996_v50 }
 0x386   : > { %8957 = vst.msk [vmem:[%s15828_s29 + $0x44] sm:$0xf] %vm253_vm0, %v10753_v29  ;;  %v9100_v37 = vsel %vm826_vm10, %v9058_v41, 0.0 }
 0x387   : > { %v9000_v14 = vadd.f32 %v8999_v5, %v8998_v35  ;;  %v9101_v28 = vadd.f32 %v9100_v37, %v9099_v36 }
 0x389   : > { %v9002_v0 = vadd.f32 %v9001_v34, %v9000_v14  ;;  %v9103_v3 = vadd.f32 %v9102_v1, %v9101_v28 }
 0x38b   : > { %v9003_v63 = vrot.slane %v9002_v0, 4  ;;  %v9105_v62 = vadd.f32 %v9104_v57, %v9103_v3 }
 0x38d   : > { %v9004_v33 = vadd.f32 %v9003_v63, %v9002_v0  ;;  %v9106_v18 = vrot.slane %v9105_v62, 4 }
 0x38f   : > { %v9005_v2 = vrot.slane %v9004_v33, 2  ;;  %v9107_v53 = vadd.f32 %v9106_v18, %v9105_v62 }
 0x391   : > { %v9006_v47 = vadd.f32 %v9005_v2, %v9004_v33  ;;  %v9108_v40 = vrot.slane %v9107_v53, 2 }
 0x393   : > { %v9007_v15 = vrot.slane %v9006_v47, 1  ;;  %v9109_v7 = vadd.f32 %v9108_v40, %v9107_v53 }
 0x395   : > { %v9008_v42 = vadd.f32 %v9007_v15, %v9006_v47  ;;  %v9110_v11 = vrot.slane %v9109_v7, 1 }
 0x397   : > { %v9026_v51 = vrot.slane %v9008_v42, %v15920_v31  ;;  %v9111_v43 = vadd.f32 %v9110_v11, %v9109_v7 }
 0x399   : > { %v9027_v61 = vcombine.low %v15934_v9, %v9026_v51  ;;  %v9129_v45 = vrot.slane %v9111_v43, %v15920_v31 }
 0x39b   : > { %v9034_v25 = vrot.slane %v9027_v61, %v15920_v31  ;;  %v9130_v27 = vcombine.low %v15942_v17, %v9129_v45 }
 0x39d   : > { %9040 = vst.msk [vmem:[%s244_s8] sm:$0x7] %vm9038_vm11, %v9034_v25  ;;  %v9137_v24 = vrot.slane %v9130_v27, %v15920_v31 }
 0x39f   : > { %9139 = vst.msk [vmem:[%s248_s28] sm:$0x7] %vm9038_vm11, %v9137_v24 }
 0x3a0 PF: > { %s16_s18 = sadd.s32 1, %s12129_s18  }
 0x3a1   : > { %p13_p5 = scmp.ge.s32.totalorder %s16_s18, 4  }
 0x3a3   :  { %15 = sbr.rel (!%p13_p5) target bundleno = 1 (0x1), region = 94 }

</bundles_post_ra>
